<compile_context>
chip_gen: v7x
topology: tpu7x:2x2x1
jax: 0.10.0
libtpu: 0.0.40
codegen_flags: <defaults>
</compile_context>

<pallas_src>
import jax
import jax.numpy as jnp
from jax.experimental import pallas as pl
from jax.experimental.pallas import tpu as pltpu


# ----------------------------------------------------------------------------
# Fused Pallas kernel: conv -> relu -> conv -> relu -> conv -> relu -> conv
# One grid step = one batch element; all activations stay in VMEM.
# ----------------------------------------------------------------------------
def _fused_convnet_kernel(x_ref, w0, b0, w1, b1, w2, b2, w3, b3, o_ref):
    # x_ref : (H, W, C_in)      one batch element (squeezed batch block)
    # wi    : (9*Cin_i, Cout_i) im2col-flattened weights, rows ordered (dy, dx, cin)
    # bi    : (1, Cout_i)       bias
    # o_ref : (H, W, C_out)

    def layer(a, w_ref, b_ref, relu):
        H, W, c_in = a.shape
        c_out = w_ref.shape[-1]
        k = 9 * c_in

        # --- circular 'same' padding (halo) built in-kernel ------------------
        # rows (leading, untiled axis) then cols (second-minor axis)
        ap = jnp.concatenate([a[H - 1:H], a, a[0:1]], axis=0)            # (H+2, W,   C)
        ap = jnp.concatenate([ap[:, W - 1:W], ap, ap[:, 0:1]], axis=1)   # (H+2, W+2, C)

        # --- im2col: 9 shifted taps packed along lanes -> (H*W, 9*Cin) -------
        taps = [
            ap[dy:dy + H, dx:dx + W, :].reshape(H * W, c_in)
            for dy in range(3) for dx in range(3)
        ]
        patches = jnp.concatenate(taps, axis=-1)                         # (H*W, 9*Cin)

        # --- single MXU GEMM over the full K = 9*Cin contraction -------------
        acc = jnp.dot(patches, w_ref[...],
                      preferred_element_type=jnp.float32)                # (H*W, Cout)
        acc = acc + b_ref[...]                                           # (1, Cout) bcast
        if relu:
            acc = jnp.maximum(acc, 0.0)
        assert k == w_ref.shape[0]
        return acc.reshape(H, W, c_out)

    a = x_ref[...]                       # (H, W, C_in)
    a = layer(a, w0, b0, relu=True)
    a = layer(a, w1, b1, relu=True)
    a = layer(a, w2, b2, relu=True)
    a = layer(a, w3, b3, relu=False)
    o_ref[...] = a.astype(o_ref.dtype)


# ----------------------------------------------------------------------------
# Wrapper: one pallas_call for the whole ConvNet forward
# ----------------------------------------------------------------------------
def convnet_forward(x, params):
    B, H, W, c_in = x.shape
    c_out = params["w3"].shape[-1]

    # Flatten weights to (9*Cin, Cout) (row index = (dy*3 + dx)*Cin + cin, matching
    # the in-kernel tap order) and biases to (1, Cout).  These reshapes are free.
    flat_args = []
    for i in range(4):
        w = params[f"w{i}"]
        kh, kw, ci, co = w.shape
        flat_args.append(w.reshape(kh * kw * ci, co))
        flat_args.append(params[f"b{i}"].reshape(1, co))

    full_vmem = pl.BlockSpec(memory_space=pltpu.MemorySpace.VMEM)   # whole-array params
    batch_in = pl.BlockSpec((None, H, W, c_in), lambda b: (b, 0, 0, 0))
    batch_out = pl.BlockSpec((None, H, W, c_out), lambda b: (b, 0, 0, 0))

    return pl.pallas_call(
        _fused_convnet_kernel,
        out_shape=jax.ShapeDtypeStruct((B, H, W, c_out), jnp.float32),
        grid=(B,),
        in_specs=[batch_in] + [full_vmem] * 8,
        out_specs=batch_out,
        compiler_params=pltpu.CompilerParams(
            dimension_semantics=("parallel",)),
    )(x, *flat_args)


# ----------------------------------------------------------------------------
# Deterministic parameter init (mimics torch Conv2d default uniform bounds)
# ----------------------------------------------------------------------------
def init_params(key, in_features, hidden_features, kernel_size=3):
    shapes = [
        (in_features, hidden_features),
        (hidden_features, hidden_features),
        (hidden_features, hidden_features),
        (hidden_features, in_features),
    ]
    params = {}
    for i, (cin, cout) in enumerate(shapes):
        key, kw, kb = jax.random.split(key, 3)
        fan_in = cin * kernel_size * kernel_size
        bound = 1.0 / jnp.sqrt(fan_in)
        # weights stored in HWIO layout (kH, kW, Cin, Cout)
        params[f"w{i}"] = jax.random.uniform(
            kw, (kernel_size, kernel_size, cin, cout),
            minval=-bound, maxval=bound, dtype=jnp.float32)
        params[f"b{i}"] = jax.random.uniform(
            kb, (cout,), minval=-bound, maxval=bound, dtype=jnp.float32)
    return params


# ----------------------------------------------------------------------------
# Plain-JAX reference (for correctness check)
# ----------------------------------------------------------------------------
def _ref_layer(x, w, b, apply_relu):
    xp = jnp.pad(x, ((0, 0), (1, 1), (1, 1), (0, 0)), mode="wrap")
    y = jax.lax.conv_general_dilated(
        xp, w, window_strides=(1, 1), padding="VALID",
        dimension_numbers=("NHWC", "HWIO", "NHWC")) + b
    return jnp.maximum(y, 0.0) if apply_relu else y


def convnet_reference(x, params):
    h = _ref_layer(x, params["w0"], params["b0"], True)
    h = _ref_layer(h, params["w1"], params["b1"], True)
    h = _ref_layer(h, params["w2"], params["b2"], True)
    return _ref_layer(h, params["w3"], params["b3"], False)


if __name__ == "__main__":
    B, H, W = 2, 16, 16
    in_features, hidden_features = 4, 32

    key = jax.random.PRNGKey(0)
    key, kx = jax.random.split(key)
    x = jax.random.normal(kx, (B, H, W, in_features), dtype=jnp.float32)

    params = init_params(key, in_features, hidden_features)

    out = jax.block_until_ready(convnet_forward(x, params))
    ref = jax.block_until_ready(convnet_reference(x, params))

    assert out.shape == (B, H, W, in_features)
    assert jnp.allclose(out, ref, rtol=1e-4, atol=1e-4), "mismatch vs reference"

    print("KERNEL_OK")
</pallas_src>

<mosaic_0001>
module attributes {stable_mosaic.version = 11 : i64} {
  func.func @_fused_convnet_kernel(%arg0: i32, %arg1: memref<1x16x16x4xf32, #tpu.memory_space<vmem>>, %arg2: memref<36x32xf32, #tpu.memory_space<vmem>>, %arg3: memref<1x32xf32, #tpu.memory_space<vmem>>, %arg4: memref<288x32xf32, #tpu.memory_space<vmem>>, %arg5: memref<1x32xf32, #tpu.memory_space<vmem>>, %arg6: memref<288x32xf32, #tpu.memory_space<vmem>>, %arg7: memref<1x32xf32, #tpu.memory_space<vmem>>, %arg8: memref<288x4xf32, #tpu.memory_space<vmem>>, %arg9: memref<1x4xf32, #tpu.memory_space<vmem>>, %arg10: memref<1x16x16x4xf32, #tpu.memory_space<vmem>>) attributes {dimension_semantics = [#tpu.dimension_semantics<parallel>], iteration_bounds = array<i64: 2>, scalar_prefetch = 0 : i64, scratch_operands = 0 : i64, tpu.core_type = #tpu.core_type<tc>, window_params = [{transform_indices = @transform_0, window_bounds = array<i64: 1, 16, 16, 4>}, {pipeline_mode = #tpu.pipeline_mode<synchronous>, transform_indices = @transform_1, window_bounds = array<i64: 36, 32>}, {pipeline_mode = #tpu.pipeline_mode<synchronous>, transform_indices = @transform_2, window_bounds = array<i64: 1, 32>}, {pipeline_mode = #tpu.pipeline_mode<synchronous>, transform_indices = @transform_3, window_bounds = array<i64: 288, 32>}, {pipeline_mode = #tpu.pipeline_mode<synchronous>, transform_indices = @transform_4, window_bounds = array<i64: 1, 32>}, {pipeline_mode = #tpu.pipeline_mode<synchronous>, transform_indices = @transform_5, window_bounds = array<i64: 288, 32>}, {pipeline_mode = #tpu.pipeline_mode<synchronous>, transform_indices = @transform_6, window_bounds = array<i64: 1, 32>}, {pipeline_mode = #tpu.pipeline_mode<synchronous>, transform_indices = @transform_7, window_bounds = array<i64: 288, 4>}, {pipeline_mode = #tpu.pipeline_mode<synchronous>, transform_indices = @transform_8, window_bounds = array<i64: 1, 4>}, {transform_indices = @transform_9, window_bounds = array<i64: 1, 16, 16, 4>}]} {
    %c0 = arith.constant 0 : index
    %c0_0 = arith.constant 0 : index
    %c0_1 = arith.constant 0 : index
    %c0_2 = arith.constant 0 : index
    %0 = vector.load %arg1[%c0, %c0_0, %c0_1, %c0_2] : memref<1x16x16x4xf32, #tpu.memory_space<vmem>>, vector<1x16x16x4xf32>
    %1 = vector.shape_cast %0 : vector<1x16x16x4xf32> to vector<16x16x4xf32>
    %2 = vector.extract_strided_slice %1 {offsets = [15, 0, 0], sizes = [1, 16, 4], strides = [1, 1, 1]} : vector<16x16x4xf32> to vector<1x16x4xf32>
    %3 = vector.extract_strided_slice %1 {offsets = [0, 0, 0], sizes = [1, 16, 4], strides = [1, 1, 1]} : vector<16x16x4xf32> to vector<1x16x4xf32>
    %4 = tpu.concatenate %2, %1, %3 in 0 : vector<1x16x4xf32>, vector<16x16x4xf32>, vector<1x16x4xf32> -> vector<18x16x4xf32>
    %5 = vector.extract_strided_slice %4 {offsets = [0, 15, 0], sizes = [18, 1, 4], strides = [1, 1, 1]} : vector<18x16x4xf32> to vector<18x1x4xf32>
    %6 = vector.extract_strided_slice %4 {offsets = [0, 0, 0], sizes = [18, 1, 4], strides = [1, 1, 1]} : vector<18x16x4xf32> to vector<18x1x4xf32>
    %7 = tpu.concatenate %5, %4, %6 in 1 : vector<18x1x4xf32>, vector<18x16x4xf32>, vector<18x1x4xf32> -> vector<18x18x4xf32>
    %8 = vector.extract_strided_slice %7 {offsets = [0, 0, 0], sizes = [16, 16, 4], strides = [1, 1, 1]} : vector<18x18x4xf32> to vector<16x16x4xf32>
    %9 = vector.shape_cast %8 : vector<16x16x4xf32> to vector<256x4xf32>
    %10 = vector.extract_strided_slice %7 {offsets = [0, 1, 0], sizes = [16, 16, 4], strides = [1, 1, 1]} : vector<18x18x4xf32> to vector<16x16x4xf32>
    %11 = vector.shape_cast %10 : vector<16x16x4xf32> to vector<256x4xf32>
    %12 = vector.extract_strided_slice %7 {offsets = [0, 2, 0], sizes = [16, 16, 4], strides = [1, 1, 1]} : vector<18x18x4xf32> to vector<16x16x4xf32>
    %13 = vector.shape_cast %12 : vector<16x16x4xf32> to vector<256x4xf32>
    %14 = vector.extract_strided_slice %7 {offsets = [1, 0, 0], sizes = [16, 16, 4], strides = [1, 1, 1]} : vector<18x18x4xf32> to vector<16x16x4xf32>
    %15 = vector.shape_cast %14 : vector<16x16x4xf32> to vector<256x4xf32>
    %16 = vector.extract_strided_slice %7 {offsets = [1, 1, 0], sizes = [16, 16, 4], strides = [1, 1, 1]} : vector<18x18x4xf32> to vector<16x16x4xf32>
    %17 = vector.shape_cast %16 : vector<16x16x4xf32> to vector<256x4xf32>
    %18 = vector.extract_strided_slice %7 {offsets = [1, 2, 0], sizes = [16, 16, 4], strides = [1, 1, 1]} : vector<18x18x4xf32> to vector<16x16x4xf32>
    %19 = vector.shape_cast %18 : vector<16x16x4xf32> to vector<256x4xf32>
    %20 = vector.extract_strided_slice %7 {offsets = [2, 0, 0], sizes = [16, 16, 4], strides = [1, 1, 1]} : vector<18x18x4xf32> to vector<16x16x4xf32>
    %21 = vector.shape_cast %20 : vector<16x16x4xf32> to vector<256x4xf32>
    %22 = vector.extract_strided_slice %7 {offsets = [2, 1, 0], sizes = [16, 16, 4], strides = [1, 1, 1]} : vector<18x18x4xf32> to vector<16x16x4xf32>
    %23 = vector.shape_cast %22 : vector<16x16x4xf32> to vector<256x4xf32>
    %24 = vector.extract_strided_slice %7 {offsets = [2, 2, 0], sizes = [16, 16, 4], strides = [1, 1, 1]} : vector<18x18x4xf32> to vector<16x16x4xf32>
    %25 = vector.shape_cast %24 : vector<16x16x4xf32> to vector<256x4xf32>
    %26 = tpu.concatenate %9, %11, %13, %15, %17, %19, %21, %23, %25 in 1 : vector<256x4xf32>, vector<256x4xf32>, vector<256x4xf32>, vector<256x4xf32>, vector<256x4xf32>, vector<256x4xf32>, vector<256x4xf32>, vector<256x4xf32>, vector<256x4xf32> -> vector<256x36xf32>
    %c0_3 = arith.constant 0 : index
    %c0_4 = arith.constant 0 : index
    %27 = vector.load %arg2[%c0_3, %c0_4] : memref<36x32xf32, #tpu.memory_space<vmem>>, vector<36x32xf32>
    %cst = arith.constant dense<0.000000e+00> : vector<256x32xf32>
    %28 = tpu.matmul %26, %27, %cst {dimension_numbers = #tpu.dot_dimension_numbers<[1], [0], [0], [1], [0, 0, 1, 1], [], []>} : vector<256x36xf32>, vector<36x32xf32>, vector<256x32xf32> -> vector<256x32xf32>
    %c0_5 = arith.constant 0 : index
    %c0_6 = arith.constant 0 : index
    %29 = vector.load %arg3[%c0_5, %c0_6] : memref<1x32xf32, #tpu.memory_space<vmem>>, vector<1x32xf32>
    %30 = vector.broadcast %29 : vector<1x32xf32> to vector<256x32xf32>
    %31 = arith.addf %28, %30 : vector<256x32xf32>
    %cst_7 = arith.constant 0.000000e+00 : f32
    %32 = vector.broadcast %cst_7 : f32 to vector<256x32xf32>
    %33 = arith.maximumf %31, %32 : vector<256x32xf32>
    %34 = vector.shape_cast %33 : vector<256x32xf32> to vector<16x16x32xf32>
    %35 = vector.extract_strided_slice %34 {offsets = [15, 0, 0], sizes = [1, 16, 32], strides = [1, 1, 1]} : vector<16x16x32xf32> to vector<1x16x32xf32>
    %36 = vector.extract_strided_slice %34 {offsets = [0, 0, 0], sizes = [1, 16, 32], strides = [1, 1, 1]} : vector<16x16x32xf32> to vector<1x16x32xf32>
    %37 = tpu.concatenate %35, %34, %36 in 0 : vector<1x16x32xf32>, vector<16x16x32xf32>, vector<1x16x32xf32> -> vector<18x16x32xf32>
    %38 = vector.extract_strided_slice %37 {offsets = [0, 15, 0], sizes = [18, 1, 32], strides = [1, 1, 1]} : vector<18x16x32xf32> to vector<18x1x32xf32>
    %39 = vector.extract_strided_slice %37 {offsets = [0, 0, 0], sizes = [18, 1, 32], strides = [1, 1, 1]} : vector<18x16x32xf32> to vector<18x1x32xf32>
    %40 = tpu.concatenate %38, %37, %39 in 1 : vector<18x1x32xf32>, vector<18x16x32xf32>, vector<18x1x32xf32> -> vector<18x18x32xf32>
    %41 = vector.extract_strided_slice %40 {offsets = [0, 0, 0], sizes = [16, 16, 32], strides = [1, 1, 1]} : vector<18x18x32xf32> to vector<16x16x32xf32>
    %42 = vector.shape_cast %41 : vector<16x16x32xf32> to vector<256x32xf32>
    %43 = vector.extract_strided_slice %40 {offsets = [0, 1, 0], sizes = [16, 16, 32], strides = [1, 1, 1]} : vector<18x18x32xf32> to vector<16x16x32xf32>
    %44 = vector.shape_cast %43 : vector<16x16x32xf32> to vector<256x32xf32>
    %45 = vector.extract_strided_slice %40 {offsets = [0, 2, 0], sizes = [16, 16, 32], strides = [1, 1, 1]} : vector<18x18x32xf32> to vector<16x16x32xf32>
    %46 = vector.shape_cast %45 : vector<16x16x32xf32> to vector<256x32xf32>
    %47 = vector.extract_strided_slice %40 {offsets = [1, 0, 0], sizes = [16, 16, 32], strides = [1, 1, 1]} : vector<18x18x32xf32> to vector<16x16x32xf32>
    %48 = vector.shape_cast %47 : vector<16x16x32xf32> to vector<256x32xf32>
    %49 = vector.extract_strided_slice %40 {offsets = [1, 1, 0], sizes = [16, 16, 32], strides = [1, 1, 1]} : vector<18x18x32xf32> to vector<16x16x32xf32>
    %50 = vector.shape_cast %49 : vector<16x16x32xf32> to vector<256x32xf32>
    %51 = vector.extract_strided_slice %40 {offsets = [1, 2, 0], sizes = [16, 16, 32], strides = [1, 1, 1]} : vector<18x18x32xf32> to vector<16x16x32xf32>
    %52 = vector.shape_cast %51 : vector<16x16x32xf32> to vector<256x32xf32>
    %53 = vector.extract_strided_slice %40 {offsets = [2, 0, 0], sizes = [16, 16, 32], strides = [1, 1, 1]} : vector<18x18x32xf32> to vector<16x16x32xf32>
    %54 = vector.shape_cast %53 : vector<16x16x32xf32> to vector<256x32xf32>
    %55 = vector.extract_strided_slice %40 {offsets = [2, 1, 0], sizes = [16, 16, 32], strides = [1, 1, 1]} : vector<18x18x32xf32> to vector<16x16x32xf32>
    %56 = vector.shape_cast %55 : vector<16x16x32xf32> to vector<256x32xf32>
    %57 = vector.extract_strided_slice %40 {offsets = [2, 2, 0], sizes = [16, 16, 32], strides = [1, 1, 1]} : vector<18x18x32xf32> to vector<16x16x32xf32>
    %58 = vector.shape_cast %57 : vector<16x16x32xf32> to vector<256x32xf32>
    %59 = tpu.concatenate %42, %44, %46, %48, %50, %52, %54, %56, %58 in 1 : vector<256x32xf32>, vector<256x32xf32>, vector<256x32xf32>, vector<256x32xf32>, vector<256x32xf32>, vector<256x32xf32>, vector<256x32xf32>, vector<256x32xf32>, vector<256x32xf32> -> vector<256x288xf32>
    %c0_8 = arith.constant 0 : index
    %c0_9 = arith.constant 0 : index
    %60 = vector.load %arg4[%c0_8, %c0_9] : memref<288x32xf32, #tpu.memory_space<vmem>>, vector<288x32xf32>
    %cst_10 = arith.constant dense<0.000000e+00> : vector<256x32xf32>
    %61 = tpu.matmul %59, %60, %cst_10 {dimension_numbers = #tpu.dot_dimension_numbers<[1], [0], [0], [1], [0, 0, 1, 1], [], []>} : vector<256x288xf32>, vector<288x32xf32>, vector<256x32xf32> -> vector<256x32xf32>
    %c0_11 = arith.constant 0 : index
    %c0_12 = arith.constant 0 : index
    %62 = vector.load %arg5[%c0_11, %c0_12] : memref<1x32xf32, #tpu.memory_space<vmem>>, vector<1x32xf32>
    %63 = vector.broadcast %62 : vector<1x32xf32> to vector<256x32xf32>
    %64 = arith.addf %61, %63 : vector<256x32xf32>
    %cst_13 = arith.constant 0.000000e+00 : f32
    %65 = vector.broadcast %cst_13 : f32 to vector<256x32xf32>
    %66 = arith.maximumf %64, %65 : vector<256x32xf32>
    %67 = vector.shape_cast %66 : vector<256x32xf32> to vector<16x16x32xf32>
    %68 = vector.extract_strided_slice %67 {offsets = [15, 0, 0], sizes = [1, 16, 32], strides = [1, 1, 1]} : vector<16x16x32xf32> to vector<1x16x32xf32>
    %69 = vector.extract_strided_slice %67 {offsets = [0, 0, 0], sizes = [1, 16, 32], strides = [1, 1, 1]} : vector<16x16x32xf32> to vector<1x16x32xf32>
    %70 = tpu.concatenate %68, %67, %69 in 0 : vector<1x16x32xf32>, vector<16x16x32xf32>, vector<1x16x32xf32> -> vector<18x16x32xf32>
    %71 = vector.extract_strided_slice %70 {offsets = [0, 15, 0], sizes = [18, 1, 32], strides = [1, 1, 1]} : vector<18x16x32xf32> to vector<18x1x32xf32>
    %72 = vector.extract_strided_slice %70 {offsets = [0, 0, 0], sizes = [18, 1, 32], strides = [1, 1, 1]} : vector<18x16x32xf32> to vector<18x1x32xf32>
    %73 = tpu.concatenate %71, %70, %72 in 1 : vector<18x1x32xf32>, vector<18x16x32xf32>, vector<18x1x32xf32> -> vector<18x18x32xf32>
    %74 = vector.extract_strided_slice %73 {offsets = [0, 0, 0], sizes = [16, 16, 32], strides = [1, 1, 1]} : vector<18x18x32xf32> to vector<16x16x32xf32>
    %75 = vector.shape_cast %74 : vector<16x16x32xf32> to vector<256x32xf32>
    %76 = vector.extract_strided_slice %73 {offsets = [0, 1, 0], sizes = [16, 16, 32], strides = [1, 1, 1]} : vector<18x18x32xf32> to vector<16x16x32xf32>
    %77 = vector.shape_cast %76 : vector<16x16x32xf32> to vector<256x32xf32>
    %78 = vector.extract_strided_slice %73 {offsets = [0, 2, 0], sizes = [16, 16, 32], strides = [1, 1, 1]} : vector<18x18x32xf32> to vector<16x16x32xf32>
    %79 = vector.shape_cast %78 : vector<16x16x32xf32> to vector<256x32xf32>
    %80 = vector.extract_strided_slice %73 {offsets = [1, 0, 0], sizes = [16, 16, 32], strides = [1, 1, 1]} : vector<18x18x32xf32> to vector<16x16x32xf32>
    %81 = vector.shape_cast %80 : vector<16x16x32xf32> to vector<256x32xf32>
    %82 = vector.extract_strided_slice %73 {offsets = [1, 1, 0], sizes = [16, 16, 32], strides = [1, 1, 1]} : vector<18x18x32xf32> to vector<16x16x32xf32>
    %83 = vector.shape_cast %82 : vector<16x16x32xf32> to vector<256x32xf32>
    %84 = vector.extract_strided_slice %73 {offsets = [1, 2, 0], sizes = [16, 16, 32], strides = [1, 1, 1]} : vector<18x18x32xf32> to vector<16x16x32xf32>
    %85 = vector.shape_cast %84 : vector<16x16x32xf32> to vector<256x32xf32>
    %86 = vector.extract_strided_slice %73 {offsets = [2, 0, 0], sizes = [16, 16, 32], strides = [1, 1, 1]} : vector<18x18x32xf32> to vector<16x16x32xf32>
    %87 = vector.shape_cast %86 : vector<16x16x32xf32> to vector<256x32xf32>
    %88 = vector.extract_strided_slice %73 {offsets = [2, 1, 0], sizes = [16, 16, 32], strides = [1, 1, 1]} : vector<18x18x32xf32> to vector<16x16x32xf32>
    %89 = vector.shape_cast %88 : vector<16x16x32xf32> to vector<256x32xf32>
    %90 = vector.extract_strided_slice %73 {offsets = [2, 2, 0], sizes = [16, 16, 32], strides = [1, 1, 1]} : vector<18x18x32xf32> to vector<16x16x32xf32>
    %91 = vector.shape_cast %90 : vector<16x16x32xf32> to vector<256x32xf32>
    %92 = tpu.concatenate %75, %77, %79, %81, %83, %85, %87, %89, %91 in 1 : vector<256x32xf32>, vector<256x32xf32>, vector<256x32xf32>, vector<256x32xf32>, vector<256x32xf32>, vector<256x32xf32>, vector<256x32xf32>, vector<256x32xf32>, vector<256x32xf32> -> vector<256x288xf32>
    %c0_14 = arith.constant 0 : index
    %c0_15 = arith.constant 0 : index
    %93 = vector.load %arg6[%c0_14, %c0_15] : memref<288x32xf32, #tpu.memory_space<vmem>>, vector<288x32xf32>
    %cst_16 = arith.constant dense<0.000000e+00> : vector<256x32xf32>
    %94 = tpu.matmul %92, %93, %cst_16 {dimension_numbers = #tpu.dot_dimension_numbers<[1], [0], [0], [1], [0, 0, 1, 1], [], []>} : vector<256x288xf32>, vector<288x32xf32>, vector<256x32xf32> -> vector<256x32xf32>
    %c0_17 = arith.constant 0 : index
    %c0_18 = arith.constant 0 : index
    %95 = vector.load %arg7[%c0_17, %c0_18] : memref<1x32xf32, #tpu.memory_space<vmem>>, vector<1x32xf32>
    %96 = vector.broadcast %95 : vector<1x32xf32> to vector<256x32xf32>
    %97 = arith.addf %94, %96 : vector<256x32xf32>
    %cst_19 = arith.constant 0.000000e+00 : f32
    %98 = vector.broadcast %cst_19 : f32 to vector<256x32xf32>
    %99 = arith.maximumf %97, %98 : vector<256x32xf32>
    %100 = vector.shape_cast %99 : vector<256x32xf32> to vector<16x16x32xf32>
    %101 = vector.extract_strided_slice %100 {offsets = [15, 0, 0], sizes = [1, 16, 32], strides = [1, 1, 1]} : vector<16x16x32xf32> to vector<1x16x32xf32>
    %102 = vector.extract_strided_slice %100 {offsets = [0, 0, 0], sizes = [1, 16, 32], strides = [1, 1, 1]} : vector<16x16x32xf32> to vector<1x16x32xf32>
    %103 = tpu.concatenate %101, %100, %102 in 0 : vector<1x16x32xf32>, vector<16x16x32xf32>, vector<1x16x32xf32> -> vector<18x16x32xf32>
    %104 = vector.extract_strided_slice %103 {offsets = [0, 15, 0], sizes = [18, 1, 32], strides = [1, 1, 1]} : vector<18x16x32xf32> to vector<18x1x32xf32>
    %105 = vector.extract_strided_slice %103 {offsets = [0, 0, 0], sizes = [18, 1, 32], strides = [1, 1, 1]} : vector<18x16x32xf32> to vector<18x1x32xf32>
    %106 = tpu.concatenate %104, %103, %105 in 1 : vector<18x1x32xf32>, vector<18x16x32xf32>, vector<18x1x32xf32> -> vector<18x18x32xf32>
    %107 = vector.extract_strided_slice %106 {offsets = [0, 0, 0], sizes = [16, 16, 32], strides = [1, 1, 1]} : vector<18x18x32xf32> to vector<16x16x32xf32>
    %108 = vector.shape_cast %107 : vector<16x16x32xf32> to vector<256x32xf32>
    %109 = vector.extract_strided_slice %106 {offsets = [0, 1, 0], sizes = [16, 16, 32], strides = [1, 1, 1]} : vector<18x18x32xf32> to vector<16x16x32xf32>
    %110 = vector.shape_cast %109 : vector<16x16x32xf32> to vector<256x32xf32>
    %111 = vector.extract_strided_slice %106 {offsets = [0, 2, 0], sizes = [16, 16, 32], strides = [1, 1, 1]} : vector<18x18x32xf32> to vector<16x16x32xf32>
    %112 = vector.shape_cast %111 : vector<16x16x32xf32> to vector<256x32xf32>
    %113 = vector.extract_strided_slice %106 {offsets = [1, 0, 0], sizes = [16, 16, 32], strides = [1, 1, 1]} : vector<18x18x32xf32> to vector<16x16x32xf32>
    %114 = vector.shape_cast %113 : vector<16x16x32xf32> to vector<256x32xf32>
    %115 = vector.extract_strided_slice %106 {offsets = [1, 1, 0], sizes = [16, 16, 32], strides = [1, 1, 1]} : vector<18x18x32xf32> to vector<16x16x32xf32>
    %116 = vector.shape_cast %115 : vector<16x16x32xf32> to vector<256x32xf32>
    %117 = vector.extract_strided_slice %106 {offsets = [1, 2, 0], sizes = [16, 16, 32], strides = [1, 1, 1]} : vector<18x18x32xf32> to vector<16x16x32xf32>
    %118 = vector.shape_cast %117 : vector<16x16x32xf32> to vector<256x32xf32>
    %119 = vector.extract_strided_slice %106 {offsets = [2, 0, 0], sizes = [16, 16, 32], strides = [1, 1, 1]} : vector<18x18x32xf32> to vector<16x16x32xf32>
    %120 = vector.shape_cast %119 : vector<16x16x32xf32> to vector<256x32xf32>
    %121 = vector.extract_strided_slice %106 {offsets = [2, 1, 0], sizes = [16, 16, 32], strides = [1, 1, 1]} : vector<18x18x32xf32> to vector<16x16x32xf32>
    %122 = vector.shape_cast %121 : vector<16x16x32xf32> to vector<256x32xf32>
    %123 = vector.extract_strided_slice %106 {offsets = [2, 2, 0], sizes = [16, 16, 32], strides = [1, 1, 1]} : vector<18x18x32xf32> to vector<16x16x32xf32>
    %124 = vector.shape_cast %123 : vector<16x16x32xf32> to vector<256x32xf32>
    %125 = tpu.concatenate %108, %110, %112, %114, %116, %118, %120, %122, %124 in 1 : vector<256x32xf32>, vector<256x32xf32>, vector<256x32xf32>, vector<256x32xf32>, vector<256x32xf32>, vector<256x32xf32>, vector<256x32xf32>, vector<256x32xf32>, vector<256x32xf32> -> vector<256x288xf32>
    %c0_20 = arith.constant 0 : index
    %c0_21 = arith.constant 0 : index
    %126 = vector.load %arg8[%c0_20, %c0_21] : memref<288x4xf32, #tpu.memory_space<vmem>>, vector<288x4xf32>
    %cst_22 = arith.constant dense<0.000000e+00> : vector<256x4xf32>
    %127 = tpu.matmul %125, %126, %cst_22 {dimension_numbers = #tpu.dot_dimension_numbers<[1], [0], [0], [1], [0, 0, 1, 1], [], []>} : vector<256x288xf32>, vector<288x4xf32>, vector<256x4xf32> -> vector<256x4xf32>
    %c0_23 = arith.constant 0 : index
    %c0_24 = arith.constant 0 : index
    %128 = vector.load %arg9[%c0_23, %c0_24] : memref<1x4xf32, #tpu.memory_space<vmem>>, vector<1x4xf32>
    %129 = vector.broadcast %128 : vector<1x4xf32> to vector<256x4xf32>
    %130 = arith.addf %127, %129 : vector<256x4xf32>
    %131 = vector.shape_cast %130 : vector<256x4xf32> to vector<16x16x4xf32>
    %c0_25 = arith.constant 0 : index
    %c0_26 = arith.constant 0 : index
    %c0_27 = arith.constant 0 : index
    %c0_28 = arith.constant 0 : index
    %132 = vector.load %arg10[%c0_25, %c0_26, %c0_27, %c0_28] : memref<1x16x16x4xf32, #tpu.memory_space<vmem>>, vector<1x16x16x4xf32>
    %133 = vector.shape_cast %132 : vector<1x16x16x4xf32> to vector<16x16x4xf32>
    %134 = vector.shape_cast %131 : vector<16x16x4xf32> to vector<1x16x16x4xf32>
    tpu.vector_store %arg10[%c0_25, %c0_26, %c0_27, %c0_28], %134 {strides = array<i32>} : memref<1x16x16x4xf32, #tpu.memory_space<vmem>>, vector<1x16x16x4xf32>,
    return
  }
  func.func @transform_0(%arg0: i32) -> (i32, i32, i32, i32) {
    %c0_i32 = arith.constant 0 : i32
    %c0_i32_0 = arith.constant 0 : i32
    %c0_i32_1 = arith.constant 0 : i32
    %c0_i32_2 = arith.constant 0 : i32
    return %arg0, %c0_i32, %c0_i32_0, %c0_i32_1 : i32, i32, i32, i32
  }
  func.func @transform_1(%arg0: i32) -> (i32, i32) {
    %c0_i32 = arith.constant 0 : i32
    %c0_i32_0 = arith.constant 0 : i32
    %c0_i32_1 = arith.constant 0 : i32
    return %c0_i32, %c0_i32_0 : i32, i32
  }
  func.func @transform_2(%arg0: i32) -> (i32, i32) {
    %c0_i32 = arith.constant 0 : i32
    %c0_i32_0 = arith.constant 0 : i32
    %c0_i32_1 = arith.constant 0 : i32
    return %c0_i32, %c0_i32_0 : i32, i32
  }
  func.func @transform_3(%arg0: i32) -> (i32, i32) {
    %c0_i32 = arith.constant 0 : i32
    %c0_i32_0 = arith.constant 0 : i32
    %c0_i32_1 = arith.constant 0 : i32
    return %c0_i32, %c0_i32_0 : i32, i32
  }
  func.func @transform_4(%arg0: i32) -> (i32, i32) {
    %c0_i32 = arith.constant 0 : i32
    %c0_i32_0 = arith.constant 0 : i32
    %c0_i32_1 = arith.constant 0 : i32
    return %c0_i32, %c0_i32_0 : i32, i32
  }
  func.func @transform_5(%arg0: i32) -> (i32, i32) {
    %c0_i32 = arith.constant 0 : i32
    %c0_i32_0 = arith.constant 0 : i32
    %c0_i32_1 = arith.constant 0 : i32
    return %c0_i32, %c0_i32_0 : i32, i32
  }
  func.func @transform_6(%arg0: i32) -> (i32, i32) {
    %c0_i32 = arith.constant 0 : i32
    %c0_i32_0 = arith.constant 0 : i32
    %c0_i32_1 = arith.constant 0 : i32
    return %c0_i32, %c0_i32_0 : i32, i32
  }
  func.func @transform_7(%arg0: i32) -> (i32, i32) {
    %c0_i32 = arith.constant 0 : i32
    %c0_i32_0 = arith.constant 0 : i32
    %c0_i32_1 = arith.constant 0 : i32
    return %c0_i32, %c0_i32_0 : i32, i32
  }
  func.func @transform_8(%arg0: i32) -> (i32, i32) {
    %c0_i32 = arith.constant 0 : i32
    %c0_i32_0 = arith.constant 0 : i32
    %c0_i32_1 = arith.constant 0 : i32
    return %c0_i32, %c0_i32_0 : i32, i32
  }
  func.func @transform_9(%arg0: i32) -> (i32, i32, i32, i32) {
    %c0_i32 = arith.constant 0 : i32
    %c0_i32_0 = arith.constant 0 : i32
    %c0_i32_1 = arith.constant 0 : i32
    %c0_i32_2 = arith.constant 0 : i32
    return %arg0, %c0_i32, %c0_i32_0, %c0_i32_1 : i32, i32, i32, i32
  }
}

</mosaic_0001>

<bundles_post_ra>
// kernel: tpu_custom_call.1
= control target key start
LH: loop header
LB: loop body
LE: loop exit
PB: predicated region body
PF: predicated region fallthrough
CT: control target
= control target key end

     0   :  { %s9400_s30 = smov 0   ;;  %s15431_s0 = inlined_call_operand.vmem [shape: f32[2,16,16,4], index: 0, kind: input, shape index: {}]   ;;  %s15432_s1 = inlined_call_operand.vmem [shape: f32[36,32], index: 1, kind: input, shape index: {}]   ;;  %s15433_s2 = inlined_call_operand.vmem [shape: f32[1,32], index: 2, kind: input, shape index: {}]   ;;  %s15434_s3 = inlined_call_operand.vmem [shape: f32[288,32], index: 3, kind: input, shape index: {}]   ;;  %s15435_s4 = inlined_call_operand.vmem [shape: f32[1,32], index: 4, kind: input, shape index: {}]   ;;  %s15436_s5 = inlined_call_operand.vmem [shape: f32[288,32], index: 5, kind: input, shape index: {}]   ;;  %s15437_s6 = inlined_call_operand.vmem [shape: f32[1,32], index: 6, kind: input, shape index: {}]   ;;  %s15438_s7 = inlined_call_operand.vmem [shape: f32[288,4], index: 7, kind: input, shape index: {}]   ;;  %s15439_s8 = inlined_call_operand.vmem [shape: f32[1,4], index: 8, kind: input, shape index: {}]   ;;  %s15440_s9 = inlined_call_operand.vmem [shape: f32[2,16,16,4], index: 9, kind: output, shape index: {}]  }
   0x1 LB: > { %s7146_s10 = sadd.s32 4294967295, %s9337_s30   ;;  %p7150_p0 = scmp.ge.s32.totalorder %s9337_s30, 1  ;;  %s9337_s30 = sphi %s9400_s30, %s19_s30  }
   0x2   : > { %p287_p1 = scmp.lt.s32.totalorder %s9337_s30, 3 }
   0x4   : > { %p288_p2 = pnand %p7150_p0, %p287_p1 }
   0x6   : > { %291 = sbr.rel (%p288_p2) target bundleno = 2325 (0x915), region = 56 }
   0xd   : > { %p323_p3 = scmp.lt.s32.totalorder %s7146_s10, 1  ;;  %vm429_vm0 = vcmask 1040384   ;;  %vm526_vm1 = vcmask 1046528   ;;  %s9339_s15 = smov 4   ;;  %vm591_vm2 = vcmask 1045504   ;;  %vm1797_vm3 = vcmask 1043456  }
   0xe   : > { %s9340_s16 = smov 8   ;;  %s9341_s17 = smov 12   ;;  %vm1424_vm4 = vcmask 31744   ;;  %vm1457_vm5 = vcmask 64512   ;;  %vm1490_vm6 = vcmask 97280   ;;  %vm1523_vm7 = vcmask 130048  }
   0xf   : > { %s16263_s10 = smov (!%p323_p3, %s7146_s10), 1  ;;  %s9342_s18 = smov 16   ;;  %vm1556_vm8 = vcmask 162816   ;;  %vm1589_vm9 = vcmask 195584   ;;  %vm1622_vm10 = vcmask 228352   ;;  %vm1655_vm11 = vcmask 261120  }
  0x10   : > { %s7290_s11 = sshll.u32 %s16263_s10, 8  ;;  %s9343_s23 = smov 20   ;;  %vm1700_vm12 = vcmask 293888   ;;  %vm2986_vm13 = vcmask 523264   ;;  %vm3019_vm14 = vcmask 785408  }
  0x11   : > { %s9416_s14 = scalar_lea.vmem %s15431_s0, %s7290_s11  ;;  %s9344_s28 = smov 24  }
  0x12   : > { %v363_v0 = vld [vmem:[%s9416_s14 + $0xf0] sm:$0xff]  ;;  %v364_v1 = vld [vmem:[%s9416_s14 + $0xf8] sm:$0xff]  ;;  %v333_v2 = vld [vmem:[%s9416_s14] sm:$0xff]  ;;  %s9345_s13 = smov 28   ;;  %s9348_s12 = smov 64  }
  0x13   : > { %v381_v3 = vrot.slane %v364_v1, 7  ;;  %v430_v4 = vrot.slane %v363_v0, 7  ;;  %v334_v5 = vld [vmem:[%s9416_s14 + $0x8] sm:$0xff]  ;;  %v432_v6 = vrot.slane %v333_v2, 7  ;;  %v335_v7 = vld [vmem:[%s9416_s14 + $0x10] sm:$0xff]  ;;  %v336_v8 = vld [vmem:[%s9416_s14 + $0x18] sm:$0xff]  ;;  %s15299_s24 = scalar_lea.vmem %s15440_s9, %s7290_s11 }
  0x14   : > { %v382_v9 = vrot.slane %v334_v5, 7  ;;  %v383_v10 = vrot.slane %v336_v8, 7  ;;  %v434_v11 = vrot.slane %v335_v7, 7  ;;  %v337_v12 = vld [vmem:[%s9416_s14 + $0x20] sm:$0xff]  ;;  %v338_v13 = vld [vmem:[%s9416_s14 + $0x28] sm:$0xff]  ;;  %v339_v27 = vld [vmem:[%s9416_s14 + $0x30] sm:$0xff] }
  0x15   : > { %v9427_v14 = vsel %vm429_vm0, %v430_v4, %v381_v3  ;;  %v9430_v15 = vsel %vm429_vm0, %v381_v3, %v430_v4  ;;  %v384_v16 = vrot.slane %v338_v13, 7  ;;  %v436_v17 = vrot.slane %v337_v12, 7  ;;  %v340_v28 = vld [vmem:[%s9416_s14 + $0x38] sm:$0xff]  ;;  %v341_v38 = vld [vmem:[%s9416_s14 + $0x40] sm:$0xff]  ;;  %v342_v39 = vld [vmem:[%s9416_s14 + $0x48] sm:$0xff] }
  0x16   : > { %15725 = vst [vmem:[#allocation2_spill] sm:$0xff] %v9427_v14  ;;  %15726 = vst [vmem:[#allocation3_spill] sm:$0xff] %v9430_v15  ;;  %v527_v18 = vrot.slane %v9430_v15, 1  ;;  %v528_v19 = vrot.slane %v9427_v14, 1  ;;  %v9435_v20 = vsel %vm429_vm0, %v432_v6, %v382_v9  ;;  %v9438_v21 = vsel %vm429_vm0, %v382_v9, %v432_v6  ;;  %v343_v48 = vld [vmem:[%s9416_s14 + $0x50] sm:$0xff]  ;;  %v344_v49 = vld [vmem:[%s9416_s14 + $0x58] sm:$0xff] }
  0x17   : > { %v531_v22 = vrot.slane %v9438_v21, 1  ;;  %v532_v23 = vrot.slane %v9435_v20, 1  ;;  %v9443_v24 = vsel %vm429_vm0, %v434_v11, %v383_v10  ;;  %v9446_v25 = vsel %vm429_vm0, %v383_v10, %v434_v11  ;;  %v345_v58 = vld [vmem:[%s9416_s14 + $0x60] sm:$0xff]  ;;  %v346_v59 = vld [vmem:[%s9416_s14 + $0x68] sm:$0xff]  ;;  %v347_v4 = vld [vmem:[%s9416_s14 + $0x70] sm:$0xff] }
  0x18   : > { %v9449_v26 = vsel %vm526_vm1, %v527_v18, %v528_v19  ;;  %v9459_v30 = vsel %vm526_vm1, %v528_v19, %v527_v18  ;;  %v535_v31 = vrot.slane %v9446_v25, 1  ;;  %v536_v32 = vrot.slane %v9443_v24, 1  ;;  %v348_v5 = vld [vmem:[%s9416_s14 + $0x78] sm:$0xff] }
  0x19   : > { %15727 = vst [vmem:[#allocation4_spill] sm:$0xff] %v9449_v26  ;;  %656 = vrot.lane.b32.xlu0 %v9449_v26, %s9339_s15  ;;  %v9456_v29 = vsel %vm526_vm1, %v531_v22, %v532_v23  ;;  %15729 = vst [vmem:[#allocation6_spill] sm:$0xff] %v9459_v30  ;;  %v9466_v33 = vsel %vm429_vm0, %v436_v17, %v384_v16  ;;  %v9469_v34 = vsel %vm429_vm0, %v384_v16, %v436_v17  ;;  %v349_v16 = vld [vmem:[%s9416_s14 + $0x80] sm:$0xff]  ;;  %v350_v17 = vld [vmem:[%s9416_s14 + $0x88] sm:$0xff] }
  0x1a   : > { %15728 = vst [vmem:[#allocation5_spill] sm:$0xff] %v9456_v29  ;;  %660 = vrot.lane.b32.xlu1 %v9456_v29, %s9339_s15  ;;  %v9472_v35 = vsel %vm526_vm1, %v532_v23, %v531_v22  ;;  %v385_v36 = vrot.slane %v340_v28, 7  ;;  %v438_v37 = vrot.slane %v339_v27, 7  ;;  %v539_v40 = vrot.slane %v9469_v34, 1 }
  0x1b   : > { %15730 = vst [vmem:[#allocation7_spill] sm:$0xff] %v9472_v35  ;;  %v540_v41 = vrot.slane %v9466_v33, 1  ;;  %v9483_v42 = vsel %vm526_vm1, %v535_v31, %v536_v32  ;;  %v9486_v43 = vsel %vm526_vm1, %v536_v32, %v535_v31  ;;  %v386_v46 = vrot.slane %v342_v39, 7 }
  0x1c   : > { %v9489_v44 = vsel %vm429_vm0, %v438_v37, %v385_v36  ;;  %v9492_v45 = vsel %vm429_vm0, %v385_v36, %v438_v37  ;;  %v440_v47 = vrot.slane %v341_v38, 7  ;;  %v387_v53 = vrot.slane %v344_v49, 7  ;;  %v351_v36 = vld [vmem:[%s9416_s14 + $0x90] sm:$0xff]  ;;  %v352_v37 = vld [vmem:[%s9416_s14 + $0x98] sm:$0xff] }
  0x1d   : > { %658 = vrot.lane.b32.xlu0 %v9459_v30, %s9339_s15  ;;  %v9499_v50 = vsel %vm526_vm1, %v539_v40, %v540_v41  ;;  %v543_v51 = vrot.slane %v9492_v45, 1  ;;  %v544_v52 = vrot.slane %v9489_v44, 1  ;;  %v442_v54 = vrot.slane %v343_v48, 7 }
  0x1e   : > { %662 = vrot.lane.b32.xlu1 %v9472_v35, %s9339_s15  ;;  %v9506_v55 = vsel %vm526_vm1, %v540_v41, %v539_v40  ;;  %v9509_v56 = vsel %vm429_vm0, %v440_v47, %v386_v46  ;;  %v9512_v57 = vsel %vm429_vm0, %v386_v46, %v440_v47  ;;  %v388_v2 = vrot.slane %v346_v59, 7 }
  0x1f   : > { %v9521_v60 = vsel %vm526_vm1, %v543_v51, %v544_v52  ;;  %v547_v61 = vrot.slane %v9512_v57, 1  ;;  %v548_v62 = vrot.slane %v9509_v56, 1  ;;  %v9526_v63 = vsel %vm429_vm0, %v442_v54, %v387_v53 }
  0x20   : > { %15731 = vst [vmem:[#allocation8_spill] sm:$0xff] %v9526_v63  ;;  %v9529_v0 = vsel %vm526_vm1, %v544_v52, %v543_v51  ;;  %v9532_v1 = vsel %vm429_vm0, %v387_v53, %v442_v54  ;;  %v444_v3 = vrot.slane %v345_v58, 7  ;;  %v552_v9 = vrot.slane %v9526_v63, 1  ;;  %v353_v51 = vld [vmem:[%s9416_s14 + $0xa0] sm:$0xff]  ;;  %v354_v52 = vld [vmem:[%s9416_s14 + $0xa8] sm:$0xff] }
  0x21   : > { %664 = vrot.lane.b32.xlu0 %v9483_v42, %s9339_s15  ;;  %v9541_v6 = vsel %vm526_vm1, %v547_v61, %v548_v62  ;;  %v9544_v7 = vsel %vm526_vm1, %v548_v62, %v547_v61  ;;  %v551_v8 = vrot.slane %v9532_v1, 1  ;;  %v389_v12 = vrot.slane %v348_v5, 7  ;;  %v356_v5 = vld [vmem:[%s9416_s14 + $0xb8] sm:$0xff] }
  0x22   : > { %666 = vrot.lane.b32.xlu1 %v9486_v43, %s9339_s15  ;;  %v9549_v10 = vsel %vm429_vm0, %v444_v3, %v388_v2  ;;  %v9552_v11 = vsel %vm429_vm0, %v388_v2, %v444_v3  ;;  %v446_v13 = vrot.slane %v347_v4, 7  ;;  %v390_v31 = vrot.slane %v350_v17, 7  ;;  %v355_v4 = vld [vmem:[%s9416_s14 + $0xb0] sm:$0xff] }
  0x23   : > { %15732 = vst [vmem:[#allocation9_spill] sm:$0xff] %v9552_v11  ;;  %v9561_v18 = vsel %vm526_vm1, %v551_v8, %v552_v9  ;;  %v9564_v19 = vsel %vm526_vm1, %v552_v9, %v551_v8  ;;  %v555_v22 = vrot.slane %v9552_v11, 1  ;;  %v556_v23 = vrot.slane %v9549_v10, 1 }
  0x24   : > { %v9569_v27 = vsel %vm429_vm0, %v446_v13, %v389_v12  ;;  %v9572_v28 = vsel %vm429_vm0, %v389_v12, %v446_v13  ;;  %v448_v32 = vrot.slane %v349_v16, 7  ;;  %v391_v48 = vrot.slane %v352_v37, 7 }
  0x25   : > { %668 = vrot.lane.b32.xlu0 %v9499_v50, %s9339_s15  ;;  %15733 = vst [vmem:[#allocation10_spill] sm:$0xff] %v9569_v27  ;;  %15734 = vst [vmem:[#allocation11_spill] sm:$0xff] %v9572_v28  ;;  %v9581_v38 = vsel %vm526_vm1, %v555_v22, %v556_v23  ;;  %v9584_v39 = vsel %vm526_vm1, %v556_v23, %v555_v22  ;;  %v559_v40 = vrot.slane %v9572_v28, 1  ;;  %v560_v41 = vrot.slane %v9569_v27, 1 }
  0x26   : > { %670 = vrot.lane.b32.xlu1 %v9506_v55, %s9339_s15  ;;  %15735 = vst [vmem:[#allocation12_spill] sm:$0xff] %v9581_v38  ;;  %15736 = vst [vmem:[#allocation13_spill] sm:$0xff] %v9584_v39  ;;  %v9589_v46 = vsel %vm429_vm0, %v448_v32, %v390_v31  ;;  %v9592_v47 = vsel %vm429_vm0, %v390_v31, %v448_v32  ;;  %v450_v49 = vrot.slane %v351_v36, 7  ;;  %v392_v2 = vrot.slane %v354_v52, 7  ;;  %v357_v31 = vld [vmem:[%s9416_s14 + $0xc0] sm:$0xff]  ;;  %v358_v32 = vld [vmem:[%s9416_s14 + $0xc8] sm:$0xff] }
  0x27   : > { %15737 = vst [vmem:[#allocation14_spill] sm:$0xff] %v9589_v46  ;;  %15738 = vst [vmem:[#allocation15_spill] sm:$0xff] %v9592_v47  ;;  %v9601_v53 = vsel %vm526_vm1, %v559_v40, %v560_v41  ;;  %v9604_v54 = vsel %vm526_vm1, %v560_v41, %v559_v40  ;;  %v563_v58 = vrot.slane %v9592_v47, 1  ;;  %v564_v59 = vrot.slane %v9589_v46, 1 }
  0x28   : > { %15739 = vst [vmem:[#allocation16_spill] sm:$0xff] %v9601_v53  ;;  %15740 = vst [vmem:[#allocation17_spill] sm:$0xff] %v9604_v54  ;;  %v9609_v61 = vsel %vm429_vm0, %v450_v49, %v391_v48  ;;  %v9612_v62 = vsel %vm429_vm0, %v391_v48, %v450_v49  ;;  %v452_v3 = vrot.slane %v353_v51, 7  ;;  %v393_v22 = vrot.slane %v356_v5, 7 }
  0x29   : > { %672 = vrot.lane.b32.xlu0 %v9521_v60, %s9339_s15  ;;  %15741 = vst [vmem:[#allocation18_spill] sm:$0xff] %v9609_v61  ;;  %15742 = vst [vmem:[#allocation19_spill] sm:$0xff] %v9612_v62  ;;  %v9621_v8 = vsel %vm526_vm1, %v563_v58, %v564_v59  ;;  %v9624_v9 = vsel %vm526_vm1, %v564_v59, %v563_v58  ;;  %v567_v12 = vrot.slane %v9612_v62, 1  ;;  %v568_v13 = vrot.slane %v9609_v61, 1  ;;  %v359_v58 = vld [vmem:[%s9416_s14 + $0xd0] sm:$0xff]  ;;  %v360_v59 = vld [vmem:[%s9416_s14 + $0xd8] sm:$0xff] }
  0x2a   : > { %674 = vrot.lane.b32.xlu1 %v9529_v0, %s9339_s15  ;;  %15743 = vst [vmem:[#allocation20_spill] sm:$0xff] %v9621_v8  ;;  %15744 = vst [vmem:[#allocation21_spill] sm:$0xff] %v9624_v9  ;;  %v9629_v16 = vsel %vm429_vm0, %v452_v3, %v392_v2  ;;  %v9632_v17 = vsel %vm429_vm0, %v392_v2, %v452_v3  ;;  %v454_v23 = vrot.slane %v355_v4, 7  ;;  %v394_v51 = vrot.slane %v358_v32, 7  ;;  %v362_v32 = vld [vmem:[%s9416_s14 + $0xe8] sm:$0xff] }
  0x2b   : > { %15745 = vst [vmem:[#allocation22_spill] sm:$0xff] %v9629_v16  ;;  %15746 = vst [vmem:[#allocation23_spill] sm:$0xff] %v9632_v17  ;;  %v9641_v36 = vsel %vm526_vm1, %v567_v12, %v568_v13  ;;  %v9644_v37 = vsel %vm526_vm1, %v568_v13, %v567_v12  ;;  %v571_v40 = vrot.slane %v9632_v17, 1  ;;  %v572_v41 = vrot.slane %v9629_v16, 1 }
  0x2c   : > { %15747 = vst [vmem:[#allocation24_spill] sm:$0xff] %v9641_v36  ;;  %15748 = vst [vmem:[#allocation25_spill] sm:$0xff] %v9644_v37  ;;  %v9649_v48 = vsel %vm429_vm0, %v454_v23, %v393_v22  ;;  %v9652_v49 = vsel %vm429_vm0, %v393_v22, %v454_v23  ;;  %v456_v52 = vrot.slane %v357_v31, 7  ;;  %v395_v22 = vrot.slane %v360_v59, 7  ;;  %v361_v31 = vld [vmem:[%s9416_s14 + $0xe0] sm:$0xff]  ;;  %s9346_s14 = smov 32  }
  0x2d   : > { %676 = vrot.lane.b32.xlu0 %v9541_v6, %s9339_s15  ;;  %15749 = vst [vmem:[#allocation26_spill] sm:$0xff] %v9649_v48  ;;  %15750 = vst [vmem:[#allocation27_spill] sm:$0xff] %v9652_v49  ;;  %v9661_v2 = vsel %vm526_vm1, %v571_v40, %v572_v41  ;;  %v9664_v3 = vsel %vm526_vm1, %v572_v41, %v571_v40  ;;  %v575_v4 = vrot.slane %v9652_v49, 1  ;;  %v576_v5 = vrot.slane %v9649_v48, 1 }
  0x2e   : > { %678 = vrot.lane.b32.xlu1 %v9544_v7, %s9339_s15  ;;  %15751 = vst [vmem:[#allocation28_spill] sm:$0xff] %v9661_v2  ;;  %15752 = vst [vmem:[#allocation29_spill] sm:$0xff] %v9664_v3  ;;  %v9669_v12 = vsel %vm429_vm0, %v456_v52, %v394_v51  ;;  %v9672_v13 = vsel %vm429_vm0, %v394_v51, %v456_v52  ;;  %v458_v23 = vrot.slane %v359_v58, 7  ;;  %v396_v59 = vrot.slane %v362_v32, 7 }
  0x2f   : > { %15753 = vst [vmem:[#allocation30_spill] sm:$0xff] %v9669_v12  ;;  %15754 = vst [vmem:[#allocation31_spill] sm:$0xff] %v9672_v13  ;;  %v9681_v40 = vsel %vm526_vm1, %v575_v4, %v576_v5  ;;  %v9684_v41 = vsel %vm526_vm1, %v576_v5, %v575_v4  ;;  %v579_v30 = vrot.slane %v9672_v13, 1  ;;  %v580_v51 = vrot.slane %v9669_v12, 1 }
  0x30   : > { %15755 = vst [vmem:[#allocation32_spill] sm:$0xff] %v9681_v40  ;;  %15756 = vst [vmem:[#allocation33_spill] sm:$0xff] %v9684_v41  ;;  %v9689_v52 = vsel %vm429_vm0, %v458_v23, %v395_v22  ;;  %v9692_v58 = vsel %vm429_vm0, %v395_v22, %v458_v23  ;;  %v460_v26 = vrot.slane %v361_v31, 7 }
  0x31   : > { %680 = vrot.lane.b32.xlu0 %v9561_v18, %s9339_s15  ;;  %15757 = vst [vmem:[#allocation34_spill] sm:$0xff] %v9689_v52  ;;  %15758 = vst [vmem:[#allocation35_spill] sm:$0xff] %v9692_v58  ;;  %v9699_v4 = vsel %vm526_vm1, %v579_v30, %v580_v51  ;;  %v583_v5 = vrot.slane %v9692_v58, 1 }
  0x32   : > { %682 = vrot.lane.b32.xlu1 %v9564_v19, %s9339_s15  ;;  %15759 = vst [vmem:[#allocation36_spill] sm:$0xff] %v9699_v4  ;;  %v9707_v22 = vsel %vm429_vm0, %v460_v26, %v396_v59  ;;  %v9710_v23 = vsel %vm429_vm0, %v396_v59, %v460_v26  ;;  %v592_v59 = vrot.slane %v9430_v15, 2 }
  0x33   : > { %15761 = vst [vmem:[#allocation38_spill] sm:$0xff] %v9707_v22  ;;  %15762 = vst [vmem:[#allocation39_spill] sm:$0xff] %v9710_v23  ;;  %v587_v32 = vrot.slane %v9710_v23, 1 }
  0x35   : > { %684 = vrot.lane.b32.xlu0 %v9581_v38, %s9339_s15  ;;  %v629_v38 = vrot.slane %v9589_v46, 2  ;;  %v637_v46 = vrot.slane %v9629_v16, 2  ;;  %v645_v16 = vrot.slane %v9669_v12, 2 }
  0x36   : > { %686 = vrot.lane.b32.xlu1 %v9584_v39, %s9339_s15  ;;  %v625_v39 = vrot.slane %v9569_v27, 2  ;;  %v633_v27 = vrot.slane %v9609_v61, 2  ;;  %v641_v61 = vrot.slane %v9649_v48, 2  ;;  %v649_v48 = vrot.slane %v9689_v52, 2 }
  0x39   : > { %688 = vrot.lane.b32.xlu0 %v9601_v53, %s9339_s15 }
  0x3a   : > { %690 = vrot.lane.b32.xlu1 %v9604_v54, %s9339_s15  ;;  %v621_v54 = vrot.slane %v9549_v10, 2 }
  0x3d   : > { %692 = vrot.lane.b32.xlu0 %v9621_v8, %s9339_s15 }
  0x3e   : > { %694 = vrot.lane.b32.xlu1 %v9624_v9, %s9339_s15  ;;  %v617_v9 = vrot.slane %v9526_v63, 2 }
  0x41   : > { %696 = vrot.lane.b32.xlu0 %v9641_v36, %s9339_s15 }
  0x42   : > { %698 = vrot.lane.b32.xlu1 %v9644_v37, %s9339_s15  ;;  %v613_v37 = vrot.slane %v9509_v56, 2 }
  0x45   : > { %700 = vrot.lane.b32.xlu0 %v9661_v2, %s9339_s15  ;;  %v9704_v2 = vsel %vm526_vm1, %v580_v51, %v579_v30  ;;  %v588_v30 = vrot.slane %v9707_v22, 1 }
  0x46   : > { %702 = vrot.lane.b32.xlu1 %v9664_v3, %s9339_s15  ;;  %v584_v3 = vrot.slane %v9689_v52, 1  ;;  %15760 = vst [vmem:[#allocation37_spill] sm:$0xff] %v9704_v2  ;;  %v653_v52 = vrot.slane %v9707_v22, 2 }
  0x47   : > { %v9729_v26 = vsel %vm526_vm1, %v587_v32, %v588_v30 }
  0x48   : > { %v9717_v31 = vsel %vm526_vm1, %v583_v5, %v584_v3  ;;  %v9722_v51 = vsel %vm526_vm1, %v584_v3, %v583_v5  ;;  %15765 = vst [vmem:[#allocation42_spill] sm:$0xff] %v9729_v26  ;;  %v596_v5 = vrot.slane %v9438_v21, 2 }
  0x49   : > { %704 = vrot.lane.b32.xlu0 %v9681_v40, %s9339_s15  ;;  %15763 = vst [vmem:[#allocation40_spill] sm:$0xff] %v9717_v31  ;;  %15764 = vst [vmem:[#allocation41_spill] sm:$0xff] %v9722_v51 }
  0x4a   : > { %706 = vrot.lane.b32.xlu1 %v9684_v41, %s9339_s15  ;;  %v609_v41 = vrot.slane %v9489_v44, 2 }
  0x4d   : > { %708 = vrot.lane.b32.xlu0 %v9699_v4, %s9339_s15  ;;  %v9734_v4 = vsel %vm526_vm1, %v588_v30, %v587_v32  ;;  %v600_v30 = vrot.slane %v9446_v25, 2 }
  0x4e   : > { %710 = vrot.lane.b32.xlu1 %v9704_v2, %s9339_s15  ;;  %v593_v2 = vrot.slane %v9427_v14, 2  ;;  %15766 = vst [vmem:[#allocation43_spill] sm:$0xff] %v9734_v4 }
  0x50   : > { %v9741_v3 = vsel %vm591_vm2, %v592_v59, %v593_v2 }
  0x51   : > { %712 = vrot.lane.b32.xlu0 %v9717_v31, %s9339_s15  ;;  %15767 = vst [vmem:[#allocation44_spill] sm:$0xff] %v9741_v3  ;;  %v9746_v31 = vsel %vm591_vm2, %v593_v2, %v592_v59  ;;  %v604_v59 = vrot.slane %v9469_v34, 2 }
  0x52   : > { %714 = vrot.lane.b32.xlu1 %v9722_v51, %s9339_s15  ;;  %v597_v51 = vrot.slane %v9435_v20, 2  ;;  %15768 = vst [vmem:[#allocation45_spill] sm:$0xff] %v9746_v31 }
  0x54   : > { %v9753_v32 = vsel %vm591_vm2, %v596_v5, %v597_v51 }
  0x55   : > { %716 = vrot.lane.b32.xlu0 %v9729_v26, %s9339_s15  ;;  %15769 = vst [vmem:[#allocation46_spill] sm:$0xff] %v9753_v32  ;;  %v9758_v26 = vsel %vm591_vm2, %v597_v51, %v596_v5  ;;  %v608_v5 = vrot.slane %v9492_v45, 2 }
  0x56   : > { %718 = vrot.lane.b32.xlu1 %v9734_v4, %s9339_s15  ;;  %v601_v4 = vrot.slane %v9443_v24, 2  ;;  %15770 = vst [vmem:[#allocation47_spill] sm:$0xff] %v9758_v26 }
  0x57   : > { %v9794_v36 = vsel %vm591_vm2, %v609_v41, %v608_v5 }
  0x58   : > { %v9765_v2 = vsel %vm591_vm2, %v600_v30, %v601_v4 }
  0x59   : > { %752 = vrot.lane.b32.xlu0 %v9741_v3, %s9340_s16  ;;  %v9770_v3 = vsel %vm591_vm2, %v601_v4, %v600_v30  ;;  %v9789_v4 = vsel %vm591_vm2, %v608_v5, %v609_v41  ;;  %v612_v30 = vrot.slane %v9512_v57, 2  ;;  %v620_v5 = vrot.slane %v9552_v11, 2 }
  0x5a   : > { %754 = vrot.lane.b32.xlu1 %v9746_v31, %s9340_s16  ;;  %v605_v31 = vrot.slane %v9466_v33, 2 }
  0x5b   : > { %v9806_v8 = vsel %vm591_vm2, %v613_v37, %v612_v30  ;;  %v9830_v14 = vsel %vm591_vm2, %v621_v54, %v620_v5 }
  0x5c   : > { %v9777_v51 = vsel %vm591_vm2, %v604_v59, %v605_v31  ;;  %v9782_v40 = vsel %vm591_vm2, %v605_v31, %v604_v59  ;;  %v9801_v31 = vsel %vm591_vm2, %v612_v30, %v613_v37  ;;  %v616_v59 = vrot.slane %v9532_v1, 2 }
  0x5d   : > { %756 = vrot.lane.b32.xlu0 %v9753_v32, %s9340_s16  ;;  %v9825_v37 = vsel %vm591_vm2, %v620_v5, %v621_v54  ;;  %v624_v30 = vrot.slane %v9572_v28, 2  ;;  %v632_v5 = vrot.slane %v9612_v62, 2 }
  0x5e   : > { %758 = vrot.lane.b32.xlu1 %v9758_v26, %s9340_s16  ;;  %v9813_v41 = vsel %vm591_vm2, %v616_v59, %v617_v9  ;;  %v9818_v53 = vsel %vm591_vm2, %v617_v9, %v616_v59  ;;  %v628_v59 = vrot.slane %v9592_v47, 2 }
  0x5f   : > { %v9837_v9 = vsel %vm591_vm2, %v624_v30, %v625_v39  ;;  %v9842_v28 = vsel %vm591_vm2, %v625_v39, %v624_v30  ;;  %v9861_v39 = vsel %vm591_vm2, %v632_v5, %v633_v27  ;;  %v636_v30 = vrot.slane %v9632_v17, 2 }
  0x60   : > { %v9849_v54 = vsel %vm591_vm2, %v628_v59, %v629_v38  ;;  %v9854_v47 = vsel %vm591_vm2, %v629_v38, %v628_v59  ;;  %v9866_v62 = vsel %vm591_vm2, %v633_v27, %v632_v5  ;;  %v640_v59 = vrot.slane %v9652_v49, 2 }
  0x61   : > { %760 = vrot.lane.b32.xlu0 %v9765_v2, %s9340_s16  ;;  %v9873_v38 = vsel %vm591_vm2, %v636_v30, %v637_v46  ;;  %v9878_v17 = vsel %vm591_vm2, %v637_v46, %v636_v30  ;;  %v644_v5 = vrot.slane %v9672_v13, 2  ;;  %v648_v30 = vrot.slane %v9692_v58, 2 }
  0x62   : > { %762 = vrot.lane.b32.xlu1 %v9770_v3, %s9340_s16  ;;  %15771 = vst [vmem:[#allocation48_spill] sm:$0xff] %v9878_v17  ;;  %v9885_v27 = vsel %vm591_vm2, %v640_v59, %v641_v61  ;;  %v9890_v49 = vsel %vm591_vm2, %v641_v61, %v640_v59  ;;  %v652_v58 = vrot.slane %v9710_v23, 2 }
  0x63   : > { %15772 = vst [vmem:[#allocation49_spill] sm:$0xff] %v9885_v27  ;;  %15773 = vst [vmem:[#allocation50_spill] sm:$0xff] %v9890_v49  ;;  %v9897_v46 = vsel %vm591_vm2, %v644_v5, %v645_v16  ;;  %v9904_v12 = vsel %vm591_vm2, %v645_v16, %v644_v5  ;;  %v9913_v59 = vsel %vm591_vm2, %v648_v30, %v649_v48 }
  0x64   : > { %15774 = vst [vmem:[#allocation51_spill] sm:$0xff] %v9897_v46  ;;  %15775 = vst [vmem:[#allocation52_spill] sm:$0xff] %v9904_v12  ;;  %v9920_v16 = vsel %vm591_vm2, %v649_v48, %v648_v30  ;;  %v9934_v22 = vsel %vm591_vm2, %v653_v52, %v652_v58 }
  0x65   : > { %764 = vrot.lane.b32.xlu0 %v9777_v51, %s9340_s16  ;;  %15776 = vst [vmem:[#allocation53_spill] sm:$0xff] %v9913_v59  ;;  %15777 = vst [vmem:[#allocation54_spill] sm:$0xff] %v9920_v16 }
  0x66   : > { %766 = vrot.lane.b32.xlu1 %v9782_v40, %s9340_s16  ;;  %15779 = vst [vmem:[#allocation56_spill] sm:$0xff] %v9934_v22 }
  0x69   : > { %768 = vrot.lane.b32.xlu0 %v9789_v4, %s9340_s16 }
  0x6a   : > { %770 = vrot.lane.b32.xlu1 %v9794_v36, %s9340_s16 }
  0x6d   : > { %772 = vrot.lane.b32.xlu0 %v9801_v31, %s9340_s16 }
  0x6e   : > { %774 = vrot.lane.b32.xlu1 %v9806_v8, %s9340_s16 }
  0x71   : > { %776 = vrot.lane.b32.xlu0 %v9813_v41, %s9340_s16 }
  0x72   : > { %778 = vrot.lane.b32.xlu1 %v9818_v53, %s9340_s16 }
  0x75   : > { %780 = vrot.lane.b32.xlu0 %v9825_v37, %s9340_s16 }
  0x76   : > { %782 = vrot.lane.b32.xlu1 %v9830_v14, %s9340_s16 }
  0x79   : > { %784 = vrot.lane.b32.xlu0 %v9837_v9, %s9340_s16 }
  0x7a   : > { %786 = vrot.lane.b32.xlu1 %v9842_v28, %s9340_s16 }
  0x7d   : > { %788 = vrot.lane.b32.xlu0 %v9849_v54, %s9340_s16 }
  0x7e   : > { %790 = vrot.lane.b32.xlu1 %v9854_v47, %s9340_s16 }
  0x81   : > { %792 = vrot.lane.b32.xlu0 %v9861_v39, %s9340_s16 }
  0x82   : > { %794 = vrot.lane.b32.xlu1 %v9866_v62, %s9340_s16 }
  0x85   : > { %796 = vrot.lane.b32.xlu0 %v9873_v38, %s9340_s16 }
  0x86   : > { %798 = vrot.lane.b32.xlu1 %v9878_v17, %s9340_s16 }
  0x89   : > { %800 = vrot.lane.b32.xlu0 %v9885_v27, %s9340_s16  ;;  %v1689_v27 = vld [vmem:[%s15432_s1 + $0x8] sm:$0xff] }
  0x8a   : > { %802 = vrot.lane.b32.xlu1 %v9890_v49, %s9340_s16  ;;  %v1688_v49 = vld [vmem:[%s15432_s1] sm:$0xff] }
  0x8b   : > { %v9901_v17 = vpop.permute.xlu0 %656 }
  0x8c   : > { %v9906_v61 = vpop.permute.xlu1 %660 }
  0x8d   : > { %804 = vrot.lane.b32.xlu0 %v9897_v46, %s9340_s16 }
  0x8e   : > { %806 = vrot.lane.b32.xlu1 %v9904_v12, %s9340_s16  ;;  %v9929_v12 = vsel %vm591_vm2, %v652_v58, %v653_v52 }
  0x8f   : > { %v9917_v13 = vpop.permute.xlu0 %658  ;;  %15778 = vst [vmem:[#allocation55_spill] sm:$0xff] %v9929_v12 }
  0x90   : > { %v9922_v5 = vpop.permute.xlu1 %662 }
  0x91   : > { %808 = vrot.lane.b32.xlu0 %v9913_v59, %s9340_s16 }
  0x92   : > { %810 = vrot.lane.b32.xlu1 %v9920_v16, %s9340_s16 }
  0x93   : > { %v9931_v46 = vpop.permute.xlu0 %664 }
  0x94   : > { %v9936_v23 = vpop.permute.xlu1 %666 }
  0x95   : > { %812 = vrot.lane.b32.xlu0 %v9929_v12, %s9340_s16 }
  0x96   : > { %814 = vrot.lane.b32.xlu1 %v9934_v22, %s9340_s16 }
  0x97   : > { %v9942_v48 = vpop.permute.xlu0 %668 }
  0x98   : > { %v9944_v30 = vpop.permute.xlu1 %670 }
  0x99   : > { %848 = vrot.lane.b32.xlu0 %v9438_v21, %s9341_s17 }
  0x9a   : > { %850 = vrot.lane.b32.xlu1 %v9435_v20, %s9341_s17 }
  0x9b   : > { %v9950_v52 = vpop.permute.xlu0 %672 }
  0x9c   : > { %v9952_v58 = vpop.permute.xlu1 %674 }
  0x9d   : > { %852 = vrot.lane.b32.xlu0 %v9446_v25, %s9341_s17 }
  0x9e   : > { %854 = vrot.lane.b32.xlu1 %v9443_v24, %s9341_s17 }
  0x9f   : > { %v9958_v22 = vpop.permute.xlu0 %676 }
  0xa0   : > { %15780 = vst [vmem:[#allocation57_spill] sm:$0xff] %v9958_v22  ;;  %v9960_v12 = vpop.permute.xlu1 %678 }
  0xa1   : > { %15781 = vst [vmem:[#allocation58_spill] sm:$0xff] %v9960_v12  ;;  %856 = vrot.lane.b32.xlu0 %v9469_v34, %s9341_s17  ;;  %v7663_v12 = vpack.c.bf16 %v1689_v27, %v1688_v49 }
  0xa2   : > { %858 = vrot.lane.b32.xlu1 %v9466_v33, %s9341_s17 }
  0xa3   : > { %v9966_v16 = vpop.permute.xlu0 %680  ;;  %7664 = vmatprep.subr.bf16.mxu0 %v7663_v12 }
  0xa4   : > { %15782 = vst [vmem:[#allocation59_spill] sm:$0xff] %v9966_v16  ;;  %v9968_v59 = vpop.permute.xlu1 %682  ;;  %7666 = vmatpush3.bf16.msra.mxu0 %v7663_v12  ;;  %v1692_v12 = vld [vmem:[%s15432_s1 + $0x20] sm:$0xf] }
  0xa5   : > { %15783 = vst [vmem:[#allocation60_spill] sm:$0xff] %v9968_v59  ;;  %944 = vrot.lane.b32.xlu0 %v9456_v29, %s9342_s18  ;;  %v1690_v29 = vld [vmem:[%s15432_s1 + $0x10] sm:$0xff]  ;;  %v1691_v59 = vld [vmem:[%s15432_s1 + $0x18] sm:$0xff] }
  0xa6   : > { %946 = vrot.lane.b32.xlu1 %v9472_v35, %s9342_s18  ;;  %v7667_v49 = vpack.c.bf16 %v1691_v59, %v1690_v29 }
  0xa7   : > { %v9980_v22 = vpop.permute.xlu0 %684 }
  0xa8   : > { %15784 = vst [vmem:[#allocation61_spill] sm:$0xff] %v9980_v22  ;;  %v9982_v16 = vpop.permute.xlu1 %686  ;;  %7668 = vmatprep.subr.bf16.mxu0 %v7667_v49 }
  0xa9   : > { %15785 = vst [vmem:[#allocation62_spill] sm:$0xff] %v9982_v16  ;;  %1040 = vrot.lane.b32.xlu0 %v9753_v32, %s9343_s23  ;;  %7670 = vmatpush3.bf16.msra.mxu0 %v7667_v49 }
  0xaa   : > { %1042 = vrot.lane.b32.xlu1 %v9758_v26, %s9343_s23  ;;  %7445 = vmatprep.subr.msk.mxu0 %vm1797_vm3, %v1692_v12 }
  0xab   : > { %v9994_v27 = vpop.permute.xlu0 %688 }
  0xac   : > { %15786 = vst [vmem:[#allocation63_spill] sm:$0xff] %v9994_v27  ;;  %v9996_v35 = vpop.permute.xlu1 %690 }
  0xad   : > { %15787 = vst [vmem:[#allocation64_spill] sm:$0xff] %v9996_v35  ;;  %1136 = vrot.lane.b32.xlu0 %v9446_v25, %s9344_s28  ;;  %7446 = vmatpush3.msk.msra.mxu0 %vm1797_vm3, %v1692_v12 }
  0xae   : > { %1138 = vrot.lane.b32.xlu1 %v9443_v24, %s9344_s28 }
  0xaf   : > { %v10005_v26 = vpop.permute.xlu0 %692 }
  0xb0   : > { %15788 = vst [vmem:[#allocation65_spill] sm:$0xff] %v10005_v26  ;;  %v10007_v29 = vpop.permute.xlu1 %694 }
  0xb1   : > { %15789 = vst [vmem:[#allocation66_spill] sm:$0xff] %v10007_v29  ;;  %1232 = vrot.lane.b32.xlu0 %v9483_v42, %s9345_s13 }
  0xb2   : > { %948 = vrot.lane.b32.xlu1 %v9483_v42, %s9342_s18 }
  0xb3   : > { %v10013_v59 = vpop.permute.xlu0 %696 }
  0xb4   : > { %15790 = vst [vmem:[#allocation67_spill] sm:$0xff] %v10013_v59  ;;  %v10015_v49 = vpop.permute.xlu1 %698 }
  0xb5   : > { %15791 = vst [vmem:[#allocation68_spill] sm:$0xff] %v10015_v49  ;;  %1234 = vrot.lane.b32.xlu0 %v9486_v43, %s9345_s13 }
  0xb6   : > { %1328 = vrot.lane.b32.xlu1 %v9765_v2, %s9346_s14 }
  0xb7   : > { %v10021_v32 = vpop.permute.xlu0 %700 }
  0xb8   : > { %15792 = vst [vmem:[#allocation69_spill] sm:$0xff] %v10021_v32  ;;  %v10023_v29 = vpop.permute.xlu1 %702 }
  0xb9   : > { %15793 = vst [vmem:[#allocation70_spill] sm:$0xff] %v10023_v29  ;;  %950 = vrot.lane.b32.xlu0 %v9486_v43, %s9342_s18 }
  0xba   : > { %1044 = vrot.lane.b32.xlu1 %v9765_v2, %s9343_s23 }
  0xbb   : > { %v10029_v42 = vpop.permute.xlu0 %704 }
  0xbc   : > { %15794 = vst [vmem:[#allocation71_spill] sm:$0xff] %v10029_v42  ;;  %v10031_v12 = vpop.permute.xlu1 %706 }
  0xbd   : > { %15795 = vst [vmem:[#allocation72_spill] sm:$0xff] %v10031_v12  ;;  %1330 = vrot.lane.b32.xlu0 %v9770_v3, %s9346_s14 }
  0xbe   : > { %1046 = vrot.lane.b32.xlu1 %v9770_v3, %s9343_s23 }
  0xbf   : > { %v10037_v49 = vpop.permute.xlu0 %708 }
  0xc0   : > { %15796 = vst [vmem:[#allocation73_spill] sm:$0xff] %v10037_v49  ;;  %v10039_v32 = vpop.permute.xlu1 %710 }
  0xc1   : > { %15797 = vst [vmem:[#allocation74_spill] sm:$0xff] %v10039_v32  ;;  %1140 = vrot.lane.b32.xlu0 %v9469_v34, %s9344_s28 }
  0xc2   : > { %1142 = vrot.lane.b32.xlu1 %v9466_v33, %s9344_s28 }
  0xc3   : > { %v10045_v43 = vpop.permute.xlu0 %712 }
  0xc4   : > { %15798 = vst [vmem:[#allocation75_spill] sm:$0xff] %v10045_v43  ;;  %v10047_v2 = vpop.permute.xlu1 %714 }
  0xc5   : > { %15799 = vst [vmem:[#allocation76_spill] sm:$0xff] %v10047_v2  ;;  %1236 = vrot.lane.b32.xlu0 %v9499_v50, %s9345_s13 }
  0xc6   : > { %952 = vrot.lane.b32.xlu1 %v9499_v50, %s9342_s18 }
  0xc7   : > { %v10053_v3 = vpop.permute.xlu0 %716 }
  0xc8   : > { %15800 = vst [vmem:[#allocation77_spill] sm:$0xff] %v10053_v3  ;;  %v10055_v49 = vpop.permute.xlu1 %718 }
  0xc9   : > { %15801 = vst [vmem:[#allocation78_spill] sm:$0xff] %v10055_v49  ;;  %1238 = vrot.lane.b32.xlu0 %v9506_v55, %s9345_s13 }
  0xca   : > { %1332 = vrot.lane.b32.xlu1 %v9777_v51, %s9346_s14 }
  0xcb   : > { %v10061_v32 = vpop.permute.xlu0 %752 }
  0xcc   : > { %v10063_v43 = vpop.permute.xlu1 %754 }
  0xcd   : > { %954 = vrot.lane.b32.xlu0 %v9506_v55, %s9342_s18 }
  0xce   : > { %1048 = vrot.lane.b32.xlu1 %v9777_v51, %s9343_s23 }
  0xcf   : > { %v10069_v50 = vpop.permute.xlu0 %756 }
  0xd0   : > { %v10071_v3 = vpop.permute.xlu1 %758 }
  0xd1   : > { %1334 = vrot.lane.b32.xlu0 %v9782_v40, %s9346_s14 }
  0xd2   : > { %1050 = vrot.lane.b32.xlu1 %v9782_v40, %s9343_s23 }
  0xd3   : > { %v10077_v49 = vpop.permute.xlu0 %760 }
  0xd4   : > { %v10079_v2 = vpop.permute.xlu1 %762 }
  0xd5   : > { %1144 = vrot.lane.b32.xlu0 %v9492_v45, %s9344_s28 }
  0xd6   : > { %860 = vrot.lane.b32.xlu1 %v9492_v45, %s9341_s17 }
  0xd7   : > { %v10085_v55 = vpop.permute.xlu0 %764 }
  0xd8   : > { %v10087_v51 = vpop.permute.xlu1 %766 }
  0xd9   : > { %1146 = vrot.lane.b32.xlu0 %v9489_v44, %s9344_s28 }
  0xda   : > { %1240 = vrot.lane.b32.xlu1 %v9521_v60, %s9345_s13 }
  0xdb   : > { %v10093_v40 = vpop.permute.xlu0 %768 }
  0xdc   : > { %v10095_v12 = vpop.permute.xlu1 %770 }
  0xdd   : > { %862 = vrot.lane.b32.xlu0 %v9489_v44, %s9341_s17 }
  0xde   : > { %956 = vrot.lane.b32.xlu1 %v9521_v60, %s9342_s18 }
  0xdf   : > { %v10101_v42 = vpop.permute.xlu0 %772 }
  0xe0   : > { %v10103_v29 = vpop.permute.xlu1 %774 }
  0xe1   : > { %1242 = vrot.lane.b32.xlu0 %v9529_v0, %s9345_s13 }
  0xe2   : > { %1336 = vrot.lane.b32.xlu1 %v9789_v4, %s9346_s14 }
  0xe3   : > { %v10109_v59 = vpop.permute.xlu0 %776 }
  0xe4   : > { %v10111_v26 = vpop.permute.xlu1 %778 }
  0xe5   : > { %15802 = vst [vmem:[#allocation79_spill] sm:$0xff] %v10111_v26  ;;  %958 = vrot.lane.b32.xlu0 %v9529_v0, %s9342_s18 }
  0xe6   : > { %1052 = vrot.lane.b32.xlu1 %v9789_v4, %s9343_s23 }
  0xe7   : > { %v10117_v60 = vpop.permute.xlu0 %780 }
  0xe8   : > { %15803 = vst [vmem:[#allocation80_spill] sm:$0xff] %v10117_v60  ;;  %v10119_v35 = vpop.permute.xlu1 %782 }
  0xe9   : > { %15804 = vst [vmem:[#allocation81_spill] sm:$0xff] %v10119_v35  ;;  %1338 = vrot.lane.b32.xlu0 %v9794_v36, %s9346_s14  ;;  %v15821_v35 = vld [vmem:[#allocation12_spill] sm:$0xff] }
  0xea   : > { %1054 = vrot.lane.b32.xlu1 %v9794_v36, %s9343_s23 }
  0xeb   : > { %v10125_v27 = vpop.permute.xlu0 %784 }
  0xec   : > { %15805 = vst [vmem:[#allocation82_spill] sm:$0xff] %v10125_v27  ;;  %v10127_v16 = vpop.permute.xlu1 %786 }
  0xed   : > { %15806 = vst [vmem:[#allocation83_spill] sm:$0xff] %v10127_v16  ;;  %1148 = vrot.lane.b32.xlu0 %v9512_v57, %s9344_s28 }
  0xee   : > { %864 = vrot.lane.b32.xlu1 %v9512_v57, %s9341_s17 }
  0xef   : > { %v10133_v0 = vpop.permute.xlu0 %788 }
  0xf0   : > { %15807 = vst [vmem:[#allocation84_spill] sm:$0xff] %v10133_v0  ;;  %v10135_v4 = vpop.permute.xlu1 %790 }
  0xf1   : > { %15808 = vst [vmem:[#allocation85_spill] sm:$0xff] %v10135_v4  ;;  %1150 = vrot.lane.b32.xlu0 %v9509_v56, %s9344_s28 }
  0xf2   : > { %1244 = vrot.lane.b32.xlu1 %v9541_v6, %s9345_s13 }
  0xf3   : > { %v10141_v36 = vpop.permute.xlu0 %792 }
  0xf4   : > { %15809 = vst [vmem:[#allocation86_spill] sm:$0xff] %v10141_v36  ;;  %v10143_v27 = vpop.permute.xlu1 %794 }
  0xf5   : > { %15810 = vst [vmem:[#allocation87_spill] sm:$0xff] %v10143_v27  ;;  %866 = vrot.lane.b32.xlu0 %v9509_v56, %s9341_s17 }
  0xf6   : > { %960 = vrot.lane.b32.xlu1 %v9541_v6, %s9342_s18 }
  0xf7   : > { %v10149_v16 = vpop.permute.xlu0 %796 }
  0xf8   : > { %15811 = vst [vmem:[#allocation88_spill] sm:$0xff] %v10149_v16  ;;  %v10151_v0 = vpop.permute.xlu1 %798 }
  0xf9   : > { %15812 = vst [vmem:[#allocation89_spill] sm:$0xff] %v10151_v0  ;;  %1246 = vrot.lane.b32.xlu0 %v9544_v7, %s9345_s13 }
  0xfa   : > { %1340 = vrot.lane.b32.xlu1 %v9801_v31, %s9346_s14 }
  0xfb   : > { %v10157_v4 = vpop.permute.xlu0 %800 }
  0xfc   : > { %15813 = vst [vmem:[#allocation90_spill] sm:$0xff] %v10157_v4  ;;  %v10159_v36 = vpop.permute.xlu1 %802 }
  0xfd   : > { %15814 = vst [vmem:[#allocation91_spill] sm:$0xff] %v10159_v36  ;;  %962 = vrot.lane.b32.xlu0 %v9544_v7, %s9342_s18 }
  0xfe   : > { %1056 = vrot.lane.b32.xlu1 %v9801_v31, %s9343_s23 }
  0xff   : > { %v10165_v6 = vpop.permute.xlu0 %804 }
 0x100   : > { %15815 = vst [vmem:[#allocation92_spill] sm:$0xff] %v10165_v6  ;;  %v10167_v16 = vpop.permute.xlu1 %806 }
 0x101   : > { %15816 = vst [vmem:[#allocation93_spill] sm:$0xff] %v10167_v16  ;;  %1342 = vrot.lane.b32.xlu0 %v9806_v8, %s9346_s14 }
 0x102   : > { %1058 = vrot.lane.b32.xlu1 %v9806_v8, %s9343_s23 }
 0x103   : > { %v10173_v0 = vpop.permute.xlu0 %808 }
 0x104   : > { %15817 = vst [vmem:[#allocation94_spill] sm:$0xff] %v10173_v0  ;;  %v10175_v4 = vpop.permute.xlu1 %810 }
 0x105   : > { %15818 = vst [vmem:[#allocation95_spill] sm:$0xff] %v10175_v4  ;;  %1152 = vrot.lane.b32.xlu0 %v9532_v1, %s9344_s28 }
 0x106   : > { %868 = vrot.lane.b32.xlu1 %v9532_v1, %s9341_s17 }
 0x107   : > { %v10181_v7 = vpop.permute.xlu0 %812 }
 0x108   : > { %15819 = vst [vmem:[#allocation96_spill] sm:$0xff] %v10181_v7  ;;  %v10183_v31 = vpop.permute.xlu1 %814 }
 0x109   : > { %15820 = vst [vmem:[#allocation97_spill] sm:$0xff] %v10183_v31  ;;  %1154 = vrot.lane.b32.xlu0 %v9526_v63, %s9344_s28 }
 0x10a   : > { %1248 = vrot.lane.b32.xlu1 %v9561_v18, %s9345_s13 }
 0x10b   : > { %v849_v8 = vpop.permute.xlu0 %848 }
 0x10c   : > { %v851_v0 = vpop.permute.xlu1 %850 }
 0x10d   : > { %870 = vrot.lane.b32.xlu0 %v9526_v63, %s9341_s17 }
 0x10e   : > { %964 = vrot.lane.b32.xlu1 %v9561_v18, %s9342_s18 }
 0x10f   : > { %v10193_v4 = vpop.permute.xlu0 %852 }
 0x110   : > { %v10195_v16 = vpop.permute.xlu1 %854 }
 0x111   : > { %1250 = vrot.lane.b32.xlu0 %v9564_v19, %s9345_s13 }
 0x112   : > { %1344 = vrot.lane.b32.xlu1 %v9813_v41, %s9346_s14 }
 0x113   : > { %v10201_v31 = vpop.permute.xlu0 %856 }
 0x114   : > { %v10203_v7 = vpop.permute.xlu1 %858 }
 0x115   : > { %966 = vrot.lane.b32.xlu0 %v9564_v19, %s9342_s18 }
 0x116   : > { %1060 = vrot.lane.b32.xlu1 %v9813_v41, %s9343_s23 }
 0x117   : > { %v945_v18 = vpop.permute.xlu0 %944 }
 0x118   : > { %v947_v6 = vpop.permute.xlu1 %946 }
 0x119   : > { %1346 = vrot.lane.b32.xlu0 %v9818_v53, %s9346_s14 }
 0x11a   : > { %1062 = vrot.lane.b32.xlu1 %v9818_v53, %s9343_s23  ;;  %v1425_v53 = vsel %vm1424_vm4, %v9430_v15, %v9901_v17  ;;  %v15822_v15 = vld [vmem:[#allocation2_spill] sm:$0xff] }
 0x11b   : > { %v1041_v36 = vpop.permute.xlu0 %1040  ;;  %v1458_v60 = vsel %vm1457_vm5, %v1425_v53, %v10061_v32 }
 0x11c   : > { %v1043_v27 = vpop.permute.xlu1 %1042  ;;  %v1491_v22 = vsel %vm1490_vm6, %v1458_v60, %v849_v8 }
 0x11d   : > { %1156 = vrot.lane.b32.xlu0 %v9552_v11, %s9344_s28  ;;  %v1524_v63 = vsel %vm1523_vm7, %v1491_v22, %v945_v18  ;;  %v1426_v22 = vsel %vm1424_vm4, %v15822_v15, %v9917_v13  ;;  %v15823_v18 = vld [vmem:[#allocation13_spill] sm:$0xff] }
 0x11e   : > { %872 = vrot.lane.b32.xlu1 %v9552_v11, %s9341_s17  ;;  %v1557_v17 = vsel %vm1556_vm8, %v1524_v63, %v1041_v36 }
 0x11f   : > { %v1137_v19 = vpop.permute.xlu0 %1136 }
 0x120   : > { %v1139_v41 = vpop.permute.xlu1 %1138  ;;  %v1590_v32 = vsel %vm1589_vm9, %v1557_v17, %v1137_v19 }
 0x121   : > { %1158 = vrot.lane.b32.xlu0 %v9549_v10, %s9344_s28 }
 0x122   : > { %1252 = vrot.lane.b32.xlu1 %v15821_v35, %s9345_s13 }
 0x123   : > { %v1233_v11 = vpop.permute.xlu0 %1232 }
 0x124   : > { %v949_v26 = vpop.permute.xlu1 %948  ;;  %v1623_v60 = vsel %vm1622_vm10, %v1590_v32, %v1233_v11 }
 0x125   : > { %874 = vrot.lane.b32.xlu0 %v9549_v10, %s9341_s17 }
 0x126   : > { %968 = vrot.lane.b32.xlu1 %v15821_v35, %s9342_s18  ;;  %v1459_v35 = vsel %vm1457_vm5, %v1426_v22, %v10063_v43 }
 0x127   : > { %v1235_v53 = vpop.permute.xlu0 %1234  ;;  %v1492_v11 = vsel %vm1490_vm6, %v1459_v35, %v851_v0  ;;  %v15825_v35 = vld [vmem:[#allocation10_spill] sm:$0xff] }
 0x128   : > { %v1329_v8 = vpop.permute.xlu1 %1328  ;;  %v1525_v19 = vsel %vm1523_vm7, %v1492_v11, %v947_v6 }
 0x129   : > { %1254 = vrot.lane.b32.xlu0 %v15823_v18, %s9345_s13  ;;  %v1656_v63 = vsel %vm1655_vm11, %v1623_v60, %v1329_v8  ;;  %v1558_v13 = vsel %vm1556_vm8, %v1525_v19, %v1043_v27 }
 0x12a   : > { %1348 = vrot.lane.b32.xlu1 %v9825_v37, %s9346_s14  ;;  %7447 = vmatprep.mubr.msk.f32.mxu0 %vm1700_vm12, %v1656_v63  ;;  %v1591_v32 = vsel %vm1589_vm9, %v1558_v13, %v1139_v41  ;;  %v15824_v41 = vld [vmem:[#allocation11_spill] sm:$0xff] }
 0x12b   : > { %v951_v36 = vpop.permute.xlu0 %950  ;;  %v1624_v43 = vsel %vm1622_vm10, %v1591_v32, %v1235_v53 }
 0x12c   : > { %v1045_v17 = vpop.permute.xlu1 %1044 }
 0x12d   : > { %970 = vrot.lane.b32.xlu0 %v15823_v18, %s9342_s18 }
 0x12e   : > { %1064 = vrot.lane.b32.xlu1 %v9825_v37, %s9343_s23  ;;  %v1427_v37 = vsel %vm1424_vm4, %v9438_v21, %v9906_v61  ;;  %v15826_v61 = vld [vmem:[#allocation16_spill] sm:$0xff] }
 0x12f   : > { %v1331_v60 = vpop.permute.xlu0 %1330  ;;  %v1460_v53 = vsel %vm1457_vm5, %v1427_v37, %v10069_v50  ;;  %v15827_v37 = vld [vmem:[#allocation17_spill] sm:$0xff] }
 0x130   : > { %v1657_v8 = vsel %vm1655_vm11, %v1624_v43, %v1331_v60  ;;  %v1047_v0 = vpop.permute.xlu1 %1046  ;;  %v1493_v18 = vsel %vm1490_vm6, %v1460_v53, %v10193_v4  ;;  %v1428_v4 = vsel %vm1424_vm4, %v9435_v20, %v9922_v5 }
 0x131   : > { %1350 = vrot.lane.b32.xlu0 %v9830_v14, %s9346_s14  ;;  %7448 = vmatmul.mubr.msk.f32.vlgmr.msra.gmra.mrb[0].mxu0 %vm1700_vm12, %v1657_v8  ;;  %v1526_v63 = vsel %vm1523_vm7, %v1493_v18, %v949_v26 }
 0x132   : > { %1066 = vrot.lane.b32.xlu1 %v9830_v14, %s9343_s23  ;;  %v1559_v11 = vsel %vm1556_vm8, %v1526_v63, %v1045_v17  ;;  %v1461_v17 = vsel %vm1457_vm5, %v1428_v4, %v10071_v3 }
 0x133   : > { %v1141_v27 = vpop.permute.xlu0 %1140  ;;  %v1494_v43 = vsel %vm1490_vm6, %v1461_v17, %v10195_v16 }
 0x134   : > { %v1143_v6 = vpop.permute.xlu1 %1142  ;;  %v1592_v19 = vsel %vm1589_vm9, %v1559_v11, %v1141_v27  ;;  %v1527_v8 = vsel %vm1523_vm7, %v1494_v43, %v951_v36  ;;  %v15828_v11 = vld [vmem:[#allocation15_spill] sm:$0xff] }
 0x135   : > { %1160 = vrot.lane.b32.xlu0 %v15824_v41, %s9344_s28  ;;  %v1560_v27 = vsel %vm1556_vm8, %v1527_v8, %v1047_v0 }
 0x136   : > { %876 = vrot.lane.b32.xlu1 %v15824_v41, %s9341_s17  ;;  %v1593_v53 = vsel %vm1589_vm9, %v1560_v27, %v1143_v6 }
 0x137   : > { %v1237_v22 = vpop.permute.xlu0 %1236 }
 0x138   : > { %v953_v14 = vpop.permute.xlu1 %952  ;;  %v1625_v50 = vsel %vm1622_vm10, %v1592_v19, %v1237_v22 }
 0x139   : > { %1162 = vrot.lane.b32.xlu0 %v15825_v35, %s9344_s28 }
 0x13a   : > { %1256 = vrot.lane.b32.xlu1 %v15826_v61, %s9345_s13 }
 0x13b   : > { %v1239_v13 = vpop.permute.xlu0 %1238 }
 0x13c   : > { %v1333_v32 = vpop.permute.xlu1 %1332  ;;  %v1626_v3 = vsel %vm1622_vm10, %v1593_v53, %v1239_v13 }
 0x13d   : > { %v1658_v26 = vsel %vm1655_vm11, %v1625_v50, %v1333_v32  ;;  %878 = vrot.lane.b32.xlu0 %v15825_v35, %s9341_s17  ;;  %v15829_v32 = vld [vmem:[#allocation14_spill] sm:$0xff] }
 0x13e   : > { %972 = vrot.lane.b32.xlu1 %v15826_v61, %s9342_s18  ;;  %7450 = vmatprep.mubr.msk.f32.mxu0 %vm1700_vm12, %v1658_v26  ;;  %v1429_v61 = vsel %vm1424_vm4, %v9446_v25, %v9931_v46  ;;  %v15830_v25 = vld [vmem:[#allocation20_spill] sm:$0xff] }
 0x13f   : > { %v955_v60 = vpop.permute.xlu0 %954 }
 0x140   : > { %v1049_v5 = vpop.permute.xlu1 %1048 }
 0x141   : > { %1258 = vrot.lane.b32.xlu0 %v15827_v37, %s9345_s13 }
 0x142   : > { %1352 = vrot.lane.b32.xlu1 %v9837_v9, %s9346_s14 }
 0x143   : > { %v1335_v22 = vpop.permute.xlu0 %1334 }
 0x144   : > { %v1659_v18 = vsel %vm1655_vm11, %v1626_v3, %v1335_v22  ;;  %v1051_v16 = vpop.permute.xlu1 %1050 }
 0x145   : > { %974 = vrot.lane.b32.xlu0 %v15827_v37, %s9342_s18  ;;  %7451 = vmatmul.mubr.msk.f32.gmra.mrb[2].mxu0 %vm1700_vm12, %v1659_v18  ;;  %v15831_v37 = vld [vmem:[#allocation21_spill] sm:$0xff] }
 0x146   : > { %1068 = vrot.lane.b32.xlu1 %v9837_v9, %s9343_s23  ;;  %v1462_v9 = vsel %vm1457_vm5, %v1429_v61, %v10077_v49 }
 0x147   : > { %v1145_v36 = vpop.permute.xlu0 %1144  ;;  %v1495_v13 = vsel %vm1490_vm6, %v1462_v9, %v10201_v31  ;;  %v1430_v31 = vsel %vm1424_vm4, %v9443_v24, %v9936_v23 }
 0x148   : > { %v861_v0 = vpop.permute.xlu1 %860  ;;  %v1528_v50 = vsel %vm1523_vm7, %v1495_v13, %v953_v14  ;;  %v1463_v43 = vsel %vm1457_vm5, %v1430_v31, %v10079_v2 }
 0x149   : > { %1354 = vrot.lane.b32.xlu0 %v9842_v28, %s9346_s14  ;;  %v1561_v4 = vsel %vm1556_vm8, %v1528_v50, %v1049_v5  ;;  %v1496_v8 = vsel %vm1490_vm6, %v1463_v43, %v10203_v7  ;;  %v15833_v50 = vld [vmem:[#allocation18_spill] sm:$0xff] }
 0x14a   : > { %1070 = vrot.lane.b32.xlu1 %v9842_v28, %s9343_s23  ;;  %v1594_v46 = vsel %vm1589_vm9, %v1561_v4, %v1145_v36  ;;  %v1529_v27 = vsel %vm1523_vm7, %v1496_v8, %v955_v60 }
 0x14b   : > { %v1147_v6 = vpop.permute.xlu0 %1146  ;;  %v1562_v23 = vsel %vm1556_vm8, %v1529_v27, %v1051_v16 }
 0x14c   : > { %v1241_v63 = vpop.permute.xlu1 %1240  ;;  %v1595_v53 = vsel %vm1589_vm9, %v1562_v23, %v1147_v6  ;;  %v15832_v6 = vld [vmem:[#allocation19_spill] sm:$0xff] }
 0x14d   : > { %1164 = vrot.lane.b32.xlu0 %v15828_v11, %s9344_s28  ;;  %v1627_v49 = vsel %vm1622_vm10, %v1594_v46, %v1241_v63  ;;  %v1431_v63 = vsel %vm1424_vm4, %v9469_v34, %v9942_v48 }
 0x14e   : > { %880 = vrot.lane.b32.xlu1 %v15828_v11, %s9341_s17 }
 0x14f   : > { %v863_v19 = vpop.permute.xlu0 %862 }
 0x150   : > { %v957_v28 = vpop.permute.xlu1 %956 }
 0x151   : > { %1166 = vrot.lane.b32.xlu0 %v15829_v32, %s9344_s28 }
 0x152   : > { %1260 = vrot.lane.b32.xlu1 %v15830_v25, %s9345_s13 }
 0x153   : > { %v1243_v26 = vpop.permute.xlu0 %1242 }
 0x154   : > { %v1337_v17 = vpop.permute.xlu1 %1336  ;;  %v1628_v2 = vsel %vm1622_vm10, %v1595_v53, %v1243_v26  ;;  %v15836_v53 = vld [vmem:[#allocation23_spill] sm:$0xff] }
 0x155   : > { %v1660_v14 = vsel %vm1655_vm11, %v1627_v49, %v1337_v17  ;;  %882 = vrot.lane.b32.xlu0 %v15829_v32, %s9341_s17 }
 0x156   : > { %976 = vrot.lane.b32.xlu1 %v15830_v25, %s9342_s18  ;;  %7453 = vmatprep.mubr.msk.f32.mxu0 %vm1700_vm12, %v1660_v14  ;;  %v15834_v25 = vld [vmem:[#allocation24_spill] sm:$0xff] }
 0x157   : > { %v959_v5 = vpop.permute.xlu0 %958 }
 0x158   : > { %v1053_v24 = vpop.permute.xlu1 %1052 }
 0x159   : > { %1262 = vrot.lane.b32.xlu0 %v15831_v37, %s9345_s13 }
 0x15a   : > { %1356 = vrot.lane.b32.xlu1 %v9849_v54, %s9346_s14 }
 0x15b   : > { %v1339_v3 = vpop.permute.xlu0 %1338 }
 0x15c   : > { %v1661_v22 = vsel %vm1655_vm11, %v1628_v2, %v1339_v3  ;;  %v1055_v7 = vpop.permute.xlu1 %1054  ;;  %v1433_v2 = vsel %vm1424_vm4, %v9492_v45, %v9950_v52 }
 0x15d   : > { %978 = vrot.lane.b32.xlu0 %v15831_v37, %s9342_s18  ;;  %7454 = vmatmul.mubr.msk.f32.gmra.mrb[4].mxu0 %vm1700_vm12, %v1661_v22 }
 0x15e   : > { %1072 = vrot.lane.b32.xlu1 %v9849_v54, %s9343_s23  ;;  %v1464_v54 = vsel %vm1457_vm5, %v1431_v63, %v10085_v55 }
 0x15f   : > { %v1149_v60 = vpop.permute.xlu0 %1148  ;;  %v1497_v9 = vsel %vm1490_vm6, %v1464_v54, %v861_v0  ;;  %v1432_v0 = vsel %vm1424_vm4, %v9466_v33, %v9944_v30  ;;  %v15835_v30 = vld [vmem:[#allocation25_spill] sm:$0xff] }
 0x160   : > { %v865_v18 = vpop.permute.xlu1 %864  ;;  %v1465_v26 = vsel %vm1457_vm5, %v1432_v0, %v10087_v51 }
 0x161   : > { %1358 = vrot.lane.b32.xlu0 %v9854_v47, %s9346_s14  ;;  %v1498_v49 = vsel %vm1490_vm6, %v1465_v26, %v863_v19 }
 0x162   : > { %1074 = vrot.lane.b32.xlu1 %v9854_v47, %s9343_s23  ;;  %v1530_v47 = vsel %vm1523_vm7, %v1497_v9, %v957_v28  ;;  %v1531_v31 = vsel %vm1523_vm7, %v1498_v49, %v959_v5 }
 0x163   : > { %v1151_v16 = vpop.permute.xlu0 %1150  ;;  %v1563_v4 = vsel %vm1556_vm8, %v1530_v47, %v1053_v24  ;;  %v1564_v33 = vsel %vm1556_vm8, %v1531_v31, %v1055_v7  ;;  %v15842_v31 = vld [vmem:[#allocation57_spill] sm:$0xff] }
 0x164   : > { %v1245_v36 = vpop.permute.xlu1 %1244  ;;  %v1596_v34 = vsel %vm1589_vm9, %v1563_v4, %v1149_v60  ;;  %v1597_v43 = vsel %vm1589_vm9, %v1564_v33, %v1151_v16  ;;  %v15837_v60 = vld [vmem:[#allocation22_spill] sm:$0xff] }
 0x165   : > { %1168 = vrot.lane.b32.xlu0 %v15832_v6, %s9344_s28  ;;  %v1629_v46 = vsel %vm1622_vm10, %v1596_v34, %v1245_v36  ;;  %v15838_v36 = vld [vmem:[#allocation28_spill] sm:$0xff] }
 0x166   : > { %884 = vrot.lane.b32.xlu1 %v15832_v6, %s9341_s17 }
 0x167   : > { %v867_v61 = vpop.permute.xlu0 %866 }
 0x168   : > { %v961_v13 = vpop.permute.xlu1 %960 }
 0x169   : > { %1170 = vrot.lane.b32.xlu0 %v15833_v50, %s9344_s28 }
 0x16a   : > { %1264 = vrot.lane.b32.xlu1 %v15834_v25, %s9345_s13 }
 0x16b   : > { %v1247_v48 = vpop.permute.xlu0 %1246 }
 0x16c   : > { %v1341_v55 = vpop.permute.xlu1 %1340  ;;  %v1630_v51 = vsel %vm1622_vm10, %v1597_v43, %v1247_v48 }
 0x16d   : > { %v1662_v28 = vsel %vm1655_vm11, %v1629_v46, %v1341_v55  ;;  %886 = vrot.lane.b32.xlu0 %v15833_v50, %s9341_s17 }
 0x16e   : > { %980 = vrot.lane.b32.xlu1 %v15834_v25, %s9342_s18  ;;  %7456 = vmatprep.mubr.msk.f32.mxu0 %vm1700_vm12, %v1662_v28  ;;  %v15840_v28 = vld [vmem:[#allocation48_spill] sm:$0xff] }
 0x16f   : > { %v963_v17 = vpop.permute.xlu0 %962 }
 0x170   : > { %v1057_v14 = vpop.permute.xlu1 %1056 }
 0x171   : > { %1266 = vrot.lane.b32.xlu0 %v15835_v30, %s9345_s13 }
 0x172   : > { %1360 = vrot.lane.b32.xlu1 %v9861_v39, %s9346_s14 }
 0x173   : > { %v1343_v8 = vpop.permute.xlu0 %1342 }
 0x174   : > { %v1663_v27 = vsel %vm1655_vm11, %v1630_v51, %v1343_v8  ;;  %v1059_v19 = vpop.permute.xlu1 %1058  ;;  %v15843_v8 = vld [vmem:[#allocation26_spill] sm:$0xff] }
 0x175   : > { %982 = vrot.lane.b32.xlu0 %v15835_v30, %s9342_s18  ;;  %7457 = vmatmul.mubr.msk.f32.gmra.mrb[6].mxu0 %vm1700_vm12, %v1663_v27 }
 0x176   : > { %1076 = vrot.lane.b32.xlu1 %v9861_v39, %s9343_s23  ;;  %v1466_v39 = vsel %vm1457_vm5, %v1433_v2, %v10093_v40 }
 0x177   : > { %v1153_v5 = vpop.permute.xlu0 %1152  ;;  %v1499_v22 = vsel %vm1490_vm6, %v1466_v39, %v865_v18  ;;  %v1434_v18 = vsel %vm1424_vm4, %v9489_v44, %v9952_v58  ;;  %v15839_v58 = vld [vmem:[#allocation29_spill] sm:$0xff] }
 0x178   : > { %v869_v24 = vpop.permute.xlu1 %868  ;;  %v1467_v9 = vsel %vm1457_vm5, %v1434_v18, %v10095_v12 }
 0x179   : > { %1362 = vrot.lane.b32.xlu0 %v9866_v62, %s9346_s14 }
 0x17a   : > { %1078 = vrot.lane.b32.xlu1 %v9866_v62, %s9343_s23  ;;  %v1532_v62 = vsel %vm1523_vm7, %v1499_v22, %v961_v13  ;;  %v1500_v13 = vsel %vm1490_vm6, %v1467_v9, %v867_v61  ;;  %v15848_v9 = vld [vmem:[#allocation50_spill] sm:$0xff] }
 0x17b   : > { %v1155_v23 = vpop.permute.xlu0 %1154  ;;  %v1565_v16 = vsel %vm1556_vm8, %v1532_v62, %v1057_v14  ;;  %v1533_v4 = vsel %vm1523_vm7, %v1500_v13, %v963_v17  ;;  %v15841_v17 = vld [vmem:[#allocation27_spill] sm:$0xff]  ;;  %v1435_v14 = vsel %vm1424_vm4, %v9512_v57, %v15842_v31  ;;  %v15853_v31 = vld [vmem:[#allocation60_spill] sm:$0xff] }
 0x17c   : > { %v1249_v37 = vpop.permute.xlu1 %1248  ;;  %v1598_v45 = vsel %vm1589_vm9, %v1565_v16, %v1153_v5  ;;  %v1566_v44 = vsel %vm1556_vm8, %v1533_v4, %v1059_v19  ;;  %v15844_v19 = vld [vmem:[#allocation32_spill] sm:$0xff]  ;;  %v15849_v4 = vld [vmem:[#allocation31_spill] sm:$0xff] }
 0x17d   : > { %1172 = vrot.lane.b32.xlu0 %v15836_v53, %s9344_s28  ;;  %v1631_v63 = vsel %vm1622_vm10, %v1598_v45, %v1249_v37  ;;  %v1599_v34 = vsel %vm1589_vm9, %v1566_v44, %v1155_v23  ;;  %v15845_v37 = vld [vmem:[#allocation58_spill] sm:$0xff] }
 0x17e   : > { %888 = vrot.lane.b32.xlu1 %v15836_v53, %s9341_s17 }
 0x17f   : > { %v871_v3 = vpop.permute.xlu0 %870 }
 0x180   : > { %v965_v7 = vpop.permute.xlu1 %964 }
 0x181   : > { %1174 = vrot.lane.b32.xlu0 %v15837_v60, %s9344_s28 }
 0x182   : > { %1268 = vrot.lane.b32.xlu1 %v15838_v36, %s9345_s13 }
 0x183   : > { %v1251_v52 = vpop.permute.xlu0 %1250 }
 0x184   : > { %v1345_v40 = vpop.permute.xlu1 %1344  ;;  %v1632_v12 = vsel %vm1622_vm10, %v1599_v34, %v1251_v52 }
 0x185   : > { %v1664_v54 = vsel %vm1655_vm11, %v1631_v63, %v1345_v40  ;;  %890 = vrot.lane.b32.xlu0 %v15837_v60, %s9341_s17 }
 0x186   : > { %984 = vrot.lane.b32.xlu1 %v15838_v36, %s9342_s18  ;;  %7459 = vmatprep.mubr.msk.f32.mxu0 %vm1700_vm12, %v1664_v54  ;;  %v15846_v36 = vld [vmem:[#allocation33_spill] sm:$0xff] }
 0x187   : > { %v967_v47 = vpop.permute.xlu0 %966 }
 0x188   : > { %v1061_v25 = vpop.permute.xlu1 %1060 }
 0x189   : > { %1270 = vrot.lane.b32.xlu0 %v15839_v58, %s9345_s13 }
 0x18a   : > { %1364 = vrot.lane.b32.xlu1 %v9873_v38, %s9346_s14 }
 0x18b   : > { %v1347_v48 = vpop.permute.xlu0 %1346 }
 0x18c   : > { %v1665_v46 = vsel %vm1655_vm11, %v1632_v12, %v1347_v48  ;;  %v1063_v61 = vpop.permute.xlu1 %1062 }
 0x18d   : > { %986 = vrot.lane.b32.xlu0 %v15839_v58, %s9342_s18  ;;  %7460 = vmatmul.mubr.msk.f32.gmra.mrb[8].mxu0 %vm1700_vm12, %v1665_v46 }
 0x18e   : > { %1080 = vrot.lane.b32.xlu1 %v9873_v38, %s9343_s23  ;;  %v1468_v38 = vsel %vm1457_vm5, %v1435_v14, %v10101_v42  ;;  %v15854_v14 = vld [vmem:[#allocation8_spill] sm:$0xff] }
 0x18f   : > { %v1157_v55 = vpop.permute.xlu0 %1156  ;;  %v1501_v30 = vsel %vm1490_vm6, %v1468_v38, %v869_v24  ;;  %v1436_v24 = vsel %vm1424_vm4, %v9509_v56, %v15845_v37  ;;  %v15857_v37 = vld [vmem:[#allocation51_spill] sm:$0xff] }
 0x190   : > { %v873_v0 = vpop.permute.xlu1 %872  ;;  %v1534_v51 = vsel %vm1523_vm7, %v1501_v30, %v965_v7  ;;  %v1469_v39 = vsel %vm1457_vm5, %v1436_v24, %v10103_v29  ;;  %v15847_v29 = vld [vmem:[#allocation49_spill] sm:$0xff]  ;;  %v15855_v30 = vld [vmem:[#allocation79_spill] sm:$0xff] }
 0x191   : > { %1366 = vrot.lane.b32.xlu0 %v15840_v28, %s9346_s14  ;;  %v1567_v27 = vsel %vm1556_vm8, %v1534_v51, %v1061_v25  ;;  %v1502_v22 = vsel %vm1490_vm6, %v1469_v39, %v871_v3  ;;  %v15850_v25 = vld [vmem:[#allocation59_spill] sm:$0xff] }
 0x192   : > { %1082 = vrot.lane.b32.xlu1 %v15840_v28, %s9343_s23  ;;  %v1600_v57 = vsel %vm1589_vm9, %v1567_v27, %v1157_v55  ;;  %v1535_v62 = vsel %vm1523_vm7, %v1502_v22, %v967_v47  ;;  %v1437_v44 = vsel %vm1424_vm4, %v9532_v1, %v15850_v25  ;;  %v15852_v28 = vld [vmem:[#allocation36_spill] sm:$0xff] }
 0x193   : > { %v1159_v26 = vpop.permute.xlu0 %1158  ;;  %v1568_v56 = vsel %vm1556_vm8, %v1535_v62, %v1063_v61  ;;  %v1470_v58 = vsel %vm1457_vm5, %v1437_v44, %v10109_v59  ;;  %v15851_v61 = vld [vmem:[#allocation30_spill] sm:$0xff]  ;;  %v15858_v62 = vld [vmem:[#allocation52_spill] sm:$0xff] }
 0x194   : > { %v1253_v49 = vpop.permute.xlu1 %1252  ;;  %v1601_v45 = vsel %vm1589_vm9, %v1568_v56, %v1159_v26  ;;  %v1503_v12 = vsel %vm1490_vm6, %v1470_v58, %v873_v0  ;;  %v1438_v0 = vsel %vm1424_vm4, %v15854_v14, %v15853_v31  ;;  %v15864_v44 = vld [vmem:[#allocation40_spill] sm:$0xff] }
 0x195   : > { %1176 = vrot.lane.b32.xlu0 %v15841_v17, %s9344_s28  ;;  %v1633_v23 = vsel %vm1622_vm10, %v1600_v57, %v1253_v49 }
 0x196   : > { %892 = vrot.lane.b32.xlu1 %v15841_v17, %s9341_s17 }
 0x197   : > { %v875_v33 = vpop.permute.xlu0 %874 }
 0x198   : > { %v969_v43 = vpop.permute.xlu1 %968 }
 0x199   : > { %1178 = vrot.lane.b32.xlu0 %v15843_v8, %s9344_s28  ;;  %v1536_v46 = vsel %vm1523_vm7, %v1503_v12, %v969_v43  ;;  %v1471_v43 = vsel %vm1457_vm5, %v1438_v0, %v15855_v30  ;;  %v15867_v0 = vld [vmem:[#allocation41_spill] sm:$0xff] }
 0x19a   : > { %1272 = vrot.lane.b32.xlu1 %v15844_v19, %s9345_s13  ;;  %v1504_v51 = vsel %vm1490_vm6, %v1471_v43, %v875_v33  ;;  %v15868_v30 = vld [vmem:[#allocation53_spill] sm:$0xff] }
 0x19b   : > { %v1255_v5 = vpop.permute.xlu0 %1254 }
 0x19c   : > { %v1349_v42 = vpop.permute.xlu1 %1348  ;;  %v1634_v52 = vsel %vm1622_vm10, %v1601_v45, %v1255_v5  ;;  %v15860_v45 = vld [vmem:[#allocation61_spill] sm:$0xff] }
 0x19d   : > { %v1666_v2 = vsel %vm1655_vm11, %v1633_v23, %v1349_v42  ;;  %894 = vrot.lane.b32.xlu0 %v15843_v8, %s9341_s17  ;;  %v15856_v23 = vld [vmem:[#allocation37_spill] sm:$0xff] }
 0x19e   : > { %988 = vrot.lane.b32.xlu1 %v15844_v19, %s9342_s18  ;;  %7462 = vmatprep.mubr.msk.f32.mxu0 %vm1700_vm12, %v1666_v2 }
 0x19f   : > { %v971_v7 = vpop.permute.xlu0 %970 }
 0x1a0   : > { %v1065_v16 = vpop.permute.xlu1 %1064  ;;  %v1537_v19 = vsel %vm1523_vm7, %v1504_v51, %v971_v7 }
 0x1a1   : > { %1274 = vrot.lane.b32.xlu0 %v15846_v36, %s9345_s13  ;;  %v1569_v55 = vsel %vm1556_vm8, %v1536_v46, %v1065_v16 }
 0x1a2   : > { %1368 = vrot.lane.b32.xlu1 %v15847_v29, %s9346_s14 }
 0x1a3   : > { %v1351_v63 = vpop.permute.xlu0 %1350 }
 0x1a4   : > { %v1667_v40 = vsel %vm1655_vm11, %v1634_v52, %v1351_v63  ;;  %v1067_v3 = vpop.permute.xlu1 %1066  ;;  %v15862_v63 = vld [vmem:[#allocation80_spill] sm:$0xff] }
 0x1a5   : > { %990 = vrot.lane.b32.xlu0 %v15846_v36, %s9342_s18  ;;  %7463 = vmatmul.mubr.msk.f32.gmra.mrb[10].mxu0 %vm1700_vm12, %v1667_v40  ;;  %v1570_v5 = vsel %vm1556_vm8, %v1537_v19, %v1067_v3  ;;  %v15859_v36 = vld [vmem:[#allocation35_spill] sm:$0xff] }
 0x1a6   : > { %1084 = vrot.lane.b32.xlu1 %v15847_v29, %s9343_s23  ;;  %v15861_v29 = vld [vmem:[#allocation9_spill] sm:$0xff] }
 0x1a7   : > { %v1161_v18 = vpop.permute.xlu0 %1160  ;;  %v1439_v52 = vsel %vm1424_vm4, %v15861_v29, %v15860_v45  ;;  %v15873_v45 = vld [vmem:[#allocation38_spill] sm:$0xff] }
 0x1a8   : > { %v877_v54 = vpop.permute.xlu1 %876  ;;  %v1602_v1 = vsel %vm1589_vm9, %v1569_v55, %v1161_v18  ;;  %v1472_v40 = vsel %vm1457_vm5, %v1439_v52, %v15862_v63  ;;  %v15874_v52 = vld [vmem:[#allocation42_spill] sm:$0xff] }
 0x1a9   : > { %1370 = vrot.lane.b32.xlu0 %v15848_v9, %s9346_s14  ;;  %v1505_v18 = vsel %vm1490_vm6, %v1472_v40, %v877_v54 }
 0x1aa   : > { %1086 = vrot.lane.b32.xlu1 %v15848_v9, %s9343_s23 }
 0x1ab   : > { %v1163_v13 = vpop.permute.xlu0 %1162 }
 0x1ac   : > { %v1257_v47 = vpop.permute.xlu1 %1256  ;;  %v1603_v42 = vsel %vm1589_vm9, %v1570_v5, %v1163_v13  ;;  %v15869_v5 = vld [vmem:[#allocation54_spill] sm:$0xff] }
 0x1ad   : > { %1180 = vrot.lane.b32.xlu0 %v15849_v4, %s9344_s28  ;;  %v1635_v49 = vsel %vm1622_vm10, %v1602_v1, %v1257_v47  ;;  %v15863_v47 = vld [vmem:[#allocation34_spill] sm:$0xff]  ;;  %v15866_v1 = vld [vmem:[#allocation81_spill] sm:$0xff] }
 0x1ae   : > { %896 = vrot.lane.b32.xlu1 %v15849_v4, %s9341_s17 }
 0x1af   : > { %v879_v34 = vpop.permute.xlu0 %878 }
 0x1b0   : > { %v973_v48 = vpop.permute.xlu1 %972 }
 0x1b1   : > { %1182 = vrot.lane.b32.xlu0 %v15851_v61, %s9344_s28  ;;  %v1538_v13 = vsel %vm1523_vm7, %v1505_v18, %v973_v48 }
 0x1b2   : > { %1276 = vrot.lane.b32.xlu1 %v15852_v28, %s9345_s13 }
 0x1b3   : > { %v1259_v26 = vpop.permute.xlu0 %1258 }
 0x1b4   : > { %v1353_v59 = vpop.permute.xlu1 %1352  ;;  %v1636_v24 = vsel %vm1622_vm10, %v1603_v42, %v1259_v26 }
 0x1b5   : > { %v1668_v38 = vsel %vm1655_vm11, %v1635_v49, %v1353_v59  ;;  %898 = vrot.lane.b32.xlu0 %v15851_v61, %s9341_s17 }
 0x1b6   : > { %992 = vrot.lane.b32.xlu1 %v15852_v28, %s9342_s18  ;;  %7465 = vmatprep.mubr.msk.f32.mxu0 %vm1700_vm12, %v1668_v38  ;;  %v15865_v28 = vld [vmem:[#allocation62_spill] sm:$0xff] }
 0x1b7   : > { %v975_v27 = vpop.permute.xlu0 %974  ;;  %v1440_v54 = vsel %vm1424_vm4, %v9549_v10, %v15865_v28  ;;  %v15877_v28 = vld [vmem:[#allocation43_spill] sm:$0xff] }
 0x1b8   : > { %v1069_v57 = vpop.permute.xlu1 %1068  ;;  %v1473_v26 = vsel %vm1457_vm5, %v1440_v54, %v15866_v1 }
 0x1b9   : > { %1278 = vrot.lane.b32.xlu0 %v15856_v23, %s9345_s13  ;;  %v1571_v25 = vsel %vm1556_vm8, %v1538_v13, %v1069_v57  ;;  %v1506_v49 = vsel %vm1490_vm6, %v1473_v26, %v879_v34  ;;  %v15875_v13 = vld [vmem:[#allocation64_spill] sm:$0xff] }
 0x1ba   : > { %1372 = vrot.lane.b32.xlu1 %v15857_v37, %s9346_s14  ;;  %v1539_v31 = vsel %vm1523_vm7, %v1506_v49, %v975_v27 }
 0x1bb   : > { %v1355_v2 = vpop.permute.xlu0 %1354 }
 0x1bc   : > { %v1669_v39 = vsel %vm1655_vm11, %v1636_v24, %v1355_v2  ;;  %v1071_v33 = vpop.permute.xlu1 %1070  ;;  %v15871_v24 = vld [vmem:[#allocation63_spill] sm:$0xff] }
 0x1bd   : > { %994 = vrot.lane.b32.xlu0 %v15856_v23, %s9342_s18  ;;  %7466 = vmatmul.mubr.msk.f32.gmra.mrb[12].mxu0 %vm1700_vm12, %v1669_v39  ;;  %v1572_v10 = vsel %vm1556_vm8, %v1539_v31, %v1071_v33  ;;  %v1441_v2 = vsel %vm1424_vm4, %v15824_v41, %v15871_v24  ;;  %v15872_v39 = vld [vmem:[#allocation82_spill] sm:$0xff] }
 0x1be   : > { %1088 = vrot.lane.b32.xlu1 %v15857_v37, %s9343_s23  ;;  %v15870_v37 = vld [vmem:[#allocation39_spill] sm:$0xff]  ;;  %v1474_v33 = vsel %vm1457_vm5, %v1441_v2, %v15872_v39 }
 0x1bf   : > { %v1165_v22 = vpop.permute.xlu0 %1164 }
 0x1c0   : > { %v881_v7 = vpop.permute.xlu1 %880  ;;  %v1604_v58 = vsel %vm1589_vm9, %v1571_v25, %v1165_v22  ;;  %v15876_v25 = vld [vmem:[#allocation83_spill] sm:$0xff] }
 0x1c1   : > { %1374 = vrot.lane.b32.xlu0 %v15858_v62, %s9346_s14 }
 0x1c2   : > { %1090 = vrot.lane.b32.xlu1 %v15858_v62, %s9343_s23  ;;  %v1507_v62 = vsel %vm1490_vm6, %v1474_v33, %v881_v7  ;;  %v1442_v7 = vsel %vm1424_vm4, %v15825_v35, %v15875_v13  ;;  %v15887_v13 = vld [vmem:[#allocation44_spill] sm:$0xff] }
 0x1c3   : > { %v1167_v16 = vpop.permute.xlu0 %1166 }
 0x1c4   : > { %v1261_v56 = vpop.permute.xlu1 %1260  ;;  %v1605_v38 = vsel %vm1589_vm9, %v1572_v10, %v1167_v16 }
 0x1c5   : > { %1184 = vrot.lane.b32.xlu0 %v15859_v36, %s9344_s28  ;;  %v1637_v46 = vsel %vm1622_vm10, %v1604_v58, %v1261_v56 }
 0x1c6   : > { %900 = vrot.lane.b32.xlu1 %v15859_v36, %s9341_s17 }
 0x1c7   : > { %v883_v3 = vpop.permute.xlu0 %882 }
 0x1c8   : > { %v977_v9 = vpop.permute.xlu1 %976 }
 0x1c9   : > { %1186 = vrot.lane.b32.xlu0 %v15863_v47, %s9344_s28  ;;  %v1540_v56 = vsel %vm1523_vm7, %v1507_v62, %v977_v9  ;;  %v15884_v62 = vld [vmem:[#allocation66_spill] sm:$0xff] }
 0x1ca   : > { %1280 = vrot.lane.b32.xlu1 %v15864_v44, %s9345_s13 }
 0x1cb   : > { %v1263_v12 = vpop.permute.xlu0 %1262 }
 0x1cc   : > { %v1357_v55 = vpop.permute.xlu1 %1356  ;;  %v1638_v43 = vsel %vm1622_vm10, %v1605_v38, %v1263_v12  ;;  %v15880_v38 = vld [vmem:[#allocation3_spill] sm:$0xff] }
 0x1cd   : > { %v1670_v48 = vsel %vm1655_vm11, %v1637_v46, %v1357_v55  ;;  %902 = vrot.lane.b32.xlu0 %v15863_v47, %s9341_s17 }
 0x1ce   : > { %996 = vrot.lane.b32.xlu1 %v15864_v44, %s9342_s18  ;;  %7468 = vmatprep.mubr.msk.f32.mxu0 %vm1700_vm12, %v1670_v48  ;;  %v1475_v44 = vsel %vm1457_vm5, %v1442_v7, %v15876_v25  ;;  %v15878_v48 = vld [vmem:[#allocation55_spill] sm:$0xff]  ;;  %v10693_v7 = vld [vmem:[%s15433_s2] ss:$0 sm:$0xff] }
 0x1cf   : > { %v979_v59 = vpop.permute.xlu0 %978  ;;  %v1508_v58 = vsel %vm1490_vm6, %v1475_v44, %v883_v3 }
 0x1d0   : > { %v1073_v14 = vpop.permute.xlu1 %1072  ;;  %v1541_v46 = vsel %vm1523_vm7, %v1508_v58, %v979_v59 }
 0x1d1   : > { %1282 = vrot.lane.b32.xlu0 %v15867_v0, %s9345_s13  ;;  %v1573_v29 = vsel %vm1556_vm8, %v1540_v56, %v1073_v14  ;;  %v15879_v14 = vld [vmem:[#allocation56_spill] sm:$0xff]  ;;  %v15885_v56 = vld [vmem:[#allocation85_spill] sm:$0xff] }
 0x1d2   : > { %1376 = vrot.lane.b32.xlu1 %v15868_v30, %s9346_s14 }
 0x1d3   : > { %v1359_v51 = vpop.permute.xlu0 %1358 }
 0x1d4   : > { %v1671_v19 = vsel %vm1655_vm11, %v1638_v43, %v1359_v51  ;;  %v1075_v34 = vpop.permute.xlu1 %1074  ;;  %v15882_v51 = vld [vmem:[#allocation84_spill] sm:$0xff] }
 0x1d5   : > { %998 = vrot.lane.b32.xlu0 %v15867_v0, %s9342_s18  ;;  %7469 = vmatmul.mubr.msk.f32.gmra.mrb[14].mxu0 %vm1700_vm12, %v1671_v19  ;;  %v1574_v35 = vsel %vm1556_vm8, %v1541_v46, %v1075_v34 }
 0x1d6   : > { %1092 = vrot.lane.b32.xlu1 %v15868_v30, %s9343_s23  ;;  %v15881_v30 = vld [vmem:[#allocation65_spill] sm:$0xff] }
 0x1d7   : > { %v1169_v27 = vpop.permute.xlu0 %1168  ;;  %v1443_v43 = vsel %vm1424_vm4, %v15828_v11, %v15881_v30  ;;  %v15883_v11 = vld [vmem:[#allocation4_spill] sm:$0xff]  ;;  %v15890_v30 = vld [vmem:[#allocation86_spill] sm:$0xff] }
 0x1d8   : > { %v885_v57 = vpop.permute.xlu1 %884  ;;  %v1606_v41 = vsel %vm1589_vm9, %v1573_v29, %v1169_v27  ;;  %v1476_v19 = vsel %vm1457_vm5, %v1443_v43, %v15882_v51 }
 0x1d9   : > { %1378 = vrot.lane.b32.xlu0 %v15869_v5, %s9346_s14  ;;  %v1509_v27 = vsel %vm1490_vm6, %v1476_v19, %v885_v57  ;;  %v1444_v57 = vsel %vm1424_vm4, %v15829_v32, %v15884_v62  ;;  %v15895_v62 = vld [vmem:[#allocation87_spill] sm:$0xff] }
 0x1da   : > { %1094 = vrot.lane.b32.xlu1 %v15869_v5, %s9343_s23  ;;  %v1477_v29 = vsel %vm1457_vm5, %v1444_v57, %v15885_v56 }
 0x1db   : > { %v1171_v23 = vpop.permute.xlu0 %1170 }
 0x1dc   : > { %v1265_v42 = vpop.permute.xlu1 %1264  ;;  %v1607_v54 = vsel %vm1589_vm9, %v1574_v35, %v1171_v23 }
 0x1dd   : > { %1188 = vrot.lane.b32.xlu0 %v15870_v37, %s9344_s28  ;;  %v1639_v40 = vsel %vm1622_vm10, %v1606_v41, %v1265_v42 }
 0x1de   : > { %904 = vrot.lane.b32.xlu1 %v15870_v37, %s9341_s17 }
 0x1df   : > { %v887_v22 = vpop.permute.xlu0 %886 }
 0x1e0   : > { %v981_v16 = vpop.permute.xlu1 %980 }
 0x1e1   : > { %1190 = vrot.lane.b32.xlu0 %v15873_v45, %s9344_s28  ;;  %v1542_v23 = vsel %vm1523_vm7, %v1509_v27, %v981_v16 }
 0x1e2   : > { %1284 = vrot.lane.b32.xlu1 %v15874_v52, %s9345_s13 }
 0x1e3   : > { %v1267_v63 = vpop.permute.xlu0 %1266 }
 0x1e4   : > { %v1361_v18 = vpop.permute.xlu1 %1360  ;;  %v1640_v1 = vsel %vm1622_vm10, %v1607_v54, %v1267_v63 }
 0x1e5   : > { %v1672_v9 = vsel %vm1655_vm11, %v1639_v40, %v1361_v18  ;;  %906 = vrot.lane.b32.xlu0 %v15873_v45, %s9341_s17  ;;  %v15886_v18 = vld [vmem:[#allocation6_spill] sm:$0xff] }
 0x1e6   : > { %1000 = vrot.lane.b32.xlu1 %v15874_v52, %s9342_s18  ;;  %7471 = vmatprep.mubr.msk.f32.mxu0 %vm1700_vm12, %v1672_v9  ;;  %v1510_v52 = vsel %vm1490_vm6, %v1477_v29, %v887_v22 }
 0x1e7   : > { %v983_v12 = vpop.permute.xlu0 %982 }
 0x1e8   : > { %v1077_v55 = vpop.permute.xlu1 %1076  ;;  %v1543_v63 = vsel %vm1523_vm7, %v1510_v52, %v983_v12 }
 0x1e9   : > { %1286 = vrot.lane.b32.xlu0 %v15877_v28, %s9345_s13  ;;  %v1575_v42 = vsel %vm1556_vm8, %v1542_v23, %v1077_v55 }
 0x1ea   : > { %1380 = vrot.lane.b32.xlu1 %v15878_v48, %s9346_s14 }
 0x1eb   : > { %v1363_v26 = vpop.permute.xlu0 %1362 }
 0x1ec   : > { %v1673_v49 = vsel %vm1655_vm11, %v1640_v1, %v1363_v26  ;;  %v1079_v3 = vpop.permute.xlu1 %1078  ;;  %v15888_v26 = vld [vmem:[#allocation45_spill] sm:$0xff] }
 0x1ed   : > { %1002 = vrot.lane.b32.xlu0 %v15877_v28, %s9342_s18  ;;  %7472 = vmatmul.mubr.msk.f32.gmra.mrb[16].mxu0 %vm1700_vm12, %v1673_v49  ;;  %v1576_v32 = vsel %vm1556_vm8, %v1543_v63, %v1079_v3 }
 0x1ee   : > { %1096 = vrot.lane.b32.xlu1 %v15878_v48, %s9343_s23 }
 0x1ef   : > { %v1173_v59 = vpop.permute.xlu0 %1172 }
 0x1f0   : > { %v10645_v31 = vpop.permute.xlu1 %888  ;;  %v1608_v24 = vsel %vm1589_vm9, %v1575_v42, %v1173_v59 }
 0x1f1   : > { %1382 = vrot.lane.b32.xlu0 %v15879_v14, %s9346_s14 }
 0x1f2   : > { %1098 = vrot.lane.b32.xlu1 %v15879_v14, %s9343_s23 }
 0x1f3   : > { %v1175_v10 = vpop.permute.xlu0 %1174 }
 0x1f4   : > { %v1269_v0 = vpop.permute.xlu1 %1268 }
 0x1f5   : > { %1192 = vrot.lane.b32.xlu0 %v15880_v38, %s9344_s28  ;;  %v1641_v39 = vsel %vm1622_vm10, %v1608_v24, %v1269_v0  ;;  %v15889_v0 = vld [vmem:[#allocation67_spill] sm:$0xff] }
 0x1f6   : > { %908 = vrot.lane.b32.xlu1 %v15880_v38, %s9341_s17  ;;  %v1445_v38 = vsel %vm1424_vm4, %v15832_v6, %v15889_v0  ;;  %v15892_v6 = vld [vmem:[#allocation7_spill] sm:$0xff]  ;;  %v15897_v0 = vld [vmem:[#allocation69_spill] sm:$0xff] }
 0x1f7   : > { %v10660_v34 = vpop.permute.xlu0 %890  ;;  %v1478_v43 = vsel %vm1457_vm5, %v1445_v38, %v15890_v30  ;;  %v1447_v38 = vsel %vm1424_vm4, %v15836_v53, %v15897_v0  ;;  %v15898_v30 = vld [vmem:[#allocation88_spill] sm:$0xff] }
 0x1f8   : > { %v985_v5 = vpop.permute.xlu1 %984  ;;  %v1511_v19 = vsel %vm1490_vm6, %v1478_v43, %v10645_v31  ;;  %v1480_v43 = vsel %vm1457_vm5, %v1447_v38, %v15898_v30 }
 0x1f9   : > { %1194 = vrot.lane.b32.xlu0 %v15822_v15, %s9344_s28  ;;  %v1544_v23 = vsel %vm1523_vm7, %v1511_v19, %v985_v5 }
 0x1fa   : > { %1288 = vrot.lane.b32.xlu1 %v15883_v11, %s9345_s13 }
 0x1fb   : > { %v1271_v2 = vpop.permute.xlu0 %1270 }
 0x1fc   : > { %v1365_v33 = vpop.permute.xlu1 %1364 }
 0x1fd   : > { %v1674_v16 = vsel %vm1655_vm11, %v1641_v39, %v1365_v33  ;;  %910 = vrot.lane.b32.xlu0 %v15822_v15, %s9341_s17  ;;  %v1609_v15 = vsel %vm1589_vm9, %v1576_v32, %v1175_v10  ;;  %v15893_v39 = vld [vmem:[#allocation68_spill] sm:$0xff]  ;;  %v15894_v33 = vld [vmem:[#allocation46_spill] sm:$0xff] }
 0x1fe   : > { %1004 = vrot.lane.b32.xlu1 %v15883_v11, %s9342_s18  ;;  %7474 = vmatprep.mubr.msk.f32.mxu0 %vm1700_vm12, %v1674_v16  ;;  %v1642_v22 = vsel %vm1622_vm10, %v1609_v15, %v1271_v2  ;;  %v1446_v31 = vsel %vm1424_vm4, %v15833_v50, %v15893_v39  ;;  %v15896_v16 = vld [vmem:[#allocation47_spill] sm:$0xff] }
 0x1ff   : > { %v987_v41 = vpop.permute.xlu0 %986  ;;  %v1479_v57 = vsel %vm1457_vm5, %v1446_v31, %v15895_v62  ;;  %v3153_v62 = vld [vmem:[%s15434_s3 + $0x28] sm:$0xff] }
 0x200   : > { %v1081_v40 = vpop.permute.xlu1 %1080  ;;  %v1512_v56 = vsel %vm1490_vm6, %v1479_v57, %v10660_v34  ;;  %v15900_v57 = vld [vmem:[#allocation89_spill] sm:$0xff] }
 0x201   : > { %1290 = vrot.lane.b32.xlu0 %v15886_v18, %s9345_s13  ;;  %v1577_v42 = vsel %vm1556_vm8, %v1544_v23, %v1081_v40  ;;  %v1545_v52 = vsel %vm1523_vm7, %v1512_v56, %v987_v41 }
 0x202   : > { %1384 = vrot.lane.b32.xlu1 %v15887_v13, %s9346_s14 }
 0x203   : > { %v1367_v9 = vpop.permute.xlu0 %1366 }
 0x204   : > { %v1675_v25 = vsel %vm1655_vm11, %v1642_v22, %v1367_v9  ;;  %v1083_v44 = vpop.permute.xlu1 %1082  ;;  %v7449_v58 = vpop.f32.mrb[0].mxu0 }
 0x205   : > { %v1873_v12 = vadd.f32 %v7449_v58, %v10693_v7  ;;  %1006 = vrot.lane.b32.xlu0 %v15886_v18, %s9342_s18  ;;  %v1867_v46 = vpop.f32.mrb[1].mxu0  ;;  %7475 = vmatmul.mubr.msk.f32.gmra.mrb[18].mxu0 %vm1700_vm12, %v1675_v25  ;;  %v1578_v40 = vsel %vm1556_vm8, %v1545_v52, %v1083_v44 }
 0x206   : > { %v1868_v55 = vadd.f32 %v10693_v7, %v1867_v46  ;;  %1100 = vrot.lane.b32.xlu1 %v15887_v13, %s9343_s23 }
 0x207   : > { %v2027_v35 = vmax.f32 %v1873_v12, 0.0  ;;  %v1177_v28 = vpop.permute.xlu0 %1176 }
 0x208   : > { %v2026_v54 = vmax.f32 %v1868_v55, 0.0  ;;  %v10704_v48 = vpop.permute.xlu1 %892 }
 0x209   : > { %v2075_v1 = vrot.slane %v2027_v35, 7  ;;  %1386 = vrot.lane.b32.xlu0 %v15888_v26, %s9346_s14  ;;  %v1513_v23 = vsel %vm1490_vm6, %v1480_v43, %v10704_v48  ;;  %v3158_v43 = vld [vmem:[%s15434_s3 + $0x50] sm:$0xff] }
 0x20a   : > { %v2124_v49 = vrot.slane %v2026_v54, 7  ;;  %1102 = vrot.lane.b32.xlu1 %v15888_v26, %s9343_s23  ;;  %v3148_v26 = vld [vmem:[%s15434_s3] sm:$0xff] }
 0x20b   : > { %v1179_v3 = vpop.permute.xlu0 %1178 }
 0x20c   : > { %v10711_v59 = vsel %vm429_vm0, %v2124_v49, %v2075_v1  ;;  %v10714_v14 = vsel %vm429_vm0, %v2075_v1, %v2124_v49  ;;  %v1273_v10 = vpop.permute.xlu1 %1272  ;;  %v1611_v15 = vsel %vm1589_vm9, %v1578_v40, %v1179_v3  ;;  %v3149_v49 = vld [vmem:[%s15434_s3 + $0x8] sm:$0xff]  ;;  %v15545_v3 = vmov 0.0|0.0  }
 0x20d   : > { %1196 = vrot.lane.b32.xlu0 %v9438_v21, %s9344_s28  ;;  %v15891_v21 = vld [vmem:[#allocation5_spill] sm:$0xff]  ;;  %7839 = vmatprep.subr.bf16.mxu1 %v15545_v3 }
 0x20e   : > { %1198 = vrot.lane.b32.xlu1 %v9435_v20, %s9344_s28  ;;  %v1610_v20 = vsel %vm1589_vm9, %v1577_v42, %v1177_v28  ;;  %7671 = vmatprep.subr.bf16.mxu0 %v15545_v3  ;;  %v3150_v42 = vld [vmem:[%s15434_s3 + $0x10] sm:$0xff] }
 0x20f   : > { %v10725_v51 = vpop.permute.xlu0 %894  ;;  %v1643_v24 = vsel %vm1622_vm10, %v1610_v20, %v1273_v10  ;;  %v7672_v10 = vpack.c.bf16 %v3149_v49, %v3148_v26 }
 0x210   : > { %v989_v27 = vpop.permute.xlu1 %988 }
 0x211   : > { %1292 = vrot.lane.b32.xlu0 %v15891_v21, %s9345_s13  ;;  %7855 = vmatpush1.bf16.msra.mxu1 %v7672_v10  ;;  %v1546_v53 = vsel %vm1523_vm7, %v1513_v23, %v989_v27  ;;  %v15899_v27 = vld [vmem:[#allocation70_spill] sm:$0xff]  ;;  %v3159_v23 = vld [vmem:[%s15434_s3 + $0x58] sm:$0xff] }
 0x212   : > { %1294 = vrot.lane.b32.xlu1 %v15892_v6, %s9345_s13  ;;  %7673 = vmatpush1.bf16.msra.mxu0 %v7672_v10  ;;  %v3151_v6 = vld [vmem:[%s15434_s3 + $0x18] sm:$0xff]  ;;  %v1448_v31 = vsel %vm1424_vm4, %v15837_v60, %v15899_v27  ;;  %s9349_s13 = smov 96  }
 0x213   : > { %v1275_v11 = vpop.permute.xlu0 %1274  ;;  %7840 = vmatprep.subr.bf16.mxu1 %v15545_v3  ;;  %7674 = vmatprep.subr.bf16.mxu0 %v15545_v3 }
 0x214   : > { %v1369_v2 = vpop.permute.xlu1 %1368  ;;  %v1644_v22 = vsel %vm1622_vm10, %v1611_v15, %v1275_v11  ;;  %v7675_v11 = vpack.c.bf16 %v3151_v6, %v3150_v42 }
 0x215   : > { %v1676_v5 = vsel %vm1655_vm11, %v1643_v24, %v1369_v2  ;;  %1388 = vrot.lane.b32.xlu0 %v15894_v33, %s9346_s14  ;;  %v3152_v33 = vld [vmem:[%s15434_s3 + $0x20] sm:$0xff] }
 0x216   : > { %1390 = vrot.lane.b32.xlu1 %v15896_v16, %s9346_s14  ;;  %7477 = vmatprep.mubr.msk.f32.mxu0 %vm1700_vm12, %v1676_v5  ;;  %v1481_v16 = vsel %vm1457_vm5, %v1448_v31, %v15900_v57  ;;  %v7678_v60 = vpack.c.bf16 %v3153_v62, %v3152_v33  ;;  %v3163_v57 = vld [vmem:[%s15434_s3 + $0x78] sm:$0xff] }
 0x217   : > { %v991_v29 = vpop.permute.xlu0 %990  ;;  %7856 = vmatpush1.bf16.msra.mxu1 %v7675_v11  ;;  %7676 = vmatpush1.bf16.msra.mxu0 %v7675_v11  ;;  %v1514_v56 = vsel %vm1490_vm6, %v1481_v16, %v10725_v51  ;;  %v3155_v51 = vld [vmem:[%s15434_s3 + $0x38] sm:$0xff]  ;;  %v3161_v11 = vld [vmem:[%s15434_s3 + $0x68] sm:$0xff] }
 0x218   : > { %v1085_v50 = vpop.permute.xlu1 %1084  ;;  %v7452_v63 = vpop.f32.mrb[2].mxu0  ;;  %7841 = vmatprep.subr.bf16.mxu1 %v15545_v3  ;;  %7677 = vmatprep.subr.bf16.mxu0 %v15545_v3 }
 0x219   : > { %v1883_v32 = vadd.f32 %v7452_v63, %v10693_v7  ;;  %v1877_v18 = vpop.f32.mrb[3].mxu0  ;;  %v1579_v20 = vsel %vm1556_vm8, %v1546_v53, %v1085_v50  ;;  %v1547_v50 = vsel %vm1523_vm7, %v1514_v56, %v991_v29  ;;  %v7687_v53 = vpack.c.bf16 %v3159_v23, %v3158_v43 }
 0x21a   : > { %v1878_v13 = vadd.f32 %v10693_v7, %v1877_v18 }
 0x21b   : > { %v2029_v9 = vmax.f32 %v1883_v32, 0.0  ;;  %v1371_v25 = vpop.permute.xlu0 %1370  ;;  %7857 = vmatpush1.bf16.msra.mxu1 %v7678_v60  ;;  %7679 = vmatpush1.bf16.msra.mxu0 %v7678_v60 }
 0x21c   : > { %v2028_v58 = vmax.f32 %v1878_v13, 0.0  ;;  %v1677_v34 = vsel %vm1655_vm11, %v1644_v22, %v1371_v25  ;;  %v1087_v12 = vpop.permute.xlu1 %1086  ;;  %7842 = vmatprep.subr.bf16.mxu1 %v15545_v3  ;;  %v3154_v13 = vld [vmem:[%s15434_s3 + $0x30] sm:$0xff]  ;;  %7680 = vmatprep.subr.bf16.mxu0 %v15545_v3 }
 0x21d   : > { %v2076_v41 = vrot.slane %v2029_v9, 7  ;;  %7478 = vmatmul.mubr.msk.f32.gmra.mrb[20].mxu0 %vm1700_vm12, %v1677_v34  ;;  %v1580_v32 = vsel %vm1556_vm8, %v1547_v50, %v1087_v12  ;;  %v7681_v9 = vpack.c.bf16 %v3155_v51, %v3154_v13  ;;  %v15904_v13 = vld [vmem:[#allocation91_spill] sm:$0xff] }
 0x21e   : > { %v2126_v46 = vrot.slane %v2028_v58, 7 }
 0x21f   : > { %v1181_v44 = vpop.permute.xlu0 %1180  ;;  %7858 = vmatpush1.bf16.msra.mxu1 %v7681_v9  ;;  %7682 = vmatpush1.bf16.msra.mxu0 %v7681_v9 }
 0x220   : > { %v10759_v55 = vsel %vm429_vm0, %v2126_v46, %v2076_v41  ;;  %v10762_v35 = vsel %vm429_vm0, %v2076_v41, %v2126_v46  ;;  %v10764_v28 = vpop.permute.xlu1 %896  ;;  %v1612_v48 = vsel %vm1589_vm9, %v1579_v20, %v1181_v44  ;;  %v3156_v44 = vld [vmem:[%s15434_s3 + $0x40] sm:$0xff]  ;;  %7843 = vmatprep.subr.bf16.mxu1 %v15545_v3  ;;  %7683 = vmatprep.subr.bf16.mxu0 %v15545_v3 }
 0x221   : > { %v3160_v20 = vld [vmem:[%s15434_s3 + $0x60] sm:$0xff] }
 0x223   : > { %v1183_v54 = vpop.permute.xlu0 %1182 }
 0x224   : > { %v1277_v1 = vpop.permute.xlu1 %1276  ;;  %v1613_v29 = vsel %vm1589_vm9, %v1580_v32, %v1183_v54  ;;  %v3157_v54 = vld [vmem:[%s15434_s3 + $0x48] sm:$0xff] }
 0x225   : > { %v1645_v2 = vsel %vm1622_vm10, %v1612_v48, %v1277_v1  ;;  %v7684_v26 = vpack.c.bf16 %v3157_v54, %v3156_v44  ;;  %v7690_v48 = vpack.c.bf16 %v3161_v11, %v3160_v20 }
 0x227   : > { %v10779_v19 = vpop.permute.xlu0 %898  ;;  %7859 = vmatpush1.bf16.msra.mxu1 %v7684_v26  ;;  %7685 = vmatpush1.bf16.msra.mxu0 %v7684_v26 }
 0x228   : > { %v10783_v21 = vpop.permute.xlu1 %992  ;;  %7844 = vmatprep.subr.bf16.mxu1 %v15545_v3  ;;  %7686 = vmatprep.subr.bf16.mxu0 %v15545_v3 }
 0x22b   : > { %v1279_v24 = vpop.permute.xlu0 %1278  ;;  %7860 = vmatpush1.bf16.msra.mxu1 %v7687_v53  ;;  %7688 = vmatpush1.bf16.msra.mxu0 %v7687_v53  ;;  %v3168_v53 = vld [vmem:[%s15434_s3 + $0xa0] sm:$0xff] }
 0x22c   : > { %v1373_v39 = vpop.permute.xlu1 %1372  ;;  %v1646_v25 = vsel %vm1622_vm10, %v1613_v29, %v1279_v24  ;;  %7845 = vmatprep.subr.bf16.mxu1 %v15545_v3  ;;  %v15901_v24 = vld [vmem:[#allocation71_spill] sm:$0xff]  ;;  %7689 = vmatprep.subr.bf16.mxu0 %v15545_v3 }
 0x22d   : > { %v1678_v5 = vsel %vm1655_vm11, %v1645_v2, %v1373_v39  ;;  %v1449_v2 = vsel %vm1424_vm4, %v15841_v17, %v15901_v24  ;;  %v15902_v39 = vld [vmem:[#allocation90_spill] sm:$0xff]  ;;  %v3162_v17 = vld [vmem:[%s15434_s3 + $0x70] sm:$0xff] }
 0x22e   : > { %7480 = vmatprep.mubr.msk.f32.mxu0 %vm1700_vm12, %v1678_v5  ;;  %v1482_v27 = vsel %vm1457_vm5, %v1449_v2, %v15902_v39 }
 0x22f   : > { %v10814_v52 = vpop.permute.xlu0 %994  ;;  %v1515_v5 = vsel %vm1490_vm6, %v1482_v27, %v10764_v28  ;;  %7861 = vmatpush1.bf16.msra.mxu1 %v7690_v48  ;;  %7691 = vmatpush1.bf16.msra.mxu0 %v7690_v48  ;;  %v7693_v28 = vpack.c.bf16 %v3163_v57, %v3162_v17  ;;  %v3171_v17 = vld [vmem:[%s15434_s3 + $0xb8] sm:$0xff] }
 0x230   : > { %v1089_v63 = vpop.permute.xlu1 %1088  ;;  %v7455_v40 = vpop.f32.mrb[4].mxu0  ;;  %v1548_v62 = vsel %vm1523_vm7, %v1515_v5, %v10783_v21  ;;  %7846 = vmatprep.subr.bf16.mxu1 %v15545_v3  ;;  %7692 = vmatprep.subr.bf16.mxu0 %v15545_v3 }
 0x231   : > { %v1893_v18 = vadd.f32 %v7455_v40, %v10693_v7  ;;  %v1887_v15 = vpop.f32.mrb[5].mxu0  ;;  %v1581_v16 = vsel %vm1556_vm8, %v1548_v62, %v1089_v63  ;;  %v15903_v40 = vld [vmem:[#allocation72_spill] sm:$0xff]  ;;  %v3164_v63 = vld [vmem:[%s15434_s3 + $0x80] sm:$0xff] }
 0x232   : > { %v1888_v22 = vadd.f32 %v10693_v7, %v1887_v15  ;;  %v1450_v32 = vsel %vm1424_vm4, %v15843_v8, %v15903_v40  ;;  %v3165_v15 = vld [vmem:[%s15434_s3 + $0x88] sm:$0xff]  ;;  %v3170_v62 = vld [vmem:[%s15434_s3 + $0xb0] sm:$0xff] }
 0x233   : > { %v2031_v58 = vmax.f32 %v1893_v18, 0.0  ;;  %v1375_v34 = vpop.permute.xlu0 %1374  ;;  %7862 = vmatpush1.bf16.msra.mxu1 %v7693_v28  ;;  %7694 = vmatpush1.bf16.msra.mxu0 %v7693_v28  ;;  %v1483_v51 = vsel %vm1457_vm5, %v1450_v32, %v15904_v13  ;;  %v7696_v29 = vpack.c.bf16 %v3165_v15, %v3164_v63  ;;  %v7705_v28 = vpack.c.bf16 %v3171_v17, %v3170_v62  ;;  %v3172_v32 = vld [vmem:[%s15434_s3 + $0xc0] sm:$0xff]  ;;  %v15906_v15 = vld [vmem:[#allocation73_spill] sm:$0xff] }
 0x234   : > { %v2030_v12 = vmax.f32 %v1888_v22, 0.0  ;;  %v1679_v41 = vsel %vm1655_vm11, %v1646_v25, %v1375_v34  ;;  %v10831_v46 = vpop.permute.xlu1 %1090  ;;  %7847 = vmatprep.subr.bf16.mxu1 %v15545_v3  ;;  %7695 = vmatprep.subr.bf16.mxu0 %v15545_v3  ;;  %v1516_v8 = vsel %vm1490_vm6, %v1483_v51, %v10779_v19  ;;  %v3166_v19 = vld [vmem:[%s15434_s3 + $0x90] sm:$0xff]  ;;  %v1451_v13 = vsel %vm1424_vm4, %v15849_v4, %v15906_v15  ;;  %v3179_v17 = vld [vmem:[%s15434_s3 + $0xf8] sm:$0xff] }
 0x235   : > { %v2077_v1 = vrot.slane %v2031_v58, 7  ;;  %7481 = vmatmul.mubr.msk.f32.gmra.mrb[22].mxu0 %vm1700_vm12, %v1679_v41  ;;  %v1549_v9 = vsel %vm1523_vm7, %v1516_v8, %v10814_v52  ;;  %v3167_v52 = vld [vmem:[%s15434_s3 + $0x98] sm:$0xff]  ;;  %v15907_v51 = vld [vmem:[#allocation92_spill] sm:$0xff] }
 0x236   : > { %v2128_v49 = vrot.slane %v2030_v12, 7  ;;  %v1582_v34 = vsel %vm1556_vm8, %v1549_v9, %v10831_v46  ;;  %v3174_v4 = vld [vmem:[%s15434_s3 + $0xd0] sm:$0xff] }
 0x237   : > { %v1185_v10 = vpop.permute.xlu0 %1184  ;;  %7863 = vmatpush1.bf16.msra.mxu1 %v7696_v29  ;;  %7697 = vmatpush1.bf16.msra.mxu0 %v7696_v29  ;;  %v1484_v29 = vsel %vm1457_vm5, %v1451_v13, %v15907_v51 }
 0x238   : > { %v10843_v0 = vsel %vm429_vm0, %v2128_v49, %v2077_v1  ;;  %v10846_v38 = vsel %vm429_vm0, %v2077_v1, %v2128_v49  ;;  %v10848_v30 = vpop.permute.xlu1 %900  ;;  %v1614_v60 = vsel %vm1589_vm9, %v1581_v16, %v1185_v10  ;;  %7848 = vmatprep.subr.bf16.mxu1 %v15545_v3  ;;  %v7699_v1 = vpack.c.bf16 %v3167_v52, %v3166_v19 }
 0x239   : > { %7698 = vmatprep.subr.bf16.mxu0 %v15545_v3  ;;  %v2230_v48 = vrot.slane %v10846_v38, 1  ;;  %v2231_v24 = vrot.slane %v10843_v0, 1  ;;  %v1517_v9 = vsel %vm1490_vm6, %v1484_v29, %v10848_v30  ;;  %v2294_v13 = vrot.slane %v10846_v38, 2 }
 0x23b   : > { %v1187_v42 = vpop.permute.xlu0 %1186  ;;  %7864 = vmatpush1.bf16.msra.mxu1 %v7699_v1  ;;  %7700 = vmatpush1.bf16.msra.mxu0 %v7699_v1 }
 0x23c   : > { %v1281_v6 = vpop.permute.xlu1 %1280  ;;  %v1615_v44 = vsel %vm1589_vm9, %v1582_v34, %v1187_v42  ;;  %v3169_v42 = vld [vmem:[%s15434_s3 + $0xa8] sm:$0xff]  ;;  %7849 = vmatprep.subr.bf16.mxu1 %v15545_v3  ;;  %7701 = vmatprep.subr.bf16.mxu0 %v15545_v3 }
 0x23d   : > { %v1647_v21 = vsel %vm1622_vm10, %v1614_v60, %v1281_v6  ;;  %v7702_v20 = vpack.c.bf16 %v3169_v42, %v3168_v53 }
 0x23f   : > { %v10871_v31 = vpop.permute.xlu0 %902  ;;  %7865 = vmatpush1.bf16.msra.mxu1 %v7702_v20  ;;  %7703 = vmatpush1.bf16.msra.mxu0 %v7702_v20 }
 0x240   : > { %v10875_v33 = vpop.permute.xlu1 %996  ;;  %7850 = vmatprep.subr.bf16.mxu1 %v15545_v3  ;;  %7704 = vmatprep.subr.bf16.mxu0 %v15545_v3 }
 0x241   : > { %v1550_v34 = vsel %vm1523_vm7, %v1517_v9, %v10875_v33 }
 0x243   : > { %v1283_v56 = vpop.permute.xlu0 %1282  ;;  %7866 = vmatpush1.bf16.msra.mxu1 %v7705_v28  ;;  %7706 = vmatpush1.bf16.msra.mxu0 %v7705_v28 }
 0x244   : > { %v1377_v50 = vpop.permute.xlu1 %1376  ;;  %v1648_v46 = vsel %vm1622_vm10, %v1615_v44, %v1283_v56  ;;  %v10963_v56 = vsel %vm526_vm1, %v2230_v48, %v2231_v24  ;;  %7851 = vmatprep.subr.bf16.mxu1 %v15545_v3  ;;  %7707 = vmatprep.subr.bf16.mxu0 %v15545_v3 }
 0x245   : > { %v1680_v18 = vsel %vm1655_vm11, %v1647_v21, %v1377_v50 }
 0x246   : > { %7483 = vmatprep.mubr.msk.f32.mxu0 %vm1700_vm12, %v1680_v18  ;;  %v3173_v18 = vld [vmem:[%s15434_s3 + $0xc8] sm:$0xff] }
 0x247   : > { %v10907_v22 = vpop.permute.xlu0 %998  ;;  %v7708_v63 = vpack.c.bf16 %v3173_v18, %v3172_v32 }
 0x248   : > { %v10911_v25 = vpop.permute.xlu1 %1092  ;;  %v7458_v58 = vpop.f32.mrb[6].mxu0 }
 0x249   : > { %v1903_v12 = vadd.f32 %v7458_v58, %v10693_v7  ;;  %v1897_v41 = vpop.f32.mrb[7].mxu0  ;;  %7867 = vmatpush1.bf16.msra.mxu1 %v7708_v63  ;;  %7709 = vmatpush1.bf16.msra.mxu0 %v7708_v63 }
 0x24a   : > { %v1898_v54 = vadd.f32 %v10693_v7, %v1897_v41  ;;  %7852 = vmatprep.subr.bf16.mxu1 %v15545_v3  ;;  %v1583_v41 = vsel %vm1556_vm8, %v1550_v34, %v10911_v25  ;;  %7710 = vmatprep.subr.bf16.mxu0 %v15545_v3  ;;  %v3176_v25 = vld [vmem:[%s15434_s3 + $0xe0] sm:$0xff] }
 0x24b   : > { %v2033_v26 = vmax.f32 %v1903_v12, 0.0  ;;  %v1379_v49 = vpop.permute.xlu0 %1378  ;;  %v3175_v12 = vld [vmem:[%s15434_s3 + $0xd8] sm:$0xff] }
 0x24c   : > { %v2032_v10 = vmax.f32 %v1898_v54, 0.0  ;;  %v1681_v43 = vsel %vm1655_vm11, %v1648_v46, %v1379_v49  ;;  %v10928_v23 = vpop.permute.xlu1 %1094  ;;  %v7711_v30 = vpack.c.bf16 %v3175_v12, %v3174_v4  ;;  %v15908_v54 = vld [vmem:[#allocation74_spill] sm:$0xff]  ;;  %v15909_v49 = vld [vmem:[#allocation93_spill] sm:$0xff] }
 0x24d   : > { %v2078_v6 = vrot.slane %v2033_v26, 7  ;;  %7484 = vmatmul.mubr.msk.f32.gmra.mrb[24].mxu0 %vm1700_vm12, %v1681_v43  ;;  %v1452_v1 = vsel %vm1424_vm4, %v15851_v61, %v15908_v54  ;;  %v3177_v26 = vld [vmem:[%s15434_s3 + $0xe8] sm:$0xff] }
 0x24e   : > { %v2130_v11 = vrot.slane %v2032_v10, 7  ;;  %7868 = vmatpush1.bf16.msra.mxu1 %v7711_v30  ;;  %v1485_v10 = vsel %vm1457_vm5, %v1452_v1, %v15909_v49  ;;  %v7714_v43 = vpack.c.bf16 %v3177_v26, %v3176_v25  ;;  %7712 = vmatpush1.bf16.msra.mxu0 %v7711_v30  ;;  %v15911_v25 = vld [vmem:[#allocation75_spill] sm:$0xff] }
 0x24f   : > { %v1189_v2 = vpop.permute.xlu0 %1188  ;;  %7853 = vmatprep.subr.bf16.mxu1 %v15545_v3  ;;  %v1518_v61 = vsel %vm1490_vm6, %v1485_v10, %v10871_v31  ;;  %7713 = vmatprep.subr.bf16.mxu0 %v15545_v3  ;;  %v3178_v31 = vld [vmem:[%s15434_s3 + $0xf0] sm:$0xff]  ;;  %v1453_v26 = vsel %vm1424_vm4, %v15859_v36, %v15911_v25 }
 0x250   : > { %v10942_v39 = vsel %vm429_vm0, %v2130_v11, %v2078_v6  ;;  %v10945_v27 = vsel %vm429_vm0, %v2078_v6, %v2130_v11  ;;  %v10947_v5 = vpop.permute.xlu1 %904  ;;  %v1616_v19 = vsel %vm1589_vm9, %v1583_v41, %v1189_v2  ;;  %v1551_v42 = vsel %vm1523_vm7, %v1518_v61, %v10907_v22 }
 0x251   : > { %v2298_v57 = vrot.slane %v10945_v27, 2  ;;  %v2299_v16 = vrot.slane %v10942_v39, 2  ;;  %v1584_v11 = vsel %vm1556_vm8, %v1551_v42, %v10928_v23  ;;  %v2234_v61 = vrot.slane %v10945_v27, 1 }
 0x252   : > { %7869 = vmatpush1.bf16.msra.mxu1 %v7714_v43  ;;  %7715 = vmatpush1.bf16.msra.mxu0 %v7714_v43  ;;  %v2235_v42 = vrot.slane %v10942_v39, 1 }
 0x253   : > { %v1191_v60 = vpop.permute.xlu0 %1190  ;;  %v10970_v21 = vsel %vm591_vm2, %v2298_v57, %v2299_v16  ;;  %7854 = vmatprep.subr.bf16.mxu1 %v15545_v3  ;;  %7716 = vmatprep.subr.bf16.mxu0 %v15545_v3  ;;  %v11073_v54 = vsel %vm591_vm2, %v2299_v16, %v2298_v57  ;;  %v11088_v57 = vsel %vm526_vm1, %v2231_v24, %v2230_v48  ;;  %v15912_v16 = vld [vmem:[#allocation94_spill] sm:$0xff] }
 0x254   : > { %15905 = vst [vmem:[#allocation12_spill] sm:$0xff] %v10970_v21  ;;  %v1285_v50 = vpop.permute.xlu1 %1284  ;;  %v7890_v40 = vpack.i.bf16 %v10963_v56, %v10970_v21  ;;  %v1617_v22 = vsel %vm1589_vm9, %v1584_v11, %v1191_v60  ;;  %v2295_v60 = vrot.slane %v10843_v0, 2  ;;  %15910 = vst [vmem:[#allocation2_spill] sm:$0xff] %v11073_v54  ;;  %v1486_v43 = vsel %vm1457_vm5, %v1453_v26, %v15912_v16 }
 0x255   : > { %v1649_v33 = vsel %vm1622_vm10, %v1616_v19, %v1285_v50  ;;  %v7717_v50 = vpack.c.bf16 %v3179_v17, %v3178_v31  ;;  %v7905_v36 = vpack.i.bf16 %v11088_v57, %v11073_v54  ;;  %v1519_v24 = vsel %vm1490_vm6, %v1486_v43, %v10947_v5 }
 0x256   : > { %7891 = vrot.lane.b32.xlu0 %v7890_v40, %s9346_s14  ;;  %v11061_v19 = vsel %vm591_vm2, %v2294_v13, %v2295_v60  ;;  %v11098_v11 = vsel %vm591_vm2, %v2295_v60, %v2294_v13  ;;  %v15915_v13 = vld [vmem:[#allocation95_spill] sm:$0xff] }
 0x257   : > { %v10988_v8 = vpop.permute.xlu0 %906  ;;  %7870 = vmatpush1.bf16.msra.mxu1 %v7717_v50  ;;  %7718 = vmatpush1.bf16.msra.mxu0 %v7717_v50 }
 0x258   : > { %v10993_v58 = vpop.permute.xlu1 %1000 }
 0x259   : > { %v1552_v31 = vsel %vm1523_vm7, %v1519_v24, %v10993_v58  ;;  %v11127_v58 = vsel %vm526_vm1, %v2234_v61, %v2235_v42 }
 0x25b   : > { %v1287_v52 = vpop.permute.xlu0 %1286 }
 0x25c   : > { %v1381_v44 = vpop.permute.xlu1 %1380  ;;  %v1650_v23 = vsel %vm1622_vm10, %v1617_v22, %v1287_v52 }
 0x25d   : > { %v1682_v46 = vsel %vm1655_vm11, %v1649_v33, %v1381_v44 }
 0x25e   : > { %7486 = vmatprep.mubr.msk.f32.mxu0 %vm1700_vm12, %v1682_v46 }
 0x25f   : > { %v11025_v53 = vpop.permute.xlu0 %1002 }
 0x260   : > { %v1097_v6 = vpop.permute.xlu1 %1096  ;;  %v7461_v20 = vpop.f32.mrb[8].mxu0 }
 0x261   : > { %v1913_v2 = vadd.f32 %v7461_v20, %v10693_v7  ;;  %v1907_v62 = vpop.f32.mrb[9].mxu0  ;;  %v1585_v22 = vsel %vm1556_vm8, %v1552_v31, %v1097_v6 }
 0x262   : > { %v1908_v28 = vadd.f32 %v10693_v7, %v1907_v62 }
 0x263   : > { %v2035_v40 = vmax.f32 %v1913_v2, 0.0  ;;  %v1383_v32 = vpop.permute.xlu0 %1382 }
 0x264   : > { %v2034_v18 = vmax.f32 %v1908_v28, 0.0  ;;  %v1683_v63 = vsel %vm1655_vm11, %v1650_v23, %v1383_v32  ;;  %v11045_v15 = vpop.permute.xlu1 %1098  ;;  %v15914_v32 = vld [vmem:[#allocation76_spill] sm:$0xff] }
 0x265   : > { %v2079_v51 = vrot.slane %v2035_v40, 7  ;;  %7487 = vmatmul.mubr.msk.f32.gmra.mrb[26].mxu0 %vm1700_vm12, %v1683_v63 }
 0x266   : > { %v2132_v29 = vrot.slane %v2034_v18, 7  ;;  %v1454_v18 = vsel %vm1424_vm4, %v15863_v47, %v15914_v32  ;;  %v15918_v32 = vld [vmem:[#allocation96_spill] sm:$0xff] }
 0x267   : > { %v1193_v9 = vpop.permute.xlu0 %1192  ;;  %v1487_v60 = vsel %vm1457_vm5, %v1454_v18, %v15915_v13  ;;  %v15919_v13 = vld [vmem:[#allocation97_spill] sm:$0xff] }
 0x268   : > { %v11051_v34 = vsel %vm429_vm0, %v2132_v29, %v2079_v51  ;;  %v11054_v4 = vsel %vm429_vm0, %v2079_v51, %v2132_v29  ;;  %v11056_v12 = vpop.permute.xlu1 %908  ;;  %v1618_v28 = vsel %vm1589_vm9, %v1585_v22, %v1193_v9  ;;  %v1520_v51 = vsel %vm1490_vm6, %v1487_v60, %v10988_v8 }
 0x269   : > { %v2238_v41 = vrot.slane %v11054_v4, 1  ;;  %v2239_v30 = vrot.slane %v11051_v34, 1  ;;  %v7895_v52 = vpack.i.bf16 %v11061_v19, %v11054_v4  ;;  %v2302_v49 = vrot.slane %v11054_v4, 2 }
 0x26a   : > { %v2303_v10 = vrot.slane %v11051_v34, 2  ;;  %v7910_v62 = vpack.i.bf16 %v11098_v11, %v11051_v34  ;;  %v1553_v9 = vsel %vm1523_vm7, %v1520_v51, %v11025_v53 }
 0x26b   : > { %v1195_v33 = vpop.permute.xlu0 %1194  ;;  %v11066_v44 = vsel %vm526_vm1, %v2238_v41, %v2239_v30  ;;  %7896 = vrot.lane.b32.xlu1 %v7895_v52, %s9348_s12  ;;  %v11101_v48 = vsel %vm526_vm1, %v2239_v30, %v2238_v41  ;;  %v1586_v47 = vsel %vm1556_vm8, %v1553_v9, %v11045_v15 }
 0x26c   : > { %v1289_v1 = vpop.permute.xlu1 %1288  ;;  %v7900_v46 = vpack.i.bf16 %v10945_v27, %v11066_v44  ;;  %v11115_v17 = vsel %vm591_vm2, %v2302_v49, %v2303_v10  ;;  %v7915_v5 = vpack.i.bf16 %v10942_v39, %v11101_v48 }
 0x26d   : > { %15913 = vst [vmem:[#allocation13_spill] sm:$0xff] %v11115_v17  ;;  %v1651_v23 = vsel %vm1622_vm10, %v1618_v28, %v1289_v1  ;;  %v7920_v40 = vpack.i.bf16 %v11127_v58, %v11115_v17 }
 0x26e   : > { %7901 = vrot.lane.b32.xlu0 %v7900_v46, %s9349_s13  ;;  %v1619_v46 = vsel %vm1589_vm9, %v1586_v47, %v1195_v33 }
 0x26f   : > { %v911_v20 = vpop.permute.xlu0 %910  ;;  %7906 = vrot.lane.b32.xlu1 %v7905_v36, %s9346_s14 }
 0x270   : > { %v1005_v2 = vpop.permute.xlu1 %1004 }
 0x272   : > { %7911 = vrot.lane.b32.xlu0 %v7910_v62, %s9348_s12 }
 0x273   : > { %v1291_v50 = vpop.permute.xlu0 %1290  ;;  %7916 = vrot.lane.b32.xlu1 %v7915_v5, %s9349_s13  ;;  %v15916_v5 = vld [vmem:[#allocation77_spill] sm:$0xff] }
 0x274   : > { %v1385_v6 = vpop.permute.xlu1 %1384  ;;  %v1652_v26 = vsel %vm1622_vm10, %v1619_v46, %v1291_v50  ;;  %v1455_v28 = vsel %vm1424_vm4, %v15870_v37, %v15916_v5 }
 0x275   : > { %v1684_v63 = vsel %vm1655_vm11, %v1651_v23, %v1385_v6  ;;  %v15917_v6 = vld [vmem:[#allocation78_spill] sm:$0xff]  ;;  %v1488_v18 = vsel %vm1457_vm5, %v1455_v28, %v15918_v32 }
 0x276   : > { %7489 = vmatprep.mubr.msk.f32.mxu0 %vm1700_vm12, %v1684_v63  ;;  %7921 = vrot.lane.b32.xlu0 %v7920_v40, %s9346_s14  ;;  %v1456_v40 = vsel %vm1424_vm4, %v15873_v45, %v15917_v6  ;;  %v1521_v37 = vsel %vm1490_vm6, %v1488_v18, %v11056_v12  ;;  %v11183_v45 = vsel %vm591_vm2, %v2303_v10, %v2302_v49 }
 0x277   : > { %v1007_v29 = vpop.permute.xlu0 %1006  ;;  %v1489_v60 = vsel %vm1457_vm5, %v1456_v40, %v15919_v13  ;;  %15920 = vst [vmem:[#allocation11_spill] sm:$0xff] %v11183_v45  ;;  %v1554_v47 = vsel %vm1523_vm7, %v1521_v37, %v1005_v2 }
 0x278   : > { %v1101_v41 = vpop.permute.xlu1 %1100  ;;  %v7464_v30 = vpop.f32.mrb[10].mxu0 }
 0x279   : > { %v1923_v52 = vadd.f32 %v7464_v30, %v10693_v7  ;;  %v1917_v1 = vpop.f32.mrb[11].mxu0  ;;  %v1522_v30 = vsel %vm1490_vm6, %v1489_v60, %v911_v20  ;;  %v1587_v10 = vsel %vm1556_vm8, %v1554_v47, %v1101_v41 }
 0x27a   : > { %v1918_v25 = vadd.f32 %v10693_v7, %v1917_v1  ;;  %v11195_v1 = vsel %vm526_vm1, %v2235_v42, %v2234_v61  ;;  %v1555_v49 = vsel %vm1523_vm7, %v1522_v30, %v1007_v29 }
 0x27b   : > { %v2037_v16 = vmax.f32 %v1923_v52, 0.0  ;;  %v1387_v8 = vpop.permute.xlu0 %1386 }
 0x27c   : > { %v2036_v43 = vmax.f32 %v1918_v25, 0.0  ;;  %v1685_v36 = vsel %vm1655_vm11, %v1652_v26, %v1387_v8  ;;  %v1103_v53 = vpop.permute.xlu1 %1102  ;;  %v7935_v26 = vpack.i.bf16 %v11195_v1, %v11183_v45 }
 0x27d   : > { %v2080_v24 = vrot.slane %v2037_v16, 7  ;;  %7490 = vmatmul.mubr.msk.f32.gmra.mrb[28].mxu0 %vm1700_vm12, %v1685_v36  ;;  %v1588_v46 = vsel %vm1556_vm8, %v1555_v49, %v1103_v53 }
 0x27e   : > { %v2134_v62 = vrot.slane %v2036_v43, 7 }
 0x27f   : > { %v1197_v15 = vpop.permute.xlu0 %1196 }
 0x280   : > { %v11154_v31 = vsel %vm429_vm0, %v2134_v62, %v2080_v24  ;;  %v11157_v33 = vsel %vm429_vm0, %v2080_v24, %v2134_v62  ;;  %v1199_v22 = vpop.permute.xlu1 %1198  ;;  %v1620_v25 = vsel %vm1589_vm9, %v1587_v10, %v1197_v15 }
 0x281   : > { %v2242_v50 = vrot.slane %v11157_v33, 1  ;;  %v2243_v23 = vrot.slane %v11154_v31, 1  ;;  %v7925_v63 = vpack.i.bf16 %v10970_v21, %v11157_v33  ;;  %v2306_v20 = vrot.slane %v11157_v33, 2 }
 0x282   : > { %v2307_v2 = vrot.slane %v11154_v31, 2  ;;  %v1621_v61 = vsel %vm1589_vm9, %v1588_v46, %v1199_v22  ;;  %v7940_v36 = vpack.i.bf16 %v11073_v54, %v11154_v31 }
 0x283   : > { %v1293_v51 = vpop.permute.xlu0 %1292  ;;  %v11176_v9 = vsel %vm526_vm1, %v2242_v50, %v2243_v23  ;;  %7926 = vrot.lane.b32.xlu1 %v7925_v63, %s9348_s12  ;;  %v11209_v41 = vsel %vm526_vm1, %v2243_v23, %v2242_v50 }
 0x284   : > { %v1295_v52 = vpop.permute.xlu1 %1294  ;;  %v7930_v12 = vpack.i.bf16 %v11054_v4, %v11176_v9  ;;  %v1653_v42 = vsel %vm1622_vm10, %v1620_v25, %v1293_v51  ;;  %v11219_v24 = vsel %vm591_vm2, %v2306_v20, %v2307_v2  ;;  %v7945_v62 = vpack.i.bf16 %v11051_v34, %v11209_v41 }
 0x285   : > { %v1654_v16 = vsel %vm1622_vm10, %v1621_v61, %v1295_v52  ;;  %15921 = vst [vmem:[#allocation10_spill] sm:$0xff] %v11219_v24  ;;  %v7950_v15 = vpack.i.bf16 %v11066_v44, %v11219_v24  ;;  %v11248_v47 = vsel %vm591_vm2, %v2307_v2, %v2306_v20 }
 0x286   : > { %7931 = vrot.lane.b32.xlu0 %v7930_v12, %s9349_s13  ;;  %15922 = vst [vmem:[#allocation16_spill] sm:$0xff] %v11248_v47  ;;  %v7980_v52 = vpack.i.bf16 %v11101_v48, %v11248_v47 }
 0x287   : > { %v1389_v29 = vpop.permute.xlu0 %1388  ;;  %7936 = vrot.lane.b32.xlu1 %v7935_v26, %s9346_s14 }
 0x288   : > { %v1686_v8 = vsel %vm1655_vm11, %v1653_v42, %v1389_v29  ;;  %v1391_v43 = vpop.permute.xlu1 %1390 }
 0x289   : > { %v1687_v53 = vsel %vm1655_vm11, %v1654_v16, %v1391_v43  ;;  %7492 = vmatprep.mubr.msk.f32.mxu0 %vm1700_vm12, %v1686_v8 }
 0x28a   : > { %7941 = vrot.lane.b32.xlu0 %v7940_v36, %s9348_s12  ;;  %7493 = vmatmul.mubr.msk.f32.gmra.mrb[30].mxu0 %vm1700_vm12, %v1687_v53 }
 0x28b   : > { %7946 = vrot.lane.b32.xlu1 %v7945_v62, %s9349_s13 }
 0x28e   : > { %7951 = vrot.lane.b32.xlu0 %v7950_v15, %s9346_s14 }
 0x290   : > { %v7467_v22 = vpop.f32.mrb[12].mxu0 }
 0x291   : > { %v1933_v5 = vadd.f32 %v7467_v22, %v10693_v7  ;;  %v1927_v28 = vpop.f32.mrb[13].mxu0 }
 0x292   : > { %v1928_v50 = vadd.f32 %v10693_v7, %v1927_v28 }
 0x293   : > { %v2039_v23 = vmax.f32 %v1933_v5, 0.0 }
 0x294   : > { %v2038_v6 = vmax.f32 %v1928_v50, 0.0 }
 0x295   : > { %v2081_v40 = vrot.slane %v2039_v23, 7 }
 0x296   : > { %v2136_v32 = vrot.slane %v2038_v6, 7 }
 0x298   : > { %v11232_v18 = vsel %vm429_vm0, %v2136_v32, %v2081_v40  ;;  %v11235_v63 = vsel %vm429_vm0, %v2081_v40, %v2136_v32 }
 0x299   : > { %v2246_v13 = vrot.slane %v11235_v63, 1  ;;  %v2247_v60 = vrot.slane %v11232_v18, 1  ;;  %v7960_v37 = vpack.i.bf16 %v11115_v17, %v11235_v63  ;;  %v7990_v12 = vpack.i.bf16 %v11183_v45, %v11232_v18 }
 0x29a   : > { %v2310_v49 = vrot.slane %v11235_v63, 2  ;;  %v2311_v10 = vrot.slane %v11232_v18, 2 }
 0x29b   : > { %v11242_v51 = vsel %vm526_vm1, %v2246_v13, %v2247_v60  ;;  %7961 = vrot.lane.b32.xlu0 %v7960_v37, %s9348_s12  ;;  %v11259_v46 = vsel %vm526_vm1, %v2247_v60, %v2246_v13 }
 0x29c   : > { %v7970_v30 = vpack.i.bf16 %v11157_v33, %v11242_v51  ;;  %v8000_v61 = vpack.i.bf16 %v11154_v31, %v11259_v46  ;;  %v11267_v29 = vsel %vm591_vm2, %v2310_v49, %v2311_v10  ;;  %v11290_v23 = vsel %vm591_vm2, %v2311_v10, %v2310_v49 }
 0x29d   : > { %15923 = vst [vmem:[#allocation17_spill] sm:$0xff] %v11267_v29  ;;  %v8010_v36 = vpack.i.bf16 %v11176_v9, %v11267_v29  ;;  %15926 = vst [vmem:[#allocation20_spill] sm:$0xff] %v11290_v23  ;;  %v8040_v6 = vpack.i.bf16 %v11209_v41, %v11290_v23 }
 0x29f   : > { %7971 = vrot.lane.b32.xlu0 %v7970_v30, %s9349_s13 }
 0x2a3   : > { %7981 = vrot.lane.b32.xlu0 %v7980_v52, %s9346_s14 }
 0x2a7   : > { %7991 = vrot.lane.b32.xlu0 %v7990_v12, %s9348_s12 }
 0x2a8   : > { %v7470_v20 = vpop.f32.mrb[14].mxu0 }
 0x2a9   : > { %v1943_v2 = vadd.f32 %v7470_v20, %v10693_v7  ;;  %v1937_v25 = vpop.f32.mrb[15].mxu0 }
 0x2aa   : > { %v1938_v26 = vadd.f32 %v10693_v7, %v1937_v25 }
 0x2ab   : > { %v2041_v42 = vmax.f32 %v1943_v2, 0.0  ;;  %8001 = vrot.lane.b32.xlu0 %v8000_v61, %s9349_s13 }
 0x2ac   : > { %v2040_v16 = vmax.f32 %v1938_v26, 0.0 }
 0x2ad   : > { %v2082_v8 = vrot.slane %v2041_v42, 7 }
 0x2ae   : > { %v2138_v43 = vrot.slane %v2040_v16, 7 }
 0x2af   : > { %8011 = vrot.lane.b32.xlu0 %v8010_v36, %s9346_s14 }
 0x2b0   : > { %v11273_v53 = vsel %vm429_vm0, %v2138_v43, %v2082_v8  ;;  %v11276_v62 = vsel %vm429_vm0, %v2082_v8, %v2138_v43 }
 0x2b1   : > { %15924 = vst [vmem:[#allocation15_spill] sm:$0xff] %v11273_v53  ;;  %15925 = vst [vmem:[#allocation14_spill] sm:$0xff] %v11276_v62  ;;  %v2250_v15 = vrot.slane %v11276_v62, 1  ;;  %v2251_v22 = vrot.slane %v11273_v53, 1  ;;  %v8020_v5 = vpack.i.bf16 %v11219_v24, %v11276_v62  ;;  %v8050_v40 = vpack.i.bf16 %v11248_v47, %v11273_v53 }
 0x2b2   : > { %v2314_v32 = vrot.slane %v11276_v62, 2  ;;  %v2315_v13 = vrot.slane %v11273_v53, 2 }
 0x2b3   : > { %v11284_v28 = vsel %vm526_vm1, %v2250_v15, %v2251_v22  ;;  %8021 = vrot.lane.b32.xlu0 %v8020_v5, %s9348_s12  ;;  %v11301_v60 = vsel %vm526_vm1, %v2251_v22, %v2250_v15 }
 0x2b4   : > { %v8030_v50 = vpack.i.bf16 %v11235_v63, %v11284_v28  ;;  %v8060_v49 = vpack.i.bf16 %v11232_v18, %v11301_v60  ;;  %v11309_v20 = vsel %vm591_vm2, %v2314_v32, %v2315_v13  ;;  %v11332_v5 = vsel %vm591_vm2, %v2315_v13, %v2314_v32 }
 0x2b5   : > { %v8070_v61 = vpack.i.bf16 %v11242_v51, %v11309_v20  ;;  %15929 = vst [vmem:[#allocation18_spill] sm:$0xff] %v11332_v5 }
 0x2b7   : > { %8031 = vrot.lane.b32.xlu0 %v8030_v50, %s9349_s13  ;;  %v8100_v50 = vpack.i.bf16 %v11259_v46, %v11332_v5 }
 0x2bb   : > { %8041 = vrot.lane.b32.xlu0 %v8040_v6, %s9346_s14 }
 0x2bf   : > { %8051 = vrot.lane.b32.xlu0 %v8050_v40, %s9348_s12 }
 0x2c0   : > { %v7473_v37 = vpop.f32.mrb[16].mxu0 }
 0x2c1   : > { %v1953_v30 = vadd.f32 %v7473_v37, %v10693_v7  ;;  %v1947_v52 = vpop.f32.mrb[17].mxu0 }
 0x2c2   : > { %v1948_v12 = vadd.f32 %v10693_v7, %v1947_v52 }
 0x2c3   : > { %v2043_v10 = vmax.f32 %v1953_v30, 0.0  ;;  %8061 = vrot.lane.b32.xlu0 %v8060_v49, %s9349_s13 }
 0x2c4   : > { %v2042_v2 = vmax.f32 %v1948_v12, 0.0 }
 0x2c5   : > { %v2083_v25 = vrot.slane %v2043_v10, 7 }
 0x2c6   : > { %v2140_v26 = vrot.slane %v2042_v2, 7 }
 0x2c7   : > { %8071 = vrot.lane.b32.xlu0 %v8070_v61, %s9346_s14 }
 0x2c8   : > { %v11315_v42 = vsel %vm429_vm0, %v2140_v26, %v2083_v25  ;;  %v11318_v16 = vsel %vm429_vm0, %v2083_v25, %v2140_v26  ;;  %v7892_v12 = vpop.permute.xlu0 %7891 }
 0x2c9   : > { %15927 = vst [vmem:[#allocation21_spill] sm:$0xff] %v11318_v16  ;;  %v2254_v8 = vrot.slane %v11318_v16, 1  ;;  %v2255_v43 = vrot.slane %v11315_v42, 1  ;;  %v8080_v36 = vpack.i.bf16 %v11267_v29, %v11318_v16  ;;  %v8110_v6 = vpack.i.bf16 %v11290_v23, %v11315_v42 }
 0x2ca   : > { %v15548_v40 = vrot.slane %v11318_v16, 2  ;;  %v15547_v37 = vrot.slane %v11315_v42, 2  ;;  %v7893_v61 = vunpack.i.l.bf16 %v7892_v12 }
 0x2cb   : > { %v11326_v15 = vsel %vm526_vm1, %v2254_v8, %v2255_v43  ;;  %8081 = vrot.lane.b32.xlu0 %v8080_v36, %s9348_s12  ;;  %v11343_v30 = vsel %vm526_vm1, %v2255_v43, %v2254_v8  ;;  %v7894_v43 = vunpack.i.h.bf16 %v7892_v12 }
 0x2cc   : > { %15928 = vst [vmem:[#allocation19_spill] sm:$0xff] %v11326_v15  ;;  %v8090_v22 = vpack.i.bf16 %v11276_v62, %v11326_v15  ;;  %v8120_v10 = vpack.i.bf16 %v11273_v53, %v11343_v30  ;;  %v11355_v25 = vsel %vm591_vm2, %v15548_v40, %v15547_v37 }
 0x2cf   : > { %8091 = vrot.lane.b32.xlu0 %v8090_v22, %s9349_s13 }
 0x2d3   : > { %8101 = vrot.lane.b32.xlu0 %v8100_v50, %s9346_s14 }
 0x2d7   : > { %8111 = vrot.lane.b32.xlu0 %v8110_v6, %s9348_s12 }
 0x2d8   : > { %v7476_v32 = vpop.f32.mrb[18].mxu0 }
 0x2d9   : > { %v1963_v13 = vadd.f32 %v7476_v32, %v10693_v7  ;;  %v1957_v52 = vpop.f32.mrb[19].mxu0 }
 0x2da   : > { %v1958_v49 = vadd.f32 %v10693_v7, %v1957_v52  ;;  %v8130_v7 = vpack.i.bf16 %v11284_v28, %v11355_v25 }
 0x2db   : > { %v2045_v2 = vmax.f32 %v1963_v13, 0.0  ;;  %8121 = vrot.lane.b32.xlu0 %v8120_v10, %s9349_s13  ;;  %v3058_v10 = vsel %vm1655_vm11, %v11127_v58, %v7893_v61 }
 0x2dc   : > { %v2044_v26 = vmax.f32 %v1958_v49, 0.0 }
 0x2dd   : > { %v2084_v8 = vrot.slane %v2045_v2, 7  ;;  %v7897_v22 = vpop.permute.xlu1 %7896 }
 0x2de   : > { %v2142_v36 = vrot.slane %v2044_v26, 7  ;;  %v7899_v50 = vunpack.i.h.bf16 %v7897_v22  ;;  %v7898_v6 = vunpack.i.l.bf16 %v7897_v22 }
 0x2df   : > { %8131 = vrot.lane.b32.xlu0 %v8130_v7, %s9346_s14 }
 0x2e0   : > { %v11361_v32 = vsel %vm429_vm0, %v2142_v36, %v2084_v8  ;;  %v11364_v13 = vsel %vm429_vm0, %v2084_v8, %v2142_v36  ;;  %v7902_v52 = vpop.permute.xlu0 %7901  ;;  %v3090_v3 = vsel %vm2986_vm13, %v3058_v10, %v7898_v6  ;;  %v2960_v8 = vsel %vm1655_vm11, %v10846_v38, %v7894_v43 }
 0x2e1   : > { %v2258_v49 = vrot.slane %v11364_v13, 1  ;;  %v2259_v12 = vrot.slane %v11361_v32, 1  ;;  %v7904_v2 = vunpack.i.h.bf16 %v7902_v52  ;;  %v7903_v26 = vunpack.i.l.bf16 %v7902_v52  ;;  %v7907_v22 = vpop.permute.xlu1 %7906 }
 0x2e2   : > { %v7909_v36 = vunpack.i.h.bf16 %v7907_v22  ;;  %v7908_v37 = vunpack.i.l.bf16 %v7907_v22  ;;  %v2993_v7 = vsel %vm2986_vm13, %v2960_v8, %v7899_v50  ;;  %v15553_v6 = vrot.slane %v11364_v13, 2 }
 0x2e3   : > { %v11376_v40 = vsel %vm526_vm1, %v2258_v49, %v2259_v12  ;;  %v3122_v29 = vsel %vm3019_vm14, %v3090_v3, %v7903_v26  ;;  %v3026_v61 = vsel %vm3019_vm14, %v2993_v7, %v7904_v2  ;;  %v15552_v10 = vrot.slane %v11361_v32, 2 }
 0x2e4   : > { %15930 = vst [vmem:[#allocation24_spill] sm:$0xff] %v11376_v40  ;;  %v7912_v23 = vpop.permute.xlu0 %7911  ;;  %v8140_v52 = vpack.i.bf16 %v11318_v16, %v11376_v40  ;;  %3349 = vmatprep.mubr.f32.mxu1 %v3122_v29  ;;  %v3059_v50 = vsel %vm1655_vm11, %v11195_v1, %v7908_v37  ;;  %v2961_v3 = vsel %vm1655_vm11, %v10843_v0, %v7909_v36 }
 0x2e5   : > { %v7914_v43 = vunpack.i.h.bf16 %v7912_v23  ;;  %v7913_v47 = vunpack.i.l.bf16 %v7912_v23  ;;  %v7917_v22 = vpop.permute.xlu1 %7916  ;;  %3350 = vmatmul.mubr.f32.vlgmr.msra.gmra.mrb[0].mxu1 %v3026_v61  ;;  %v8150_v23 = vpack.i.bf16 %v11332_v5, %v11361_v32  ;;  %v11394_v29 = vsel %vm526_vm1, %v2259_v12, %v2258_v49  ;;  %v11412_v12 = vld [vmem:[%s15433_s2] ss:$0 sm:$0xff] }
 0x2e6   : > { %8141 = vrot.lane.b32.xlu0 %v8140_v52, %s9349_s13  ;;  %v7919_v2 = vunpack.i.h.bf16 %v7917_v22  ;;  %v7918_v26 = vunpack.i.l.bf16 %v7917_v22  ;;  %v11403_v37 = vsel %vm591_vm2, %v15553_v6, %v15552_v10 }
 0x2e7   : > { %v3091_v8 = vsel %vm2986_vm13, %v3059_v50, %v7913_v47  ;;  %v2994_v7 = vsel %vm2986_vm13, %v2961_v3, %v7914_v43  ;;  %v8160_v47 = vpack.i.bf16 %v11326_v15, %v11403_v37 }
 0x2e8   : > { %v3123_v61 = vsel %vm3019_vm14, %v3091_v8, %v7918_v26  ;;  %v3027_v52 = vsel %vm3019_vm14, %v2994_v7, %v7919_v2  ;;  %v7922_v22 = vpop.permute.xlu0 %7921 }
 0x2e9   : > { %3354 = vmatprep.mubr.f32.mxu1 %v3123_v61  ;;  %v7923_v26 = vunpack.i.l.bf16 %v7922_v22  ;;  %v7924_v7 = vunpack.i.h.bf16 %v7922_v22 }
 0x2ea   : > { %8151 = vrot.lane.b32.xlu0 %v8150_v23, %s9348_s12  ;;  %3355 = vmatmul.mubr.f32.gmra.mrb[2].mxu1 %v3027_v52 }
 0x2ee   : > { %8161 = vrot.lane.b32.xlu0 %v8160_v47, %s9346_s14 }
 0x2f0   : > { %v7479_v49 = vpop.f32.mrb[20].mxu0 }
 0x2f1   : > { %v1973_v36 = vadd.f32 %v11412_v12, %v7479_v49  ;;  %v1967_v43 = vpop.f32.mrb[21].mxu0 }
 0x2f2   : > { %v1968_v50 = vadd.f32 %v11412_v12, %v1967_v43 }
 0x2f3   : > { %v2047_v3 = vmax.f32 %v1973_v36, 0.0  ;;  %v3060_v36 = vsel %vm1655_vm11, %v11066_v44, %v7923_v26 }
 0x2f4   : > { %v2046_v2 = vmax.f32 %v1968_v50, 0.0 }
 0x2f5   : > { %v2085_v8 = vrot.slane %v2047_v3, 7  ;;  %v7927_v61 = vpop.permute.xlu1 %7926 }
 0x2f6   : > { %v2144_v23 = vrot.slane %v2046_v2, 7  ;;  %v7929_v52 = vunpack.i.h.bf16 %v7927_v61  ;;  %v7928_v47 = vunpack.i.l.bf16 %v7927_v61  ;;  %v2962_v61 = vsel %vm1655_vm11, %v10945_v27, %v7924_v7 }
 0x2f8   : > { %v11417_v10 = vsel %vm429_vm0, %v2144_v23, %v2085_v8  ;;  %v11420_v6 = vsel %vm429_vm0, %v2085_v8, %v2144_v23  ;;  %v7932_v49 = vpop.permute.xlu0 %7931  ;;  %v3092_v2 = vsel %vm2986_vm13, %v3060_v36, %v7928_v47  ;;  %v2995_v8 = vsel %vm2986_vm13, %v2962_v61, %v7929_v52 }
 0x2f9   : > { %v2262_v5 = vrot.slane %v11420_v6, 1  ;;  %v2263_v43 = vrot.slane %v11417_v10, 1  ;;  %v7934_v50 = vunpack.i.h.bf16 %v7932_v49  ;;  %v7933_v22 = vunpack.i.l.bf16 %v7932_v49  ;;  %v7937_v3 = vpop.permute.xlu1 %7936 }
 0x2fa   : > { %v7939_v24 = vunpack.i.h.bf16 %v7937_v3  ;;  %v7938_v45 = vunpack.i.l.bf16 %v7937_v3  ;;  %v15560_v47 = vrot.slane %v11420_v6, 2  ;;  %v15559_v49 = vrot.slane %v11417_v10, 2 }
 0x2fb   : > { %v11431_v23 = vsel %vm526_vm1, %v2262_v5, %v2263_v43  ;;  %v3124_v54 = vsel %vm3019_vm14, %v3092_v2, %v7933_v22  ;;  %v3028_v44 = vsel %vm3019_vm14, %v2995_v8, %v7934_v50  ;;  %v15932_v22 = vrot.slane %v11318_v16, 2 }
 0x2fc   : > { %15931 = vst [vmem:[#allocation25_spill] sm:$0xff] %v11431_v23  ;;  %v7942_v17 = vpop.permute.xlu0 %7941  ;;  %v8170_v26 = vpack.i.bf16 %v11364_v13, %v11431_v23  ;;  %3359 = vmatprep.mubr.f32.mxu1 %v3124_v54  ;;  %v3061_v52 = vsel %vm1655_vm11, %v11101_v48, %v7938_v45  ;;  %v15933_v50 = vrot.slane %v11315_v42, 2  ;;  %v2963_v61 = vsel %vm1655_vm11, %v10942_v39, %v7939_v24 }
 0x2fd   : > { %v7944_v7 = vunpack.i.h.bf16 %v7942_v17  ;;  %v7943_v36 = vunpack.i.l.bf16 %v7942_v17  ;;  %v7947_v3 = vpop.permute.xlu1 %7946  ;;  %3360 = vmatmul.mubr.f32.gmra.mrb[4].mxu1 %v3028_v44  ;;  %v11456_v48 = vsel %vm526_vm1, %v2263_v43, %v2262_v5  ;;  %v11465_v24 = vsel %vm591_vm2, %v15560_v47, %v15559_v49 }
 0x2fe   : > { %8171 = vrot.lane.b32.xlu0 %v8170_v26, %s9349_s13  ;;  %v11447_v2 = vsel %vm591_vm2, %v15933_v50, %v15932_v22  ;;  %v7949_v8 = vunpack.i.h.bf16 %v7947_v3  ;;  %v7948_v17 = vunpack.i.l.bf16 %v7947_v3 }
 0x2ff   : > { %v3093_v54 = vsel %vm2986_vm13, %v3061_v52, %v7943_v36  ;;  %v2996_v44 = vsel %vm2986_vm13, %v2963_v61, %v7944_v7  ;;  %v8180_v26 = vpack.i.bf16 %v11447_v2, %v11417_v10  ;;  %v8190_v7 = vpack.i.bf16 %v11376_v40, %v11465_v24 }
 0x300   : > { %v3125_v45 = vsel %vm3019_vm14, %v3093_v54, %v7948_v17  ;;  %v3029_v22 = vsel %vm3019_vm14, %v2996_v44, %v7949_v8  ;;  %v7952_v3 = vpop.permute.xlu0 %7951 }
 0x301   : > { %3364 = vmatprep.mubr.f32.mxu1 %v3125_v45  ;;  %v7953_v17 = vunpack.i.l.bf16 %v7952_v3 }
 0x302   : > { %8181 = vrot.lane.b32.xlu0 %v8180_v26, %s9348_s12  ;;  %3365 = vmatmul.mubr.f32.gmra.mrb[6].mxu1 %v3029_v22  ;;  %v7954_v26 = vunpack.i.h.bf16 %v7952_v3 }
 0x306   : > { %8191 = vrot.lane.b32.xlu0 %v8190_v7, %s9346_s14 }
 0x308   : > { %v7482_v5 = vpop.f32.mrb[22].mxu0 }
 0x309   : > { %v1983_v43 = vadd.f32 %v11412_v12, %v7482_v5  ;;  %v1977_v36 = vpop.f32.mrb[23].mxu0 }
 0x30a   : > { %v1978_v52 = vadd.f32 %v11412_v12, %v1977_v36 }
 0x30b   : > { %v2049_v50 = vmax.f32 %v1983_v43, 0.0  ;;  %v3062_v43 = vsel %vm1655_vm11, %v11176_v9, %v7953_v17 }
 0x30c   : > { %v2048_v61 = vmax.f32 %v1978_v52, 0.0 }
 0x30d   : > { %v2086_v8 = vrot.slane %v2049_v50, 7  ;;  %v7962_v44 = vpop.permute.xlu0 %7961 }
 0x30e   : > { %v2146_v54 = vrot.slane %v2048_v61, 7  ;;  %v7964_v7 = vunpack.i.h.bf16 %v7962_v44  ;;  %v7963_v49 = vunpack.i.l.bf16 %v7962_v44  ;;  %v2964_v61 = vsel %vm1655_vm11, %v11054_v4, %v7954_v26 }
 0x30f   : > { %v15935_v4 = vrot.slane %v11364_v13, 2 }
 0x310   : > { %v11474_v45 = vsel %vm429_vm0, %v2146_v54, %v2086_v8  ;;  %v11477_v22 = vsel %vm429_vm0, %v2086_v8, %v2146_v54  ;;  %v3094_v8 = vsel %vm2986_vm13, %v3062_v43, %v7963_v49  ;;  %v2997_v44 = vsel %vm2986_vm13, %v2964_v61, %v7964_v7 }
 0x311   : > { %v2266_v5 = vrot.slane %v11477_v22, 1  ;;  %v2267_v47 = vrot.slane %v11474_v45, 1  ;;  %v7972_v36 = vpop.permute.xlu0 %7971  ;;  %v15565_v9 = vrot.slane %v11477_v22, 2  ;;  %v15564_v17 = vrot.slane %v11474_v45, 2 }
 0x312   : > { %v7974_v52 = vunpack.i.h.bf16 %v7972_v36  ;;  %v7973_v50 = vunpack.i.l.bf16 %v7972_v36  ;;  %v15936_v49 = vrot.slane %v11361_v32, 2 }
 0x313   : > { %v11484_v3 = vsel %vm526_vm1, %v2266_v5, %v2267_v47  ;;  %v11493_v16 = vsel %vm526_vm1, %v2267_v47, %v2266_v5  ;;  %v11514_v7 = vsel %vm591_vm2, %v15565_v9, %v15564_v17 }
 0x314   : > { %15934 = vst [vmem:[#allocation23_spill] sm:$0xff] %v11484_v3  ;;  %v8200_v54 = vpack.i.bf16 %v11420_v6, %v11484_v3  ;;  %v3126_v36 = vsel %vm3019_vm14, %v3094_v8, %v7973_v50  ;;  %v3030_v40 = vsel %vm3019_vm14, %v2997_v44, %v7974_v52  ;;  %v11505_v47 = vsel %vm591_vm2, %v15936_v49, %v15935_v4 }
 0x315   : > { %v7982_v21 = vpop.permute.xlu0 %7981  ;;  %3369 = vmatprep.mubr.f32.mxu1 %v3126_v36  ;;  %v8210_v26 = vpack.i.bf16 %v11505_v47, %v11474_v45  ;;  %v8220_v61 = vpack.i.bf16 %v11431_v23, %v11514_v7 }
 0x316   : > { %8201 = vrot.lane.b32.xlu0 %v8200_v54, %s9349_s13  ;;  %3370 = vmatmul.mubr.f32.gmra.mrb[8].mxu1 %v3030_v40  ;;  %v7984_v40 = vunpack.i.h.bf16 %v7982_v21  ;;  %v7983_v43 = vunpack.i.l.bf16 %v7982_v21 }
 0x318   : > { %v3063_v36 = vsel %vm1655_vm11, %v11209_v41, %v7983_v43  ;;  %v2965_v4 = vsel %vm1655_vm11, %v11051_v34, %v7984_v40 }
 0x319   : > { %v7992_v5 = vpop.permute.xlu0 %7991 }
 0x31a   : > { %8211 = vrot.lane.b32.xlu0 %v8210_v26, %s9348_s12  ;;  %v7994_v52 = vunpack.i.h.bf16 %v7992_v5  ;;  %v7993_v50 = vunpack.i.l.bf16 %v7992_v5 }
 0x31c   : > { %v3095_v26 = vsel %vm2986_vm13, %v3063_v36, %v7993_v50  ;;  %v2998_v21 = vsel %vm2986_vm13, %v2965_v4, %v7994_v52 }
 0x31d   : > { %v8002_v8 = vpop.permute.xlu0 %8001 }
 0x31e   : > { %8221 = vrot.lane.b32.xlu0 %v8220_v61, %s9346_s14  ;;  %v8004_v54 = vunpack.i.h.bf16 %v8002_v8  ;;  %v8003_v44 = vunpack.i.l.bf16 %v8002_v8 }
 0x320   : > { %v7485_v49 = vpop.f32.mrb[24].mxu0  ;;  %v3127_v9 = vsel %vm3019_vm14, %v3095_v26, %v8003_v44  ;;  %v3031_v61 = vsel %vm3019_vm14, %v2998_v21, %v8004_v54 }
 0x321   : > { %v1993_v5 = vadd.f32 %v11412_v12, %v7485_v49  ;;  %v1987_v17 = vpop.f32.mrb[25].mxu0  ;;  %v8012_v23 = vpop.permute.xlu0 %8011  ;;  %3374 = vmatprep.mubr.f32.mxu1 %v3127_v9 }
 0x322   : > { %v1988_v8 = vadd.f32 %v11412_v12, %v1987_v17  ;;  %3375 = vmatmul.mubr.f32.gmra.mrb[10].mxu1 %v3031_v61  ;;  %v8013_v40 = vunpack.i.l.bf16 %v8012_v23  ;;  %v8014_v36 = vunpack.i.h.bf16 %v8012_v23 }
 0x323   : > { %v2051_v41 = vmax.f32 %v1993_v5, 0.0 }
 0x324   : > { %v2050_v43 = vmax.f32 %v1988_v8, 0.0  ;;  %v3064_v26 = vsel %vm1655_vm11, %v11242_v51, %v8013_v40  ;;  %v2966_v61 = vsel %vm1655_vm11, %v11157_v33, %v8014_v36  ;;  %v15939_v33 = vrot.slane %v11420_v6, 2 }
 0x325   : > { %v2087_v34 = vrot.slane %v2051_v41, 7  ;;  %v8022_v50 = vpop.permute.xlu0 %8021  ;;  %v15940_v36 = vrot.slane %v11417_v10, 2 }
 0x326   : > { %v2148_v53 = vrot.slane %v2050_v43, 7  ;;  %v8024_v44 = vunpack.i.h.bf16 %v8022_v50  ;;  %v8023_v54 = vunpack.i.l.bf16 %v8022_v50 }
 0x328   : > { %v11531_v52 = vsel %vm429_vm0, %v2148_v53, %v2087_v34  ;;  %v11534_v4 = vsel %vm429_vm0, %v2087_v34, %v2148_v53  ;;  %v3096_v53 = vsel %vm2986_vm13, %v3064_v26, %v8023_v54  ;;  %v2999_v41 = vsel %vm2986_vm13, %v2966_v61, %v8024_v44 }
 0x329   : > { %15937 = vst [vmem:[#allocation22_spill] sm:$0xff] %v11531_v52  ;;  %v2270_v49 = vrot.slane %v11534_v4, 1  ;;  %v2271_v9 = vrot.slane %v11531_v52, 1  ;;  %v8032_v17 = vpop.permute.xlu0 %8031  ;;  %v15569_v51 = vrot.slane %v11534_v4, 2  ;;  %v15568_v34 = vrot.slane %v11531_v52, 2 }
 0x32a   : > { %v8034_v21 = vunpack.i.h.bf16 %v8032_v17  ;;  %v8033_v5 = vunpack.i.l.bf16 %v8032_v17  ;;  %v11562_v44 = vsel %vm591_vm2, %v15940_v36, %v15939_v33 }
 0x32b   : > { %v11541_v23 = vsel %vm526_vm1, %v2270_v49, %v2271_v9  ;;  %v11550_v43 = vsel %vm526_vm1, %v2271_v9, %v2270_v49  ;;  %v8240_v54 = vpack.i.bf16 %v11562_v44, %v11531_v52  ;;  %v11571_v49 = vsel %vm591_vm2, %v15569_v51, %v15568_v34 }
 0x32c   : > { %15938 = vst [vmem:[#allocation28_spill] sm:$0xff] %v11541_v23  ;;  %v8230_v8 = vpack.i.bf16 %v11477_v22, %v11541_v23  ;;  %v3128_v40 = vsel %vm3019_vm14, %v3096_v53, %v8033_v5  ;;  %v3032_v50 = vsel %vm3019_vm14, %v2999_v41, %v8034_v21  ;;  %15941 = vst [vmem:[#allocation29_spill] sm:$0xff] %v11571_v49 }
 0x32d   : > { %v8042_v17 = vpop.permute.xlu0 %8041  ;;  %3379 = vmatprep.mubr.f32.mxu1 %v3128_v40  ;;  %v8250_v53 = vpack.i.bf16 %v11484_v3, %v11571_v49 }
 0x32e   : > { %8231 = vrot.lane.b32.xlu0 %v8230_v8, %s9349_s13  ;;  %3380 = vmatmul.mubr.f32.gmra.mrb[12].mxu1 %v3032_v50  ;;  %v8044_v26 = vunpack.i.h.bf16 %v8042_v17  ;;  %v8043_v21 = vunpack.i.l.bf16 %v8042_v17 }
 0x330   : > { %v3065_v50 = vsel %vm1655_vm11, %v11259_v46, %v8043_v21  ;;  %v2967_v33 = vsel %vm1655_vm11, %v11154_v31, %v8044_v26 }
 0x331   : > { %v8052_v9 = vpop.permute.xlu0 %8051 }
 0x332   : > { %8241 = vrot.lane.b32.xlu0 %v8240_v54, %s9348_s12  ;;  %v8054_v5 = vunpack.i.h.bf16 %v8052_v9  ;;  %v8053_v61 = vunpack.i.l.bf16 %v8052_v9 }
 0x334   : > { %v3097_v54 = vsel %vm2986_vm13, %v3065_v50, %v8053_v61  ;;  %v3000_v17 = vsel %vm2986_vm13, %v2967_v33, %v8054_v5 }
 0x335   : > { %v8062_v8 = vpop.permute.xlu0 %8061 }
 0x336   : > { %8251 = vrot.lane.b32.xlu0 %v8250_v53, %s9346_s14  ;;  %v8064_v41 = vunpack.i.h.bf16 %v8062_v8  ;;  %v8063_v40 = vunpack.i.l.bf16 %v8062_v8 }
 0x338   : > { %v7488_v36 = vpop.f32.mrb[26].mxu0  ;;  %v3129_v51 = vsel %vm3019_vm14, %v3097_v54, %v8063_v40  ;;  %v3033_v53 = vsel %vm3019_vm14, %v3000_v17, %v8064_v41 }
 0x339   : > { %v2003_v9 = vadd.f32 %v11412_v12, %v7488_v36  ;;  %v1997_v34 = vpop.f32.mrb[27].mxu0  ;;  %v8072_v3 = vpop.permute.xlu0 %8071  ;;  %3384 = vmatprep.mubr.f32.mxu1 %v3129_v51 }
 0x33a   : > { %v1998_v8 = vadd.f32 %v11412_v12, %v1997_v34  ;;  %3385 = vmatmul.mubr.f32.gmra.mrb[14].mxu1 %v3033_v53  ;;  %v8073_v26 = vunpack.i.l.bf16 %v8072_v3  ;;  %v8074_v50 = vunpack.i.h.bf16 %v8072_v3 }
 0x33b   : > { %v2053_v46 = vmax.f32 %v2003_v9, 0.0 }
 0x33c   : > { %v2052_v21 = vmax.f32 %v1998_v8, 0.0  ;;  %v3066_v54 = vsel %vm1655_vm11, %v11284_v28, %v8073_v26  ;;  %v2968_v53 = vsel %vm1655_vm11, %v11235_v63, %v8074_v50  ;;  %v15945_v63 = vrot.slane %v11477_v22, 2 }
 0x33d   : > { %v2088_v31 = vrot.slane %v2053_v46, 7  ;;  %v8082_v61 = vpop.permute.xlu0 %8081  ;;  %v15946_v50 = vrot.slane %v11474_v45, 2 }
 0x33e   : > { %v2150_v62 = vrot.slane %v2052_v21, 7  ;;  %v8084_v40 = vunpack.i.h.bf16 %v8082_v61  ;;  %v8083_v41 = vunpack.i.l.bf16 %v8082_v61 }
 0x340   : > { %v11588_v5 = vsel %vm429_vm0, %v2150_v62, %v2088_v31  ;;  %v11591_v33 = vsel %vm429_vm0, %v2088_v31, %v2150_v62  ;;  %v3098_v62 = vsel %vm2986_vm13, %v3066_v54, %v8083_v41  ;;  %v3001_v46 = vsel %vm2986_vm13, %v2968_v53, %v8084_v40 }
 0x341   : > { %15942 = vst [vmem:[#allocation48_spill] sm:$0xff] %v11588_v5  ;;  %15943 = vst [vmem:[#allocation27_spill] sm:$0xff] %v11591_v33  ;;  %v2274_v36 = vrot.slane %v11591_v33, 1  ;;  %v2275_v51 = vrot.slane %v11588_v5, 1  ;;  %v8092_v34 = vpop.permute.xlu0 %8091  ;;  %v15573_v28 = vrot.slane %v11591_v33, 2  ;;  %v15572_v31 = vrot.slane %v11588_v5, 2 }
 0x342   : > { %v8094_v17 = vunpack.i.h.bf16 %v8092_v34  ;;  %v8093_v9 = vunpack.i.l.bf16 %v8092_v34  ;;  %v11619_v40 = vsel %vm591_vm2, %v15946_v50, %v15945_v63 }
 0x343   : > { %v11598_v3 = vsel %vm526_vm1, %v2274_v36, %v2275_v51  ;;  %v11607_v21 = vsel %vm526_vm1, %v2275_v51, %v2274_v36  ;;  %v8270_v41 = vpack.i.bf16 %v11619_v40, %v11588_v5  ;;  %v11628_v36 = vsel %vm591_vm2, %v15573_v28, %v15572_v31 }
 0x344   : > { %15944 = vst [vmem:[#allocation57_spill] sm:$0xff] %v11598_v3  ;;  %v8260_v8 = vpack.i.bf16 %v11534_v4, %v11598_v3  ;;  %v3130_v26 = vsel %vm3019_vm14, %v3098_v62, %v8093_v9  ;;  %v3034_v61 = vsel %vm3019_vm14, %v3001_v46, %v8094_v17  ;;  %15947 = vst [vmem:[#allocation26_spill] sm:$0xff] %v11628_v36 }
 0x345   : > { %v8102_v34 = vpop.permute.xlu0 %8101  ;;  %3389 = vmatprep.mubr.f32.mxu1 %v3130_v26  ;;  %v8280_v62 = vpack.i.bf16 %v11541_v23, %v11628_v36 }
 0x346   : > { %8261 = vrot.lane.b32.xlu0 %v8260_v8, %s9349_s13  ;;  %3390 = vmatmul.mubr.f32.gmra.mrb[16].mxu1 %v3034_v61  ;;  %v8104_v54 = vunpack.i.h.bf16 %v8102_v34  ;;  %v8103_v17 = vunpack.i.l.bf16 %v8102_v34 }
 0x348   : > { %v3067_v61 = vsel %vm1655_vm11, %v11301_v60, %v8103_v17  ;;  %v2969_v63 = vsel %vm1655_vm11, %v11232_v18, %v8104_v54 }
 0x349   : > { %v8112_v51 = vpop.permute.xlu0 %8111 }
 0x34a   : > { %8271 = vrot.lane.b32.xlu0 %v8270_v41, %s9348_s12  ;;  %v8114_v9 = vunpack.i.h.bf16 %v8112_v51  ;;  %v8113_v53 = vunpack.i.l.bf16 %v8112_v51 }
 0x34c   : > { %v3099_v41 = vsel %vm2986_vm13, %v3067_v61, %v8113_v53  ;;  %v3002_v34 = vsel %vm2986_vm13, %v2969_v63, %v8114_v9 }
 0x34d   : > { %v8122_v8 = vpop.permute.xlu0 %8121 }
 0x34e   : > { %8281 = vrot.lane.b32.xlu0 %v8280_v62, %s9346_s14  ;;  %v8124_v46 = vunpack.i.h.bf16 %v8122_v8  ;;  %v8123_v26 = vunpack.i.l.bf16 %v8122_v8 }
 0x350   : > { %v7491_v50 = vpop.f32.mrb[28].mxu0  ;;  %v3131_v28 = vsel %vm3019_vm14, %v3099_v41, %v8123_v26  ;;  %v3035_v62 = vsel %vm3019_vm14, %v3002_v34, %v8124_v46  ;;  %v15952_v34 = vrot.slane %v11534_v4, 2 }
 0x351   : > { %v2013_v51 = vadd.f32 %v11412_v12, %v7491_v50  ;;  %v2007_v31 = vpop.f32.mrb[29].mxu0  ;;  %3394 = vmatprep.mubr.f32.mxu1 %v3131_v28 }
 0x352   : > { %v2008_v8 = vadd.f32 %v11412_v12, %v2007_v31  ;;  %3395 = vmatmul.mubr.f32.gmra.mrb[18].mxu1 %v3035_v62 }
 0x353   : > { %v2055_v23 = vmax.f32 %v2013_v51, 0.0  ;;  %v15953_v51 = vrot.slane %v11531_v52, 2 }
 0x354   : > { %v2054_v17 = vmax.f32 %v2008_v8, 0.0 }
 0x355   : > { %v2089_v15 = vrot.slane %v2055_v23, 7  ;;  %v11670_v62 = vsel %vm591_vm2, %v15953_v51, %v15952_v34 }
 0x356   : > { %v2152_v18 = vrot.slane %v2054_v17, 7 }
 0x358   : > { %v11645_v54 = vsel %vm429_vm0, %v2152_v18, %v2089_v15  ;;  %v11648_v9 = vsel %vm429_vm0, %v2089_v15, %v2152_v18 }
 0x359   : > { %15948 = vst [vmem:[#allocation32_spill] sm:$0xff] %v11645_v54  ;;  %15949 = vst [vmem:[#allocation58_spill] sm:$0xff] %v11648_v9  ;;  %v2278_v53 = vrot.slane %v11648_v9, 1  ;;  %v2279_v26 = vrot.slane %v11645_v54, 1  ;;  %v2342_v31 = vrot.slane %v11648_v9, 2  ;;  %v2343_v61 = vrot.slane %v11645_v54, 2 }
 0x35a   : > { %v8300_v17 = vpack.i.bf16 %v11670_v62, %v11645_v54  ;;  %v2227_v54 = vrot.slane %v10759_v55, 1 }
 0x35b   : > { %v11653_v46 = vsel %vm526_vm1, %v2278_v53, %v2279_v26  ;;  %v11656_v28 = vsel %vm526_vm1, %v2279_v26, %v2278_v53  ;;  %v11675_v53 = vsel %vm591_vm2, %v2342_v31, %v2343_v61 }
 0x35c   : > { %15950 = vst [vmem:[#allocation33_spill] sm:$0xff] %v11653_v46  ;;  %15951 = vst [vmem:[#allocation49_spill] sm:$0xff] %v11656_v28  ;;  %v8290_v23 = vpack.i.bf16 %v11591_v33, %v11653_v46  ;;  %v15959_v28 = vrot.slane %v11588_v5, 2 }
 0x35d   : > { %v7494_v63 = vpop.f32.mrb[30].mxu0  ;;  %15954 = vst [vmem:[#allocation50_spill] sm:$0xff] %v11675_v53 }
 0x35e   : > { %v2023_v15 = vadd.f32 %v11412_v12, %v7494_v63  ;;  %8291 = vrot.lane.b32.xlu0 %v8290_v23, %s9349_s13  ;;  %v2017_v50 = vpop.f32.mrb[31].mxu0  ;;  %v2287_v63 = vrot.slane %v10711_v59, 2 }
 0x35f   : > { %v2018_v41 = vadd.f32 %v11412_v12, %v2017_v50  ;;  %v2286_v12 = vrot.slane %v10714_v14, 2  ;;  %v8310_v50 = vpack.i.bf16 %v11598_v3, %v11675_v53  ;;  %v2226_v53 = vrot.slane %v10762_v35, 1 }
 0x360   : > { %v2057_v8 = vmax.f32 %v2023_v15, 0.0 }
 0x361   : > { %v2056_v18 = vmax.f32 %v2018_v41, 0.0  ;;  %v11697_v3 = vsel %vm591_vm2, %v2286_v12, %v2287_v63  ;;  %v11722_v52 = vsel %vm526_vm1, %v2226_v53, %v2227_v54 }
 0x362   : > { %v2074_v26 = vrot.slane %v2057_v8, 7  ;;  %8301 = vrot.lane.b32.xlu0 %v8300_v17, %s9348_s12 }
 0x363   : > { %v2122_v23 = vrot.slane %v2056_v18, 7 }
 0x365   : > { %v11683_v15 = vsel %vm429_vm0, %v2122_v23, %v2074_v26  ;;  %v11686_v34 = vsel %vm429_vm0, %v2074_v26, %v2122_v23 }
 0x366   : > { %15955 = vst [vmem:[#allocation31_spill] sm:$0xff] %v11683_v15  ;;  %v2218_v41 = vrot.slane %v11686_v34, 1  ;;  %v2219_v51 = vrot.slane %v11683_v15, 1  ;;  %v2282_v8 = vrot.slane %v11686_v34, 2  ;;  %v2283_v17 = vrot.slane %v11683_v15, 2  ;;  %8311 = vrot.lane.b32.xlu0 %v8310_v50, %s9346_s14 }
 0x367   : > { %v15958_v50 = vrot.slane %v11591_v33, 2 }
 0x368   : > { %v11694_v18 = vsel %vm526_vm1, %v2218_v41, %v2219_v51  ;;  %v11706_v36 = vsel %vm591_vm2, %v2282_v8, %v2283_v17  ;;  %v11733_v5 = vsel %vm526_vm1, %v2219_v51, %v2218_v41  ;;  %v11751_v41 = vsel %vm591_vm2, %v2283_v17, %v2282_v8 }
 0x369   : > { %15956 = vst [vmem:[#allocation59_spill] sm:$0xff] %v11694_v18  ;;  %v8320_v26 = vpack.i.bf16 %v11648_v9, %v11694_v18  ;;  %v7955_v23 = vpack.i.bf16 %v11694_v18, %v11697_v3  ;;  %15957 = vst [vmem:[#allocation30_spill] sm:$0xff] %v11706_v36  ;;  %v11715_v49 = vsel %vm591_vm2, %v15959_v28, %v15958_v50  ;;  %v2290_v51 = vrot.slane %v10762_v35, 2 }
 0x36a   : > { %v8330_v18 = vpack.i.bf16 %v11715_v49, %v11683_v15  ;;  %v7965_v9 = vpack.i.bf16 %v11706_v36, %v10762_v35  ;;  %v8340_v28 = vpack.i.bf16 %v11653_v46, %v11706_v36  ;;  %v7975_v50 = vpack.i.bf16 %v10714_v14, %v11722_v52  ;;  %15960 = vst [vmem:[#allocation36_spill] sm:$0xff] %v11733_v5 }
 0x36b   : > { %8321 = vrot.lane.b32.xlu0 %v8320_v26, %s9349_s13  ;;  %7956 = vrot.lane.b32.xlu1 %v7955_v23, %s9346_s14  ;;  %v2222_v26 = vrot.slane %v10714_v14, 1  ;;  %v2223_v23 = vrot.slane %v10711_v59, 1  ;;  %v11748_v36 = vsel %vm591_vm2, %v2343_v61, %v2342_v31  ;;  %v11762_v31 = vsel %vm526_vm1, %v2227_v54, %v2226_v53 }
 0x36c   : > { %v8025_v54 = vpack.i.bf16 %v11697_v3, %v10846_v38  ;;  %v8035_v53 = vpack.i.bf16 %v10762_v35, %v10963_v56 }
 0x36d   : > { %v11785_v17 = vsel %vm526_vm1, %v2223_v23, %v2222_v26 }
 0x36f   : > { %8331 = vrot.lane.b32.xlu0 %v8330_v18, %s9348_s12  ;;  %7966 = vrot.lane.b32.xlu1 %v7965_v9, %s9348_s12  ;;  %v11738_v18 = vsel %vm526_vm1, %v2222_v26, %v2223_v23  ;;  %v11741_v9 = vsel %vm591_vm2, %v2287_v63, %v2286_v12  ;;  %v8360_v12 = vpack.i.bf16 %v11748_v36, %v10711_v59 }
 0x370   : > { %15961 = vst [vmem:[#allocation60_spill] sm:$0xff] %v11741_v9  ;;  %v8350_v15 = vpack.i.bf16 %v11686_v34, %v11738_v18  ;;  %v7985_v46 = vpack.i.bf16 %v11733_v5, %v11741_v9  ;;  %v7995_v63 = vpack.i.bf16 %v11751_v41, %v10759_v55  ;;  %v8095_v23 = vpack.i.bf16 %v10846_v38, %v11127_v58 }
 0x371   : > { %v8125_v58 = vpack.i.bf16 %v10843_v0, %v11195_v1 }
 0x373   : > { %8341 = vrot.lane.b32.xlu0 %v8340_v28, %s9346_s14  ;;  %7976 = vrot.lane.b32.xlu1 %v7975_v50, %s9349_s13  ;;  %v2291_v28 = vrot.slane %v10759_v55, 2 }
 0x375   : > { %v11769_v61 = vsel %vm591_vm2, %v2290_v51, %v2291_v28  ;;  %v11781_v8 = vsel %vm591_vm2, %v2291_v28, %v2290_v51  ;;  %v8075_v51 = vpack.i.bf16 %v11722_v52, %v11061_v19  ;;  %v3180_v28 = vld [vmem:[%s15434_s3 + $0x100] sm:$0xff] }
 0x376   : > { %v8045_v50 = vpack.i.bf16 %v11785_v17, %v11781_v8  ;;  %v8085_v26 = vpack.i.bf16 %v11769_v61, %v10945_v27  ;;  %v8105_v27 = vpack.i.bf16 %v11762_v31, %v11098_v11  ;;  %v8115_v38 = vpack.i.bf16 %v11781_v8, %v10942_v39 }
 0x377   : > { %8351 = vrot.lane.b32.xlu0 %v8350_v15, %s9349_s13  ;;  %7986 = vrot.lane.b32.xlu1 %v7985_v46, %s9346_s14  ;;  %v8005_v46 = vpack.i.bf16 %v10711_v59, %v11762_v31  ;;  %v8015_v15 = vpack.i.bf16 %v11738_v18, %v11769_v61  ;;  %v8155_v39 = vpack.i.bf16 %v11315_v42, %v11394_v29 }
 0x37b   : > { %8361 = vrot.lane.b32.xlu0 %v8360_v12, %s9348_s12  ;;  %7996 = vrot.lane.b32.xlu1 %v7995_v63, %s9348_s12  ;;  %v8055_v12 = vpack.i.bf16 %v11741_v9, %v10843_v0  ;;  %v8065_v63 = vpack.i.bf16 %v10759_v55, %v11088_v57  ;;  %v8165_v0 = vpack.i.bf16 %v11355_v25, %v11420_v6 }
 0x37f   : > { %8006 = vrot.lane.b32.xlu1 %v8005_v46, %s9349_s13  ;;  %v3181_v46 = vld [vmem:[%s15434_s3 + $0x108] sm:$0xff] }
 0x383   : > { %8016 = vrot.lane.b32.xlu1 %v8015_v15, %s9346_s14  ;;  %v11811_v15 = vpack.c.bf16 %v3181_v46, %v3180_v28  ;;  %v8215_v46 = vpack.i.bf16 %v11417_v10, %v11493_v16 }
 0x385   : > { %7720 = vmatprep.subr.bf16.mxu0 %v11811_v15 }
 0x387   : > { %8026 = vrot.lane.b32.xlu1 %v8025_v54, %s9348_s12  ;;  %v8135_v54 = vpack.i.bf16 %v11309_v20, %v11364_v13 }
 0x38b   : > { %8036 = vrot.lane.b32.xlu1 %v8035_v53, %s9349_s13  ;;  %v8145_v53 = vpack.i.bf16 %v11301_v60, %v11447_v2  ;;  %v8175_v60 = vpack.i.bf16 %v11343_v30, %v11505_v47 }
 0x38f   : > { %8046 = vrot.lane.b32.xlu1 %v8045_v50, %s9346_s14 }
 0x393   : > { %8056 = vrot.lane.b32.xlu1 %v8055_v12, %s9348_s12 }
 0x397   : > { %8066 = vrot.lane.b32.xlu1 %v8065_v63, %s9349_s13 }
 0x39b   : > { %8076 = vrot.lane.b32.xlu1 %v8075_v51, %s9346_s14  ;;  %v8185_v51 = vpack.i.bf16 %v11361_v32, %v11456_v48 }
 0x39f   : > { %8086 = vrot.lane.b32.xlu1 %v8085_v26, %s9348_s12  ;;  %v8195_v26 = vpack.i.bf16 %v11403_v37, %v11477_v22 }
 0x3a3   : > { %8096 = vrot.lane.b32.xlu1 %v8095_v23, %s9349_s13  ;;  %v8205_v23 = vpack.i.bf16 %v11394_v29, %v11562_v44 }
 0x3a7   : > { %8106 = vrot.lane.b32.xlu1 %v8105_v27, %s9346_s14 }
 0x3ab   : > { %8116 = vrot.lane.b32.xlu1 %v8115_v38, %s9348_s12  ;;  %v8225_v38 = vpack.i.bf16 %v11465_v24, %v11534_v4 }
 0x3af   : > { %8126 = vrot.lane.b32.xlu1 %v8125_v58, %s9349_s13 }
 0x3b3   : > { %8136 = vrot.lane.b32.xlu1 %v8135_v54, %s9348_s12 }
 0x3b7   : > { %8146 = vrot.lane.b32.xlu1 %v8145_v53, %s9346_s14  ;;  %v8235_v53 = vpack.i.bf16 %v11456_v48, %v11619_v40 }
 0x3b8   : > { %v11829_v50 = vpop.f32.mrb[0].mxu1 }
 0x3b9   : > { %15962 = vst [vmem:[#allocation8_spill] sm:$0xff] %v11829_v50  ;;  %v3353_v12 = vpop.f32.mrb[1].mxu1 }
 0x3ba   : > { %v8245_v12 = vpack.i.bf16 %v11474_v45, %v11550_v43 }
 0x3bb   : > { %8156 = vrot.lane.b32.xlu1 %v8155_v39, %s9349_s13 }
 0x3bd   : > { %v11836_v1 = vpop.f32.mrb[2].mxu1 }
 0x3be   : > { %15963 = vst [vmem:[#allocation79_spill] sm:$0xff] %v11836_v1  ;;  %v3358_v63 = vpop.f32.mrb[3].mxu1 }
 0x3bf   : > { %8166 = vrot.lane.b32.xlu1 %v8165_v0, %s9348_s12  ;;  %v8255_v63 = vpack.i.bf16 %v11514_v7, %v11591_v33 }
 0x3c3   : > { %8176 = vrot.lane.b32.xlu1 %v8175_v60, %s9346_s14 }
 0x3c7   : > { %8186 = vrot.lane.b32.xlu1 %v8185_v51, %s9349_s13 }
 0x3cb   : > { %8196 = vrot.lane.b32.xlu1 %v8195_v26, %s9348_s12 }
 0x3cf   : > { %8206 = vrot.lane.b32.xlu1 %v8205_v23, %s9346_s14 }
 0x3d0   : > { %v11851_v28 = vpop.f32.mrb[4].mxu1 }
 0x3d1   : > { %15964 = vst [vmem:[#allocation37_spill] sm:$0xff] %v11851_v28  ;;  %v3363_v27 = vpop.f32.mrb[5].mxu1 }
 0x3d2   : > { %v8265_v27 = vpack.i.bf16 %v11493_v16, %v11670_v62 }
 0x3d3   : > { %8216 = vrot.lane.b32.xlu1 %v8215_v46, %s9349_s13 }
 0x3d5   : > { %v11858_v58 = vpop.f32.mrb[6].mxu1 }
 0x3d6   : > { %15965 = vst [vmem:[#allocation51_spill] sm:$0xff] %v11858_v58  ;;  %v3368_v54 = vpop.f32.mrb[7].mxu1 }
 0x3d7   : > { %8226 = vrot.lane.b32.xlu1 %v8225_v38, %s9348_s12  ;;  %v3182_v38 = vld [vmem:[%s15434_s3 + $0x110] sm:$0xff]  ;;  %v3183_v54 = vld [vmem:[%s15434_s3 + $0x118] sm:$0xff] }
 0x3d8   : > { %v7723_v50 = vpack.c.bf16 %v3183_v54, %v3182_v38 }
 0x3db   : > { %8236 = vrot.lane.b32.xlu1 %v8235_v53, %s9346_s14 }
 0x3dd   : > { %v7957_v39 = vpop.permute.xlu1 %7956 }
 0x3de   : > { %v7959_v60 = vunpack.i.h.bf16 %v7957_v39  ;;  %v7958_v51 = vunpack.i.l.bf16 %v7957_v39 }
 0x3df   : > { %8246 = vrot.lane.b32.xlu1 %v8245_v12, %s9349_s13 }
 0x3e0   : > { %v2954_v53 = vsel %vm1655_vm11, %v11686_v34, %v7959_v60  ;;  %v15966_v60 = vld [vmem:[#allocation22_spill] sm:$0xff] }
 0x3e1   : > { %v7967_v0 = vpop.permute.xlu1 %7966  ;;  %v8275_v9 = vpack.i.bf16 %v15966_v60, %v11607_v21 }
 0x3e2   : > { %v7969_v26 = vunpack.i.h.bf16 %v7967_v0  ;;  %v7968_v23 = vunpack.i.l.bf16 %v7967_v0  ;;  %v3052_v0 = vsel %vm1655_vm11, %v11738_v18, %v7958_v51 }
 0x3e3   : > { %8256 = vrot.lane.b32.xlu1 %v8255_v63, %s9348_s12 }
 0x3e4   : > { %v3084_v63 = vsel %vm2986_vm13, %v3052_v0, %v7968_v23  ;;  %v2987_v28 = vsel %vm2986_vm13, %v2954_v53, %v7969_v26  ;;  %v15968_v26 = vld [vmem:[#allocation58_spill] sm:$0xff]  ;;  %v15969_v23 = vld [vmem:[#allocation29_spill] sm:$0xff]  ;;  %v15970_v53 = vmov 0.0|0.0   ;;  %v15971_v0 = vld [vmem:[#allocation31_spill] sm:$0xff] }
 0x3e5   : > { %v7977_v46 = vpop.permute.xlu1 %7976 }
 0x3e6   : > { %v7979_v39 = vunpack.i.h.bf16 %v7977_v46  ;;  %v7978_v12 = vunpack.i.l.bf16 %v7977_v46 }
 0x3e7   : > { %8266 = vrot.lane.b32.xlu1 %v8265_v27, %s9346_s14  ;;  %v8285_v27 = vpack.i.bf16 %v15969_v23, %v15968_v26 }
 0x3e8   : > { %v3116_v58 = vsel %vm3019_vm14, %v3084_v63, %v7978_v12  ;;  %v3020_v1 = vsel %vm3019_vm14, %v2987_v28, %v7979_v39 }
 0x3e9   : > { %v7987_v33 = vpop.permute.xlu1 %7986  ;;  %3319 = vmatprep.mubr.f32.mxu0 %v3116_v58  ;;  %v11889_v46 = vpop.f32.mrb[8].mxu1 }
 0x3ea   : > { %15967 = vst [vmem:[#allocation52_spill] sm:$0xff] %v11889_v46  ;;  %3320 = vmatmul.mubr.f32.vlgmr.msra.gmra.mrb[32].mxu0 %v3020_v1  ;;  %v3373_v18 = vpop.f32.mrb[9].mxu1  ;;  %v7989_v28 = vunpack.i.h.bf16 %v7987_v33  ;;  %v7988_v38 = vunpack.i.l.bf16 %v7987_v33  ;;  %v15972_v46 = vld [vmem:[#allocation49_spill] sm:$0xff] }
 0x3eb   : > { %8276 = vrot.lane.b32.xlu1 %v8275_v9, %s9349_s13  ;;  %7722 = vmatpush3.bf16.msra.mxu0 %v11811_v15  ;;  %v8295_v9 = vpack.i.bf16 %v11550_v43, %v11715_v49 }
 0x3ec   : > { %7724 = vmatprep.subr.bf16.mxu0 %v7723_v50  ;;  %v3053_v12 = vsel %vm1655_vm11, %v11785_v17, %v7988_v38  ;;  %v2955_v63 = vsel %vm1655_vm11, %v15971_v0, %v7989_v28 }
 0x3ed   : > { %v7997_v51 = vpop.permute.xlu1 %7996 }
 0x3ee   : > { %v7999_v54 = vunpack.i.h.bf16 %v7997_v51  ;;  %v7998_v58 = vunpack.i.l.bf16 %v7997_v51 }
 0x3ef   : > { %8286 = vrot.lane.b32.xlu1 %v8285_v27, %s9348_s12  ;;  %7726 = vmatpush3.bf16.msra.mxu0 %v7723_v50 }
 0x3f0   : > { %7727 = vmatprep.subr.bf16.mxu0 %v15970_v53  ;;  %v3085_v33 = vsel %vm2986_vm13, %v3053_v12, %v7998_v58  ;;  %v2988_v50 = vsel %vm2986_vm13, %v2955_v63, %v7999_v54  ;;  %v15975_v58 = vld [vmem:[#allocation26_spill] sm:$0xff] }
 0x3f1   : > { %v8007_v1 = vpop.permute.xlu1 %8006 }
 0x3f2   : > { %v8009_v39 = vunpack.i.h.bf16 %v8007_v1  ;;  %v8008_v15 = vunpack.i.l.bf16 %v8007_v1  ;;  %v15973_v1 = vld [vmem:[#allocation48_spill] sm:$0xff] }
 0x3f3   : > { %8296 = vrot.lane.b32.xlu1 %v8295_v9, %s9346_s14  ;;  %v8305_v53 = vpack.i.bf16 %v15973_v1, %v15972_v46  ;;  %v8315_v9 = vpack.i.bf16 %v15975_v58, %v11686_v34 }
 0x3f4   : > { %v3117_v18 = vsel %vm3019_vm14, %v3085_v33, %v8008_v15  ;;  %v3021_v51 = vsel %vm3019_vm14, %v2988_v50, %v8009_v39  ;;  %v8325_v33 = vpack.i.bf16 %v11607_v21, %v11748_v36 }
 0x3f5   : > { %v8017_v27 = vpop.permute.xlu1 %8016  ;;  %3324 = vmatprep.mubr.f32.mxu0 %v3117_v18  ;;  %v11910_v26 = vpop.f32.mrb[10].mxu1 }
 0x3f6   : > { %15974 = vst [vmem:[#allocation35_spill] sm:$0xff] %v11910_v26  ;;  %3325 = vmatmul.mubr.f32.gmra.mrb[34].mxu0 %v3021_v51  ;;  %v3378_v38 = vpop.f32.mrb[11].mxu1  ;;  %v8019_v54 = vunpack.i.h.bf16 %v8017_v27  ;;  %v8018_v12 = vunpack.i.l.bf16 %v8017_v27 }
 0x3f7   : > { %8306 = vrot.lane.b32.xlu1 %v8305_v53, %s9349_s13  ;;  %v11925_v38 = vpop.permute.xlu0 %8131 }
 0x3f8   : > { %v3054_v51 = vsel %vm1655_vm11, %v11722_v52, %v8018_v12  ;;  %v2956_v53 = vsel %vm1655_vm11, %v10714_v14, %v8019_v54 }
 0x3f9   : > { %v8027_v28 = vpop.permute.xlu1 %8026 }
 0x3fa   : > { %v8029_v15 = vunpack.i.h.bf16 %v8027_v28  ;;  %v8028_v63 = vunpack.i.l.bf16 %v8027_v28 }
 0x3fb   : > { %8316 = vrot.lane.b32.xlu1 %v8315_v9, %s9348_s12 }
 0x3fc   : > { %v3086_v34 = vsel %vm2986_vm13, %v3054_v51, %v8028_v63  ;;  %v2989_v27 = vsel %vm2986_vm13, %v2956_v53, %v8029_v15  ;;  %v11934_v63 = vpop.permute.xlu0 %8141 }
 0x3fd   : > { %v8037_v39 = vpop.permute.xlu1 %8036 }
 0x3fe   : > { %v8039_v50 = vunpack.i.h.bf16 %v8037_v39  ;;  %v8038_v18 = vunpack.i.l.bf16 %v8037_v39  ;;  %v15976_v39 = vld [vmem:[#allocation32_spill] sm:$0xff] }
 0x3ff   : > { %8326 = vrot.lane.b32.xlu1 %v8325_v33, %s9346_s14  ;;  %v8335_v52 = vpack.i.bf16 %v15976_v39, %v11733_v5  ;;  %v15978_v33 = vld [vmem:[#allocation50_spill] sm:$0xff] }
 0x400   : > { %v3118_v28 = vsel %vm3019_vm14, %v3086_v34, %v8038_v18  ;;  %v3022_v9 = vsel %vm3019_vm14, %v2989_v27, %v8039_v50  ;;  %v8345_v51 = vpack.i.bf16 %v15978_v33, %v10714_v14 }
 0x401   : > { %v8047_v26 = vpop.permute.xlu1 %8046  ;;  %3329 = vmatprep.mubr.f32.mxu0 %v3118_v28  ;;  %v11931_v12 = vpop.f32.mrb[12].mxu1  ;;  %v8355_v28 = vpack.i.bf16 %v15972_v46, %v11751_v41 }
 0x402   : > { %15977 = vst [vmem:[#allocation61_spill] sm:$0xff] %v11931_v12  ;;  %3330 = vmatmul.mubr.f32.gmra.mrb[36].mxu0 %v3022_v9  ;;  %v3383_v54 = vpop.f32.mrb[13].mxu1  ;;  %v8049_v18 = vunpack.i.h.bf16 %v8047_v26  ;;  %v8048_v53 = vunpack.i.l.bf16 %v8047_v26  ;;  %v11941_v9 = vpop.permute.xlu0 %8151 }
 0x403   : > { %8336 = vrot.lane.b32.xlu1 %v8335_v52, %s9349_s13 }
 0x404   : > { %v3055_v12 = vsel %vm1655_vm11, %v11762_v31, %v8048_v53  ;;  %v2957_v14 = vsel %vm1655_vm11, %v10711_v59, %v8049_v18 }
 0x405   : > { %v8057_v15 = vpop.permute.xlu1 %8056 }
 0x406   : > { %v8059_v50 = vunpack.i.h.bf16 %v8057_v15  ;;  %v8058_v34 = vunpack.i.l.bf16 %v8057_v15  ;;  %v11957_v59 = vpop.permute.xlu0 %8161 }
 0x407   : > { %8346 = vrot.lane.b32.xlu1 %v8345_v51, %s9348_s12 }
 0x408   : > { %v3087_v26 = vsel %vm2986_vm13, %v3055_v12, %v8058_v34  ;;  %v2990_v15 = vsel %vm2986_vm13, %v2957_v14, %v8059_v50 }
 0x409   : > { %v8067_v27 = vpop.permute.xlu1 %8066 }
 0x40a   : > { %v8069_v54 = vunpack.i.h.bf16 %v8067_v27  ;;  %v8068_v52 = vunpack.i.l.bf16 %v8067_v27  ;;  %v8365_v27 = vpack.i.bf16 %v15971_v0, %v11785_v17 }
 0x40b   : > { %8356 = vrot.lane.b32.xlu1 %v8355_v28, %s9346_s14  ;;  %v11959_v28 = vpop.permute.xlu0 %8171 }
 0x40c   : > { %v3119_v51 = vsel %vm3019_vm14, %v3087_v26, %v8068_v52  ;;  %v3023_v39 = vsel %vm3019_vm14, %v2990_v15, %v8069_v54 }
 0x40d   : > { %v8077_v5 = vpop.permute.xlu1 %8076  ;;  %3334 = vmatprep.mubr.f32.mxu0 %v3119_v51  ;;  %v11954_v1 = vpop.f32.mrb[14].mxu1 }
 0x40e   : > { %3335 = vmatmul.mubr.f32.gmra.mrb[38].mxu0 %v3023_v39  ;;  %v3388_v31 = vpop.f32.mrb[15].mxu1  ;;  %v8079_v18 = vunpack.i.h.bf16 %v8077_v5  ;;  %v8078_v53 = vunpack.i.l.bf16 %v8077_v5 }
 0x40f   : > { %8366 = vrot.lane.b32.xlu1 %v8365_v27, %s9349_s13  ;;  %v11969_v27 = vpop.permute.xlu0 %8181 }
 0x410   : > { %v3056_v17 = vsel %vm1655_vm11, %v10963_v56, %v8078_v53  ;;  %v2958_v0 = vsel %vm1655_vm11, %v10762_v35, %v8079_v18 }
 0x411   : > { %v8087_v12 = vpop.permute.xlu1 %8086 }
 0x412   : > { %v8089_v50 = vunpack.i.h.bf16 %v8087_v12  ;;  %v8088_v34 = vunpack.i.l.bf16 %v8087_v12 }
 0x414   : > { %v3088_v39 = vsel %vm2986_vm13, %v3056_v17, %v8088_v34  ;;  %v2991_v26 = vsel %vm2986_vm13, %v2958_v0, %v8089_v50  ;;  %v11973_v34 = vpop.permute.xlu0 %8191 }
 0x415   : > { %v8097_v54 = vpop.permute.xlu1 %8096 }
 0x416   : > { %v8099_v52 = vunpack.i.h.bf16 %v8097_v54  ;;  %v8098_v14 = vunpack.i.l.bf16 %v8097_v54 }
 0x418   : > { %v3120_v15 = vsel %vm3019_vm14, %v3088_v39, %v8098_v14  ;;  %v3024_v5 = vsel %vm3019_vm14, %v2991_v26, %v8099_v52  ;;  %v8134_v39 = vunpack.i.h.bf16 %v11925_v38  ;;  %v8133_v26 = vunpack.i.l.bf16 %v11925_v38 }
 0x419   : > { %v8107_v51 = vpop.permute.xlu1 %8106  ;;  %3339 = vmatprep.mubr.f32.mxu0 %v3120_v15  ;;  %v11971_v31 = vpop.f32.mrb[16].mxu1  ;;  %v8143_v38 = vunpack.i.l.bf16 %v11934_v63 }
 0x41a   : > { %15979 = vst [vmem:[#allocation9_spill] sm:$0xff] %v11971_v31  ;;  %3340 = vmatmul.mubr.f32.gmra.mrb[40].mxu0 %v3024_v5  ;;  %v3393_v12 = vpop.f32.mrb[17].mxu1  ;;  %v8109_v53 = vunpack.i.h.bf16 %v8107_v51  ;;  %v8108_v54 = vunpack.i.l.bf16 %v8107_v51  ;;  %v11983_v51 = vpop.permute.xlu0 %8201 }
 0x41c   : > { %v3057_v52 = vsel %vm1655_vm11, %v11088_v57, %v8108_v54  ;;  %v2959_v0 = vsel %vm1655_vm11, %v10759_v55, %v8109_v53  ;;  %v8144_v55 = vunpack.i.h.bf16 %v11934_v63 }
 0x41d   : > { %v8117_v56 = vpop.permute.xlu1 %8116 }
 0x41e   : > { %v8119_v35 = vunpack.i.h.bf16 %v8117_v56  ;;  %v8118_v18 = vunpack.i.l.bf16 %v8117_v56  ;;  %v12001_v63 = vpop.permute.xlu0 %8211 }
 0x420   : > { %v3089_v15 = vsel %vm2986_vm13, %v3057_v52, %v8118_v18  ;;  %v2992_v5 = vsel %vm2986_vm13, %v2959_v0, %v8119_v35  ;;  %v15980_v35 = vld [vmem:[#allocation19_spill] sm:$0xff] }
 0x421   : > { %v8127_v50 = vpop.permute.xlu1 %8126  ;;  %v3068_v18 = vsel %vm1655_vm11, %v15980_v35, %v8133_v26  ;;  %v15983_v35 = vld [vmem:[#allocation12_spill] sm:$0xff] }
 0x422   : > { %v8129_v17 = vunpack.i.h.bf16 %v8127_v50  ;;  %v8128_v14 = vunpack.i.l.bf16 %v8127_v50 }
 0x424   : > { %v3121_v12 = vsel %vm3019_vm14, %v3089_v15, %v8128_v14  ;;  %v3025_v56 = vsel %vm3019_vm14, %v2992_v5, %v8129_v17  ;;  %v15981_v14 = vld [vmem:[#allocation14_spill] sm:$0xff] }
 0x425   : > { %v8137_v50 = vpop.permute.xlu1 %8136  ;;  %3344 = vmatprep.mubr.f32.mxu0 %v3121_v12  ;;  %v11987_v31 = vpop.f32.mrb[18].mxu1  ;;  %v2970_v17 = vsel %vm1655_vm11, %v15981_v14, %v8134_v39  ;;  %v15982_v39 = vld [vmem:[#allocation15_spill] sm:$0xff] }
 0x426   : > { %v8139_v57 = vunpack.i.h.bf16 %v8137_v50  ;;  %v8138_v54 = vunpack.i.l.bf16 %v8137_v50  ;;  %3345 = vmatmul.mubr.f32.gmra.mrb[42].mxu0 %v3025_v56  ;;  %v3398_v53 = vpop.f32.mrb[19].mxu1  ;;  %v12021_v14 = vpop.permute.xlu0 %8221 }
 0x427   : > { %7503 = vmatprep.mubr.msk.f32.mxu0 %vm1655_vm11, %v11769_v61 }
 0x428   : > { %v3100_v52 = vsel %vm2986_vm13, %v3068_v18, %v8138_v54  ;;  %v3003_v0 = vsel %vm2986_vm13, %v2970_v17, %v8139_v57  ;;  %v8154_v57 = vunpack.i.h.bf16 %v11941_v9  ;;  %v8153_v54 = vunpack.i.l.bf16 %v11941_v9 }
 0x429   : > { %v8147_v15 = vpop.permute.xlu1 %8146  ;;  %v3132_v5 = vsel %vm3019_vm14, %v3100_v52, %v8143_v38  ;;  %v3036_v12 = vsel %vm3019_vm14, %v3003_v0, %v8144_v55 }
 0x42a   : > { %v8149_v56 = vunpack.i.h.bf16 %v8147_v15  ;;  %v8148_v50 = vunpack.i.l.bf16 %v8147_v15  ;;  %3399 = vmatprep.mubr.f32.mxu1 %v3132_v5  ;;  %7504 = vmatmul.mubr.msk.f32.vlgmr.msra.gmra.mrb[44].mxu0 %vm1655_vm11, %v11781_v8  ;;  %v8164_v8 = vunpack.i.h.bf16 %v11957_v59  ;;  %v15984_v15 = vld [vmem:[#allocation2_spill] sm:$0xff]  ;;  %v8173_v5 = vunpack.i.l.bf16 %v11959_v28 }
 0x42b   : > { %3400 = vmatmul.mubr.f32.gmra.mrb[20].mxu1 %v3036_v12  ;;  %7506 = vmatprep.mubr.msk.f32.mxu0 %vm1655_vm11, %v11061_v19  ;;  %v8163_v19 = vunpack.i.l.bf16 %v11957_v59  ;;  %v8174_v59 = vunpack.i.h.bf16 %v11959_v28  ;;  %v15985_v12 = vld [vmem:[#allocation13_spill] sm:$0xff] }
 0x42c   : > { %v3069_v61 = vsel %vm1655_vm11, %v11343_v30, %v8148_v50  ;;  %v2971_v26 = vsel %vm1655_vm11, %v15982_v39, %v8149_v56  ;;  %v15986_v56 = vld [vmem:[#allocation24_spill] sm:$0xff] }
 0x42d   : > { %v8157_v55 = vpop.permute.xlu1 %8156  ;;  %v3101_v30 = vsel %vm2986_vm13, %v3069_v61, %v8153_v54  ;;  %v3004_v18 = vsel %vm2986_vm13, %v2971_v26, %v8154_v57  ;;  %v3070_v50 = vsel %vm1655_vm11, %v15986_v56, %v8163_v19  ;;  %v15987_v61 = vld [vmem:[#allocation21_spill] sm:$0xff]  ;;  %v12035_v26 = vpop.permute.xlu0 %8231  ;;  %v15989_v19 = vld [vmem:[#allocation10_spill] sm:$0xff] }
 0x42e   : > { %v8159_v38 = vunpack.i.h.bf16 %v8157_v55  ;;  %v8158_v53 = vunpack.i.l.bf16 %v8157_v55  ;;  %7507 = vmatmul.mubr.msk.f32.gmra.mrb[46].mxu0 %vm1655_vm11, %v11098_v11  ;;  %v2972_v39 = vsel %vm1655_vm11, %v15987_v61, %v8164_v8 }
 0x42f   : > { %7509 = vmatprep.mubr.msk.f32.mxu0 %vm1655_vm11, %v15983_v35 }
 0x430   : > { %v3133_v9 = vsel %vm3019_vm14, %v3101_v30, %v8158_v53  ;;  %v3037_v17 = vsel %vm3019_vm14, %v3004_v18, %v8159_v38  ;;  %v15988_v30 = vld [vmem:[#allocation11_spill] sm:$0xff] }
 0x431   : > { %v8167_v52 = vpop.permute.xlu1 %8166  ;;  %3404 = vmatprep.mubr.f32.mxu1 %v3133_v9  ;;  %v8184_v9 = vunpack.i.h.bf16 %v11969_v27 }
 0x432   : > { %v8169_v11 = vunpack.i.h.bf16 %v8167_v52  ;;  %v8168_v0 = vunpack.i.l.bf16 %v8167_v52  ;;  %3405 = vmatmul.mubr.f32.gmra.mrb[22].mxu1 %v3037_v17  ;;  %7510 = vmatmul.mubr.msk.f32.gmra.mrb[48].mxu0 %vm1655_vm11, %v15984_v15  ;;  %v8183_v17 = vunpack.i.l.bf16 %v11969_v27 }
 0x433   : > { %7512 = vmatprep.mubr.msk.f32.mxu0 %vm1655_vm11, %v15985_v12  ;;  %v8193_v12 = vunpack.i.l.bf16 %v11973_v34 }
 0x434   : > { %v3102_v57 = vsel %vm2986_vm13, %v3070_v50, %v8168_v0  ;;  %v3005_v54 = vsel %vm2986_vm13, %v2972_v39, %v8169_v11  ;;  %v12051_v11 = vpop.permute.xlu0 %8241 }
 0x435   : > { %v8177_v55 = vpop.permute.xlu1 %8176  ;;  %v3134_v38 = vsel %vm3019_vm14, %v3102_v57, %v8173_v5  ;;  %v3038_v28 = vsel %vm3019_vm14, %v3005_v54, %v8174_v59  ;;  %v15990_v59 = vld [vmem:[#allocation16_spill] sm:$0xff]  ;;  %v8194_v5 = vunpack.i.h.bf16 %v11973_v34  ;;  %v8204_v34 = vunpack.i.h.bf16 %v11983_v51 }
 0x436   : > { %v8179_v53 = vunpack.i.h.bf16 %v8177_v55  ;;  %v8178_v35 = vunpack.i.l.bf16 %v8177_v55  ;;  %3409 = vmatprep.mubr.f32.mxu1 %v3134_v38  ;;  %7513 = vmatmul.mubr.msk.f32.gmra.mrb[50].mxu0 %vm1655_vm11, %v15988_v30  ;;  %v15992_v54 = vld [vmem:[#allocation20_spill] sm:$0xff]  ;;  %v8203_v55 = vunpack.i.l.bf16 %v11983_v51  ;;  %v15993_v38 = vld [vmem:[#allocation25_spill] sm:$0xff] }
 0x437   : > { %3410 = vmatmul.mubr.f32.gmra.mrb[24].mxu1 %v3038_v28  ;;  %7515 = vmatprep.mubr.msk.f32.mxu0 %vm1655_vm11, %v15989_v19  ;;  %v3072_v28 = vsel %vm1655_vm11, %v15993_v38, %v8193_v12 }
 0x438   : > { %v3071_v8 = vsel %vm1655_vm11, %v11394_v29, %v8178_v35  ;;  %v2973_v18 = vsel %vm1655_vm11, %v11315_v42, %v8179_v53  ;;  %v15991_v29 = vld [vmem:[#allocation17_spill] sm:$0xff]  ;;  %v2974_v53 = vsel %vm1655_vm11, %v11364_v13, %v8194_v5  ;;  %v12073_v35 = vpop.permute.xlu0 %8251 }
 0x439   : > { %v8187_v52 = vpop.permute.xlu1 %8186  ;;  %v3103_v42 = vsel %vm2986_vm13, %v3071_v8, %v8183_v17  ;;  %v3006_v56 = vsel %vm2986_vm13, %v2973_v18, %v8184_v9 }
 0x43a   : > { %v8189_v0 = vunpack.i.h.bf16 %v8187_v52  ;;  %v8188_v15 = vunpack.i.l.bf16 %v8187_v52  ;;  %7516 = vmatmul.mubr.msk.f32.gmra.mrb[52].mxu0 %vm1655_vm11, %v15990_v59  ;;  %v8213_v59 = vunpack.i.l.bf16 %v12001_v63 }
 0x43b   : > { %7518 = vmatprep.mubr.msk.f32.mxu0 %vm1655_vm11, %v15991_v29 }
 0x43c   : > { %v3135_v27 = vsel %vm3019_vm14, %v3103_v42, %v8188_v15  ;;  %v3039_v50 = vsel %vm3019_vm14, %v3006_v56, %v8189_v0  ;;  %v12083_v13 = vpop.permute.xlu0 %8261  ;;  %v8214_v15 = vunpack.i.h.bf16 %v12001_v63  ;;  %v8223_v42 = vunpack.i.l.bf16 %v12021_v14 }
 0x43d   : > { %v8197_v61 = vpop.permute.xlu1 %8196  ;;  %3414 = vmatprep.mubr.f32.mxu1 %v3135_v27 }
 0x43e   : > { %v8199_v39 = vunpack.i.h.bf16 %v8197_v61  ;;  %v8198_v57 = vunpack.i.l.bf16 %v8197_v61  ;;  %3415 = vmatmul.mubr.f32.gmra.mrb[26].mxu1 %v3039_v50  ;;  %7519 = vmatmul.mubr.msk.f32.gmra.mrb[54].mxu0 %vm1655_vm11, %v15992_v54 }
 0x43f   : > { %7521 = vmatprep.mubr.msk.f32.mxu0 %vm1655_vm11, %v11309_v20  ;;  %v15994_v20 = vld [vmem:[#allocation18_spill] sm:$0xff] }
 0x440   : > { %v3104_v30 = vsel %vm2986_vm13, %v3072_v28, %v8198_v57  ;;  %v3007_v19 = vsel %vm2986_vm13, %v2974_v53, %v8199_v39  ;;  %v12101_v50 = vpop.permute.xlu0 %8271  ;;  %v15995_v39 = vld [vmem:[#allocation23_spill] sm:$0xff] }
 0x441   : > { %v8207_v8 = vpop.permute.xlu1 %8206  ;;  %v3136_v18 = vsel %vm3019_vm14, %v3104_v30, %v8203_v55  ;;  %v3040_v51 = vsel %vm3019_vm14, %v3007_v19, %v8204_v34  ;;  %v3074_v57 = vsel %vm1655_vm11, %v15995_v39, %v8223_v42  ;;  %v8244_v19 = vunpack.i.h.bf16 %v12051_v11 }
 0x442   : > { %v8209_v9 = vunpack.i.h.bf16 %v8207_v8  ;;  %v8208_v17 = vunpack.i.l.bf16 %v8207_v8  ;;  %3419 = vmatprep.mubr.f32.mxu1 %v3136_v18  ;;  %7522 = vmatmul.mubr.msk.f32.gmra.mrb[56].mxu0 %vm1655_vm11, %v15994_v20  ;;  %v8243_v8 = vunpack.i.l.bf16 %v12051_v11 }
 0x443   : > { %3420 = vmatmul.mubr.f32.gmra.mrb[28].mxu1 %v3040_v51  ;;  %7524 = vmatprep.mubr.msk.f32.mxu0 %vm1655_vm11, %v11355_v25  ;;  %v8224_v25 = vunpack.i.h.bf16 %v12021_v14  ;;  %v8233_v14 = vunpack.i.l.bf16 %v12035_v26 }
 0x444   : > { %v3073_v52 = vsel %vm1655_vm11, %v11456_v48, %v8208_v17  ;;  %v2975_v0 = vsel %vm1655_vm11, %v11361_v32, %v8209_v9 }
 0x445   : > { %v8217_v5 = vpop.permute.xlu1 %8216  ;;  %v3105_v48 = vsel %vm2986_vm13, %v3073_v52, %v8213_v59  ;;  %v3008_v32 = vsel %vm2986_vm13, %v2975_v0, %v8214_v15  ;;  %v2976_v54 = vsel %vm1655_vm11, %v11420_v6, %v8224_v25  ;;  %v12121_v6 = vpop.permute.xlu0 %8281  ;;  %v15996_v15 = vld [vmem:[#allocation28_spill] sm:$0xff] }
 0x446   : > { %v8219_v12 = vunpack.i.h.bf16 %v8217_v5  ;;  %v8218_v29 = vunpack.i.l.bf16 %v8217_v5  ;;  %7525 = vmatmul.mubr.msk.f32.gmra.mrb[58].mxu0 %vm1655_vm11, %v11447_v2 }
 0x447   : > { %7527 = vmatprep.mubr.msk.f32.mxu0 %vm1655_vm11, %v11403_v37  ;;  %v8234_v37 = vunpack.i.h.bf16 %v12035_v26 }
 0x448   : > { %v3137_v56 = vsel %vm3019_vm14, %v3105_v48, %v8218_v29  ;;  %v3041_v63 = vsel %vm3019_vm14, %v3008_v32, %v8219_v12 }
 0x449   : > { %v8227_v27 = vpop.permute.xlu1 %8226  ;;  %3424 = vmatprep.mubr.f32.mxu1 %v3137_v56  ;;  %v8292_v17 = vpop.permute.xlu0 %8291  ;;  %v8274_v56 = vunpack.i.h.bf16 %v12101_v50 }
 0x44a   : > { %v8229_v2 = vunpack.i.h.bf16 %v8227_v27  ;;  %v8228_v61 = vunpack.i.l.bf16 %v8227_v27  ;;  %3425 = vmatmul.mubr.f32.gmra.mrb[30].mxu1 %v3041_v63  ;;  %7528 = vmatmul.mubr.msk.f32.gmra.mrb[60].mxu0 %vm1655_vm11, %v11505_v47  ;;  %v8273_v63 = vunpack.i.l.bf16 %v12101_v50 }
 0x44b   : > { %7530 = vmatprep.mubr.msk.f32.mxu0 %vm1655_vm11, %v11465_v24 }
 0x44c   : > { %v3106_v34 = vsel %vm2986_vm13, %v3074_v57, %v8228_v61  ;;  %v3009_v55 = vsel %vm2986_vm13, %v2976_v54, %v8229_v2 }
 0x44d   : > { %v8237_v38 = vpop.permute.xlu1 %8236  ;;  %v3138_v47 = vsel %vm3019_vm14, %v3106_v34, %v8233_v14  ;;  %v3042_v28 = vsel %vm3019_vm14, %v3009_v55, %v8234_v37  ;;  %v8302_v48 = vpop.permute.xlu0 %8301  ;;  %v15997_v37 = vld [vmem:[#allocation30_spill] sm:$0xff]  ;;  %v8294_v34 = vunpack.i.h.bf16 %v8292_v17  ;;  %v8293_v55 = vunpack.i.l.bf16 %v8292_v17 }
 0x44e   : > { %v8239_v53 = vunpack.i.h.bf16 %v8237_v38  ;;  %v8238_v26 = vunpack.i.l.bf16 %v8237_v38  ;;  %3429 = vmatprep.mubr.f32.mxu1 %v3138_v47  ;;  %7531 = vmatmul.mubr.msk.f32.gmra.mrb[62].mxu0 %vm1655_vm11, %v11562_v44  ;;  %v8253_v44 = vunpack.i.l.bf16 %v12073_v35  ;;  %v15998_v38 = vld [vmem:[#allocation57_spill] sm:$0xff] }
 0x44f   : > { %3430 = vmatmul.mubr.f32.gmra.mrb[32].mxu1 %v3042_v28  ;;  %7533 = vmatprep.mubr.msk.f32.mxu0 %vm1655_vm11, %v11514_v7  ;;  %v8254_v7 = vunpack.i.h.bf16 %v12073_v35  ;;  %v8264_v35 = vunpack.i.h.bf16 %v12083_v13 }
 0x450   : > { %v3075_v24 = vsel %vm1655_vm11, %v11493_v16, %v8238_v26  ;;  %v2977_v30 = vsel %vm1655_vm11, %v11417_v10, %v8239_v53  ;;  %v3076_v59 = vsel %vm1655_vm11, %v15996_v15, %v8253_v44 }
 0x451   : > { %v8247_v18 = vpop.permute.xlu1 %8246  ;;  %v3107_v16 = vsel %vm2986_vm13, %v3075_v24, %v8243_v8  ;;  %v3010_v10 = vsel %vm2986_vm13, %v2977_v30, %v8244_v19  ;;  %v2978_v5 = vsel %vm1655_vm11, %v11477_v22, %v8254_v7  ;;  %v8312_v14 = vpop.permute.xlu0 %8311 }
 0x452   : > { %v8249_v51 = vunpack.i.h.bf16 %v8247_v18  ;;  %v8248_v9 = vunpack.i.l.bf16 %v8247_v18  ;;  %7534 = vmatmul.mubr.msk.f32.gmra.mrb[64].mxu0 %vm1655_vm11, %v11619_v40  ;;  %v8313_v17 = vunpack.i.l.bf16 %v8312_v14 }
 0x453   : > { %7536 = vmatprep.mubr.msk.f32.mxu0 %vm1655_vm11, %v15969_v23  ;;  %v8263_v23 = vunpack.i.l.bf16 %v12083_v13 }
 0x454   : > { %v3139_v11 = vsel %vm3019_vm14, %v3107_v16, %v8248_v9  ;;  %v3043_v20 = vsel %vm3019_vm14, %v3010_v10, %v8249_v51  ;;  %v8304_v51 = vunpack.i.h.bf16 %v8302_v48  ;;  %v8303_v9 = vunpack.i.l.bf16 %v8302_v48 }
 0x455   : > { %v8257_v52 = vpop.permute.xlu1 %8256  ;;  %3434 = vmatprep.mubr.f32.mxu1 %v3139_v11  ;;  %v8322_v30 = vpop.permute.xlu0 %8321  ;;  %v8314_v10 = vunpack.i.h.bf16 %v8312_v14 }
 0x456   : > { %v8259_v0 = vunpack.i.h.bf16 %v8257_v52  ;;  %v8258_v40 = vunpack.i.l.bf16 %v8257_v52  ;;  %3435 = vmatmul.mubr.f32.gmra.mrb[34].mxu1 %v3043_v20  ;;  %7537 = vmatmul.mubr.msk.f32.gmra.mrb[66].mxu0 %vm1655_vm11, %v11670_v62  ;;  %v8323_v15 = vunpack.i.l.bf16 %v8322_v30 }
 0x457   : > { %7539 = vmatprep.mubr.msk.f32.mxu0 %vm1655_vm11, %v15975_v58 }
 0x458   : > { %v3108_v12 = vsel %vm2986_vm13, %v3076_v59, %v8258_v40  ;;  %v3011_v29 = vsel %vm2986_vm13, %v2978_v5, %v8259_v0  ;;  %v16000_v59 = vld [vmem:[#allocation33_spill] sm:$0xff] }
 0x459   : > { %v8267_v25 = vpop.permute.xlu1 %8266  ;;  %v3140_v62 = vsel %vm3019_vm14, %v3108_v12, %v8263_v23  ;;  %v3044_v42 = vsel %vm3019_vm14, %v3011_v29, %v8264_v35  ;;  %v8332_v52 = vpop.permute.xlu0 %8331  ;;  %v8324_v23 = vunpack.i.h.bf16 %v8322_v30  ;;  %v3080_v5 = vsel %vm1655_vm11, %v16000_v59, %v8313_v17  ;;  %v16001_v12 = vld [vmem:[#allocation27_spill] sm:$0xff] }
 0x45a   : > { %v8269_v13 = vunpack.i.h.bf16 %v8267_v25  ;;  %v8268_v32 = vunpack.i.l.bf16 %v8267_v25  ;;  %3439 = vmatprep.mubr.f32.mxu1 %v3140_v62  ;;  %7540 = vmatmul.mubr.msk.f32.gmra.mrb[68].mxu0 %vm1655_vm11, %v11715_v49  ;;  %v8284_v49 = vunpack.i.h.bf16 %v12121_v6  ;;  %v2982_v29 = vsel %vm1655_vm11, %v16001_v12, %v8314_v10 }
 0x45b   : > { %3440 = vmatmul.mubr.f32.gmra.mrb[36].mxu1 %v3044_v42  ;;  %7542 = vmatprep.mubr.msk.f32.mxu0 %vm1655_vm11, %v15978_v33  ;;  %v8283_v33 = vunpack.i.l.bf16 %v12121_v6 }
 0x45c   : > { %v3077_v22 = vsel %vm1655_vm11, %v11550_v43, %v8268_v32  ;;  %v2979_v58 = vsel %vm1655_vm11, %v11474_v45, %v8269_v13  ;;  %v2980_v28 = vsel %vm1655_vm11, %v11534_v4, %v8284_v49 }
 0x45d   : > { %v8277_v27 = vpop.permute.xlu1 %8276  ;;  %v3109_v43 = vsel %vm2986_vm13, %v3077_v22, %v8273_v63  ;;  %v3012_v45 = vsel %vm2986_vm13, %v2979_v58, %v8274_v56  ;;  %v3078_v47 = vsel %vm1655_vm11, %v15998_v38, %v8283_v33  ;;  %v8342_v32 = vpop.permute.xlu0 %8341  ;;  %v16002_v63 = vld [vmem:[#allocation48_spill] sm:$0xff] }
 0x45e   : > { %v8279_v2 = vunpack.i.h.bf16 %v8277_v27  ;;  %v8278_v61 = vunpack.i.l.bf16 %v8277_v27  ;;  %7543 = vmatmul.mubr.msk.f32.gmra.mrb[70].mxu0 %vm1655_vm11, %v11748_v36 }
 0x45f   : > { %7545 = vmatprep.mubr.msk.f32.mxu0 %vm1655_vm11, %v15997_v37 }
 0x460   : > { %v3141_v50 = vsel %vm3019_vm14, %v3109_v43, %v8278_v61  ;;  %v3045_v39 = vsel %vm3019_vm14, %v3012_v45, %v8279_v2  ;;  %v8334_v2 = vunpack.i.h.bf16 %v8332_v52  ;;  %v8333_v61 = vunpack.i.l.bf16 %v8332_v52 }
 0x461   : > { %v8287_v57 = vpop.permute.xlu1 %8286  ;;  %3444 = vmatprep.mubr.f32.mxu1 %v3141_v50  ;;  %v8344_v43 = vunpack.i.h.bf16 %v8342_v32  ;;  %v8343_v45 = vunpack.i.l.bf16 %v8342_v32 }
 0x462   : > { %v8289_v54 = vunpack.i.h.bf16 %v8287_v57  ;;  %v8288_v36 = vunpack.i.l.bf16 %v8287_v57  ;;  %3445 = vmatmul.mubr.f32.gmra.mrb[38].mxu1 %v3045_v39  ;;  %7546 = vmatmul.mubr.msk.f32.gmra.mrb[72].mxu0 %vm1655_vm11, %v11751_v41  ;;  %v8352_v39 = vpop.permute.xlu0 %8351 }
 0x463   : > { %7548 = vmatprep.mubr.msk.f32.mxu0 %vm1655_vm11, %v11697_v3  ;;  %v15999_v3 = vld [vmem:[#allocation60_spill] sm:$0xff]  ;;  %v8353_v38 = vunpack.i.l.bf16 %v8352_v39 }
 0x464   : > { %v3110_v53 = vsel %vm2986_vm13, %v3078_v47, %v8288_v36  ;;  %v3013_v26 = vsel %vm2986_vm13, %v2980_v28, %v8289_v54  ;;  %v16003_v47 = vld [vmem:[#allocation59_spill] sm:$0xff] }
 0x465   : > { %v8297_v6 = vpop.permute.xlu1 %8296  ;;  %v3142_v24 = vsel %vm3019_vm14, %v3110_v53, %v8293_v55  ;;  %v3046_v41 = vsel %vm3019_vm14, %v3013_v26, %v8294_v34  ;;  %v8354_v55 = vunpack.i.h.bf16 %v8352_v39  ;;  %v3082_v28 = vsel %vm1655_vm11, %v16003_v47, %v8343_v45  ;;  %v16004_v53 = vld [vmem:[#allocation58_spill] sm:$0xff] }
 0x466   : > { %v8299_v19 = vunpack.i.h.bf16 %v8297_v6  ;;  %v8298_v8 = vunpack.i.l.bf16 %v8297_v6  ;;  %3449 = vmatprep.mubr.f32.mxu1 %v3142_v24  ;;  %7549 = vmatmul.mubr.msk.f32.gmra.mrb[74].mxu0 %vm1655_vm11, %v15999_v3  ;;  %v2984_v26 = vsel %vm1655_vm11, %v16004_v53, %v8344_v43 }
 0x467   : > { %3450 = vmatmul.mubr.f32.gmra.mrb[40].mxu1 %v3046_v41 }
 0x468   : > { %v3079_v4 = vsel %vm1655_vm11, %v11607_v21, %v8298_v8  ;;  %v2981_v18 = vsel %vm1655_vm11, %v15966_v60, %v8299_v19  ;;  %v8362_v8 = vpop.permute.xlu0 %8361 }
 0x469   : > { %v8307_v7 = vpop.permute.xlu1 %8306  ;;  %v3111_v11 = vsel %vm2986_vm13, %v3079_v4, %v8303_v9  ;;  %v3014_v20 = vsel %vm2986_vm13, %v2981_v18, %v8304_v51  ;;  %v16005_v18 = vld [vmem:[#allocation36_spill] sm:$0xff] }
 0x46a   : > { %v8309_v44 = vunpack.i.h.bf16 %v8307_v7  ;;  %v8308_v16 = vunpack.i.l.bf16 %v8307_v7  ;;  %v16006_v9 = vld [vmem:[#allocation32_spill] sm:$0xff] }
 0x46c   : > { %v3143_v0 = vsel %vm3019_vm14, %v3111_v11, %v8308_v16  ;;  %v3047_v40 = vsel %vm3019_vm14, %v3014_v20, %v8309_v44  ;;  %v8364_v44 = vunpack.i.h.bf16 %v8362_v8  ;;  %v8363_v16 = vunpack.i.l.bf16 %v8362_v8 }
 0x46d   : > { %v8317_v21 = vpop.permute.xlu1 %8316  ;;  %3454 = vmatprep.mubr.f32.mxu1 %v3143_v0 }
 0x46e   : > { %v8319_v35 = vunpack.i.h.bf16 %v8317_v21  ;;  %v8318_v60 = vunpack.i.l.bf16 %v8317_v21  ;;  %3455 = vmatmul.mubr.f32.gmra.mrb[42].mxu1 %v3047_v40  ;;  %v4857_v21 = vld [vmem:[%s15436_s5 + $0x100] sm:$0xff] }
 0x470   : > { %v3112_v25 = vsel %vm2986_vm13, %v3080_v5, %v8318_v60  ;;  %v3015_v62 = vsel %vm2986_vm13, %v2982_v29, %v8319_v35  ;;  %v4858_v35 = vld [vmem:[%s15436_s5 + $0x108] sm:$0xff]  ;;  %v16007_v5 = vmov 0.0|0.0  }
 0x471   : > { %v8327_v42 = vpop.permute.xlu1 %8326  ;;  %v3144_v48 = vsel %vm3019_vm14, %v3112_v25, %v8323_v15  ;;  %v3048_v13 = vsel %vm3019_vm14, %v3015_v62, %v8324_v23  ;;  %v7775_v60 = vpack.c.bf16 %v4858_v35, %v4857_v21  ;;  %v4859_v23 = vld [vmem:[%s15436_s5 + $0x110] sm:$0xff]  ;;  %v4860_v15 = vld [vmem:[%s15436_s5 + $0x118] sm:$0xff] }
 0x472   : > { %v8329_v22 = vunpack.i.h.bf16 %v8327_v42  ;;  %v8328_v58 = vunpack.i.l.bf16 %v8327_v42  ;;  %3459 = vmatprep.mubr.f32.mxu1 %v3144_v48  ;;  %v7779_v59 = vpack.c.bf16 %v4860_v15, %v4859_v23 }
 0x473   : > { %3460 = vmatmul.mubr.f32.gmra.mrb[44].mxu1 %v3048_v13  ;;  %7776 = vmatprep.subr.bf16.mxu1 %v7775_v60 }
 0x474   : > { %v3081_v56 = vsel %vm1655_vm11, %v15972_v46, %v8328_v58  ;;  %v2983_v27 = vsel %vm1655_vm11, %v16002_v63, %v8329_v22  ;;  %7778 = vmatpush3.bf16.msra.mxu1 %v7775_v60 }
 0x475   : > { %v8337_v49 = vpop.permute.xlu1 %8336  ;;  %v3113_v14 = vsel %vm2986_vm13, %v3081_v56, %v8333_v61  ;;  %v3016_v50 = vsel %vm2986_vm13, %v2983_v27, %v8334_v2  ;;  %7780 = vmatprep.subr.bf16.mxu1 %v7779_v59  ;;  %v12243_v27 = vld [vmem:[%s15435_s4] ss:$0 sm:$0xff] }
 0x476   : > { %v8339_v33 = vunpack.i.h.bf16 %v8337_v49  ;;  %v8338_v37 = vunpack.i.l.bf16 %v8337_v49 }
 0x478   : > { %v3145_v57 = vsel %vm3019_vm14, %v3113_v14, %v8338_v37  ;;  %v3049_v54 = vsel %vm3019_vm14, %v3016_v50, %v8339_v33  ;;  %7782 = vmatpush3.bf16.msra.mxu1 %v7779_v59 }
 0x479   : > { %v8347_v46 = vpop.permute.xlu1 %8346  ;;  %3464 = vmatprep.mubr.f32.mxu1 %v3145_v57  ;;  %7783 = vmatprep.subr.bf16.mxu1 %v16007_v5 }
 0x47a   : > { %v8349_v36 = vunpack.i.h.bf16 %v8347_v46  ;;  %v8348_v34 = vunpack.i.l.bf16 %v8347_v46  ;;  %3465 = vmatmul.mubr.f32.gmra.mrb[46].mxu1 %v3049_v54 }
 0x47c   : > { %v3114_v6 = vsel %vm2986_vm13, %v3082_v28, %v8348_v34  ;;  %v3017_v24 = vsel %vm2986_vm13, %v2984_v26, %v8349_v36 }
 0x47d   : > { %v8357_v41 = vpop.permute.xlu1 %8356  ;;  %v3146_v30 = vsel %vm3019_vm14, %v3114_v6, %v8353_v38  ;;  %v3050_v19 = vsel %vm3019_vm14, %v3017_v24, %v8354_v55 }
 0x47e   : > { %v8359_v3 = vunpack.i.h.bf16 %v8357_v41  ;;  %v8358_v4 = vunpack.i.l.bf16 %v8357_v41  ;;  %3469 = vmatprep.mubr.f32.mxu1 %v3146_v30 }
 0x47f   : > { %3470 = vmatmul.mubr.f32.gmra.mrb[48].mxu1 %v3050_v19 }
 0x480   : > { %v3083_v51 = vsel %vm1655_vm11, %v16005_v18, %v8358_v4  ;;  %v2985_v7 = vsel %vm1655_vm11, %v16006_v9, %v8359_v3  ;;  %v16010_v9 = vld [vmem:[#allocation8_spill] sm:$0xff] }
 0x481   : > { %v8367_v10 = vpop.permute.xlu1 %8366  ;;  %v3115_v20 = vsel %vm2986_vm13, %v3083_v51, %v8363_v16  ;;  %v3018_v52 = vsel %vm2986_vm13, %v2985_v7, %v8364_v44  ;;  %v3352_v7 = vadd.f32 %v12243_v27, %v16010_v9  ;;  %v16011_v44 = vld [vmem:[#allocation79_spill] sm:$0xff] }
 0x482   : > { %v8369_v17 = vunpack.i.h.bf16 %v8367_v10  ;;  %v8368_v11 = vunpack.i.l.bf16 %v8367_v10  ;;  %v3357_v16 = vadd.f32 %v12243_v27, %v16011_v44  ;;  %v16012_v10 = vld [vmem:[#allocation51_spill] sm:$0xff] }
 0x484   : > { %v3147_v0 = vsel %vm3019_vm14, %v3115_v20, %v8368_v11  ;;  %v3051_v40 = vsel %vm3019_vm14, %v3018_v52, %v8369_v17  ;;  %v3367_v17 = vadd.f32 %v12243_v27, %v16012_v10 }
 0x485   : > { %3474 = vmatprep.mubr.f32.mxu1 %v3147_v0 }
 0x486   : > { %3475 = vmatmul.mubr.f32.gmra.mrb[50].mxu1 %v3051_v40 }
 0x4bd   : > { %v3321_v12 = vpop.f32.mrb[32].mxu0 }
 0x4be   : > { %v3323_v29 = vpop.f32.mrb[33].mxu0  ;;  %v3322_v61 = vadd.f32 %v12243_v27, %v3321_v12 }
 0x4c9   : > { %v3326_v25 = vpop.f32.mrb[34].mxu0 }
 0x4ca   : > { %v3328_v62 = vpop.f32.mrb[35].mxu0  ;;  %v3327_v2 = vadd.f32 %v12243_v27, %v3326_v25 }
 0x4d5   : > { %v3331_v42 = vpop.f32.mrb[36].mxu0 }
 0x4d6   : > { %v3333_v48 = vpop.f32.mrb[37].mxu0  ;;  %v3332_v57 = vadd.f32 %v12243_v27, %v3331_v42 }
 0x4e1   : > { %v3336_v13 = vpop.f32.mrb[38].mxu0 }
 0x4e2   : > { %v3338_v32 = vpop.f32.mrb[39].mxu0  ;;  %v3337_v50 = vadd.f32 %v12243_v27, %v3336_v13 }
 0x4ed   : > { %v3341_v22 = vpop.f32.mrb[40].mxu0 }
 0x4ee   : > { %v3343_v58 = vpop.f32.mrb[41].mxu0  ;;  %v3342_v19 = vadd.f32 %v12243_v27, %v3341_v22 }
 0x4f9   : > { %v3346_v56 = vpop.f32.mrb[42].mxu0 }
 0x4fa   : > { %v3348_v63 = vpop.f32.mrb[43].mxu0  ;;  %v3347_v53 = vadd.f32 %v12243_v27, %v3346_v56  ;;  %v16014_v56 = vld [vmem:[#allocation37_spill] sm:$0xff] }
 0x4fb   : > { %v3362_v63 = vadd.f32 %v12243_v27, %v16014_v56 }
 0x4fd   : > { %v7505_v49 = vpop.f32.mrb[44].mxu0 }
 0x4fe   : > { %v3552_v33 = vadd.f32 %v7505_v49, %v3327_v2  ;;  %v12247_v37 = vpop.f32.mrb[20].mxu1  ;;  %v3546_v43 = vpop.f32.mrb[45].mxu0 }
 0x4ff   : > { %v3547_v45 = vadd.f32 %v3546_v43, %v3322_v61  ;;  %v3403_v14 = vpop.f32.mrb[21].mxu1 }
 0x500   : > { %v3706_v39 = vmax.f32 %v3552_v33, 0.0 }
 0x501   : > { %v3705_v54 = vmax.f32 %v3547_v45, 0.0  ;;  %v7508_v46 = vpop.f32.mrb[46].mxu0 }
 0x502   : > { %v3754_v36 = vrot.slane %v3706_v39, 7  ;;  %v3562_v34 = vadd.f32 %v7508_v46, %v3337_v50  ;;  %v3556_v55 = vpop.f32.mrb[47].mxu0 }
 0x503   : > { %v3803_v38 = vrot.slane %v3705_v54, 7  ;;  %v3557_v47 = vadd.f32 %v3556_v55, %v3332_v57  ;;  %v16018_v57 = vld [vmem:[#allocation35_spill] sm:$0xff] }
 0x504   : > { %v3708_v28 = vmax.f32 %v3562_v34, 0.0  ;;  %v3377_v54 = vadd.f32 %v12243_v27, %v16018_v57 }
 0x505   : > { %v12253_v26 = vsel %vm429_vm0, %v3803_v38, %v3754_v36  ;;  %v12256_v6 = vsel %vm429_vm0, %v3754_v36, %v3803_v38  ;;  %v3707_v24 = vmax.f32 %v3557_v47, 0.0  ;;  %v12258_v41 = vpop.f32.mrb[22].mxu1  ;;  %v7511_v30 = vpop.f32.mrb[48].mxu0 }
 0x506   : > { %16008 = vst [vmem:[#allocation80_spill] sm:$0xff] %v12253_v26  ;;  %16009 = vst [vmem:[#allocation34_spill] sm:$0xff] %v12256_v6  ;;  %v3408_v8 = vpop.f32.mrb[23].mxu1  ;;  %v3566_v3 = vpop.f32.mrb[49].mxu0  ;;  %v3755_v4 = vrot.slane %v3708_v28, 7  ;;  %v3572_v51 = vadd.f32 %v7511_v30, %v3347_v53  ;;  %v3901_v20 = vrot.slane %v12256_v6, 1 }
 0x507   : > { %v3805_v18 = vrot.slane %v3707_v24, 7  ;;  %v3567_v11 = vadd.f32 %v3566_v3, %v3342_v19  ;;  %v3902_v29 = vrot.slane %v12253_v26, 1 }
 0x508   : > { %v3710_v40 = vmax.f32 %v3572_v51, 0.0 }
 0x509   : > { %v12269_v52 = vsel %vm429_vm0, %v3805_v18, %v3755_v4  ;;  %v12272_v0 = vsel %vm429_vm0, %v3755_v4, %v3805_v18  ;;  %v7514_v21 = vpop.f32.mrb[50].mxu0  ;;  %v3709_v23 = vmax.f32 %v3567_v11, 0.0  ;;  %v12300_v36 = vsel %vm526_vm1, %v3901_v20, %v3902_v29  ;;  %v16022_v4 = vld [vmem:[#allocation52_spill] sm:$0xff] }
 0x50a   : > { %v3905_v35 = vrot.slane %v12272_v0, 1  ;;  %v3906_v60 = vrot.slane %v12269_v52, 1  ;;  %v3582_v15 = vadd.f32 %v7514_v21, %v3357_v16  ;;  %v12276_v59 = vpop.f32.mrb[24].mxu1  ;;  %v3576_v12 = vpop.f32.mrb[51].mxu0  ;;  %v3756_v25 = vrot.slane %v3710_v40, 7  ;;  %16019 = vst [vmem:[#allocation53_spill] sm:$0xff] %v12300_v36 }
 0x50b   : > { %v3577_v62 = vadd.f32 %v3576_v12, %v3352_v7  ;;  %v3413_v42 = vpop.f32.mrb[25].mxu1  ;;  %v3969_v48 = vrot.slane %v12272_v0, 2  ;;  %v3807_v13 = vrot.slane %v3709_v23, 7  ;;  %v3970_v22 = vrot.slane %v12269_v52, 2 }
 0x50c   : > { %v3712_v32 = vmax.f32 %v3582_v15, 0.0  ;;  %v12282_v58 = vsel %vm526_vm1, %v3905_v35, %v3906_v60  ;;  %v12289_v33 = vsel %vm526_vm1, %v3906_v60, %v3905_v35  ;;  %v3372_v18 = vadd.f32 %v12243_v27, %v16022_v4 }
 0x50d   : > { %16013 = vst [vmem:[#allocation40_spill] sm:$0xff] %v12282_v58  ;;  %v3711_v2 = vmax.f32 %v3577_v62, 0.0  ;;  %v7517_v61 = vpop.f32.mrb[52].mxu0  ;;  %v8370_v49 = vpack.i.bf16 %v12256_v6, %v12282_v58  ;;  %16015 = vst [vmem:[#allocation62_spill] sm:$0xff] %v12289_v33  ;;  %v12292_v43 = vsel %vm429_vm0, %v3807_v13, %v3756_v25  ;;  %v12295_v45 = vsel %vm429_vm0, %v3756_v25, %v3807_v13 }
 0x50e   : > { %16016 = vst [vmem:[#allocation81_spill] sm:$0xff] %v12292_v43  ;;  %16017 = vst [vmem:[#allocation41_spill] sm:$0xff] %v12295_v45  ;;  %v3757_v14 = vrot.slane %v3712_v32, 7  ;;  %v3592_v50 = vadd.f32 %v7517_v61, %v3367_v17  ;;  %v3586_v39 = vpop.f32.mrb[53].mxu0  ;;  %v12303_v34 = vsel %vm591_vm2, %v3969_v48, %v3970_v22  ;;  %v12311_v28 = vsel %vm591_vm2, %v3970_v22, %v3969_v48 }
 0x50f   : > { %v3809_v46 = vrot.slane %v3711_v2, 7  ;;  %8371 = vrot.lane.b32.xlu0 %v8370_v49, %s9349_s13  ;;  %v8380_v38 = vpack.i.bf16 %v12300_v36, %v12303_v34  ;;  %7559 = vmatprep.mubr.msk.f32.mxu1 %vm1655_vm11, %v12303_v34  ;;  %v3587_v47 = vadd.f32 %v3586_v39, %v3362_v63  ;;  %v8375_v30 = vpack.i.bf16 %v12253_v26, %v12289_v33  ;;  %v16026_v2 = vld [vmem:[#allocation61_spill] sm:$0xff] }
 0x510   : > { %v3714_v55 = vmax.f32 %v3592_v50, 0.0  ;;  %7560 = vmatmul.mubr.msk.f32.vlgmr.msra.gmra.mrb[52].mxu1 %vm1655_vm11, %v12311_v28  ;;  %v3973_v3 = vrot.slane %v12295_v45, 2  ;;  %v12329_v7 = vsel %vm526_vm1, %v3902_v29, %v3901_v20  ;;  %v3974_v17 = vrot.slane %v12292_v43, 2 }
 0x511   : > { %v12314_v53 = vsel %vm429_vm0, %v3809_v46, %v3757_v14  ;;  %v12317_v24 = vsel %vm429_vm0, %v3757_v14, %v3809_v46  ;;  %v12323_v19 = vpop.f32.mrb[26].mxu1  ;;  %v7520_v8 = vpop.f32.mrb[54].mxu0  ;;  %16023 = vst [vmem:[#allocation63_spill] sm:$0xff] %v12329_v7  ;;  %v3713_v16 = vmax.f32 %v3587_v47, 0.0  ;;  %8376 = vrot.lane.b32.xlu1 %v8375_v30, %s9349_s13  ;;  %v3387_v11 = vadd.f32 %v12243_v27, %v11954_v1 }
 0x512   : > { %16020 = vst [vmem:[#allocation54_spill] sm:$0xff] %v12314_v53  ;;  %16021 = vst [vmem:[#allocation39_spill] sm:$0xff] %v12317_v24  ;;  %v3418_v51 = vpop.f32.mrb[27].mxu1  ;;  %v3596_v9 = vpop.f32.mrb[55].mxu0  ;;  %v3758_v44 = vrot.slane %v3714_v55, 7  ;;  %v3602_v10 = vadd.f32 %v7520_v8, %v3377_v54  ;;  %v8385_v21 = vpack.i.bf16 %v12329_v7, %v12311_v28  ;;  %v3977_v35 = vrot.slane %v12317_v24, 2 }
 0x513   : > { %8381 = vrot.lane.b32.xlu0 %v8380_v38, %s9346_s14  ;;  %v3597_v40 = vadd.f32 %v3596_v9, %v3372_v18  ;;  %v3811_v20 = vrot.slane %v3713_v16, 7  ;;  %v12340_v23 = vsel %vm591_vm2, %v3973_v3, %v3974_v17  ;;  %v12343_v15 = vsel %vm591_vm2, %v3974_v17, %v3973_v3  ;;  %v16029_v16 = vld [vmem:[#allocation9_spill] sm:$0xff] }
 0x514   : > { %v3716_v60 = vmax.f32 %v3602_v10, 0.0  ;;  %v3965_v29 = vrot.slane %v12256_v6, 2  ;;  %v3966_v25 = vrot.slane %v12253_v26, 2  ;;  %7562 = vmatprep.mubr.msk.f32.mxu1 %vm1655_vm11, %v12340_v23  ;;  %v3978_v56 = vrot.slane %v12314_v53, 2 }
 0x515   : > { %v7523_v12 = vpop.f32.mrb[56].mxu0  ;;  %v3715_v1 = vmax.f32 %v3597_v40, 0.0  ;;  %v12352_v13 = vsel %vm429_vm0, %v3811_v20, %v3758_v44  ;;  %v12355_v32 = vsel %vm429_vm0, %v3758_v44, %v3811_v20  ;;  %7563 = vmatmul.mubr.msk.f32.gmra.mrb[54].mxu1 %vm1655_vm11, %v12343_v15  ;;  %8386 = vrot.lane.b32.xlu1 %v8385_v21, %s9346_s14  ;;  %v3382_v61 = vadd.f32 %v12243_v27, %v16026_v2 }
 0x516   : > { %v3612_v62 = vadd.f32 %v7523_v12, %v3387_v11  ;;  %v12349_v42 = vpop.f32.mrb[28].mxu1  ;;  %v3606_v48 = vpop.f32.mrb[57].mxu0  ;;  %16024 = vst [vmem:[#allocation82_spill] sm:$0xff] %v12352_v13  ;;  %16025 = vst [vmem:[#allocation38_spill] sm:$0xff] %v12355_v32  ;;  %v3759_v22 = vrot.slane %v3716_v60, 7  ;;  %v3909_v49 = vrot.slane %v12295_v45, 1  ;;  %v12366_v57 = vsel %vm591_vm2, %v3977_v35, %v3978_v56 }
 0x517   : > { %v3423_v63 = vpop.f32.mrb[29].mxu1  ;;  %v3910_v14 = vrot.slane %v12292_v43, 1  ;;  %v3813_v50 = vrot.slane %v3715_v1, 7  ;;  %7565 = vmatprep.mubr.msk.f32.mxu1 %vm1655_vm11, %v12366_v57  ;;  %v3607_v38 = vadd.f32 %v3606_v48, %v3382_v61  ;;  %v3397_v30 = vadd.f32 %v12243_v27, %v11987_v31 }
 0x518   : > { %v3718_v39 = vmax.f32 %v3612_v62, 0.0  ;;  %v12379_v3 = vsel %vm591_vm2, %v3965_v29, %v3966_v25  ;;  %v12382_v4 = vsel %vm591_vm2, %v3966_v25, %v3965_v29  ;;  %v12388_v9 = vsel %vm591_vm2, %v3978_v56, %v3977_v35 }
 0x519   : > { %v7526_v54 = vpop.f32.mrb[58].mxu0  ;;  %v12369_v46 = vsel %vm429_vm0, %v3813_v50, %v3759_v22  ;;  %v12372_v55 = vsel %vm429_vm0, %v3759_v22, %v3813_v50  ;;  %v3717_v18 = vmax.f32 %v3607_v38, 0.0  ;;  %v12385_v51 = vsel %vm526_vm1, %v3910_v14, %v3909_v49  ;;  %7566 = vmatmul.mubr.msk.f32.gmra.mrb[56].mxu1 %vm1655_vm11, %v12388_v9 }
 0x51a   : > { %16027 = vst [vmem:[#allocation42_spill] sm:$0xff] %v12372_v55  ;;  %v3616_v47 = vpop.f32.mrb[59].mxu0  ;;  %v3760_v8 = vrot.slane %v3718_v39, 7  ;;  %16028 = vst [vmem:[#allocation64_spill] sm:$0xff] %v12385_v51  ;;  %v8390_v44 = vpack.i.bf16 %v12379_v3, %v12295_v45  ;;  %v3392_v31 = vadd.f32 %v12243_v27, %v16029_v16  ;;  %v8395_v10 = vpack.i.bf16 %v12382_v4, %v12292_v43 }
 0x51b   : > { %v3622_v17 = vadd.f32 %v7526_v54, %v3397_v30  ;;  %v3815_v21 = vrot.slane %v3717_v18, 7  ;;  %v3981_v35 = vrot.slane %v12355_v32, 2  ;;  %v3982_v20 = vrot.slane %v12352_v13, 2 }
 0x51c   : > { %8391 = vrot.lane.b32.xlu1 %v8390_v44, %s9348_s12  ;;  %v12404_v29 = vsel %vm526_vm1, %v3909_v49, %v3910_v14  ;;  %8396 = vrot.lane.b32.xlu0 %v8395_v10, %s9348_s12  ;;  %v3617_v1 = vadd.f32 %v3616_v47, %v3392_v31  ;;  %v8405_v62 = vpack.i.bf16 %v12269_v52, %v12385_v51  ;;  %v3985_v30 = vrot.slane %v12372_v55, 2 }
 0x51d   : > { %v12398_v11 = vpop.f32.mrb[30].mxu1  ;;  %v7529_v40 = vpop.f32.mrb[60].mxu0  ;;  %16030 = vst [vmem:[#allocation83_spill] sm:$0xff] %v12404_v29  ;;  %v3720_v25 = vmax.f32 %v3622_v17, 0.0  ;;  %v12410_v48 = vsel %vm429_vm0, %v3815_v21, %v3760_v8  ;;  %v12413_v22 = vsel %vm429_vm0, %v3760_v8, %v3815_v21  ;;  %v12416_v56 = vsel %vm591_vm2, %v3981_v35, %v3982_v20 }
 0x51e   : > { %v3428_v60 = vpop.f32.mrb[31].mxu1  ;;  %v3626_v12 = vpop.f32.mrb[61].mxu0  ;;  %16031 = vst [vmem:[#allocation43_spill] sm:$0xff] %v12410_v48  ;;  %16032 = vst [vmem:[#allocation55_spill] sm:$0xff] %v12413_v22  ;;  %v12419_v63 = vsel %vm591_vm2, %v3982_v20, %v3981_v35  ;;  %v3407_v2 = vadd.f32 %v12243_v27, %v12258_v41  ;;  %7568 = vmatprep.mubr.msk.f32.mxu1 %vm1655_vm11, %v12416_v56  ;;  %v3402_v49 = vadd.f32 %v12243_v27, %v12247_v37 }
 0x51f   : > { %v3761_v14 = vrot.slane %v3720_v25, 7  ;;  %v3719_v50 = vmax.f32 %v3617_v1, 0.0  ;;  %7569 = vmatmul.mubr.msk.f32.gmra.mrb[58].mxu1 %vm1655_vm11, %v12419_v63  ;;  %v3417_v41 = vadd.f32 %v12243_v27, %v12323_v19  ;;  %v8400_v38 = vpack.i.bf16 %v12272_v0, %v12404_v29 }
 0x520   : > { %8406 = vrot.lane.b32.xlu1 %v8405_v62, %s9349_s13  ;;  %v3632_v47 = vadd.f32 %v7529_v40, %v3407_v2  ;;  %v8415_v8 = vpack.i.bf16 %v12289_v33, %v12343_v15  ;;  %v3986_v44 = vrot.slane %v12369_v46, 2  ;;  %v3627_v16 = vadd.f32 %v3626_v12, %v3402_v49 }
 0x521   : > { %v7532_v61 = vpop.f32.mrb[62].mxu0  ;;  %v3817_v18 = vrot.slane %v3719_v50, 7  ;;  %8401 = vrot.lane.b32.xlu0 %v8400_v38, %s9349_s13  ;;  %v3913_v60 = vrot.slane %v12317_v24, 1  ;;  %v8410_v12 = vpack.i.bf16 %v12282_v58, %v12340_v23  ;;  %v3989_v1 = vrot.slane %v12413_v22, 2 }
 0x522   : > { %v12430_v39 = vpop.f32.mrb[32].mxu1  ;;  %v3636_v54 = vpop.f32.mrb[63].mxu0  ;;  %v3722_v31 = vmax.f32 %v3632_v47, 0.0  ;;  %v3642_v10 = vadd.f32 %v7532_v61, %v3417_v41  ;;  %v12448_v21 = vsel %vm591_vm2, %v3985_v30, %v3986_v44  ;;  %v3721_v35 = vmax.f32 %v3627_v16, 0.0 }
 0x523   : > { %v3433_v37 = vpop.f32.mrb[33].mxu1  ;;  %v12442_v19 = vsel %vm429_vm0, %v3817_v18, %v3761_v14  ;;  %v12445_v40 = vsel %vm429_vm0, %v3761_v14, %v3817_v18  ;;  %7571 = vmatprep.mubr.msk.f32.mxu1 %vm1655_vm11, %v12448_v21  ;;  %v3914_v62 = vrot.slane %v12314_v53, 1  ;;  %v8420_v2 = vpack.i.bf16 %v12303_v34, %v12317_v24 }
 0x524   : > { %16033 = vst [vmem:[#allocation56_spill] sm:$0xff] %v12442_v19  ;;  %16034 = vst [vmem:[#allocation3_spill] sm:$0xff] %v12445_v40  ;;  %8416 = vrot.lane.b32.xlu1 %v8415_v8, %s9346_s14  ;;  %v3762_v25 = vrot.slane %v3722_v31, 7  ;;  %v3819_v61 = vrot.slane %v3721_v35, 7  ;;  %v12461_v49 = vsel %vm591_vm2, %v3986_v44, %v3985_v30  ;;  %v3412_v14 = vadd.f32 %v12243_v27, %v12276_v59 }
 0x525   : > { %v7535_v17 = vpop.f32.mrb[64].mxu0  ;;  %7572 = vmatmul.mubr.msk.f32.gmra.mrb[60].mxu1 %vm1655_vm11, %v12461_v49  ;;  %8411 = vrot.lane.b32.xlu0 %v8410_v12, %s9346_s14  ;;  %v3724_v50 = vmax.f32 %v3642_v10, 0.0  ;;  %v3990_v41 = vrot.slane %v12410_v48, 2  ;;  %v12480_v44 = vsel %vm526_vm1, %v3914_v62, %v3913_v60  ;;  %v3427_v16 = vadd.f32 %v12243_v27, %v12398_v11 }
 0x526   : > { %v3646_v20 = vpop.f32.mrb[65].mxu0  ;;  %v12470_v37 = vsel %vm429_vm0, %v3819_v61, %v3762_v25  ;;  %v12473_v34 = vsel %vm429_vm0, %v3762_v25, %v3819_v61  ;;  %v3637_v18 = vadd.f32 %v3636_v54, %v3412_v14  ;;  %16037 = vst [vmem:[#allocation4_spill] sm:$0xff] %v12480_v44  ;;  %v3422_v10 = vadd.f32 %v12243_v27, %v12349_v42 }
 0x527   : > { %16035 = vst [vmem:[#allocation65_spill] sm:$0xff] %v12470_v37  ;;  %16036 = vst [vmem:[#allocation84_spill] sm:$0xff] %v12473_v34  ;;  %v12477_v8 = vsel %vm591_vm2, %v3989_v1, %v3990_v41  ;;  %v12487_v31 = vsel %vm591_vm2, %v3990_v41, %v3989_v1  ;;  %v3763_v35 = vrot.slane %v3724_v50, 7  ;;  %v8425_v54 = vpack.i.bf16 %v12311_v28, %v12314_v53 }
 0x528   : > { %8421 = vrot.lane.b32.xlu1 %v8420_v2, %s9348_s12  ;;  %7574 = vmatprep.mubr.msk.f32.mxu1 %vm1655_vm11, %v12477_v8  ;;  %v3723_v12 = vmax.f32 %v3637_v18, 0.0  ;;  %v12498_v11 = vsel %vm526_vm1, %v3913_v60, %v3914_v62  ;;  %v3652_v2 = vadd.f32 %v7535_v17, %v3427_v16  ;;  %v3993_v1 = vrot.slane %v12445_v40, 2 }
 0x529   : > { %v3436_v38 = vpop.f32.mrb[34].mxu1  ;;  %v7538_v47 = vpop.f32.mrb[66].mxu0  ;;  %7575 = vmatmul.mubr.msk.f32.gmra.mrb[62].mxu1 %vm1655_vm11, %v12487_v31  ;;  %16038 = vst [vmem:[#allocation66_spill] sm:$0xff] %v12498_v11  ;;  %v3994_v61 = vrot.slane %v12442_v19, 2  ;;  %8426 = vrot.lane.b32.xlu0 %v8425_v54, %s9348_s12  ;;  %v3647_v41 = vadd.f32 %v3646_v20, %v3422_v10  ;;  %v8430_v16 = vpack.i.bf16 %v12295_v45, %v12498_v11 }
 0x52a   : > { %v3438_v30 = vpop.f32.mrb[35].mxu1  ;;  %v3656_v59 = vpop.f32.mrb[67].mxu0  ;;  %v3821_v50 = vrot.slane %v3723_v12, 7  ;;  %v3726_v18 = vmax.f32 %v3652_v2, 0.0  ;;  %v3432_v12 = vadd.f32 %v12243_v27, %v12430_v39  ;;  %v8445_v2 = vpack.i.bf16 %v12385_v51, %v12388_v9 }
 0x52b   : > { %v8435_v30 = vpack.i.bf16 %v12292_v43, %v12480_v44  ;;  %v12506_v33 = vsel %vm591_vm2, %v3993_v1, %v3994_v61  ;;  %v12509_v17 = vsel %vm591_vm2, %v3994_v61, %v3993_v1  ;;  %v3725_v20 = vmax.f32 %v3647_v41, 0.0 }
 0x52c   : > { %v12512_v60 = vsel %vm429_vm0, %v3821_v50, %v3763_v35  ;;  %v12515_v62 = vsel %vm429_vm0, %v3763_v35, %v3821_v50  ;;  %7577 = vmatprep.mubr.msk.f32.mxu1 %vm1655_vm11, %v12506_v33  ;;  %v3764_v54 = vrot.slane %v3726_v18, 7  ;;  %v3437_v61 = vadd.f32 %v12243_v27, %v3436_v38 }
 0x52d   : > { %v12495_v25 = vpop.f32.mrb[68].mxu0  ;;  %16039 = vst [vmem:[#allocation85_spill] sm:$0xff] %v12512_v60  ;;  %16040 = vst [vmem:[#allocation6_spill] sm:$0xff] %v12515_v62  ;;  %8436 = vrot.lane.b32.xlu1 %v8435_v30, %s9349_s13  ;;  %7578 = vmatmul.mubr.msk.f32.gmra.mrb[64].mxu1 %vm1655_vm11, %v12509_v17  ;;  %v3823_v1 = vrot.slane %v3725_v20, 7  ;;  %v3997_v50 = vrot.slane %v12473_v34, 2  ;;  %v3998_v41 = vrot.slane %v12470_v37, 2  ;;  %v3657_v30 = vadd.f32 %v3656_v59, %v3432_v12 }
 0x52e   : > { %v3441_v14 = vpop.f32.mrb[36].mxu1  ;;  %v3666_v42 = vpop.f32.mrb[69].mxu0  ;;  %8431 = vrot.lane.b32.xlu0 %v8430_v16, %s9349_s13  ;;  %v8440_v39 = vpack.i.bf16 %v12404_v29, %v12366_v57  ;;  %v3662_v43 = vadd.f32 %v7538_v47, %v3437_v61  ;;  %v8450_v51 = vpack.i.bf16 %v12340_v23, %v12355_v32  ;;  %v4001_v61 = vrot.slane %v12515_v62, 2 }
 0x52f   : > { %v3443_v28 = vpop.f32.mrb[37].mxu1  ;;  %v12542_v18 = vsel %vm429_vm0, %v3764_v54, %v3823_v1  ;;  %v12548_v38 = vsel %vm591_vm2, %v3997_v50, %v3998_v41  ;;  %v3727_v45 = vmax.f32 %v3657_v30, 0.0  ;;  %v12557_v47 = vsel %vm591_vm2, %v3998_v41, %v3997_v50 }
 0x530   : > { %v12539_v28 = vsel %vm429_vm0, %v3823_v1, %v3764_v54  ;;  %16042 = vst [vmem:[#allocation45_spill] sm:$0xff] %v12542_v18  ;;  %v3728_v29 = vmax.f32 %v3662_v43, 0.0  ;;  %7580 = vmatprep.mubr.msk.f32.mxu1 %vm1655_vm11, %v12548_v38  ;;  %v3917_v54 = vrot.slane %v12355_v32, 1  ;;  %v8455_v43 = vpack.i.bf16 %v12343_v15, %v12352_v13 }
 0x531   : > { %v12522_v10 = vpop.f32.mrb[70].mxu0  ;;  %16041 = vst [vmem:[#allocation44_spill] sm:$0xff] %v12539_v28  ;;  %8446 = vrot.lane.b32.xlu1 %v8445_v2, %s9346_s14  ;;  %v3918_v2 = vrot.slane %v12352_v13, 1  ;;  %v3825_v1 = vrot.slane %v3727_v45, 7  ;;  %7581 = vmatmul.mubr.msk.f32.gmra.mrb[66].mxu1 %vm1655_vm11, %v12557_v47  ;;  %v4002_v30 = vrot.slane %v12512_v60, 2  ;;  %v3442_v50 = vadd.f32 %v12243_v27, %v3441_v14 }
 0x532   : > { %v12528_v35 = vpop.f32.mrb[71].mxu0  ;;  %8441 = vrot.lane.b32.xlu0 %v8440_v39, %s9346_s14  ;;  %v3765_v23 = vrot.slane %v3728_v29, 7  ;;  %v4005_v39 = vrot.slane %v12542_v18, 2  ;;  %v4006_v45 = vrot.slane %v12539_v28, 2 }
 0x533   : > { %v12583_v29 = vsel %vm591_vm2, %v4001_v61, %v4002_v30  ;;  %v3667_v14 = vadd.f32 %v3666_v42, %v3442_v50  ;;  %v12587_v26 = vsel %vm526_vm1, %v3917_v54, %v3918_v2  ;;  %v12590_v36 = vsel %vm526_vm1, %v3918_v2, %v3917_v54 }
 0x534   : > { %v12577_v7 = vsel %vm429_vm0, %v3825_v1, %v3765_v23  ;;  %v12580_v15 = vsel %vm429_vm0, %v3765_v23, %v3825_v1  ;;  %16045 = vst [vmem:[#allocation5_spill] sm:$0xff] %v12590_v36  ;;  %7583 = vmatprep.mubr.msk.f32.mxu1 %vm1655_vm11, %v12583_v29  ;;  %v12595_v6 = vsel %vm591_vm2, %v4002_v30, %v4001_v61  ;;  %v3921_v30 = vrot.slane %v12372_v55, 1 }
 0x535   : > { %v3446_v20 = vpop.f32.mrb[38].mxu1  ;;  %v12545_v16 = vpop.f32.mrb[72].mxu0  ;;  %8451 = vrot.lane.b32.xlu1 %v8450_v51, %s9348_s12  ;;  %16043 = vst [vmem:[#allocation67_spill] sm:$0xff] %v12577_v7  ;;  %16044 = vst [vmem:[#allocation86_spill] sm:$0xff] %v12580_v15  ;;  %v12598_v1 = vsel %vm591_vm2, %v4005_v39, %v4006_v45  ;;  %7584 = vmatmul.mubr.msk.f32.gmra.mrb[68].mxu1 %vm1655_vm11, %v12595_v6  ;;  %v12605_v42 = vsel %vm591_vm2, %v4006_v45, %v4005_v39  ;;  %v4010_v23 = vrot.slane %v12577_v7, 2 }
 0x536   : > { %v3448_v59 = vpop.f32.mrb[39].mxu1  ;;  %v12550_v12 = vpop.f32.mrb[73].mxu0  ;;  %8456 = vrot.lane.b32.xlu0 %v8455_v43, %s9348_s12  ;;  %16046 = vst [vmem:[#allocation7_spill] sm:$0xff] %v12598_v1  ;;  %7586 = vmatprep.mubr.msk.f32.mxu1 %vm1655_vm11, %v12598_v1  ;;  %v8465_v54 = vpack.i.bf16 %v12314_v53, %v12590_v36  ;;  %v8460_v2 = vpack.i.bf16 %v12317_v24, %v12587_v26  ;;  %v4009_v43 = vrot.slane %v12580_v15, 2  ;;  %v3922_v50 = vrot.slane %v12369_v46, 1 }
 0x537   : > { %v3447_v61 = vadd.f32 %v12243_v27, %v3446_v20  ;;  %v3729_v53 = vmax.f32 %v3667_v14, 0.0 }
 0x538   : > { %v12625_v24 = vsel %vm591_vm2, %v4009_v43, %v4010_v23 }
 0x539   : > { %v12570_v41 = vpop.f32.mrb[74].mxu0  ;;  %8466 = vrot.lane.b32.xlu1 %v8465_v54, %s9349_s13  ;;  %7587 = vmatmul.mubr.msk.f32.gmra.mrb[70].mxu1 %vm1655_vm11, %v12605_v42  ;;  %v3672_v20 = vadd.f32 %v12495_v25, %v3447_v61  ;;  %v8475_v54 = vpack.i.bf16 %v12480_v44, %v12419_v63  ;;  %v8480_v61 = vpack.i.bf16 %v12366_v57, %v12372_v55  ;;  %v4825_v57 = vld [vmem:[%s15436_s5] sm:$0xff] }
 0x53a   : > { %v3451_v59 = vpop.f32.mrb[40].mxu1  ;;  %v12574_v58 = vpop.f32.mrb[75].mxu0  ;;  %8461 = vrot.lane.b32.xlu0 %v8460_v2, %s9349_s13  ;;  %7589 = vmatprep.mubr.msk.f32.mxu1 %vm1655_vm11, %v12625_v24  ;;  %v8485_v44 = vpack.i.bf16 %v12388_v9, %v12369_v46 }
 0x53b   : > { %v3453_v51 = vpop.f32.mrb[41].mxu1  ;;  %v3452_v39 = vadd.f32 %v12243_v27, %v3451_v59  ;;  %v12632_v59 = vsel %vm591_vm2, %v4010_v23, %v4009_v43  ;;  %v3827_v43 = vrot.slane %v3729_v53, 7  ;;  %v4826_v53 = vld [vmem:[%s15436_s5 + $0x8] sm:$0xff] }
 0x53c   : > { %v8470_v51 = vpack.i.bf16 %v12498_v11, %v12416_v56  ;;  %v3730_v11 = vmax.f32 %v3672_v20, 0.0 }
 0x53d   : > { %v3677_v14 = vadd.f32 %v12528_v35, %v3452_v39  ;;  %8476 = vrot.lane.b32.xlu1 %v8475_v54, %s9346_s14  ;;  %7590 = vmatmul.mubr.msk.f32.gmra.mrb[72].mxu1 %vm1655_vm11, %v12632_v59  ;;  %v12646_v39 = vsel %vm526_vm1, %v3921_v30, %v3922_v50 }
 0x53e   : > { %8471 = vrot.lane.b32.xlu0 %v8470_v51, %s9346_s14  ;;  %v3766_v23 = vrot.slane %v3730_v11, 7 }
 0x53f   : > { %v3731_v25 = vmax.f32 %v3677_v14, 0.0 }
 0x540   : > { %v12659_v9 = vsel %vm429_vm0, %v3827_v43, %v3766_v23  ;;  %v12662_v11 = vsel %vm429_vm0, %v3766_v23, %v3827_v43  ;;  %v7728_v43 = vpack.c.bf16 %v4826_v53, %v4825_v57 }
 0x541   : > { %v3456_v45 = vpop.f32.mrb[42].mxu1  ;;  %16047 = vst [vmem:[#allocation68_spill] sm:$0xff] %v12659_v9  ;;  %16048 = vst [vmem:[#allocation46_spill] sm:$0xff] %v12662_v11  ;;  %8481 = vrot.lane.b32.xlu1 %v8480_v61, %s9348_s12  ;;  %v4013_v54 = vrot.slane %v12662_v11, 2  ;;  %v4014_v14 = vrot.slane %v12659_v9, 2 }
 0x542   : > { %v3458_v1 = vpop.f32.mrb[43].mxu1  ;;  %v3457_v2 = vadd.f32 %v12243_v27, %v3456_v45  ;;  %v12649_v45 = vsel %vm526_vm1, %v3922_v50, %v3921_v30  ;;  %v3829_v30 = vrot.slane %v3731_v25, 7  ;;  %8486 = vrot.lane.b32.xlu0 %v8485_v44, %s9348_s12  ;;  %7729 = vmatpush1.bf16.msra.mxu0 %v7728_v43  ;;  %v8500_v43 = vpack.i.bf16 %v12587_v26, %v12448_v21 }
 0x543   : > { %v12680_v44 = vsel %vm591_vm2, %v4013_v54, %v4014_v14  ;;  %v12683_v23 = vsel %vm591_vm2, %v4014_v14, %v4013_v54  ;;  %7730 = vmatprep.subr.bf16.mxu0 %v16007_v5 }
 0x544   : > { %v3682_v1 = vadd.f32 %v12522_v10, %v3457_v2  ;;  %7592 = vmatprep.mubr.msk.f32.mxu1 %vm1655_vm11, %v12680_v44 }
 0x545   : > { %7593 = vmatmul.mubr.msk.f32.gmra.mrb[74].mxu1 %vm1655_vm11, %v12683_v23 }
 0x546   : > { %v3461_v35 = vpop.f32.mrb[44].mxu1  ;;  %v3732_v51 = vmax.f32 %v3682_v1, 0.0  ;;  %v8495_v1 = vpack.i.bf16 %v12352_v13, %v12649_v45 }
 0x547   : > { %v3462_v10 = vadd.f32 %v12243_v27, %v3461_v35  ;;  %v3463_v20 = vpop.f32.mrb[45].mxu1  ;;  %v8490_v35 = vpack.i.bf16 %v12355_v32, %v12646_v39 }
 0x548   : > { %v3767_v50 = vrot.slane %v3732_v51, 7  ;;  %v4828_v51 = vld [vmem:[%s15436_s5 + $0x18] sm:$0xff]  ;;  %v15623_v20 = vrot.slane %v12410_v48, 1  ;;  %8496 = vrot.lane.b32.xlu1 %v8495_v1, %s9349_s13  ;;  %v8505_v1 = vpack.i.bf16 %v12590_v36, %v12461_v49 }
 0x549   : > { %v3687_v2 = vadd.f32 %v12550_v12, %v3462_v10  ;;  %v4827_v12 = vld [vmem:[%s15436_s5 + $0x10] sm:$0xff]  ;;  %8491 = vrot.lane.b32.xlu0 %v8490_v35, %s9349_s13 }
 0x54a   : > { %v12674_v25 = vsel %vm429_vm0, %v3829_v30, %v3767_v50  ;;  %v12677_v61 = vsel %vm429_vm0, %v3767_v50, %v3829_v30  ;;  %v7731_v14 = vpack.c.bf16 %v4828_v51, %v4827_v12  ;;  %v4830_v12 = vld [vmem:[%s15436_s5 + $0x28] sm:$0xff]  ;;  %v16051_v51 = vrot.slane %v12413_v22, 1 }
 0x54b   : > { %16049 = vst [vmem:[#allocation87_spill] sm:$0xff] %v12674_v25  ;;  %16050 = vst [vmem:[#allocation47_spill] sm:$0xff] %v12677_v61  ;;  %v4017_v53 = vrot.slane %v12677_v61, 2  ;;  %v4018_v30 = vrot.slane %v12674_v25, 2  ;;  %v3733_v13 = vmax.f32 %v3687_v2, 0.0 }
 0x54c   : > { %8506 = vrot.lane.b32.xlu1 %v8505_v1, %s9346_s14  ;;  %7732 = vmatpush1.bf16.msra.mxu0 %v7731_v14  ;;  %v4832_v14 = vld [vmem:[%s15436_s5 + $0x38] sm:$0xff] }
 0x54d   : > { %v3466_v57 = vpop.f32.mrb[46].mxu1  ;;  %v12708_v35 = vsel %vm591_vm2, %v4017_v53, %v4018_v30  ;;  %v12711_v10 = vsel %vm591_vm2, %v4018_v30, %v4017_v53  ;;  %8501 = vrot.lane.b32.xlu0 %v8500_v43, %s9346_s14  ;;  %7733 = vmatprep.subr.bf16.mxu0 %v16007_v5  ;;  %v3831_v1 = vrot.slane %v3733_v13, 7 }
 0x54e   : > { %v3467_v50 = vadd.f32 %v12243_v27, %v3466_v57  ;;  %v3468_v54 = vpop.f32.mrb[47].mxu1  ;;  %v4829_v57 = vld [vmem:[%s15436_s5 + $0x20] sm:$0xff]  ;;  %7595 = vmatprep.mubr.msk.f32.mxu1 %vm1655_vm11, %v12708_v35 }
 0x54f   : > { %v12724_v54 = vsel %vm526_vm1, %v16051_v51, %v15623_v20  ;;  %7596 = vmatmul.mubr.msk.f32.gmra.mrb[76].mxu1 %vm1655_vm11, %v12711_v10  ;;  %v7734_v36 = vpack.c.bf16 %v4830_v12, %v4829_v57  ;;  %v8510_v51 = vpack.i.bf16 %v12416_v56, %v12413_v22 }
 0x550   : > { %v3692_v32 = vadd.f32 %v12545_v16, %v3467_v50  ;;  %v8515_v16 = vpack.i.bf16 %v12372_v55, %v12724_v54  ;;  %v4842_v55 = vld [vmem:[%s15436_s5 + $0x88] sm:$0xff] }
 0x551   : > { %8511 = vrot.lane.b32.xlu1 %v8510_v51, %s9348_s12  ;;  %7735 = vmatpush1.bf16.msra.mxu0 %v7734_v36  ;;  %v4833_v51 = vld [vmem:[%s15436_s5 + $0x40] sm:$0xff] }
 0x552   : > { %v3734_v53 = vmax.f32 %v3692_v32, 0.0  ;;  %v3471_v30 = vpop.f32.mrb[48].mxu1  ;;  %v4831_v32 = vld [vmem:[%s15436_s5 + $0x30] sm:$0xff]  ;;  %8516 = vrot.lane.b32.xlu0 %v8515_v16, %s9349_s13  ;;  %7736 = vmatprep.subr.bf16.mxu0 %v16007_v5 }
 0x553   : > { %v3472_v2 = vadd.f32 %v12243_v27, %v3471_v30  ;;  %v3473_v50 = vpop.f32.mrb[49].mxu1  ;;  %v7737_v30 = vpack.c.bf16 %v4832_v14, %v4831_v32 }
 0x554   : > { %v3768_v43 = vrot.slane %v3734_v53, 7 }
 0x555   : > { %v3697_v56 = vadd.f32 %v12574_v58, %v3472_v2  ;;  %v4834_v58 = vld [vmem:[%s15436_s5 + $0x48] sm:$0xff]  ;;  %7738 = vmatpush1.bf16.msra.mxu0 %v7737_v30  ;;  %v4837_v30 = vld [vmem:[%s15436_s5 + $0x60] sm:$0xff] }
 0x556   : > { %v12749_v57 = vsel %vm429_vm0, %v3831_v1, %v3768_v43  ;;  %v12752_v13 = vsel %vm429_vm0, %v3768_v43, %v3831_v1  ;;  %v7740_v43 = vpack.c.bf16 %v4834_v58, %v4833_v51  ;;  %7739 = vmatprep.subr.bf16.mxu0 %v16007_v5 }
 0x557   : > { %16052 = vst [vmem:[#allocation69_spill] sm:$0xff] %v12749_v57  ;;  %16053 = vst [vmem:[#allocation88_spill] sm:$0xff] %v12752_v13  ;;  %v4021_v12 = vrot.slane %v12752_v13, 2  ;;  %v4022_v53 = vrot.slane %v12749_v57, 2  ;;  %v3735_v32 = vmax.f32 %v3697_v56, 0.0 }
 0x559   : > { %v3476_v16 = vpop.f32.mrb[50].mxu1  ;;  %v12764_v2 = vsel %vm591_vm2, %v4021_v12, %v4022_v53  ;;  %v12767_v36 = vsel %vm591_vm2, %v4022_v53, %v4021_v12  ;;  %v4835_v12 = vld [vmem:[%s15436_s5 + $0x50] sm:$0xff]  ;;  %7741 = vmatpush1.bf16.msra.mxu0 %v7740_v43  ;;  %v3801_v56 = vrot.slane %v3735_v32, 7 }
 0x55a   : > { %v3477_v50 = vadd.f32 %v12243_v27, %v3476_v16  ;;  %v3478_v1 = vpop.f32.mrb[51].mxu1  ;;  %7598 = vmatprep.mubr.msk.f32.mxu1 %vm1655_vm11, %v12764_v2  ;;  %v4836_v27 = vld [vmem:[%s15436_s5 + $0x58] sm:$0xff]  ;;  %7742 = vmatprep.subr.bf16.mxu0 %v16007_v5  ;;  %v4839_v32 = vld [vmem:[%s15436_s5 + $0x70] sm:$0xff] }
 0x55b   : > { %7599 = vmatmul.mubr.msk.f32.gmra.mrb[78].mxu1 %vm1655_vm11, %v12767_v36  ;;  %v7743_v16 = vpack.c.bf16 %v4836_v27, %v4835_v12 }
 0x55c   : > { %v3702_v14 = vadd.f32 %v12570_v41, %v3477_v50  ;;  %v4838_v41 = vld [vmem:[%s15436_s5 + $0x68] sm:$0xff] }
 0x55d   : > { %v7746_v1 = vpack.c.bf16 %v4838_v41, %v4837_v30  ;;  %7744 = vmatpush1.bf16.msra.mxu0 %v7743_v16 }
 0x55e   : > { %v3736_v53 = vmax.f32 %v3702_v14, 0.0  ;;  %7745 = vmatprep.subr.bf16.mxu0 %v16007_v5 }
 0x560   : > { %v3753_v51 = vrot.slane %v3736_v53, 7  ;;  %v4840_v53 = vld [vmem:[%s15436_s5 + $0x78] sm:$0xff] }
 0x561   : > { %7747 = vmatpush1.bf16.msra.mxu0 %v7746_v1 }
 0x562   : > { %v12790_v58 = vsel %vm429_vm0, %v3801_v56, %v3753_v51  ;;  %v12793_v50 = vsel %vm429_vm0, %v3753_v51, %v3801_v56  ;;  %7748 = vmatprep.subr.bf16.mxu0 %v16007_v5 }
 0x563   : > { %v3961_v43 = vrot.slane %v12793_v50, 2  ;;  %v3962_v14 = vrot.slane %v12790_v58, 2  ;;  %v3897_v12 = vrot.slane %v12793_v50, 1  ;;  %v3898_v27 = vrot.slane %v12790_v58, 1 }
 0x565   : > { %v12807_v30 = vsel %vm591_vm2, %v3961_v43, %v3962_v14  ;;  %v12810_v41 = vsel %vm591_vm2, %v3962_v14, %v3961_v43  ;;  %v12813_v56 = vsel %vm526_vm1, %v3897_v12, %v3898_v27  ;;  %v12824_v20 = vsel %vm526_vm1, %v3898_v27, %v3897_v12  ;;  %v4841_v14 = vld [vmem:[%s15436_s5 + $0x80] sm:$0xff] }
 0x566   : > { %16054 = vst [vmem:[#allocation70_spill] sm:$0xff] %v12813_v56  ;;  %v8530_v16 = vpack.i.bf16 %v12807_v30, %v12272_v0  ;;  %7601 = vmatprep.mubr.msk.f32.mxu1 %vm1655_vm11, %v12807_v30  ;;  %v8520_v51 = vpack.i.bf16 %v12813_v56, %v12379_v3  ;;  %16055 = vst [vmem:[#allocation89_spill] sm:$0xff] %v12824_v20  ;;  %v7749_v43 = vpack.c.bf16 %v4840_v53, %v4839_v32 }
 0x567   : > { %7602 = vmatmul.mubr.msk.f32.gmra.mrb[80].mxu1 %vm1655_vm11, %v12810_v41  ;;  %v8535_v1 = vpack.i.bf16 %v12824_v20, %v12382_v4  ;;  %v16056_v12 = vrot.slane %v12413_v22, 1  ;;  %v16057_v27 = vrot.slane %v12410_v48, 1  ;;  %v7752_v53 = vpack.c.bf16 %v4842_v55, %v4841_v14 }
 0x568   : > { %7604 = vmatprep.mubr.msk.f32.mxu1 %vm1655_vm11, %v12379_v3  ;;  %8531 = vrot.lane.b32.xlu1 %v8530_v16, %s9348_s12  ;;  %v8525_v3 = vpack.i.bf16 %v12419_v63, %v12410_v48  ;;  %v4843_v63 = vld [vmem:[%s15436_s5 + $0x90] sm:$0xff]  ;;  %v4844_v16 = vld [vmem:[%s15436_s5 + $0x98] sm:$0xff]  ;;  %v8545_v55 = vpack.i.bf16 %v12810_v41, %v12269_v52  ;;  %v3930_v14 = vrot.slane %v12442_v19, 1 }
 0x569   : > { %8521 = vrot.lane.b32.xlu0 %v8520_v51, %s9346_s14  ;;  %v12846_v32 = vsel %vm526_vm1, %v16057_v27, %v16056_v12  ;;  %7750 = vmatpush1.bf16.msra.mxu0 %v7749_v43  ;;  %v3929_v43 = vrot.slane %v12445_v40, 1  ;;  %v8555_v12 = vpack.i.bf16 %v12448_v21, %v12445_v40  ;;  %v8550_v27 = vpack.i.bf16 %v12646_v39, %v12477_v8  ;;  %v4848_v21 = vld [vmem:[%s15436_s5 + $0xb8] sm:$0xff] }
 0x56a   : > { %7751 = vmatprep.subr.bf16.mxu0 %v16007_v5  ;;  %v8540_v51 = vpack.i.bf16 %v12369_v46, %v12846_v32 }
 0x56b   : > { %7605 = vmatmul.mubr.msk.f32.gmra.mrb[82].mxu1 %vm1655_vm11, %v12382_v4  ;;  %v7755_v4 = vpack.c.bf16 %v4844_v16, %v4843_v63  ;;  %v12879_v63 = vsel %vm526_vm1, %v3929_v43, %v3930_v14  ;;  %v4847_v16 = vld [vmem:[%s15436_s5 + $0xb0] sm:$0xff] }
 0x56c   : > { %8536 = vrot.lane.b32.xlu1 %v8535_v1, %s9346_s14  ;;  %v4845_v1 = vld [vmem:[%s15436_s5 + $0xa0] sm:$0xff]  ;;  %16058 = vst [vmem:[#allocation71_spill] sm:$0xff] %v12879_v63 }
 0x56d   : > { %8526 = vrot.lane.b32.xlu0 %v8525_v3, %s9348_s12  ;;  %7753 = vmatpush1.bf16.msra.mxu0 %v7752_v53  ;;  %v4846_v3 = vld [vmem:[%s15436_s5 + $0xa8] sm:$0xff] }
 0x56e   : > { %7754 = vmatprep.subr.bf16.mxu0 %v16007_v5  ;;  %v7758_v53 = vpack.c.bf16 %v4846_v3, %v4845_v1  ;;  %v7761_v1 = vpack.c.bf16 %v4848_v21, %v4847_v16  ;;  %v4849_v3 = vld [vmem:[%s15436_s5 + $0xc0] sm:$0xff]  ;;  %v3934_v16 = vrot.slane %v12470_v37, 1  ;;  %v4851_v21 = vld [vmem:[%s15436_s5 + $0xd0] sm:$0xff] }
 0x570   : > { %8541 = vrot.lane.b32.xlu1 %v8540_v51, %s9349_s13  ;;  %v8565_v51 = vpack.i.bf16 %v12649_v45, %v12487_v31 }
 0x571   : > { %8546 = vrot.lane.b32.xlu0 %v8545_v55, %s9348_s12  ;;  %7756 = vmatpush1.bf16.msra.mxu0 %v7755_v4  ;;  %v12893_v55 = vsel %vm526_vm1, %v3930_v14, %v3929_v43  ;;  %v8560_v4 = vpack.i.bf16 %v12413_v22, %v12879_v63  ;;  %v8570_v14 = vpack.i.bf16 %v12461_v49, %v12442_v19 }
 0x572   : > { %7757 = vmatprep.subr.bf16.mxu0 %v16007_v5  ;;  %16059 = vst [vmem:[#allocation90_spill] sm:$0xff] %v12893_v55  ;;  %v8575_v43 = vpack.i.bf16 %v12410_v48, %v12893_v55  ;;  %v8585_v49 = vpack.i.bf16 %v12477_v8, %v12473_v34  ;;  %v4854_v8 = vld [vmem:[%s15436_s5 + $0xe8] sm:$0xff] }
 0x574   : > { %8556 = vrot.lane.b32.xlu1 %v8555_v12, %s9348_s12  ;;  %v4850_v12 = vld [vmem:[%s15436_s5 + $0xc8] sm:$0xff] }
 0x575   : > { %8551 = vrot.lane.b32.xlu0 %v8550_v27, %s9346_s14  ;;  %7759 = vmatpush1.bf16.msra.mxu0 %v7758_v53  ;;  %v7764_v27 = vpack.c.bf16 %v4850_v12, %v4849_v3  ;;  %v3933_v53 = vrot.slane %v12473_v34, 1  ;;  %v4853_v12 = vld [vmem:[%s15436_s5 + $0xe0] sm:$0xff] }
 0x576   : > { %7760 = vmatprep.subr.bf16.mxu0 %v16007_v5 }
 0x577   : > { %v12926_v3 = vsel %vm526_vm1, %v3933_v53, %v3934_v16 }
 0x578   : > { %8566 = vrot.lane.b32.xlu1 %v8565_v51, %s9346_s14  ;;  %v4852_v51 = vld [vmem:[%s15436_s5 + $0xd8] sm:$0xff]  ;;  %16060 = vst [vmem:[#allocation72_spill] sm:$0xff] %v12926_v3 }
 0x579   : > { %8561 = vrot.lane.b32.xlu0 %v8560_v4, %s9349_s13  ;;  %7762 = vmatpush1.bf16.msra.mxu0 %v7761_v1  ;;  %v8580_v4 = vpack.i.bf16 %v12724_v54, %v12506_v33  ;;  %v7767_v1 = vpack.c.bf16 %v4852_v51, %v4851_v21  ;;  %v7770_v21 = vpack.c.bf16 %v4854_v8, %v4853_v12  ;;  %v4855_v51 = vld [vmem:[%s15436_s5 + $0xf0] sm:$0xff]  ;;  %v3937_v8 = vrot.slane %v12515_v62, 1 }
 0x57a   : > { %7763 = vmatprep.subr.bf16.mxu0 %v16007_v5 }
 0x57c   : > { %8576 = vrot.lane.b32.xlu1 %v8575_v43, %s9349_s13  ;;  %v8595_v43 = vpack.i.bf16 %v12846_v32, %v12509_v17 }
 0x57d   : > { %8571 = vrot.lane.b32.xlu0 %v8570_v14, %s9348_s12  ;;  %7765 = vmatpush1.bf16.msra.mxu0 %v7764_v27  ;;  %v12940_v14 = vsel %vm526_vm1, %v3934_v16, %v3933_v53  ;;  %v8590_v27 = vpack.i.bf16 %v12445_v40, %v12926_v3 }
 0x57e   : > { %7766 = vmatprep.subr.bf16.mxu0 %v16007_v5  ;;  %16061 = vst [vmem:[#allocation91_spill] sm:$0xff] %v12940_v14  ;;  %v8605_v16 = vpack.i.bf16 %v12442_v19, %v12940_v14 }
 0x580   : > { %8586 = vrot.lane.b32.xlu1 %v8585_v49, %s9348_s12  ;;  %v4856_v49 = vld [vmem:[%s15436_s5 + $0xf8] sm:$0xff] }
 0x581   : > { %8581 = vrot.lane.b32.xlu0 %v8580_v4, %s9346_s14  ;;  %7768 = vmatpush1.bf16.msra.mxu0 %v7767_v1  ;;  %v12952_v4 = vpop.permute.xlu0 %8371  ;;  %v8600_v1 = vpack.i.bf16 %v12487_v31, %v12470_v37  ;;  %v7773_v12 = vpack.c.bf16 %v4856_v49, %v4855_v51  ;;  %v8610_v31 = vpack.i.bf16 %v12879_v63, %v12548_v38 }
 0x582   : > { %7769 = vmatprep.subr.bf16.mxu0 %v16007_v5  ;;  %v8625_v49 = vpack.i.bf16 %v12893_v55, %v12557_v47  ;;  %v16075_v55 = vld [vmem:[#allocation34_spill] sm:$0xff] }
 0x583   : > { %v12954_v53 = vpop.permute.xlu1 %8376 }
 0x584   : > { %8596 = vrot.lane.b32.xlu1 %v8595_v43, %s9346_s14  ;;  %v3938_v43 = vrot.slane %v12512_v60, 1 }
 0x585   : > { %8591 = vrot.lane.b32.xlu0 %v8590_v27, %s9349_s13  ;;  %7771 = vmatpush1.bf16.msra.mxu0 %v7770_v21  ;;  %v8615_v27 = vpack.i.bf16 %v12506_v33, %v12515_v62  ;;  %v12972_v21 = vpop.permute.xlu0 %8381 }
 0x586   : > { %7772 = vmatprep.subr.bf16.mxu0 %v16007_v5  ;;  %v12975_v51 = vsel %vm526_vm1, %v3937_v8, %v3938_v43  ;;  %v12982_v33 = vsel %vm526_vm1, %v3938_v43, %v3937_v8  ;;  %v3941_v8 = vrot.slane %v12542_v18, 1  ;;  %v3942_v43 = vrot.slane %v12539_v28, 1 }
 0x587   : > { %v12968_v40 = vpop.permute.xlu1 %8386  ;;  %16062 = vst [vmem:[#allocation73_spill] sm:$0xff] %v12975_v51  ;;  %16063 = vst [vmem:[#allocation92_spill] sm:$0xff] %v12982_v33 }
 0x588   : > { %8606 = vrot.lane.b32.xlu1 %v8605_v16, %s9349_s13  ;;  %v8620_v16 = vpack.i.bf16 %v12473_v34, %v12975_v51 }
 0x589   : > { %8601 = vrot.lane.b32.xlu0 %v8600_v1, %s9348_s12  ;;  %7774 = vmatpush1.bf16.msra.mxu0 %v7773_v12 }
 0x58c   : > { %8616 = vrot.lane.b32.xlu1 %v8615_v27, %s9348_s12  ;;  %v8635_v27 = vpack.i.bf16 %v12470_v37, %v12982_v33 }
 0x58d   : > { %8611 = vrot.lane.b32.xlu0 %v8610_v31, %s9346_s14  ;;  %v8630_v31 = vpack.i.bf16 %v12509_v17, %v12512_v60  ;;  %v13009_v17 = vsel %vm526_vm1, %v3941_v8, %v3942_v43 }
 0x58e   : > { %v12986_v1 = vpop.permute.xlu1 %8391  ;;  %v12989_v12 = vpop.permute.xlu0 %8396  ;;  %16064 = vst [vmem:[#allocation74_spill] sm:$0xff] %v13009_v17  ;;  %v8650_v19 = vpack.i.bf16 %v12515_v62, %v13009_v17 }
 0x590   : > { %8626 = vrot.lane.b32.xlu1 %v8625_v49, %s9346_s14  ;;  %v8645_v49 = vpack.i.bf16 %v12548_v38, %v12542_v18 }
 0x591   : > { %8621 = vrot.lane.b32.xlu0 %v8620_v16, %s9349_s13  ;;  %v8640_v16 = vpack.i.bf16 %v12926_v3, %v12583_v29 }
 0x592   : > { %v12998_v5 = vpop.permute.xlu1 %8406 }
 0x593   : > { %v13006_v37 = vpop.permute.xlu0 %8401 }
 0x594   : > { %8636 = vrot.lane.b32.xlu1 %v8635_v27, %s9349_s13  ;;  %v8655_v27 = vpack.i.bf16 %v12940_v14, %v12595_v6  ;;  %v3945_v14 = vrot.slane %v12580_v15, 1 }
 0x595   : > { %8631 = vrot.lane.b32.xlu0 %v8630_v31, %s9348_s12  ;;  %v13018_v31 = vsel %vm526_vm1, %v3942_v43, %v3941_v8  ;;  %v3946_v8 = vrot.slane %v12577_v7, 1 }
 0x596   : > { %v13015_v34 = vpop.permute.xlu1 %8416  ;;  %16065 = vst [vmem:[#allocation93_spill] sm:$0xff] %v13018_v31 }
 0x597   : > { %v13020_v38 = vpop.permute.xlu0 %8411 }
 0x598   : > { %8646 = vrot.lane.b32.xlu1 %v8645_v49, %s9348_s12  ;;  %v8665_v49 = vpack.i.bf16 %v12512_v60, %v13018_v31 }
 0x599   : > { %8641 = vrot.lane.b32.xlu0 %v8640_v16, %s9346_s14  ;;  %v8660_v16 = vpack.i.bf16 %v12557_v47, %v12539_v28  ;;  %v13043_v47 = vsel %vm526_vm1, %v3945_v14, %v3946_v8 }
 0x59a   : > { %v13032_v43 = vpop.permute.xlu1 %8421  ;;  %16067 = vst [vmem:[#allocation75_spill] sm:$0xff] %v13043_v47 }
 0x59b   : > { %v13035_v3 = vpop.permute.xlu0 %8426 }
 0x59c   : > { %8656 = vrot.lane.b32.xlu1 %v8655_v27, %s9346_s14  ;;  %v16066_v27 = vld [vmem:[#allocation7_spill] sm:$0xff] }
 0x59d   : > { %8651 = vrot.lane.b32.xlu0 %v8650_v19, %s9349_s13  ;;  %v8675_v19 = vpack.i.bf16 %v12583_v29, %v12580_v15  ;;  %v8670_v60 = vpack.i.bf16 %v12975_v51, %v16066_v27  ;;  %v8680_v29 = vpack.i.bf16 %v12542_v18, %v13043_v47 }
 0x59f   : > { %v13049_v62 = vpop.permute.xlu1 %8436 }
 0x5a0   : > { %8666 = vrot.lane.b32.xlu1 %v8665_v49, %s9349_s13  ;;  %v8685_v49 = vpack.i.bf16 %v12982_v33, %v12605_v42  ;;  %v13054_v48 = vpop.permute.xlu0 %8431  ;;  %v3949_v33 = vrot.slane %v12662_v11, 1 }
 0x5a1   : > { %8661 = vrot.lane.b32.xlu0 %v8660_v16, %s9348_s12  ;;  %v13052_v16 = vsel %vm526_vm1, %v3946_v8, %v3945_v14  ;;  %v3950_v14 = vrot.slane %v12659_v9, 1 }
 0x5a2   : > { %16068 = vst [vmem:[#allocation94_spill] sm:$0xff] %v13052_v16 }
 0x5a3   : > { %v13066_v8 = vpop.permute.xlu1 %8446 }
 0x5a4   : > { %8676 = vrot.lane.b32.xlu1 %v8675_v19, %s9348_s12  ;;  %v8690_v19 = vpack.i.bf16 %v12595_v6, %v12577_v7  ;;  %v13069_v51 = vpop.permute.xlu0 %8441  ;;  %v13077_v6 = vsel %vm526_vm1, %v3949_v33, %v3950_v14 }
 0x5a5   : > { %8671 = vrot.lane.b32.xlu0 %v8670_v60, %s9346_s14  ;;  %v8695_v60 = vpack.i.bf16 %v12539_v28, %v13052_v16  ;;  %16069 = vst [vmem:[#allocation76_spill] sm:$0xff] %v13077_v6 }
 0x5a7   : > { %v13083_v28 = vpop.permute.xlu1 %8451 }
 0x5a8   : > { %8686 = vrot.lane.b32.xlu1 %v8685_v49, %s9346_s14  ;;  %v8705_v49 = vpack.i.bf16 %v16066_v27, %v12662_v11  ;;  %v13088_v18 = vpop.permute.xlu0 %8456  ;;  %v8710_v27 = vpack.i.bf16 %v12580_v15, %v13077_v6 }
 0x5a9   : > { %8681 = vrot.lane.b32.xlu0 %v8680_v29, %s9349_s13  ;;  %v8700_v29 = vpack.i.bf16 %v13009_v17, %v12625_v24 }
 0x5ac   : > { %8696 = vrot.lane.b32.xlu1 %v8695_v60, %s9349_s13  ;;  %v8715_v60 = vpack.i.bf16 %v13018_v31, %v12632_v59  ;;  %v3953_v31 = vrot.slane %v12677_v61, 1  ;;  %v13103_v17 = vpop.permute.xlu0 %8461 }
 0x5ad   : > { %8691 = vrot.lane.b32.xlu0 %v8690_v19, %s9348_s12  ;;  %v13086_v19 = vsel %vm526_vm1, %v3950_v14, %v3949_v33  ;;  %v3954_v33 = vrot.slane %v12674_v25, 1  ;;  %v13100_v14 = vpop.permute.xlu1 %8466 }
 0x5ae   : > { %16070 = vst [vmem:[#allocation95_spill] sm:$0xff] %v13086_v19 }
 0x5b0   : > { %8706 = vrot.lane.b32.xlu1 %v8705_v49, %s9348_s12  ;;  %v8725_v49 = vpack.i.bf16 %v12577_v7, %v13086_v19  ;;  %v13122_v15 = vpop.permute.xlu0 %8471 }
 0x5b1   : > { %8701 = vrot.lane.b32.xlu0 %v8700_v29, %s9346_s14  ;;  %v8720_v29 = vpack.i.bf16 %v12605_v42, %v12659_v9  ;;  %v13111_v42 = vsel %vm526_vm1, %v3953_v31, %v3954_v33  ;;  %v13117_v7 = vpop.permute.xlu1 %8476 }
 0x5b2   : > { %16071 = vst [vmem:[#allocation77_spill] sm:$0xff] %v13111_v42 }
 0x5b4   : > { %8716 = vrot.lane.b32.xlu1 %v8715_v60, %s9346_s14  ;;  %v8735_v60 = vpack.i.bf16 %v12625_v24, %v12677_v61  ;;  %v8740_v24 = vpack.i.bf16 %v12662_v11, %v13111_v42 }
 0x5b5   : > { %8711 = vrot.lane.b32.xlu0 %v8710_v27, %s9349_s13  ;;  %v8730_v27 = vpack.i.bf16 %v13043_v47, %v12680_v44  ;;  %v13137_v47 = vpop.permute.xlu0 %8486 }
 0x5b8   : > { %8726 = vrot.lane.b32.xlu1 %v8725_v49, %s9349_s13  ;;  %v8745_v49 = vpack.i.bf16 %v13052_v16, %v12683_v23  ;;  %v3957_v16 = vrot.slane %v12752_v13, 1 }
 0x5b9   : > { %8721 = vrot.lane.b32.xlu0 %v8720_v29, %s9348_s12  ;;  %v13120_v29 = vsel %vm526_vm1, %v3954_v33, %v3953_v31  ;;  %v3958_v31 = vrot.slane %v12749_v57, 1  ;;  %v13134_v33 = vpop.permute.xlu1 %8481 }
 0x5ba   : > { %16072 = vst [vmem:[#allocation78_spill] sm:$0xff] %v13120_v29 }
 0x5bb   : > { %v13156_v11 = vpop.permute.xlu0 %8491 }
 0x5bc   : > { %8736 = vrot.lane.b32.xlu1 %v8735_v60, %s9348_s12  ;;  %v8755_v60 = vpack.i.bf16 %v12659_v9, %v13120_v29 }
 0x5bd   : > { %8731 = vrot.lane.b32.xlu0 %v8730_v27, %s9346_s14  ;;  %v8750_v27 = vpack.i.bf16 %v12632_v59, %v12674_v25  ;;  %v13145_v59 = vsel %vm526_vm1, %v3957_v16, %v3958_v31  ;;  %v13151_v9 = vpop.permute.xlu1 %8496 }
 0x5be   : > { %16073 = vst [vmem:[#allocation96_spill] sm:$0xff] %v13145_v59 }
 0x5c0   : > { %8746 = vrot.lane.b32.xlu1 %v8745_v49, %s9346_s14  ;;  %v8765_v49 = vpack.i.bf16 %v12680_v44, %v12752_v13  ;;  %v8770_v44 = vpack.i.bf16 %v12677_v61, %v13145_v59 }
 0x5c1   : > { %8741 = vrot.lane.b32.xlu0 %v8740_v24, %s9349_s13  ;;  %v8760_v24 = vpack.i.bf16 %v13077_v6, %v12708_v35 }
 0x5c4   : > { %8756 = vrot.lane.b32.xlu1 %v8755_v60, %s9349_s13  ;;  %v8775_v60 = vpack.i.bf16 %v13086_v19, %v12711_v10  ;;  %v13166_v19 = vpop.permute.xlu1 %8506 }
 0x5c5   : > { %8751 = vrot.lane.b32.xlu0 %v8750_v27, %s9348_s12  ;;  %v13154_v27 = vsel %vm526_vm1, %v3958_v31, %v3957_v16  ;;  %v13169_v16 = vpop.permute.xlu0 %8501  ;;  %v8795_v31 = vpack.i.bf16 %v12708_v35, %v12793_v50 }
 0x5c6   : > { %16074 = vst [vmem:[#allocation97_spill] sm:$0xff] %v13154_v27 }
 0x5c8   : > { %8766 = vrot.lane.b32.xlu1 %v8765_v49, %s9348_s12  ;;  %v8785_v49 = vpack.i.bf16 %v12674_v25, %v13154_v27 }
 0x5c9   : > { %8761 = vrot.lane.b32.xlu0 %v8760_v24, %s9346_s14  ;;  %v8780_v24 = vpack.i.bf16 %v12683_v23, %v12749_v57  ;;  %v8805_v23 = vpack.i.bf16 %v13120_v29, %v12767_v36  ;;  %v8810_v29 = vpack.i.bf16 %v12711_v10, %v12790_v58 }
 0x5cc   : > { %8776 = vrot.lane.b32.xlu1 %v8775_v60, %s9346_s14  ;;  %v8790_v60 = vpack.i.bf16 %v13111_v42, %v12764_v2 }
 0x5cd   : > { %8771 = vrot.lane.b32.xlu0 %v8770_v44, %s9349_s13  ;;  %v13180_v44 = vpop.permute.xlu1 %8511 }
 0x5d0   : > { %8786 = vrot.lane.b32.xlu1 %v8785_v49, %s9349_s13  ;;  %v13182_v49 = vpop.permute.xlu0 %8516 }
 0x5d1   : > { %8781 = vrot.lane.b32.xlu0 %v8780_v24, %s9348_s12  ;;  %v8800_v24 = vpack.i.bf16 %v12752_v13, %v12813_v56  ;;  %v8825_v13 = vpack.i.bf16 %v12764_v2, %v16075_v55 }
 0x5d4   : > { %8796 = vrot.lane.b32.xlu1 %v8795_v31, %s9348_s12  ;;  %v8815_v31 = vpack.i.bf16 %v12749_v57, %v12824_v20  ;;  %v16076_v20 = vld [vmem:[#allocation53_spill] sm:$0xff] }
 0x5d5   : > { %8791 = vrot.lane.b32.xlu0 %v8790_v60, %s9346_s14 }
 0x5d8   : > { %8806 = vrot.lane.b32.xlu1 %v8805_v23, %s9346_s14  ;;  %v8374_v23 = vunpack.i.h.bf16 %v12952_v4 }
 0x5d9   : > { %8801 = vrot.lane.b32.xlu0 %v8800_v24, %s9349_s13  ;;  %v8373_v24 = vunpack.i.l.bf16 %v12952_v4 }
 0x5da   : > { %v8532_v35 = vpop.permute.xlu1 %8531 }
 0x5db   : > { %v8534_v25 = vunpack.i.h.bf16 %v8532_v35  ;;  %v8533_v60 = vunpack.i.l.bf16 %v8532_v35  ;;  %v8522_v61 = vpop.permute.xlu0 %8521 }
 0x5dc   : > { %v8524_v42 = vunpack.i.h.bf16 %v8522_v61  ;;  %v8523_v6 = vunpack.i.l.bf16 %v8522_v61  ;;  %8816 = vrot.lane.b32.xlu1 %v8815_v31, %s9349_s13  ;;  %v8820_v61 = vpack.i.bf16 %v13145_v59, %v12807_v30  ;;  %v8835_v30 = vpack.i.bf16 %v13154_v27, %v12810_v41 }
 0x5dd   : > { %8811 = vrot.lane.b32.xlu0 %v8810_v29, %s9348_s12 }
 0x5de   : > { %v4633_v35 = vsel %vm1655_vm11, %v12793_v50, %v8524_v42  ;;  %v8537_v57 = vpop.permute.xlu1 %8536  ;;  %v4729_v10 = vsel %vm1655_vm11, %v16076_v20, %v8523_v6  ;;  %v8383_v6 = vunpack.i.l.bf16 %v12972_v21 }
 0x5df   : > { %v13204_v31 = vpop.permute.xlu0 %8526  ;;  %v4761_v2 = vsel %vm2986_vm13, %v4729_v10, %v8533_v60  ;;  %v4665_v29 = vsel %vm2986_vm13, %v4633_v35, %v8534_v25  ;;  %v8539_v42 = vunpack.i.h.bf16 %v8537_v57  ;;  %v8538_v22 = vunpack.i.l.bf16 %v8537_v57  ;;  %v16077_v25 = vld [vmem:[#allocation80_spill] sm:$0xff] }
 0x5e0   : > { %8826 = vrot.lane.b32.xlu1 %v8825_v13, %s9348_s12  ;;  %v4793_v4 = vsel %vm3019_vm14, %v4761_v2, %v8373_v24  ;;  %v4697_v56 = vsel %vm3019_vm14, %v4665_v29, %v8374_v23  ;;  %v8840_v13 = vpack.i.bf16 %v12767_v36, %v16077_v25  ;;  %v8830_v23 = vpack.i.bf16 %v12793_v50, %v16076_v20  ;;  %v16078_v24 = vld [vmem:[#allocation63_spill] sm:$0xff] }
 0x5e1   : > { %8821 = vrot.lane.b32.xlu0 %v8820_v61, %s9346_s14  ;;  %4996 = vmatprep.mubr.f32.mxu0 %v4793_v4  ;;  %v8845_v57 = vpack.i.bf16 %v12790_v58, %v16078_v24  ;;  %v8379_v10 = vunpack.i.h.bf16 %v12954_v53  ;;  %v8393_v61 = vunpack.i.l.bf16 %v12986_v1  ;;  %v8378_v29 = vunpack.i.l.bf16 %v12954_v53 }
 0x5e2   : > { %4997 = vmatmul.mubr.f32.vlgmr.msra.gmra.mrb[76].mxu0 %v4697_v56  ;;  %v13215_v60 = vpop.permute.xlu1 %8541  ;;  %v8403_v36 = vunpack.i.l.bf16 %v13006_v37  ;;  %v4730_v20 = vsel %vm1655_vm11, %v16078_v24, %v8538_v22  ;;  %v4634_v50 = vsel %vm1655_vm11, %v12790_v58, %v8539_v42  ;;  %v8404_v42 = vunpack.i.h.bf16 %v13006_v37 }
 0x5e3   : > { %v8547_v35 = vpop.permute.xlu0 %8546  ;;  %v13225_v41 = vpop.f32.mrb[52].mxu1 }
 0x5e4   : > { %16079 = vst [vmem:[#allocation22_spill] sm:$0xff] %v13225_v41  ;;  %v8549_v2 = vunpack.i.h.bf16 %v8547_v35  ;;  %v8548_v56 = vunpack.i.l.bf16 %v8547_v35  ;;  %8836 = vrot.lane.b32.xlu1 %v8835_v30, %s9346_s14  ;;  %v13230_v4 = vpop.f32.mrb[53].mxu1  ;;  %v8384_v41 = vunpack.i.h.bf16 %v12972_v21  ;;  %v16081_v35 = vld [vmem:[#allocation40_spill] sm:$0xff]  ;;  %v8398_v21 = vunpack.i.l.bf16 %v12989_v12 }
 0x5e5   : > { %16080 = vst [vmem:[#allocation29_spill] sm:$0xff] %v13230_v4  ;;  %8831 = vrot.lane.b32.xlu0 %v8830_v23, %s9349_s13  ;;  %v4731_v59 = vsel %vm1655_vm11, %v16081_v35, %v8383_v6  ;;  %v8388_v4 = vunpack.i.l.bf16 %v12968_v40  ;;  %v8394_v23 = vunpack.i.h.bf16 %v12986_v1  ;;  %v8408_v6 = vunpack.i.l.bf16 %v12998_v5 }
 0x5e6   : > { %v13238_v27 = vpop.permute.xlu1 %8556  ;;  %v4762_v30 = vsel %vm2986_vm13, %v4730_v20, %v8548_v56  ;;  %v4666_v53 = vsel %vm2986_vm13, %v4634_v50, %v8549_v2  ;;  %v4763_v24 = vsel %vm2986_vm13, %v4731_v59, %v8393_v61  ;;  %v8389_v2 = vunpack.i.h.bf16 %v12968_v40 }
 0x5e7   : > { %v13246_v63 = vpop.permute.xlu0 %8551  ;;  %v4794_v22 = vsel %vm3019_vm14, %v4762_v30, %v8378_v29  ;;  %v4698_v58 = vsel %vm3019_vm14, %v4666_v53, %v8379_v10  ;;  %v4795_v1 = vsel %vm3019_vm14, %v4763_v24, %v8403_v36  ;;  %v4635_v37 = vsel %vm1655_vm11, %v16075_v55, %v8384_v41  ;;  %v16082_v36 = vld [vmem:[#allocation62_spill] sm:$0xff] }
 0x5e8   : > { %5001 = vmatprep.mubr.f32.mxu0 %v4794_v22  ;;  %8846 = vrot.lane.b32.xlu1 %v8845_v57, %s9349_s13  ;;  %v13258_v56 = vpop.f32.mrb[54].mxu1  ;;  %v8399_v57 = vunpack.i.h.bf16 %v12989_v12  ;;  %v8413_v59 = vunpack.i.l.bf16 %v13020_v38  ;;  %v4667_v29 = vsel %vm2986_vm13, %v4635_v37, %v8394_v23  ;;  %v4732_v40 = vsel %vm1655_vm11, %v16082_v36, %v8388_v4 }
 0x5e9   : > { %8841 = vrot.lane.b32.xlu0 %v8840_v13, %s9348_s12  ;;  %5002 = vmatmul.mubr.f32.gmra.mrb[78].mxu0 %v4698_v58  ;;  %v13266_v61 = vpop.f32.mrb[55].mxu1  ;;  %v8409_v20 = vunpack.i.h.bf16 %v12998_v5  ;;  %v8423_v50 = vunpack.i.l.bf16 %v13032_v43  ;;  %v4699_v30 = vsel %vm3019_vm14, %v4667_v29, %v8404_v42  ;;  %v4764_v55 = vsel %vm2986_vm13, %v4732_v40, %v8398_v21  ;;  %v16083_v21 = vld [vmem:[#allocation83_spill] sm:$0xff] }
 0x5ea   : > { %5006 = vmatprep.mubr.f32.mxu0 %v4795_v1  ;;  %v13260_v10 = vpop.permute.xlu1 %8566  ;;  %v8433_v12 = vunpack.i.l.bf16 %v13054_v48  ;;  %v4796_v41 = vsel %vm3019_vm14, %v4764_v55, %v8408_v6  ;;  %v8414_v53 = vunpack.i.h.bf16 %v13020_v38  ;;  %v4636_v4 = vsel %vm1655_vm11, %v16077_v25, %v8389_v2 }
 0x5eb   : > { %v13268_v13 = vpop.permute.xlu0 %8561  ;;  %v8418_v5 = vunpack.i.l.bf16 %v13015_v34  ;;  %v8424_v23 = vunpack.i.h.bf16 %v13032_v43  ;;  %v4668_v58 = vsel %vm2986_vm13, %v4636_v4, %v8399_v57  ;;  %v4733_v42 = vsel %vm1655_vm11, %v16083_v21, %v8413_v59 }
 0x5ec   : > { %v8428_v24 = vunpack.i.l.bf16 %v13035_v3  ;;  %v8434_v38 = vunpack.i.h.bf16 %v13054_v48  ;;  %v13293_v6 = vpop.f32.mrb[56].mxu1  ;;  %v4700_v1 = vsel %vm3019_vm14, %v4668_v58, %v8409_v20  ;;  %v4765_v25 = vsel %vm2986_vm13, %v4733_v42, %v8423_v50  ;;  %v16084_v50 = vld [vmem:[#allocation64_spill] sm:$0xff] }
 0x5ed   : > { %5007 = vmatmul.mubr.f32.gmra.mrb[80].mxu0 %v4699_v30  ;;  %v8438_v2 = vunpack.i.l.bf16 %v13049_v62  ;;  %v13298_v43 = vpop.f32.mrb[57].mxu1  ;;  %v4797_v37 = vsel %vm3019_vm14, %v4765_v25, %v8433_v12  ;;  %v8419_v57 = vunpack.i.h.bf16 %v13015_v34  ;;  %v4637_v48 = vsel %vm1655_vm11, %v12272_v0, %v8414_v53 }
 0x5ee   : > { %5011 = vmatprep.mubr.f32.mxu0 %v4796_v41  ;;  %v13280_v35 = vpop.permute.xlu1 %8576  ;;  %v8429_v29 = vunpack.i.h.bf16 %v13035_v3  ;;  %v8443_v36 = vunpack.i.l.bf16 %v13069_v51  ;;  %v4669_v20 = vsel %vm2986_vm13, %v4637_v48, %v8424_v23  ;;  %v4734_v30 = vsel %vm1655_vm11, %v16084_v50, %v8418_v5 }
 0x5ef   : > { %v13286_v22 = vpop.permute.xlu0 %8571  ;;  %v8439_v55 = vunpack.i.h.bf16 %v13049_v62  ;;  %v8453_v34 = vunpack.i.l.bf16 %v13083_v28  ;;  %v4701_v12 = vsel %vm3019_vm14, %v4669_v20, %v8434_v38  ;;  %v4766_v41 = vsel %vm2986_vm13, %v4734_v30, %v8428_v24  ;;  %v16085_v38 = vld [vmem:[#allocation66_spill] sm:$0xff] }
 0x5f0   : > { %v8463_v0 = vunpack.i.l.bf16 %v13103_v17  ;;  %v4798_v53 = vsel %vm3019_vm14, %v4766_v41, %v8438_v2  ;;  %v8444_v4 = vunpack.i.h.bf16 %v13069_v51  ;;  %v4638_v62 = vsel %vm1655_vm11, %v12269_v52, %v8419_v57 }
 0x5f1   : > { %5012 = vmatmul.mubr.f32.gmra.mrb[82].mxu0 %v4700_v1  ;;  %v8448_v58 = vunpack.i.l.bf16 %v13066_v8  ;;  %v8454_v21 = vunpack.i.h.bf16 %v13083_v28  ;;  %v4670_v24 = vsel %vm2986_vm13, %v4638_v62, %v8429_v29  ;;  %v4735_v1 = vsel %vm1655_vm11, %v16085_v38, %v8443_v36  ;;  %v16086_v29 = vld [vmem:[#allocation41_spill] sm:$0xff] }
 0x5f2   : > { %5016 = vmatprep.mubr.f32.mxu0 %v4797_v37  ;;  %v13302_v59 = vpop.permute.xlu1 %8586  ;;  %v13318_v3 = vpop.f32.mrb[58].mxu1  ;;  %v8458_v51 = vunpack.i.l.bf16 %v13088_v18  ;;  %v8464_v25 = vunpack.i.h.bf16 %v13103_v17  ;;  %v4702_v2 = vsel %vm3019_vm14, %v4670_v24, %v8439_v55  ;;  %v4767_v37 = vsel %vm2986_vm13, %v4735_v1, %v8453_v34  ;;  %v16087_v55 = vld [vmem:[#allocation4_spill] sm:$0xff] }
 0x5f3   : > { %v13308_v40 = vpop.permute.xlu0 %8581  ;;  %v13322_v23 = vpop.f32.mrb[59].mxu1  ;;  %v8468_v52 = vunpack.i.l.bf16 %v13100_v14  ;;  %v4799_v28 = vsel %vm3019_vm14, %v4767_v37, %v8463_v0  ;;  %v8449_v57 = vunpack.i.h.bf16 %v13066_v8  ;;  %v4639_v36 = vsel %vm1655_vm11, %v16086_v29, %v8444_v4 }
 0x5f4   : > { %v8459_v20 = vunpack.i.h.bf16 %v13088_v18  ;;  %v8473_v17 = vunpack.i.l.bf16 %v13122_v15  ;;  %v4671_v30 = vsel %vm2986_vm13, %v4639_v36, %v8454_v21  ;;  %v4736_v34 = vsel %vm1655_vm11, %v16087_v55, %v8448_v58 }
 0x5f5   : > { %5017 = vmatmul.mubr.f32.gmra.mrb[84].mxu0 %v4701_v12  ;;  %v8469_v12 = vunpack.i.h.bf16 %v13100_v14  ;;  %v8483_v8 = vunpack.i.l.bf16 %v13134_v33  ;;  %v4703_v0 = vsel %vm3019_vm14, %v4671_v30, %v8464_v25  ;;  %v8493_v18 = vunpack.i.l.bf16 %v13156_v11  ;;  %v16088_v14 = vld [vmem:[#allocation81_spill] sm:$0xff]  ;;  %v16089_v30 = vld [vmem:[#allocation39_spill] sm:$0xff] }
 0x5f6   : > { %5021 = vmatprep.mubr.f32.mxu0 %v4798_v53  ;;  %v13324_v5 = vpop.permute.xlu1 %8596  ;;  %v4768_v53 = vsel %vm2986_vm13, %v4736_v34, %v8458_v51  ;;  %v8474_v21 = vunpack.i.h.bf16 %v13122_v15  ;;  %v4640_v24 = vsel %vm1655_vm11, %v16088_v14, %v8449_v57  ;;  %v8478_v38 = vunpack.i.l.bf16 %v13117_v7 }
 0x5f7   : > { %v13330_v42 = vpop.permute.xlu0 %8591  ;;  %v4800_v62 = vsel %vm3019_vm14, %v4768_v53, %v8468_v52  ;;  %v8484_v1 = vunpack.i.h.bf16 %v13134_v33  ;;  %v4672_v25 = vsel %vm2986_vm13, %v4640_v24, %v8459_v20  ;;  %v8488_v37 = vunpack.i.l.bf16 %v13137_v47 }
 0x5f8   : > { %v13355_v41 = vpop.f32.mrb[60].mxu1  ;;  %v8494_v15 = vunpack.i.h.bf16 %v13156_v11  ;;  %v8498_v29 = vunpack.i.l.bf16 %v13151_v9  ;;  %v8503_v33 = vunpack.i.l.bf16 %v13169_v16  ;;  %v4641_v55 = vsel %vm1655_vm11, %v16089_v30, %v8474_v21 }
 0x5f9   : > { %5022 = vmatmul.mubr.f32.gmra.mrb[86].mxu0 %v4702_v2  ;;  %v13360_v4 = vpop.f32.mrb[61].mxu1  ;;  %v4737_v2 = vsel %vm1655_vm11, %v12587_v26, %v8473_v17  ;;  %v8479_v26 = vunpack.i.h.bf16 %v13117_v7  ;;  %v8513_v17 = vunpack.i.l.bf16 %v13180_v44  ;;  %v8489_v34 = vunpack.i.h.bf16 %v13137_v47 }
 0x5fa   : > { %5026 = vmatprep.mubr.f32.mxu0 %v4799_v28  ;;  %v13342_v48 = vpop.permute.xlu1 %8606  ;;  %v4704_v28 = vsel %vm3019_vm14, %v4672_v25, %v8469_v12  ;;  %v4769_v57 = vsel %vm2986_vm13, %v4737_v2, %v8483_v8  ;;  %v4673_v8 = vsel %vm2986_vm13, %v4641_v55, %v8484_v1  ;;  %v8504_v7 = vunpack.i.h.bf16 %v13169_v16  ;;  %v16091_v16 = vld [vmem:[#allocation54_spill] sm:$0xff] }
 0x5fb   : > { %v13348_v50 = vpop.permute.xlu0 %8601  ;;  %v4801_v20 = vsel %vm3019_vm14, %v4769_v57, %v8493_v18  ;;  %v8499_v18 = vunpack.i.h.bf16 %v13151_v9  ;;  %v8514_v24 = vunpack.i.h.bf16 %v13180_v44  ;;  %v8518_v21 = vunpack.i.l.bf16 %v13182_v49 }
 0x5fc   : > { %v13377_v52 = vpop.f32.mrb[62].mxu1  ;;  %v4642_v2 = vsel %vm1655_vm11, %v16091_v16, %v8479_v26  ;;  %v8543_v26 = vunpack.i.l.bf16 %v13215_v60 }
 0x5fd   : > { %5027 = vmatmul.mubr.f32.gmra.mrb[88].mxu0 %v4703_v0  ;;  %v13383_v36 = vpop.f32.mrb[63].mxu1  ;;  %v16090_v0 = vld [vmem:[#allocation5_spill] sm:$0xff]  ;;  %v4674_v57 = vsel %vm2986_vm13, %v4642_v2, %v8489_v34  ;;  %v8529_v34 = vunpack.i.h.bf16 %v13204_v31  ;;  %v8573_v2 = vunpack.i.l.bf16 %v13286_v22 }
 0x5fe   : > { %5031 = vmatprep.mubr.f32.mxu0 %v4800_v62  ;;  %v13364_v58 = vpop.permute.xlu1 %8616  ;;  %v4738_v53 = vsel %vm1655_vm11, %v16090_v0, %v8478_v38  ;;  %v4705_v62 = vsel %vm3019_vm14, %v4673_v8, %v8494_v15  ;;  %v4739_v38 = vsel %vm1655_vm11, %v12646_v39, %v8503_v33  ;;  %v8508_v15 = vunpack.i.l.bf16 %v13166_v19 }
 0x5ff   : > { %v13370_v51 = vpop.permute.xlu0 %8611  ;;  %v4770_v14 = vsel %vm2986_vm13, %v4738_v53, %v8488_v37  ;;  %v4771_v44 = vsel %vm2986_vm13, %v4739_v38, %v8513_v17  ;;  %v8509_v37 = vunpack.i.h.bf16 %v13166_v19  ;;  %v8519_v39 = vunpack.i.h.bf16 %v13182_v49 }
 0x600   : > { %v13404_v47 = vpop.f32.mrb[64].mxu1  ;;  %v4802_v1 = vsel %vm3019_vm14, %v4770_v14, %v8498_v29  ;;  %v8528_v29 = vunpack.i.l.bf16 %v13204_v31  ;;  %v4706_v33 = vsel %vm3019_vm14, %v4674_v57, %v8499_v18  ;;  %v8553_v17 = vunpack.i.l.bf16 %v13246_v63 }
 0x601   : > { %5032 = vmatmul.mubr.f32.gmra.mrb[90].mxu0 %v4704_v28  ;;  %v13409_v25 = vpop.f32.mrb[65].mxu1  ;;  %v4803_v19 = vsel %vm3019_vm14, %v4771_v44, %v8518_v21  ;;  %v8544_v8 = vunpack.i.h.bf16 %v13215_v60  ;;  %v4740_v18 = vsel %vm1655_vm11, %v12649_v45, %v8508_v15  ;;  %v8558_v14 = vunpack.i.l.bf16 %v13238_v27 }
 0x602   : > { %5036 = vmatprep.mubr.f32.mxu0 %v4801_v20  ;;  %v13388_v11 = vpop.permute.xlu1 %8626  ;;  %v16092_v20 = vld [vmem:[#allocation38_spill] sm:$0xff]  ;;  %v4772_v60 = vsel %vm2986_vm13, %v4740_v18, %v8528_v29  ;;  %v8563_v38 = vunpack.i.l.bf16 %v13268_v13  ;;  %v4741_v16 = vsel %vm1655_vm11, %v12724_v54, %v8553_v17  ;;  %v8569_v15 = vunpack.i.h.bf16 %v13260_v10 }
 0x603   : > { %v13393_v12 = vpop.permute.xlu0 %8621  ;;  %v4643_v30 = vsel %vm1655_vm11, %v16092_v20, %v8504_v7  ;;  %v16093_v7 = vld [vmem:[#allocation82_spill] sm:$0xff]  ;;  %v4804_v45 = vsel %vm3019_vm14, %v4772_v60, %v8543_v26  ;;  %v8564_v29 = vunpack.i.h.bf16 %v13268_v13  ;;  %v4773_v54 = vsel %vm2986_vm13, %v4741_v16, %v8558_v14 }
 0x604   : > { %v4675_v55 = vsel %vm2986_vm13, %v4643_v30, %v8514_v24  ;;  %v13434_v0 = vpop.f32.mrb[66].mxu1  ;;  %v8554_v24 = vunpack.i.h.bf16 %v13246_v63  ;;  %v16094_v20 = vld [vmem:[#allocation42_spill] sm:$0xff]  ;;  %v8578_v26 = vunpack.i.l.bf16 %v13280_v35  ;;  %v8583_v17 = vunpack.i.l.bf16 %v13308_v40 }
 0x605   : > { %5037 = vmatmul.mubr.f32.gmra.mrb[92].mxu0 %v4705_v62  ;;  %v4644_v62 = vsel %vm1655_vm11, %v16093_v7, %v8509_v37  ;;  %v13444_v31 = vpop.f32.mrb[67].mxu1  ;;  %v4707_v21 = vsel %vm3019_vm14, %v4675_v55, %v8519_v39  ;;  %v8559_v37 = vunpack.i.h.bf16 %v13238_v27  ;;  %v4646_v7 = vsel %vm1655_vm11, %v12369_v46, %v8569_v15 }
 0x606   : > { %5041 = vmatprep.mubr.f32.mxu0 %v4802_v1  ;;  %v13411_v9 = vpop.permute.xlu1 %8636  ;;  %v8568_v1 = vunpack.i.l.bf16 %v13260_v10  ;;  %v4676_v44 = vsel %vm2986_vm13, %v4644_v62, %v8529_v34  ;;  %v4645_v30 = vsel %vm1655_vm11, %v16094_v20, %v8554_v24  ;;  %v4805_v10 = vsel %vm3019_vm14, %v4773_v54, %v8563_v38  ;;  %v16095_v38 = vld [vmem:[#allocation71_spill] sm:$0xff] }
 0x607   : > { %v13418_v28 = vpop.permute.xlu0 %8631  ;;  %v4708_v39 = vsel %vm3019_vm14, %v4676_v44, %v8544_v8  ;;  %v8579_v34 = vunpack.i.h.bf16 %v13280_v35  ;;  %v4677_v18 = vsel %vm2986_vm13, %v4645_v30, %v8559_v37  ;;  %v8588_v62 = vunpack.i.l.bf16 %v13302_v59  ;;  %v16096_v54 = vld [vmem:[#allocation55_spill] sm:$0xff] }
 0x608   : > { %v13469_v27 = vpop.f32.mrb[68].mxu1  ;;  %v4709_v14 = vsel %vm3019_vm14, %v4677_v18, %v8564_v29  ;;  %v8593_v60 = vunpack.i.l.bf16 %v13330_v42  ;;  %v4743_v46 = vsel %vm1655_vm11, %v16095_v38, %v8583_v17  ;;  %v8599_v44 = vunpack.i.h.bf16 %v13324_v5  ;;  %v16097_v17 = vld [vmem:[#allocation90_spill] sm:$0xff]  ;;  %v16099_v38 = vld [vmem:[#allocation72_spill] sm:$0xff] }
 0x609   : > { %5042 = vmatmul.mubr.f32.gmra.mrb[94].mxu0 %v4706_v33  ;;  %v8574_v33 = vunpack.i.h.bf16 %v13286_v22  ;;  %v13474_v13 = vpop.f32.mrb[69].mxu1  ;;  %v8604_v29 = vunpack.i.h.bf16 %v13348_v50  ;;  %v8608_v30 = vunpack.i.l.bf16 %v13342_v48 }
 0x60a   : > { %5046 = vmatprep.mubr.f32.mxu0 %v4803_v19  ;;  %v13431_v49 = vpop.permute.xlu1 %8646  ;;  %v4742_v19 = vsel %vm1655_vm11, %v12846_v32, %v8568_v1  ;;  %v8584_v32 = vunpack.i.h.bf16 %v13308_v40 }
 0x60b   : > { %v13436_v53 = vpop.permute.xlu0 %8641  ;;  %v4774_v55 = vsel %vm2986_vm13, %v4742_v19, %v8573_v2  ;;  %v4678_v24 = vsel %vm2986_vm13, %v4646_v7, %v8574_v33  ;;  %v8589_v2 = vunpack.i.h.bf16 %v13302_v59  ;;  %v4775_v33 = vsel %vm2986_vm13, %v4743_v46, %v8588_v62  ;;  %v16098_v7 = vld [vmem:[#allocation43_spill] sm:$0xff] }
 0x60c   : > { %v13491_v35 = vpop.f32.mrb[70].mxu1  ;;  %v4806_v1 = vsel %vm3019_vm14, %v4774_v55, %v8578_v26  ;;  %v4710_v15 = vsel %vm3019_vm14, %v4678_v24, %v8579_v34  ;;  %v4647_v20 = vsel %vm1655_vm11, %v16096_v54, %v8584_v32  ;;  %v8613_v26 = vunpack.i.l.bf16 %v13370_v51 }
 0x60d   : > { %5047 = vmatmul.mubr.f32.gmra.mrb[96].mxu0 %v4707_v21  ;;  %v8598_v21 = vunpack.i.l.bf16 %v13324_v5  ;;  %v13497_v16 = vpop.f32.mrb[71].mxu1  ;;  %v4807_v5 = vsel %vm3019_vm14, %v4775_v33, %v8593_v60  ;;  %v8609_v55 = vunpack.i.h.bf16 %v13342_v48  ;;  %v4679_v18 = vsel %vm2986_vm13, %v4647_v20, %v8589_v2  ;;  %v16100_v20 = vld [vmem:[#allocation3_spill] sm:$0xff] }
 0x60e   : > { %5051 = vmatprep.mubr.f32.mxu0 %v4804_v45  ;;  %v13454_v63 = vpop.permute.xlu1 %8656  ;;  %v8603_v45 = vunpack.i.l.bf16 %v13348_v50  ;;  %v4648_v62 = vsel %vm1655_vm11, %v16098_v7, %v8599_v44  ;;  %v8618_v32 = vunpack.i.l.bf16 %v13364_v58  ;;  %v8628_v60 = vunpack.i.l.bf16 %v13388_v11 }
 0x60f   : > { %v13459_v57 = vpop.permute.xlu0 %8651  ;;  %v4745_v46 = vsel %vm1655_vm11, %v16099_v38, %v8613_v26  ;;  %v8629_v44 = vunpack.i.h.bf16 %v13388_v11  ;;  %v8634_v33 = vunpack.i.h.bf16 %v13418_v28  ;;  %v8638_v26 = vunpack.i.l.bf16 %v13411_v9 }
 0x610   : > { %v13513_v59 = vpop.f32.mrb[72].mxu1  ;;  %v4777_v54 = vsel %vm2986_vm13, %v4745_v46, %v8618_v32  ;;  %v16103_v46 = vld [vmem:[#allocation73_spill] sm:$0xff] }
 0x611   : > { %5052 = vmatmul.mubr.f32.gmra.mrb[98].mxu0 %v4708_v39  ;;  %v8594_v39 = vunpack.i.h.bf16 %v13330_v42  ;;  %v13518_v42 = vpop.f32.mrb[73].mxu1 }
 0x612   : > { %5056 = vmatprep.mubr.f32.mxu0 %v4805_v10  ;;  %v13476_v22 = vpop.permute.xlu1 %8666  ;;  %v4744_v10 = vsel %vm1655_vm11, %v16097_v17, %v8598_v21  ;;  %v4680_v21 = vsel %vm2986_vm13, %v4648_v62, %v8604_v29  ;;  %v8624_v29 = vunpack.i.h.bf16 %v13393_v12  ;;  %v16101_v17 = vld [vmem:[#allocation91_spill] sm:$0xff]  ;;  %v16102_v62 = vld [vmem:[#allocation56_spill] sm:$0xff] }
 0x613   : > { %v13480_v8 = vpop.permute.xlu0 %8661  ;;  %v4776_v19 = vsel %vm2986_vm13, %v4744_v10, %v8603_v45  ;;  %v4711_v24 = vsel %vm3019_vm14, %v4679_v18, %v8594_v39  ;;  %v8633_v45 = vunpack.i.l.bf16 %v13418_v28  ;;  %v4712_v39 = vsel %vm3019_vm14, %v4680_v21, %v8609_v55 }
 0x614   : > { %v4808_v48 = vsel %vm3019_vm14, %v4776_v19, %v8608_v30  ;;  %v4746_v10 = vsel %vm1655_vm11, %v16101_v17, %v8628_v60  ;;  %v8639_v55 = vunpack.i.h.bf16 %v13411_v9  ;;  %v4650_v32 = vsel %vm1655_vm11, %v16102_v62, %v8629_v44 }
 0x615   : > { %5057 = vmatmul.mubr.f32.gmra.mrb[100].mxu0 %v4709_v14  ;;  %v8614_v14 = vunpack.i.h.bf16 %v13370_v51  ;;  %v8619_v51 = vunpack.i.h.bf16 %v13364_v58  ;;  %v4778_v19 = vsel %vm2986_vm13, %v4746_v10, %v8633_v45  ;;  %v4682_v60 = vsel %vm2986_vm13, %v4650_v32, %v8634_v33  ;;  %v16106_v32 = vld [vmem:[#allocation65_spill] sm:$0xff] }
 0x616   : > { %5061 = vmatprep.mubr.f32.mxu0 %v4806_v1  ;;  %v13499_v40 = vpop.permute.xlu1 %8676  ;;  %v8623_v1 = vunpack.i.l.bf16 %v13393_v12  ;;  %v4810_v38 = vsel %vm3019_vm14, %v4778_v19, %v8638_v26  ;;  %v8668_v17 = vunpack.i.l.bf16 %v13476_v22 }
 0x617   : > { %v13503_v37 = vpop.permute.xlu0 %8671  ;;  %v4649_v30 = vsel %vm1655_vm11, %v16100_v20, %v8614_v14  ;;  %v8648_v14 = vunpack.i.l.bf16 %v13431_v49  ;;  %v8654_v20 = vunpack.i.h.bf16 %v13459_v57 }
 0x618   : > { %v13553_v58 = vpop.f32.mrb[74].mxu1  ;;  %v4809_v11 = vsel %vm3019_vm14, %v4777_v54, %v8623_v1  ;;  %v4681_v7 = vsel %vm2986_vm13, %v4649_v30, %v8619_v51  ;;  %v8658_v1 = vunpack.i.l.bf16 %v13454_v63  ;;  %v8663_v51 = vunpack.i.l.bf16 %v13480_v8 }
 0x619   : > { %5062 = vmatmul.mubr.f32.gmra.mrb[102].mxu0 %v4710_v15  ;;  %v13558_v12 = vpop.f32.mrb[75].mxu1  ;;  %v4713_v21 = vsel %vm3019_vm14, %v4681_v7, %v8624_v29  ;;  %v8659_v29 = vunpack.i.h.bf16 %v13454_v63  ;;  %v4714_v54 = vsel %vm3019_vm14, %v4682_v60, %v8639_v55  ;;  %v8664_v30 = vunpack.i.h.bf16 %v13480_v8  ;;  %v16105_v63 = vld [vmem:[#allocation92_spill] sm:$0xff] }
 0x61a   : > { %5066 = vmatprep.mubr.f32.mxu0 %v4807_v5  ;;  %v13520_v50 = vpop.permute.xlu1 %8686  ;;  %v8643_v5 = vunpack.i.l.bf16 %v13436_v53  ;;  %v8673_v10 = vunpack.i.l.bf16 %v13503_v37  ;;  %v4748_v19 = vsel %vm1655_vm11, %v16105_v63, %v8658_v1  ;;  %v8669_v8 = vunpack.i.h.bf16 %v13476_v22 }
 0x61b   : > { %v13524_v34 = vpop.permute.xlu0 %8681 }
 0x61c   : > { %v4747_v45 = vsel %vm1655_vm11, %v16103_v46, %v8643_v5  ;;  %v16104_v5 = vld [vmem:[#allocation84_spill] sm:$0xff]  ;;  %v16107_v46 = vld [vmem:[#allocation74_spill] sm:$0xff] }
 0x61d   : > { %5067 = vmatmul.mubr.f32.gmra.mrb[104].mxu0 %v4711_v24  ;;  %v8644_v24 = vunpack.i.h.bf16 %v13436_v53  ;;  %v4779_v26 = vsel %vm2986_vm13, %v4747_v45, %v8648_v14  ;;  %v4652_v14 = vsel %vm1655_vm11, %v16106_v32, %v8659_v29  ;;  %v4749_v45 = vsel %vm1655_vm11, %v16107_v46, %v8673_v10  ;;  %v16108_v10 = vld [vmem:[#allocation6_spill] sm:$0xff]  ;;  %v16111_v46 = vld [vmem:[#allocation75_spill] sm:$0xff] }
 0x61e   : > { %5071 = vmatprep.mubr.f32.mxu0 %v4808_v48  ;;  %v13539_v2 = vpop.permute.xlu1 %8696  ;;  %v8653_v48 = vunpack.i.l.bf16 %v13459_v57  ;;  %v4780_v57 = vsel %vm2986_vm13, %v4748_v19, %v8663_v51  ;;  %v4684_v1 = vsel %vm2986_vm13, %v4652_v14, %v8664_v30  ;;  %v8679_v29 = vunpack.i.h.bf16 %v13499_v40  ;;  %v16109_v19 = vld [vmem:[#allocation93_spill] sm:$0xff] }
 0x61f   : > { %v13543_v15 = vpop.permute.xlu0 %8691  ;;  %v4812_v22 = vsel %vm3019_vm14, %v4780_v57, %v8668_v17  ;;  %v8698_v63 = vunpack.i.l.bf16 %v13539_v2  ;;  %v16110_v14 = vld [vmem:[#allocation85_spill] sm:$0xff] }
 0x620   : > { %v8693_v51 = vunpack.i.l.bf16 %v13543_v15 }
 0x621   : > { %5072 = vmatmul.mubr.f32.gmra.mrb[106].mxu0 %v4712_v39  ;;  %v8649_v39 = vunpack.i.h.bf16 %v13431_v49  ;;  %v4811_v49 = vsel %vm3019_vm14, %v4779_v26, %v8653_v48  ;;  %v8688_v48 = vunpack.i.l.bf16 %v13520_v50  ;;  %v4716_v26 = vsel %vm3019_vm14, %v4684_v1, %v8669_v8 }
 0x622   : > { %5076 = vmatprep.mubr.f32.mxu0 %v4809_v11  ;;  %v13560_v28 = vpop.permute.xlu1 %8706  ;;  %v13575_v9 = vpop.f32.mrb[76].mxu1  ;;  %v4651_v11 = vsel %vm1655_vm11, %v16104_v5, %v8644_v24  ;;  %v8678_v24 = vunpack.i.l.bf16 %v13499_v40  ;;  %v8684_v5 = vunpack.i.h.bf16 %v13524_v34 }
 0x623   : > { %v13564_v18 = vpop.permute.xlu0 %8701  ;;  %v13581_v44 = vpop.f32.mrb[77].mxu1  ;;  %v4683_v62 = vsel %vm2986_vm13, %v4651_v11, %v8649_v39  ;;  %v8694_v11 = vunpack.i.h.bf16 %v13543_v15  ;;  %v4750_v57 = vsel %vm1655_vm11, %v16109_v19, %v8688_v48  ;;  %v8699_v15 = vunpack.i.h.bf16 %v13539_v2 }
 0x624   : > { %v4715_v60 = vsel %vm3019_vm14, %v4683_v62, %v8654_v20  ;;  %v4781_v17 = vsel %vm2986_vm13, %v4749_v45, %v8678_v24  ;;  %v8703_v40 = vunpack.i.l.bf16 %v13564_v18 }
 0x625   : > { %5077 = vmatmul.mubr.f32.gmra.mrb[108].mxu0 %v4713_v21  ;;  %v8674_v21 = vunpack.i.h.bf16 %v13503_v37 }
 0x626   : > { %5081 = vmatprep.mubr.f32.mxu0 %v4810_v38  ;;  %v13583_v53 = vpop.permute.xlu1 %8716  ;;  %v8683_v38 = vunpack.i.l.bf16 %v13524_v34  ;;  %v4782_v34 = vsel %vm2986_vm13, %v4750_v57, %v8693_v51  ;;  %v4751_v45 = vsel %vm1655_vm11, %v16111_v46, %v8703_v40  ;;  %v16115_v46 = vld [vmem:[#allocation76_spill] sm:$0xff] }
 0x627   : > { %v13587_v33 = vpop.permute.xlu0 %8711  ;;  %v4814_v2 = vsel %vm3019_vm14, %v4782_v34, %v8698_v63 }
 0x629   : > { %5082 = vmatmul.mubr.f32.gmra.mrb[110].mxu0 %v4714_v54  ;;  %v8689_v54 = vunpack.i.h.bf16 %v13520_v50  ;;  %v4813_v50 = vsel %vm3019_vm14, %v4781_v17, %v8683_v38  ;;  %v8718_v38 = vunpack.i.l.bf16 %v13583_v53 }
 0x62a   : > { %5086 = vmatprep.mubr.f32.mxu0 %v4811_v49  ;;  %v13600_v55 = vpop.permute.xlu1 %8726  ;;  %v4653_v49 = vsel %vm1655_vm11, %v16108_v10, %v8674_v21  ;;  %v8708_v21 = vunpack.i.l.bf16 %v13560_v28 }
 0x62b   : > { %v13604_v7 = vpop.permute.xlu0 %8721  ;;  %v4685_v32 = vsel %vm2986_vm13, %v4653_v49, %v8679_v29  ;;  %v4654_v24 = vsel %vm1655_vm11, %v16110_v14, %v8689_v54  ;;  %v8719_v54 = vunpack.i.h.bf16 %v13583_v53  ;;  %v16112_v49 = vld [vmem:[#allocation45_spill] sm:$0xff]  ;;  %v8728_v40 = vunpack.i.l.bf16 %v13600_v55  ;;  %v16113_v53 = vld [vmem:[#allocation94_spill] sm:$0xff] }
 0x62c   : > { %v4717_v1 = vsel %vm3019_vm14, %v4685_v32, %v8684_v5  ;;  %v4686_v48 = vsel %vm2986_vm13, %v4654_v24, %v8694_v11  ;;  %v8723_v51 = vunpack.i.l.bf16 %v13604_v7  ;;  %v8714_v11 = vunpack.i.h.bf16 %v13587_v33  ;;  %v16114_v24 = vld [vmem:[#allocation44_spill] sm:$0xff] }
 0x62d   : > { %5087 = vmatmul.mubr.f32.gmra.mrb[112].mxu0 %v4715_v60  ;;  %v8704_v60 = vunpack.i.h.bf16 %v13564_v18  ;;  %v8709_v18 = vunpack.i.h.bf16 %v13560_v28  ;;  %v4718_v5 = vsel %vm3019_vm14, %v4686_v48, %v8699_v15  ;;  %v8724_v17 = vunpack.i.h.bf16 %v13604_v7 }
 0x62e   : > { %5091 = vmatprep.mubr.f32.mxu0 %v4812_v22  ;;  %v13619_v39 = vpop.f32.mrb[78].mxu1  ;;  %v13621_v37 = vpop.permute.xlu1 %8736  ;;  %v8713_v22 = vunpack.i.l.bf16 %v13587_v33  ;;  %v4783_v10 = vsel %vm2986_vm13, %v4751_v45, %v8708_v21  ;;  %v4752_v19 = vsel %vm1655_vm11, %v16113_v53, %v8718_v38  ;;  %v8729_v34 = vunpack.i.h.bf16 %v13600_v55 }
 0x62f   : > { %v13625_v20 = vpop.permute.xlu0 %8731  ;;  %v13627_v30 = vpop.f32.mrb[79].mxu1  ;;  %v4655_v63 = vsel %vm1655_vm11, %v16112_v49, %v8704_v60  ;;  %v4784_v7 = vsel %vm2986_vm13, %v4752_v19, %v8723_v51  ;;  %v4656_v21 = vsel %vm1655_vm11, %v16114_v24, %v8719_v54  ;;  %v8738_v60 = vunpack.i.l.bf16 %v13621_v37 }
 0x630   : > { %v4815_v28 = vsel %vm3019_vm14, %v4783_v10, %v8713_v22  ;;  %v4687_v14 = vsel %vm2986_vm13, %v4655_v63, %v8709_v18  ;;  %v4688_v38 = vsel %vm2986_vm13, %v4656_v21, %v8724_v17  ;;  %v16118_v21 = vld [vmem:[#allocation67_spill] sm:$0xff] }
 0x631   : > { %5092 = vmatmul.mubr.f32.gmra.mrb[114].mxu0 %v4716_v26  ;;  %v4719_v48 = vsel %vm3019_vm14, %v4687_v14, %v8714_v11  ;;  %v4720_v10 = vsel %vm3019_vm14, %v4688_v38, %v8729_v34 }
 0x632   : > { %5096 = vmatprep.mubr.f32.mxu0 %v4813_v50  ;;  %v13640_v8 = vpop.permute.xlu1 %8746  ;;  %v8733_v50 = vunpack.i.l.bf16 %v13625_v20 }
 0x633   : > { %v13644_v62 = vpop.permute.xlu0 %8741  ;;  %v8748_v22 = vunpack.i.l.bf16 %v13640_v8 }
 0x634   : > { %v8743_v55 = vunpack.i.l.bf16 %v13644_v62  ;;  %v4753_v45 = vsel %vm1655_vm11, %v16115_v46, %v8733_v50  ;;  %v8744_v49 = vunpack.i.h.bf16 %v13644_v62  ;;  %v16116_v50 = vld [vmem:[#allocation86_spill] sm:$0xff] }
 0x635   : > { %5097 = vmatmul.mubr.f32.gmra.mrb[116].mxu0 %v4717_v1  ;;  %v8734_v1 = vunpack.i.h.bf16 %v13625_v20  ;;  %v8739_v20 = vunpack.i.h.bf16 %v13621_v37 }
 0x636   : > { %5101 = vmatprep.mubr.f32.mxu0 %v4814_v2  ;;  %v13659_v29 = vpop.permute.xlu1 %8756  ;;  %v4816_v2 = vsel %vm3019_vm14, %v4784_v7, %v8728_v40  ;;  %v4785_v40 = vsel %vm2986_vm13, %v4753_v45, %v8738_v60  ;;  %v16119_v45 = vld [vmem:[#allocation77_spill] sm:$0xff] }
 0x637   : > { %v8752_v26 = vpop.permute.xlu0 %8751  ;;  %v8758_v53 = vunpack.i.l.bf16 %v13659_v29  ;;  %v4817_v37 = vsel %vm3019_vm14, %v4785_v40, %v8743_v55  ;;  %v8759_v62 = vunpack.i.h.bf16 %v13659_v29 }
 0x638   : > { %v8753_v51 = vunpack.i.l.bf16 %v8752_v26  ;;  %v8754_v63 = vunpack.i.h.bf16 %v8752_v26 }
 0x639   : > { %5102 = vmatmul.mubr.f32.gmra.mrb[118].mxu0 %v4718_v5  ;;  %v8749_v5 = vunpack.i.h.bf16 %v13640_v8  ;;  %v16117_v8 = vld [vmem:[#allocation95_spill] sm:$0xff] }
 0x63a   : > { %5106 = vmatprep.mubr.f32.mxu0 %v4815_v28  ;;  %v13674_v57 = vpop.f32.mrb[80].mxu1  ;;  %v13676_v33 = vpop.permute.xlu1 %8766  ;;  %v4657_v28 = vsel %vm1655_vm11, %v16116_v50, %v8734_v1  ;;  %v4754_v7 = vsel %vm1655_vm11, %v16117_v8, %v8748_v22 }
 0x63b   : > { %v8762_v15 = vpop.permute.xlu0 %8761  ;;  %v13680_v32 = vpop.f32.mrb[81].mxu1  ;;  %v4786_v34 = vsel %vm2986_vm13, %v4754_v7, %v8753_v51  ;;  %v4689_v24 = vsel %vm2986_vm13, %v4657_v28, %v8739_v20  ;;  %v4658_v60 = vsel %vm1655_vm11, %v16118_v21, %v8749_v5  ;;  %v8768_v1 = vunpack.i.l.bf16 %v13676_v33  ;;  %v16120_v28 = vld [vmem:[#allocation46_spill] sm:$0xff]  ;;  %v16122_v21 = vld [vmem:[#allocation68_spill] sm:$0xff] }
 0x63c   : > { %v8763_v19 = vunpack.i.l.bf16 %v8762_v15  ;;  %v4721_v38 = vsel %vm3019_vm14, %v4689_v24, %v8744_v49  ;;  %v4690_v55 = vsel %vm2986_vm13, %v4658_v60, %v8754_v63  ;;  %v4818_v46 = vsel %vm3019_vm14, %v4786_v34, %v8758_v53  ;;  %v16121_v7 = vld [vmem:[#allocation78_spill] sm:$0xff] }
 0x63d   : > { %5107 = vmatmul.mubr.f32.gmra.mrb[120].mxu0 %v4719_v48  ;;  %v8764_v48 = vunpack.i.h.bf16 %v8762_v15  ;;  %v8769_v5 = vunpack.i.h.bf16 %v13676_v33  ;;  %v4722_v15 = vsel %vm3019_vm14, %v4690_v55, %v8759_v62 }
 0x63e   : > { %5111 = vmatprep.mubr.f32.mxu0 %v4816_v2  ;;  %v13694_v18 = vpop.f32.mrb[82].mxu1  ;;  %v8777_v54 = vpop.permute.xlu1 %8776  ;;  %v4755_v29 = vsel %vm1655_vm11, %v16119_v45, %v8763_v19 }
 0x63f   : > { %v8772_v11 = vpop.permute.xlu0 %8771  ;;  %v13698_v17 = vpop.f32.mrb[83].mxu1  ;;  %v8778_v22 = vunpack.i.l.bf16 %v8777_v54  ;;  %v4787_v63 = vsel %vm2986_vm13, %v4755_v29, %v8768_v1 }
 0x640   : > { %v8773_v2 = vunpack.i.l.bf16 %v8772_v11  ;;  %v8774_v49 = vunpack.i.h.bf16 %v8772_v11 }
 0x641   : > { %5112 = vmatmul.mubr.f32.gmra.mrb[122].mxu0 %v4720_v10  ;;  %v8779_v10 = vunpack.i.h.bf16 %v8777_v54  ;;  %v4756_v34 = vsel %vm1655_vm11, %v16121_v7, %v8778_v22  ;;  %v16125_v7 = vld [vmem:[#allocation97_spill] sm:$0xff] }
 0x642   : > { %5116 = vmatprep.mubr.f32.mxu0 %v4817_v37  ;;  %v8787_v14 = vpop.permute.xlu1 %8786  ;;  %v4659_v37 = vsel %vm1655_vm11, %v16120_v28, %v8764_v48  ;;  %v4819_v19 = vsel %vm3019_vm14, %v4787_v63, %v8773_v2 }
 0x643   : > { %v8782_v26 = vpop.permute.xlu0 %8781  ;;  %v8788_v53 = vunpack.i.l.bf16 %v8787_v14  ;;  %v8789_v62 = vunpack.i.h.bf16 %v8787_v14  ;;  %v4691_v24 = vsel %vm2986_vm13, %v4659_v37, %v8769_v5  ;;  %v4660_v60 = vsel %vm1655_vm11, %v16122_v21, %v8779_v10 }
 0x644   : > { %v8783_v51 = vunpack.i.l.bf16 %v8782_v26  ;;  %v8784_v50 = vunpack.i.h.bf16 %v8782_v26  ;;  %v4723_v48 = vsel %vm3019_vm14, %v4691_v24, %v8774_v49  ;;  %v6534_v49 = vld [vmem:[%s15438_s7 + $0x100] sm:$0xff] }
 0x645   : > { %5117 = vmatmul.mubr.f32.gmra.mrb[124].mxu0 %v4721_v38 }
 0x646   : > { %5121 = vmatprep.mubr.f32.mxu0 %v4818_v46  ;;  %v8797_v20 = vpop.permute.xlu1 %8796  ;;  %v4788_v54 = vsel %vm2986_vm13, %v4756_v34, %v8783_v51  ;;  %v4692_v38 = vsel %vm2986_vm13, %v4660_v60, %v8784_v50  ;;  %v16123_v46 = vld [vmem:[#allocation96_spill] sm:$0xff]  ;;  %v6535_v50 = vld [vmem:[%s15438_s7 + $0x108] sm:$0xff] }
 0x647   : > { %v8792_v40 = vpop.permute.xlu0 %8791  ;;  %v8798_v1 = vunpack.i.l.bf16 %v8797_v20  ;;  %v4820_v22 = vsel %vm3019_vm14, %v4788_v54, %v8788_v53  ;;  %v8799_v29 = vunpack.i.h.bf16 %v8797_v20  ;;  %v4724_v10 = vsel %vm3019_vm14, %v4692_v38, %v8789_v62 }
 0x648   : > { %v8793_v8 = vunpack.i.l.bf16 %v8792_v40  ;;  %v8794_v11 = vunpack.i.h.bf16 %v8792_v40  ;;  %v16124_v40 = vld [vmem:[#allocation47_spill] sm:$0xff]  ;;  %v7831_v20 = vpack.c.bf16 %v6535_v50, %v6534_v49  ;;  %v16128_v50 = vld [vmem:[#allocation88_spill] sm:$0xff] }
 0x649   : > { %5122 = vmatmul.mubr.f32.gmra.mrb[126].mxu0 %v4722_v15 }
 0x64a   : > { %5126 = vmatprep.mubr.f32.mxu0 %v4819_v19  ;;  %v8807_v33 = vpop.permute.xlu1 %8806  ;;  %v4757_v14 = vsel %vm1655_vm11, %v16123_v46, %v8793_v8  ;;  %v4661_v15 = vsel %vm1655_vm11, %v16124_v40, %v8794_v11  ;;  %7832 = vmatprep.subr.bf16.mxu0 %v7831_v20  ;;  %v6537_v46 = vld [vmem:[%s15438_s7 + $0x118] sm:$0xff] }
 0x64b   : > { %v8802_v26 = vpop.permute.xlu0 %8801  ;;  %v8808_v55 = vunpack.i.l.bf16 %v8807_v33  ;;  %v8809_v51 = vunpack.i.h.bf16 %v8807_v33  ;;  %v4789_v37 = vsel %vm2986_vm13, %v4757_v14, %v8798_v1  ;;  %v4693_v11 = vsel %vm2986_vm13, %v4661_v15, %v8799_v29  ;;  %7834 = vmatpush3.bf16.msra.mxu0 %v7831_v20 }
 0x64c   : > { %v8803_v2 = vunpack.i.l.bf16 %v8802_v26  ;;  %v8804_v63 = vunpack.i.h.bf16 %v8802_v26  ;;  %v16126_v26 = vld [vmem:[#allocation87_spill] sm:$0xff] }
 0x64d   : > { %5127 = vmatmul.mubr.f32.gmra.mrb[128].mxu0 %v4723_v48  ;;  %v4758_v34 = vsel %vm1655_vm11, %v16125_v7, %v8808_v55  ;;  %v4662_v24 = vsel %vm1655_vm11, %v16126_v26, %v8809_v51  ;;  %v16129_v26 = vld [vmem:[#allocation89_spill] sm:$0xff] }
 0x64e   : > { %5131 = vmatprep.mubr.f32.mxu0 %v4820_v22  ;;  %v8817_v45 = vpop.permute.xlu1 %8816  ;;  %v4821_v19 = vsel %vm3019_vm14, %v4789_v37, %v8803_v2  ;;  %v4725_v48 = vsel %vm3019_vm14, %v4693_v11, %v8804_v63  ;;  %v6536_v22 = vld [vmem:[%s15438_s7 + $0x110] sm:$0xff] }
 0x64f   : > { %v8812_v5 = vpop.permute.xlu0 %8811  ;;  %v8818_v53 = vunpack.i.l.bf16 %v8817_v45  ;;  %v8819_v21 = vunpack.i.h.bf16 %v8817_v45  ;;  %v16127_v45 = vld [vmem:[#allocation70_spill] sm:$0xff]  ;;  %v7835_v51 = vpack.c.bf16 %v6537_v46, %v6536_v22 }
 0x650   : > { %v8813_v28 = vunpack.i.l.bf16 %v8812_v5  ;;  %v8814_v8 = vunpack.i.h.bf16 %v8812_v5 }
 0x651   : > { %5132 = vmatmul.mubr.f32.gmra.mrb[130].mxu0 %v4724_v10  ;;  %7836 = vmatprep.subr.bf16.mxu0 %v7835_v51 }
 0x652   : > { %5136 = vmatprep.mubr.f32.mxu0 %v4821_v19  ;;  %v8827_v33 = vpop.permute.xlu1 %8826  ;;  %v4790_v54 = vsel %vm2986_vm13, %v4758_v34, %v8813_v28  ;;  %v4694_v2 = vsel %vm2986_vm13, %v4662_v24, %v8814_v8  ;;  %7838 = vmatpush3.bf16.msra.mxu0 %v7835_v51 }
 0x653   : > { %v8822_v62 = vpop.permute.xlu0 %8821  ;;  %v8828_v38 = vunpack.i.l.bf16 %v8827_v33  ;;  %v4822_v55 = vsel %vm3019_vm14, %v4790_v54, %v8818_v53  ;;  %v8829_v5 = vunpack.i.h.bf16 %v8827_v33  ;;  %v4726_v49 = vsel %vm3019_vm14, %v4694_v2, %v8819_v21  ;;  %v16130_v21 = vld [vmem:[#allocation69_spill] sm:$0xff]  ;;  %v13783_v2 = vld [vmem:[%s15437_s6] ss:$0 sm:$0xff] }
 0x654   : > { %v8824_v60 = vunpack.i.h.bf16 %v8822_v62  ;;  %v8823_v1 = vunpack.i.l.bf16 %v8822_v62 }
 0x655   : > { %5137 = vmatmul.mubr.f32.gmra.mrb[132].mxu0 %v4725_v48 }
 0x656   : > { %5141 = vmatprep.mubr.f32.mxu0 %v4822_v55  ;;  %v8837_v14 = vpop.permute.xlu1 %8836  ;;  %v4759_v29 = vsel %vm1655_vm11, %v16127_v45, %v8823_v1  ;;  %v4663_v63 = vsel %vm1655_vm11, %v16128_v50, %v8824_v60  ;;  %v16131_v45 = vld [vmem:[#allocation29_spill] sm:$0xff] }
 0x657   : > { %v8832_v10 = vpop.permute.xlu0 %8831  ;;  %v8839_v28 = vunpack.i.h.bf16 %v8837_v14  ;;  %v8838_v37 = vunpack.i.l.bf16 %v8837_v14  ;;  %v4791_v20 = vsel %vm2986_vm13, %v4759_v29, %v8828_v38  ;;  %v4695_v33 = vsel %vm2986_vm13, %v4663_v63, %v8829_v5 }
 0x658   : > { %v8834_v40 = vunpack.i.h.bf16 %v8832_v10  ;;  %v8833_v15 = vunpack.i.l.bf16 %v8832_v10 }
 0x659   : > { %5142 = vmatmul.mubr.f32.gmra.mrb[134].mxu0 %v4726_v49  ;;  %v4760_v24 = vsel %vm1655_vm11, %v16129_v26, %v8838_v37  ;;  %v4664_v60 = vsel %vm1655_vm11, %v16130_v21, %v8839_v28 }
 0x65a   : > { %v8847_v53 = vpop.permute.xlu1 %8846  ;;  %v4823_v8 = vsel %vm3019_vm14, %v4791_v20, %v8833_v15  ;;  %v4727_v11 = vsel %vm3019_vm14, %v4695_v33, %v8834_v40  ;;  %v16132_v15 = vld [vmem:[#allocation22_spill] sm:$0xff] }
 0x65b   : > { %v8849_v19 = vunpack.i.h.bf16 %v8847_v53  ;;  %v8848_v7 = vunpack.i.l.bf16 %v8847_v53  ;;  %v8842_v34 = vpop.permute.xlu0 %8841  ;;  %5146 = vmatprep.mubr.f32.mxu0 %v4823_v8 }
 0x65c   : > { %v8844_v54 = vunpack.i.h.bf16 %v8842_v34  ;;  %v8843_v62 = vunpack.i.l.bf16 %v8842_v34 }
 0x65d   : > { %5147 = vmatmul.mubr.f32.gmra.mrb[136].mxu0 %v4727_v11 }
 0x65e   : > { %v4792_v1 = vsel %vm2986_vm13, %v4760_v24, %v8843_v62  ;;  %v4696_v48 = vsel %vm2986_vm13, %v4664_v60, %v8844_v54 }
 0x65f   : > { %v4824_v38 = vsel %vm3019_vm14, %v4792_v1, %v8848_v7  ;;  %v4728_v55 = vsel %vm3019_vm14, %v4696_v48, %v8849_v19 }
 0x660   : > { %5151 = vmatprep.mubr.f32.mxu0 %v4824_v38 }
 0x661   : > { %5152 = vmatmul.mubr.f32.gmra.mrb[138].mxu0 %v4728_v55 }
 0x6b5   : > { %v4998_v22 = vpop.f32.mrb[76].mxu0 }
 0x6b6   : > { %v4999_v46 = vadd.f32 %v13783_v2, %v4998_v22  ;;  %v5000_v14 = vpop.f32.mrb[77].mxu0 }
 0x6b8   : > { %v5224_v29 = vadd.f32 %v16131_v45, %v4999_v46 }
 0x6ba   : > { %v5382_v40 = vmax.f32 %v5224_v29, 0.0 }
 0x6bc   : > { %v5003_v51 = vpop.f32.mrb[78].mxu0  ;;  %v5480_v20 = vrot.slane %v5382_v40, 7 }
 0x6bd   : > { %v5004_v5 = vadd.f32 %v13783_v2, %v5003_v51  ;;  %v5005_v10 = vpop.f32.mrb[79].mxu0 }
 0x6bf   : > { %v5229_v49 = vadd.f32 %v16132_v15, %v5004_v5 }
 0x6c0   : > { %v5008_v50 = vpop.f32.mrb[80].mxu0 }
 0x6c1   : > { %v5383_v63 = vmax.f32 %v5229_v49, 0.0  ;;  %v5009_v28 = vadd.f32 %v13783_v2, %v5008_v50  ;;  %v5010_v37 = vpop.f32.mrb[81].mxu0 }
 0x6c3   : > { %v5431_v53 = vrot.slane %v5383_v63, 7  ;;  %v5234_v8 = vadd.f32 %v13266_v61, %v5009_v28 }
 0x6c4   : > { %v5013_v19 = vpop.f32.mrb[82].mxu0 }
 0x6c5   : > { %v13792_v7 = vsel %vm429_vm0, %v5480_v20, %v5431_v53  ;;  %v13795_v34 = vsel %vm429_vm0, %v5431_v53, %v5480_v20  ;;  %v5014_v33 = vadd.f32 %v13783_v2, %v5013_v19  ;;  %v5015_v54 = vpop.f32.mrb[83].mxu0  ;;  %v5384_v62 = vmax.f32 %v5234_v8, 0.0 }
 0x6c6   : > { %v5578_v10 = vrot.slane %v13795_v34, 1  ;;  %v5579_v40 = vrot.slane %v13792_v7, 1 }
 0x6c7   : > { %v5239_v11 = vadd.f32 %v13258_v56, %v5014_v33  ;;  %v5482_v1 = vrot.slane %v5384_v62, 7 }
 0x6c8   : > { %v5018_v26 = vpop.f32.mrb[84].mxu0  ;;  %v13839_v62 = vsel %vm526_vm1, %v5578_v10, %v5579_v40 }
 0x6c9   : > { %v5385_v24 = vmax.f32 %v5239_v11, 0.0  ;;  %v5019_v21 = vadd.f32 %v13783_v2, %v5018_v26  ;;  %v5020_v60 = vpop.f32.mrb[85].mxu0  ;;  %16135 = vst [vmem:[#allocation26_spill] sm:$0xff] %v13839_v62  ;;  %v13843_v26 = vsel %vm526_vm1, %v5579_v40, %v5578_v10 }
 0x6ca   : > { %16136 = vst [vmem:[#allocation50_spill] sm:$0xff] %v13843_v26 }
 0x6cb   : > { %v5432_v61 = vrot.slane %v5385_v24, 7  ;;  %v5244_v48 = vadd.f32 %v13298_v43, %v5019_v21  ;;  %v5642_v24 = vrot.slane %v13795_v34, 2  ;;  %v5643_v21 = vrot.slane %v13792_v7, 2 }
 0x6cc   : > { %v5023_v38 = vpop.f32.mrb[86].mxu0 }
 0x6cd   : > { %v13802_v55 = vsel %vm429_vm0, %v5482_v1, %v5432_v61  ;;  %v13805_v22 = vsel %vm429_vm0, %v5432_v61, %v5482_v1  ;;  %v5024_v46 = vadd.f32 %v13783_v2, %v5023_v38  ;;  %v5025_v14 = vpop.f32.mrb[87].mxu0  ;;  %v5386_v5 = vmax.f32 %v5244_v48, 0.0 }
 0x6ce   : > { %16133 = vst [vmem:[#allocation31_spill] sm:$0xff] %v13805_v22  ;;  %v5646_v56 = vrot.slane %v13805_v22, 2  ;;  %v5647_v45 = vrot.slane %v13802_v55, 2  ;;  %v5582_v29 = vrot.slane %v13805_v22, 1  ;;  %v5583_v51 = vrot.slane %v13802_v55, 1 }
 0x6cf   : > { %v5249_v43 = vadd.f32 %v13293_v6, %v5024_v46  ;;  %v5484_v19 = vrot.slane %v5386_v5, 7  ;;  %v13872_v40 = vsel %vm591_vm2, %v5643_v21, %v5642_v24 }
 0x6d0   : > { %v5028_v15 = vpop.f32.mrb[88].mxu0  ;;  %v13816_v49 = vsel %vm591_vm2, %v5646_v56, %v5647_v45  ;;  %v13819_v50 = vsel %vm591_vm2, %v5647_v45, %v5646_v56  ;;  %v13822_v63 = vsel %vm526_vm1, %v5582_v29, %v5583_v51  ;;  %v13825_v28 = vsel %vm526_vm1, %v5583_v51, %v5582_v29 }
 0x6d1   : > { %16134 = vst [vmem:[#allocation49_spill] sm:$0xff] %v13822_v63  ;;  %v5387_v37 = vmax.f32 %v5249_v43, 0.0  ;;  %v5029_v6 = vadd.f32 %v13783_v2, %v5028_v15  ;;  %v5030_v20 = vpop.f32.mrb[89].mxu0  ;;  %7615 = vmatprep.mubr.msk.f32.mxu0 %vm1655_vm11, %v13816_v49  ;;  %v8850_v53 = vpack.i.bf16 %v13795_v34, %v13822_v63  ;;  %v8855_v8 = vpack.i.bf16 %v13792_v7, %v13825_v28 }
 0x6d2   : > { %7616 = vmatmul.mubr.msk.f32.vlgmr.msra.gmra.mrb[140].mxu0 %vm1655_vm11, %v13819_v50  ;;  %v8860_v1 = vpack.i.bf16 %v13839_v62, %v13816_v49  ;;  %v8865_v38 = vpack.i.bf16 %v13843_v26, %v13819_v50 }
 0x6d3   : > { %v5433_v33 = vrot.slane %v5387_v37, 7  ;;  %v5254_v54 = vadd.f32 %v13322_v23, %v5029_v6  ;;  %8851 = vrot.lane.b32.xlu0 %v8850_v53, %s9349_s13  ;;  %8856 = vrot.lane.b32.xlu1 %v8855_v8, %s9349_s13  ;;  %v13878_v6 = vsel %vm591_vm2, %v5642_v24, %v5643_v21 }
 0x6d4   : > { %v5033_v11 = vpop.f32.mrb[90].mxu0 }
 0x6d5   : > { %v13848_v60 = vsel %vm429_vm0, %v5484_v19, %v5433_v33  ;;  %v13851_v23 = vsel %vm429_vm0, %v5433_v33, %v5484_v19  ;;  %v5034_v61 = vadd.f32 %v13783_v2, %v5033_v11  ;;  %v5035_v48 = vpop.f32.mrb[91].mxu0  ;;  %v5388_v56 = vmax.f32 %v5254_v54, 0.0 }
 0x6d6   : > { %16137 = vst [vmem:[#allocation19_spill] sm:$0xff] %v13848_v60  ;;  %16138 = vst [vmem:[#allocation14_spill] sm:$0xff] %v13851_v23  ;;  %v5650_v46 = vrot.slane %v13851_v23, 2  ;;  %v5651_v14 = vrot.slane %v13848_v60, 2  ;;  %v5586_v29 = vrot.slane %v13851_v23, 1  ;;  %v5587_v51 = vrot.slane %v13848_v60, 1 }
 0x6d7   : > { %v5259_v45 = vadd.f32 %v13318_v3, %v5034_v61  ;;  %8861 = vrot.lane.b32.xlu0 %v8860_v1, %s9346_s14  ;;  %8866 = vrot.lane.b32.xlu1 %v8865_v38, %s9346_s14  ;;  %v8875_v20 = vpack.i.bf16 %v13872_v40, %v13848_v60  ;;  %v8870_v53 = vpack.i.bf16 %v13878_v6, %v13851_v23  ;;  %v5486_v19 = vrot.slane %v5388_v56, 7 }
 0x6d8   : > { %v5038_v5 = vpop.f32.mrb[92].mxu0  ;;  %v13866_v43 = vsel %vm591_vm2, %v5650_v46, %v5651_v14  ;;  %v13869_v10 = vsel %vm591_vm2, %v5651_v14, %v5650_v46  ;;  %v13887_v8 = vsel %vm526_vm1, %v5586_v29, %v5587_v51  ;;  %v13892_v11 = vsel %vm526_vm1, %v5587_v51, %v5586_v29 }
 0x6d9   : > { %v5389_v15 = vmax.f32 %v5259_v45, 0.0  ;;  %v5039_v3 = vadd.f32 %v13783_v2, %v5038_v5  ;;  %v5040_v37 = vpop.f32.mrb[93].mxu0  ;;  %7618 = vmatprep.mubr.msk.f32.mxu0 %vm1655_vm11, %v13866_v43  ;;  %16139 = vst [vmem:[#allocation15_spill] sm:$0xff] %v13887_v8  ;;  %16140 = vst [vmem:[#allocation12_spill] sm:$0xff] %v13892_v11  ;;  %v8885_v38 = vpack.i.bf16 %v13802_v55, %v13892_v11 }
 0x6da   : > { %7619 = vmatmul.mubr.msk.f32.gmra.mrb[142].mxu0 %vm1655_vm11, %v13869_v10 }
 0x6db   : > { %v5434_v33 = vrot.slane %v5389_v15, 7  ;;  %v5264_v54 = vadd.f32 %v13360_v4, %v5039_v3  ;;  %8876 = vrot.lane.b32.xlu0 %v8875_v20, %s9348_s12  ;;  %8871 = vrot.lane.b32.xlu1 %v8870_v53, %s9348_s12  ;;  %v8880_v4 = vpack.i.bf16 %v13805_v22, %v13887_v8  ;;  %v8890_v15 = vpack.i.bf16 %v13822_v63, %v13866_v43 }
 0x6dc   : > { %v5043_v24 = vpop.f32.mrb[94].mxu0 }
 0x6dd   : > { %v13896_v21 = vsel %vm429_vm0, %v5486_v19, %v5434_v33  ;;  %v13899_v1 = vsel %vm429_vm0, %v5434_v33, %v5486_v19  ;;  %v5044_v61 = vadd.f32 %v13783_v2, %v5043_v24  ;;  %v5045_v48 = vpop.f32.mrb[95].mxu0  ;;  %v5390_v56 = vmax.f32 %v5264_v54, 0.0 }
 0x6de   : > { %16141 = vst [vmem:[#allocation2_spill] sm:$0xff] %v13896_v21  ;;  %16142 = vst [vmem:[#allocation13_spill] sm:$0xff] %v13899_v1  ;;  %v5654_v46 = vrot.slane %v13899_v1, 2  ;;  %v5655_v14 = vrot.slane %v13896_v21, 2  ;;  %v5590_v53 = vrot.slane %v13899_v1, 1  ;;  %v5591_v19 = vrot.slane %v13896_v21, 1 }
 0x6df   : > { %v5269_v45 = vadd.f32 %v13355_v41, %v5044_v61  ;;  %8881 = vrot.lane.b32.xlu0 %v8880_v4, %s9349_s13  ;;  %8886 = vrot.lane.b32.xlu1 %v8885_v38, %s9349_s13  ;;  %v8895_v41 = vpack.i.bf16 %v13825_v28, %v13869_v10  ;;  %v5488_v33 = vrot.slane %v5390_v56, 7 }
 0x6e0   : > { %v5048_v29 = vpop.f32.mrb[96].mxu0  ;;  %v13912_v51 = vsel %vm591_vm2, %v5654_v46, %v5655_v14  ;;  %v13915_v5 = vsel %vm591_vm2, %v5655_v14, %v5654_v46  ;;  %v8905_v14 = vpack.i.bf16 %v13819_v50, %v13896_v21  ;;  %v13943_v56 = vsel %vm526_vm1, %v5590_v53, %v5591_v19 }
 0x6e1   : > { %v5391_v3 = vmax.f32 %v5269_v45, 0.0  ;;  %v5049_v37 = vadd.f32 %v13783_v2, %v5048_v29  ;;  %v5050_v20 = vpop.f32.mrb[97].mxu0  ;;  %7621 = vmatprep.mubr.msk.f32.mxu0 %vm1655_vm11, %v13912_v51  ;;  %16145 = vst [vmem:[#allocation11_spill] sm:$0xff] %v13943_v56 }
 0x6e2   : > { %7622 = vmatmul.mubr.msk.f32.gmra.mrb[144].mxu0 %vm1655_vm11, %v13915_v5 }
 0x6e3   : > { %v5435_v54 = vrot.slane %v5391_v3, 7  ;;  %v5274_v24 = vadd.f32 %v13383_v36, %v5049_v37  ;;  %8891 = vrot.lane.b32.xlu0 %v8890_v15, %s9346_s14  ;;  %8896 = vrot.lane.b32.xlu1 %v8895_v41, %s9346_s14  ;;  %v8900_v36 = vpack.i.bf16 %v13816_v49, %v13899_v1  ;;  %v13950_v37 = vsel %vm526_vm1, %v5591_v19, %v5590_v53 }
 0x6e4   : > { %v5053_v61 = vpop.f32.mrb[98].mxu0  ;;  %16146 = vst [vmem:[#allocation10_spill] sm:$0xff] %v13950_v37  ;;  %v8915_v53 = vpack.i.bf16 %v13848_v60, %v13950_v37 }
 0x6e5   : > { %v13932_v48 = vsel %vm429_vm0, %v5488_v33, %v5435_v54  ;;  %v13935_v4 = vsel %vm429_vm0, %v5435_v54, %v5488_v33  ;;  %v5054_v38 = vadd.f32 %v13783_v2, %v5053_v61  ;;  %v5055_v46 = vpop.f32.mrb[99].mxu0  ;;  %v5392_v15 = vmax.f32 %v5274_v24, 0.0 }
 0x6e6   : > { %16143 = vst [vmem:[#allocation24_spill] sm:$0xff] %v13932_v48  ;;  %16144 = vst [vmem:[#allocation21_spill] sm:$0xff] %v13935_v4  ;;  %v5658_v45 = vrot.slane %v13935_v4, 2  ;;  %v5659_v29 = vrot.slane %v13932_v48, 2 }
 0x6e7   : > { %v5279_v3 = vadd.f32 %v13377_v52, %v5054_v38  ;;  %8906 = vrot.lane.b32.xlu0 %v8905_v14, %s9348_s12  ;;  %8901 = vrot.lane.b32.xlu1 %v8900_v36, %s9348_s12  ;;  %v8910_v52 = vpack.i.bf16 %v13851_v23, %v13943_v56  ;;  %v5490_v19 = vrot.slane %v5392_v15, 7  ;;  %v8920_v38 = vpack.i.bf16 %v13887_v8, %v13912_v51 }
 0x6e8   : > { %v5058_v50 = vpop.f32.mrb[100].mxu0  ;;  %v13954_v49 = vsel %vm591_vm2, %v5658_v45, %v5659_v29  ;;  %v13957_v20 = vsel %vm591_vm2, %v5659_v29, %v5658_v45  ;;  %v5594_v14 = vrot.slane %v13935_v4, 1 }
 0x6e9   : > { %v5393_v41 = vmax.f32 %v5279_v3, 0.0  ;;  %v5059_v33 = vadd.f32 %v13783_v2, %v5058_v50  ;;  %v5060_v54 = vpop.f32.mrb[101].mxu0  ;;  %7624 = vmatprep.mubr.msk.f32.mxu0 %vm1655_vm11, %v13954_v49  ;;  %v8925_v3 = vpack.i.bf16 %v13892_v11, %v13915_v5 }
 0x6ea   : > { %7625 = vmatmul.mubr.msk.f32.gmra.mrb[146].mxu0 %vm1655_vm11, %v13957_v20 }
 0x6eb   : > { %v5436_v24 = vrot.slane %v5393_v41, 7  ;;  %v5284_v61 = vadd.f32 %v13409_v25, %v5059_v33  ;;  %8911 = vrot.lane.b32.xlu0 %v8910_v52, %s9349_s13  ;;  %8916 = vrot.lane.b32.xlu1 %v8915_v53, %s9349_s13  ;;  %v5595_v25 = vrot.slane %v13932_v48, 1 }
 0x6ec   : > { %v5063_v46 = vpop.f32.mrb[102].mxu0 }
 0x6ed   : > { %v13975_v36 = vsel %vm429_vm0, %v5490_v19, %v5436_v24  ;;  %v13978_v45 = vsel %vm429_vm0, %v5436_v24, %v5490_v19  ;;  %v5064_v29 = vadd.f32 %v13783_v2, %v5063_v46  ;;  %v5065_v15 = vpop.f32.mrb[103].mxu0  ;;  %v5394_v33 = vmax.f32 %v5284_v61, 0.0 }
 0x6ee   : > { %16147 = vst [vmem:[#allocation16_spill] sm:$0xff] %v13975_v36  ;;  %16148 = vst [vmem:[#allocation17_spill] sm:$0xff] %v13978_v45  ;;  %v5662_v50 = vrot.slane %v13978_v45, 2  ;;  %v5663_v41 = vrot.slane %v13975_v36, 2  ;;  %v8935_v61 = vpack.i.bf16 %v13869_v10, %v13932_v48 }
 0x6ef   : > { %v5289_v54 = vadd.f32 %v13404_v47, %v5064_v29  ;;  %8921 = vrot.lane.b32.xlu0 %v8920_v38, %s9346_s14  ;;  %8926 = vrot.lane.b32.xlu1 %v8925_v3, %s9346_s14  ;;  %v13999_v47 = vsel %vm526_vm1, %v5595_v25, %v5594_v14  ;;  %v14004_v38 = vsel %vm526_vm1, %v5594_v14, %v5595_v25  ;;  %v5492_v3 = vrot.slane %v5394_v33, 7 }
 0x6f0   : > { %v5068_v52 = vpop.f32.mrb[104].mxu0  ;;  %v13990_v53 = vsel %vm591_vm2, %v5662_v50, %v5663_v41  ;;  %v13993_v19 = vsel %vm591_vm2, %v5663_v41, %v5662_v50  ;;  %16149 = vst [vmem:[#allocation20_spill] sm:$0xff] %v13999_v47  ;;  %16150 = vst [vmem:[#allocation25_spill] sm:$0xff] %v14004_v38  ;;  %v8930_v29 = vpack.i.bf16 %v13866_v43, %v13935_v4 }
 0x6f1   : > { %v5395_v24 = vmax.f32 %v5289_v54, 0.0  ;;  %v5069_v46 = vadd.f32 %v13783_v2, %v5068_v52  ;;  %v5070_v15 = vpop.f32.mrb[105].mxu0  ;;  %7627 = vmatprep.mubr.msk.f32.mxu0 %vm1655_vm11, %v13990_v53  ;;  %v8945_v10 = vpack.i.bf16 %v13896_v21, %v13999_v47 }
 0x6f2   : > { %7628 = vmatmul.mubr.msk.f32.gmra.mrb[148].mxu0 %vm1655_vm11, %v13993_v19 }
 0x6f3   : > { %v5437_v50 = vrot.slane %v5395_v24, 7  ;;  %v5294_v41 = vadd.f32 %v13444_v31, %v5069_v46  ;;  %8936 = vrot.lane.b32.xlu0 %v8935_v61, %s9348_s12  ;;  %8931 = vrot.lane.b32.xlu1 %v8930_v29, %s9348_s12  ;;  %v8940_v31 = vpack.i.bf16 %v13899_v1, %v14004_v38 }
 0x6f4   : > { %v5073_v54 = vpop.f32.mrb[106].mxu0 }
 0x6f5   : > { %v14016_v14 = vsel %vm429_vm0, %v5492_v3, %v5437_v50  ;;  %v14019_v25 = vsel %vm429_vm0, %v5437_v50, %v5492_v3  ;;  %v5074_v43 = vadd.f32 %v13783_v2, %v5073_v54  ;;  %v5075_v33 = vpop.f32.mrb[107].mxu0  ;;  %v5396_v61 = vmax.f32 %v5294_v41, 0.0 }
 0x6f6   : > { %v5666_v52 = vrot.slane %v14019_v25, 2  ;;  %v5667_v24 = vrot.slane %v14016_v14, 2  ;;  %v15662_v46 = vrot.slane %v14019_v25, 1  ;;  %v15663_v15 = vrot.slane %v14016_v14, 1 }
 0x6f7   : > { %v5299_v29 = vadd.f32 %v13434_v0, %v5074_v43  ;;  %8941 = vrot.lane.b32.xlu0 %v8940_v31, %s9349_s13  ;;  %8946 = vrot.lane.b32.xlu1 %v8945_v10, %s9349_s13  ;;  %v8950_v0 = vpack.i.bf16 %v13943_v56, %v13954_v49  ;;  %v8955_v31 = vpack.i.bf16 %v13950_v37, %v13957_v20  ;;  %v16154_v37 = vmov 0.0|0.0  }
 0x6f8   : > { %v5078_v3 = vpop.f32.mrb[108].mxu0  ;;  %v14032_v50 = vsel %vm591_vm2, %v5666_v52, %v5667_v24  ;;  %v14035_v54 = vsel %vm591_vm2, %v5667_v24, %v5666_v52  ;;  %v14042_v33 = vsel %vm526_vm1, %v15663_v15, %v15662_v46  ;;  %v5598_v52 = vrot.slane %v13978_v45, 1 }
 0x6f9   : > { %v5397_v41 = vmax.f32 %v5299_v29, 0.0  ;;  %v5079_v10 = vadd.f32 %v13783_v2, %v5078_v3  ;;  %v5080_v43 = vpop.f32.mrb[109].mxu0  ;;  %7630 = vmatprep.mubr.msk.f32.mxu0 %vm1655_vm11, %v14032_v50  ;;  %v5599_v24 = vrot.slane %v13975_v36, 1  ;;  %v5494_v46 = vrot.slane %v5396_v61, 7 }
 0x6fa   : > { %7631 = vmatmul.mubr.msk.f32.gmra.mrb[150].mxu0 %vm1655_vm11, %v14035_v54  ;;  %v8965_v61 = vpack.i.bf16 %v13915_v5, %v13975_v36 }
 0x6fb   : > { %v5438_v15 = vrot.slane %v5397_v41, 7  ;;  %v5304_v29 = vadd.f32 %v13474_v13, %v5079_v10  ;;  %8951 = vrot.lane.b32.xlu0 %v8950_v0, %s9346_s14  ;;  %8956 = vrot.lane.b32.xlu1 %v8955_v31, %s9346_s14  ;;  %v14068_v41 = vsel %vm526_vm1, %v5598_v52, %v5599_v24  ;;  %v8960_v13 = vpack.i.bf16 %v13912_v51, %v13978_v45  ;;  %v6503_v51 = vld [vmem:[%s15438_s7 + $0x8] sm:$0xff] }
 0x6fc   : > { %v5083_v3 = vpop.f32.mrb[110].mxu0  ;;  %16151 = vst [vmem:[#allocation18_spill] sm:$0xff] %v14068_v41 }
 0x6fd   : > { %v14059_v43 = vsel %vm429_vm0, %v5494_v46, %v5438_v15  ;;  %v14062_v21 = vsel %vm429_vm0, %v5438_v15, %v5494_v46  ;;  %v5084_v1 = vadd.f32 %v13783_v2, %v5083_v3  ;;  %v5085_v60 = vpop.f32.mrb[111].mxu0  ;;  %v5398_v31 = vmax.f32 %v5304_v29, 0.0 }
 0x6fe   : > { %v5670_v0 = vrot.slane %v14062_v21, 2  ;;  %v5671_v10 = vrot.slane %v14059_v43, 2  ;;  %v14075_v46 = vsel %vm526_vm1, %v5599_v24, %v5598_v52  ;;  %v6502_v60 = vld [vmem:[%s15438_s7] sm:$0xff]  ;;  %v8970_v3 = vpack.i.bf16 %v13935_v4, %v14068_v41 }
 0x6ff   : > { %v5309_v15 = vadd.f32 %v13469_v27, %v5084_v1  ;;  %8966 = vrot.lane.b32.xlu0 %v8965_v61, %s9348_s12  ;;  %8961 = vrot.lane.b32.xlu1 %v8960_v13, %s9348_s12  ;;  %v8975_v61 = vpack.i.bf16 %v13932_v48, %v14075_v46  ;;  %v7784_v13 = vpack.c.bf16 %v6503_v51, %v6502_v60 }
 0x700   : > { %v5088_v5 = vpop.f32.mrb[112].mxu0  ;;  %v14087_v29 = vsel %vm591_vm2, %v5670_v0, %v5671_v10  ;;  %v14090_v52 = vsel %vm591_vm2, %v5671_v10, %v5670_v0  ;;  %v6504_v0 = vld [vmem:[%s15438_s7 + $0x10] sm:$0xff]  ;;  %v6505_v10 = vld [vmem:[%s15438_s7 + $0x18] sm:$0xff]  ;;  %v8980_v4 = vpack.i.bf16 %v14004_v38, %v13990_v53 }
 0x701   : > { %v5399_v27 = vmax.f32 %v5309_v15, 0.0  ;;  %v5089_v1 = vadd.f32 %v13783_v2, %v5088_v5  ;;  %v5090_v24 = vpop.f32.mrb[113].mxu0  ;;  %7633 = vmatprep.mubr.msk.f32.mxu0 %vm1655_vm11, %v14087_v29  ;;  %v5496_v15 = vrot.slane %v5398_v31, 7  ;;  %7785 = vmatpush1.bf16.msra.mxu1 %v7784_v13 }
 0x702   : > { %7634 = vmatmul.mubr.msk.f32.gmra.mrb[152].mxu0 %vm1655_vm11, %v14090_v52  ;;  %7786 = vmatprep.subr.bf16.mxu1 %v16154_v37 }
 0x703   : > { %v5439_v5 = vrot.slane %v5399_v27, 7  ;;  %v5314_v24 = vadd.f32 %v13497_v16, %v5089_v1  ;;  %8971 = vrot.lane.b32.xlu0 %v8970_v3, %s9349_s13  ;;  %8976 = vrot.lane.b32.xlu1 %v8975_v61, %s9349_s13  ;;  %v7787_v16 = vpack.c.bf16 %v6505_v10, %v6504_v0  ;;  %v8985_v1 = vpack.i.bf16 %v13999_v47, %v13993_v19  ;;  %v6506_v0 = vld [vmem:[%s15438_s7 + $0x20] sm:$0xff]  ;;  %v6507_v10 = vld [vmem:[%s15438_s7 + $0x28] sm:$0xff] }
 0x704   : > { %v5093_v60 = vpop.f32.mrb[114].mxu0  ;;  %v16155_v3 = vrot.slane %v14016_v14, 1  ;;  %v16156_v61 = vrot.slane %v14019_v25, 1 }
 0x705   : > { %v14113_v51 = vsel %vm429_vm0, %v5496_v15, %v5439_v5  ;;  %v14116_v48 = vsel %vm429_vm0, %v5439_v5, %v5496_v15  ;;  %v5094_v31 = vadd.f32 %v13783_v2, %v5093_v60  ;;  %v5095_v27 = vpop.f32.mrb[115].mxu0  ;;  %v5400_v5 = vmax.f32 %v5314_v24, 0.0  ;;  %7788 = vmatpush1.bf16.msra.mxu1 %v7787_v16 }
 0x706   : > { %16152 = vst [vmem:[#allocation23_spill] sm:$0xff] %v14113_v51  ;;  %16153 = vst [vmem:[#allocation28_spill] sm:$0xff] %v14116_v48  ;;  %v14127_v13 = vsel %vm526_vm1, %v16156_v61, %v16155_v3  ;;  %v5674_v38 = vrot.slane %v14116_v48, 2  ;;  %v5675_v15 = vrot.slane %v14113_v51, 2  ;;  %7789 = vmatprep.subr.bf16.mxu1 %v16154_v37 }
 0x707   : > { %v5319_v60 = vadd.f32 %v13491_v35, %v5094_v31  ;;  %8981 = vrot.lane.b32.xlu0 %v8980_v4, %s9346_s14  ;;  %8986 = vrot.lane.b32.xlu1 %v8985_v1, %s9346_s14  ;;  %v8995_v61 = vpack.i.bf16 %v13978_v45, %v14127_v13  ;;  %v8990_v1 = vpack.i.bf16 %v13954_v49, %v14019_v25 }
 0x708   : > { %v5098_v27 = vpop.f32.mrb[116].mxu0  ;;  %v14141_v3 = vsel %vm591_vm2, %v5674_v38, %v5675_v15  ;;  %v14144_v24 = vsel %vm591_vm2, %v5675_v15, %v5674_v38  ;;  %v7790_v38 = vpack.c.bf16 %v6507_v10, %v6506_v0  ;;  %v6508_v15 = vld [vmem:[%s15438_s7 + $0x30] sm:$0xff] }
 0x709   : > { %v5401_v35 = vmax.f32 %v5319_v60, 0.0  ;;  %v5099_v4 = vadd.f32 %v13783_v2, %v5098_v27  ;;  %v5100_v31 = vpop.f32.mrb[117].mxu0  ;;  %7636 = vmatprep.mubr.msk.f32.mxu0 %vm1655_vm11, %v14141_v3  ;;  %v6509_v60 = vld [vmem:[%s15438_s7 + $0x38] sm:$0xff]  ;;  %v5498_v27 = vrot.slane %v5400_v5, 7 }
 0x70a   : > { %7637 = vmatmul.mubr.msk.f32.gmra.mrb[154].mxu0 %vm1655_vm11, %v14144_v24  ;;  %7791 = vmatpush1.bf16.msra.mxu1 %v7790_v38  ;;  %v7793_v23 = vpack.c.bf16 %v6509_v60, %v6508_v15 }
 0x70b   : > { %v5440_v31 = vrot.slane %v5401_v35, 7  ;;  %v5324_v16 = vadd.f32 %v13518_v42, %v5099_v4  ;;  %8996 = vrot.lane.b32.xlu0 %v8995_v61, %s9349_s13  ;;  %8991 = vrot.lane.b32.xlu1 %v8990_v1, %s9348_s12  ;;  %v6510_v61 = vld [vmem:[%s15438_s7 + $0x40] sm:$0xff]  ;;  %v6511_v1 = vld [vmem:[%s15438_s7 + $0x48] sm:$0xff] }
 0x70c   : > { %v5103_v49 = vpop.f32.mrb[118].mxu0  ;;  %7792 = vmatprep.subr.bf16.mxu1 %v16154_v37 }
 0x70d   : > { %v14166_v45 = vsel %vm429_vm0, %v5498_v27, %v5440_v31  ;;  %v14169_v0 = vsel %vm429_vm0, %v5440_v31, %v5498_v27  ;;  %v5104_v10 = vadd.f32 %v13783_v2, %v5103_v49  ;;  %v5105_v47 = vpop.f32.mrb[119].mxu0  ;;  %v5402_v35 = vmax.f32 %v5324_v16, 0.0  ;;  %v6512_v16 = vld [vmem:[%s15438_s7 + $0x50] sm:$0xff]  ;;  %v6513_v49 = vld [vmem:[%s15438_s7 + $0x58] sm:$0xff] }
 0x70e   : > { %16157 = vst [vmem:[#allocation30_spill] sm:$0xff] %v14166_v45  ;;  %16158 = vst [vmem:[#allocation57_spill] sm:$0xff] %v14169_v0  ;;  %v5678_v5 = vrot.slane %v14169_v0, 2  ;;  %v5679_v42 = vrot.slane %v14166_v45, 2  ;;  %7794 = vmatpush1.bf16.msra.mxu1 %v7793_v23 }
 0x70f   : > { %v5329_v4 = vadd.f32 %v13513_v59, %v5104_v10  ;;  %7795 = vmatprep.subr.bf16.mxu1 %v16154_v37  ;;  %v7796_v59 = vpack.c.bf16 %v6511_v1, %v6510_v61  ;;  %v5500_v10 = vrot.slane %v5402_v35, 7 }
 0x710   : > { %v5108_v47 = vpop.f32.mrb[120].mxu0  ;;  %v14183_v38 = vsel %vm591_vm2, %v5678_v5, %v5679_v42  ;;  %v14186_v15 = vsel %vm591_vm2, %v5679_v42, %v5678_v5 }
 0x711   : > { %v5403_v60 = vmax.f32 %v5329_v4, 0.0  ;;  %v5109_v27 = vadd.f32 %v13783_v2, %v5108_v47  ;;  %v5110_v31 = vpop.f32.mrb[121].mxu0  ;;  %7639 = vmatprep.mubr.msk.f32.mxu0 %vm1655_vm11, %v14183_v38 }
 0x712   : > { %7640 = vmatmul.mubr.msk.f32.gmra.mrb[156].mxu0 %vm1655_vm11, %v14186_v15  ;;  %7797 = vmatpush1.bf16.msra.mxu1 %v7796_v59  ;;  %v7799_v31 = vpack.c.bf16 %v6513_v49, %v6512_v16 }
 0x713   : > { %v5441_v5 = vrot.slane %v5403_v60, 7  ;;  %v5334_v42 = vadd.f32 %v13558_v12, %v5109_v27  ;;  %7798 = vmatprep.subr.bf16.mxu1 %v16154_v37  ;;  %v6514_v60 = vld [vmem:[%s15438_s7 + $0x60] sm:$0xff]  ;;  %v6515_v27 = vld [vmem:[%s15438_s7 + $0x68] sm:$0xff] }
 0x714   : > { %v5113_v4 = vpop.f32.mrb[122].mxu0 }
 0x715   : > { %v14202_v23 = vsel %vm429_vm0, %v5500_v10, %v5441_v5  ;;  %v14205_v47 = vsel %vm429_vm0, %v5441_v5, %v5500_v10  ;;  %v5114_v61 = vadd.f32 %v13783_v2, %v5113_v4  ;;  %v5115_v1 = vpop.f32.mrb[123].mxu0  ;;  %v5404_v35 = vmax.f32 %v5334_v42, 0.0  ;;  %v6516_v4 = vld [vmem:[%s15438_s7 + $0x70] sm:$0xff] }
 0x716   : > { %16159 = vst [vmem:[#allocation60_spill] sm:$0xff] %v14202_v23  ;;  %16160 = vst [vmem:[#allocation33_spill] sm:$0xff] %v14205_v47  ;;  %v5682_v56 = vrot.slane %v14205_v47, 2  ;;  %v5683_v11 = vrot.slane %v14202_v23, 2  ;;  %7800 = vmatpush1.bf16.msra.mxu1 %v7799_v31 }
 0x717   : > { %v5339_v12 = vadd.f32 %v13553_v58, %v5114_v61  ;;  %7801 = vmatprep.subr.bf16.mxu1 %v16154_v37  ;;  %v7802_v58 = vpack.c.bf16 %v6515_v27, %v6514_v60 }
 0x718   : > { %v5118_v10 = vpop.f32.mrb[124].mxu0  ;;  %v14219_v59 = vsel %vm591_vm2, %v5682_v56, %v5683_v11  ;;  %v14222_v16 = vsel %vm591_vm2, %v5683_v11, %v5682_v56  ;;  %v6517_v11 = vld [vmem:[%s15438_s7 + $0x78] sm:$0xff]  ;;  %v5502_v56 = vrot.slane %v5404_v35, 7 }
 0x719   : > { %v5405_v49 = vmax.f32 %v5339_v12, 0.0  ;;  %v5119_v5 = vadd.f32 %v13783_v2, %v5118_v10  ;;  %v5120_v42 = vpop.f32.mrb[125].mxu0  ;;  %7642 = vmatprep.mubr.msk.f32.mxu0 %vm1655_vm11, %v14219_v59 }
 0x71a   : > { %7643 = vmatmul.mubr.msk.f32.gmra.mrb[158].mxu0 %vm1655_vm11, %v14222_v16  ;;  %7803 = vmatpush1.bf16.msra.mxu1 %v7802_v58  ;;  %v7805_v42 = vpack.c.bf16 %v6517_v11, %v6516_v4 }
 0x71b   : > { %v5442_v61 = vrot.slane %v5405_v49, 7  ;;  %v5344_v1 = vadd.f32 %v13581_v44, %v5119_v5  ;;  %7804 = vmatprep.subr.bf16.mxu1 %v16154_v37  ;;  %v6518_v49 = vld [vmem:[%s15438_s7 + $0x80] sm:$0xff]  ;;  %v6519_v5 = vld [vmem:[%s15438_s7 + $0x88] sm:$0xff] }
 0x71c   : > { %v5123_v12 = vpop.f32.mrb[126].mxu0 }
 0x71d   : > { %v14238_v31 = vsel %vm429_vm0, %v5502_v56, %v5442_v61  ;;  %v14241_v10 = vsel %vm429_vm0, %v5442_v61, %v5502_v56  ;;  %v5124_v60 = vadd.f32 %v13783_v2, %v5123_v12  ;;  %v5125_v27 = vpop.f32.mrb[127].mxu0  ;;  %v5406_v35 = vmax.f32 %v5344_v1, 0.0  ;;  %v6520_v12 = vld [vmem:[%s15438_s7 + $0x90] sm:$0xff] }
 0x71e   : > { %16161 = vst [vmem:[#allocation27_spill] sm:$0xff] %v14238_v31  ;;  %16162 = vst [vmem:[#allocation48_spill] sm:$0xff] %v14241_v10  ;;  %v5686_v8 = vrot.slane %v14241_v10, 2  ;;  %v5687_v63 = vrot.slane %v14238_v31, 2  ;;  %7806 = vmatpush1.bf16.msra.mxu1 %v7805_v42 }
 0x71f   : > { %v5349_v44 = vadd.f32 %v13575_v9, %v5124_v60  ;;  %7807 = vmatprep.subr.bf16.mxu1 %v16154_v37  ;;  %v7808_v9 = vpack.c.bf16 %v6519_v5, %v6518_v49 }
 0x720   : > { %v5128_v56 = vpop.f32.mrb[128].mxu0  ;;  %v14255_v58 = vsel %vm591_vm2, %v5686_v8, %v5687_v63  ;;  %v14258_v4 = vsel %vm591_vm2, %v5687_v63, %v5686_v8  ;;  %v6521_v63 = vld [vmem:[%s15438_s7 + $0x98] sm:$0xff]  ;;  %v5504_v8 = vrot.slane %v5406_v35, 7 }
 0x721   : > { %v5407_v11 = vmax.f32 %v5349_v44, 0.0  ;;  %v5129_v61 = vadd.f32 %v13783_v2, %v5128_v56  ;;  %v5130_v1 = vpop.f32.mrb[129].mxu0  ;;  %7645 = vmatprep.mubr.msk.f32.mxu0 %vm1655_vm11, %v14255_v58 }
 0x722   : > { %7646 = vmatmul.mubr.msk.f32.gmra.mrb[160].mxu0 %vm1655_vm11, %v14258_v4  ;;  %7809 = vmatpush1.bf16.msra.mxu1 %v7808_v9  ;;  %v7811_v1 = vpack.c.bf16 %v6521_v63, %v6520_v12 }
 0x723   : > { %v5443_v60 = vrot.slane %v5407_v11, 7  ;;  %v5354_v27 = vadd.f32 %v13627_v30, %v5129_v61  ;;  %7810 = vmatprep.subr.bf16.mxu1 %v16154_v37  ;;  %v6522_v11 = vld [vmem:[%s15438_s7 + $0xa0] sm:$0xff]  ;;  %v6523_v61 = vld [vmem:[%s15438_s7 + $0xa8] sm:$0xff] }
 0x724   : > { %v5133_v44 = vpop.f32.mrb[130].mxu0 }
 0x725   : > { %v14274_v42 = vsel %vm429_vm0, %v5504_v8, %v5443_v60  ;;  %v14277_v56 = vsel %vm429_vm0, %v5443_v60, %v5504_v8  ;;  %v5134_v49 = vadd.f32 %v13783_v2, %v5133_v44  ;;  %v5135_v5 = vpop.f32.mrb[131].mxu0  ;;  %v5408_v35 = vmax.f32 %v5354_v27, 0.0  ;;  %v6524_v44 = vld [vmem:[%s15438_s7 + $0xb0] sm:$0xff] }
 0x726   : > { %16163 = vst [vmem:[#allocation59_spill] sm:$0xff] %v14274_v42  ;;  %16164 = vst [vmem:[#allocation58_spill] sm:$0xff] %v14277_v56  ;;  %v5690_v26 = vrot.slane %v14277_v56, 2  ;;  %v5691_v62 = vrot.slane %v14274_v42, 2  ;;  %7812 = vmatpush1.bf16.msra.mxu1 %v7811_v1 }
 0x727   : > { %v5359_v30 = vadd.f32 %v13619_v39, %v5134_v49  ;;  %7813 = vmatprep.subr.bf16.mxu1 %v16154_v37  ;;  %v7814_v39 = vpack.c.bf16 %v6523_v61, %v6522_v11 }
 0x728   : > { %v5138_v8 = vpop.f32.mrb[132].mxu0  ;;  %v14291_v9 = vsel %vm591_vm2, %v5690_v26, %v5691_v62  ;;  %v14294_v12 = vsel %vm591_vm2, %v5691_v62, %v5690_v26  ;;  %v6525_v62 = vld [vmem:[%s15438_s7 + $0xb8] sm:$0xff]  ;;  %v5506_v26 = vrot.slane %v5408_v35, 7 }
 0x729   : > { %16165 = vst [vmem:[#allocation36_spill] sm:$0xff] %v14291_v9  ;;  %16166 = vst [vmem:[#allocation32_spill] sm:$0xff] %v14294_v12  ;;  %v5409_v63 = vmax.f32 %v5359_v30, 0.0  ;;  %v5139_v60 = vadd.f32 %v13783_v2, %v5138_v8  ;;  %v5140_v27 = vpop.f32.mrb[133].mxu0  ;;  %7648 = vmatprep.mubr.msk.f32.mxu0 %vm1655_vm11, %v14291_v9 }
 0x72a   : > { %7649 = vmatmul.mubr.msk.f32.gmra.mrb[162].mxu0 %vm1655_vm11, %v14294_v12  ;;  %7815 = vmatpush1.bf16.msra.mxu1 %v7814_v39  ;;  %v7817_v27 = vpack.c.bf16 %v6525_v62, %v6524_v44 }
 0x72b   : > { %v5444_v49 = vrot.slane %v5409_v63, 7  ;;  %v5364_v5 = vadd.f32 %v13680_v32, %v5139_v60  ;;  %7816 = vmatprep.subr.bf16.mxu1 %v16154_v37  ;;  %v6526_v63 = vld [vmem:[%s15438_s7 + $0xc0] sm:$0xff]  ;;  %v6527_v60 = vld [vmem:[%s15438_s7 + $0xc8] sm:$0xff] }
 0x72c   : > { %v5143_v30 = vpop.f32.mrb[134].mxu0 }
 0x72d   : > { %v14310_v1 = vsel %vm429_vm0, %v5506_v26, %v5444_v49  ;;  %v14313_v8 = vsel %vm429_vm0, %v5444_v49, %v5506_v26  ;;  %v5144_v11 = vadd.f32 %v13783_v2, %v5143_v30  ;;  %v5145_v61 = vpop.f32.mrb[135].mxu0  ;;  %v5410_v35 = vmax.f32 %v5364_v5, 0.0  ;;  %v6528_v30 = vld [vmem:[%s15438_s7 + $0xd0] sm:$0xff] }
 0x72e   : > { %16167 = vst [vmem:[#allocation8_spill] sm:$0xff] %v14310_v1  ;;  %16168 = vst [vmem:[#allocation79_spill] sm:$0xff] %v14313_v8  ;;  %v5694_v12 = vrot.slane %v14313_v8, 2  ;;  %v5695_v9 = vrot.slane %v14310_v1, 2  ;;  %7818 = vmatpush1.bf16.msra.mxu1 %v7817_v27 }
 0x72f   : > { %v5369_v32 = vadd.f32 %v13674_v57, %v5144_v11  ;;  %7819 = vmatprep.subr.bf16.mxu1 %v16154_v37  ;;  %v7820_v57 = vpack.c.bf16 %v6527_v60, %v6526_v63 }
 0x730   : > { %v5148_v26 = vpop.f32.mrb[136].mxu0  ;;  %v14327_v39 = vsel %vm591_vm2, %v5694_v12, %v5695_v9  ;;  %v14330_v44 = vsel %vm591_vm2, %v5695_v9, %v5694_v12  ;;  %v6529_v9 = vld [vmem:[%s15438_s7 + $0xd8] sm:$0xff]  ;;  %v5508_v12 = vrot.slane %v5410_v35, 7 }
 0x731   : > { %16169 = vst [vmem:[#allocation51_spill] sm:$0xff] %v14327_v39  ;;  %16170 = vst [vmem:[#allocation37_spill] sm:$0xff] %v14330_v44  ;;  %v5411_v62 = vmax.f32 %v5369_v32, 0.0  ;;  %v5149_v49 = vadd.f32 %v13783_v2, %v5148_v26  ;;  %v5150_v5 = vpop.f32.mrb[137].mxu0  ;;  %7651 = vmatprep.mubr.msk.f32.mxu0 %vm1655_vm11, %v14327_v39 }
 0x732   : > { %7652 = vmatmul.mubr.msk.f32.gmra.mrb[164].mxu0 %vm1655_vm11, %v14330_v44  ;;  %7821 = vmatpush1.bf16.msra.mxu1 %v7820_v57  ;;  %v7823_v5 = vpack.c.bf16 %v6529_v9, %v6528_v30  ;;  %v6531_v57 = vld [vmem:[%s15438_s7 + $0xe8] sm:$0xff] }
 0x733   : > { %v5445_v11 = vrot.slane %v5411_v62, 7  ;;  %v5374_v61 = vadd.f32 %v13698_v17, %v5149_v49  ;;  %7822 = vmatprep.subr.bf16.mxu1 %v16154_v37 }
 0x734   : > { %v5153_v32 = vpop.f32.mrb[138].mxu0 }
 0x735   : > { %v14346_v27 = vsel %vm429_vm0, %v5508_v12, %v5445_v11  ;;  %v14349_v26 = vsel %vm429_vm0, %v5445_v11, %v5508_v12  ;;  %v5154_v63 = vadd.f32 %v13783_v2, %v5153_v32  ;;  %v5155_v60 = vpop.f32.mrb[139].mxu0  ;;  %v5412_v35 = vmax.f32 %v5374_v61, 0.0  ;;  %v6530_v2 = vld [vmem:[%s15438_s7 + $0xe0] sm:$0xff] }
 0x736   : > { %16171 = vst [vmem:[#allocation35_spill] sm:$0xff] %v14346_v27  ;;  %16172 = vst [vmem:[#allocation52_spill] sm:$0xff] %v14349_v26  ;;  %v5698_v44 = vrot.slane %v14349_v26, 2  ;;  %v5699_v39 = vrot.slane %v14346_v27, 2  ;;  %7824 = vmatpush1.bf16.msra.mxu1 %v7823_v5  ;;  %v7826_v12 = vpack.c.bf16 %v6531_v57, %v6530_v2 }
 0x737   : > { %v5379_v17 = vadd.f32 %v13694_v18, %v5154_v63  ;;  %7825 = vmatprep.subr.bf16.mxu1 %v16154_v37  ;;  %v6532_v18 = vld [vmem:[%s15438_s7 + $0xf0] sm:$0xff] }
 0x738   : > { %v14357_v62 = vsel %vm591_vm2, %v5698_v44, %v5699_v39  ;;  %v14360_v49 = vsel %vm591_vm2, %v5699_v39, %v5698_v44  ;;  %v6533_v39 = vld [vmem:[%s15438_s7 + $0xf8] sm:$0xff]  ;;  %v5478_v44 = vrot.slane %v5412_v35, 7 }
 0x739   : > { %v5413_v30 = vmax.f32 %v5379_v17, 0.0  ;;  %7654 = vmatprep.mubr.msk.f32.mxu0 %vm1655_vm11, %v14357_v62  ;;  %v7829_v32 = vpack.c.bf16 %v6533_v39, %v6532_v18 }
 0x73a   : > { %7655 = vmatmul.mubr.msk.f32.gmra.mrb[166].mxu0 %vm1655_vm11, %v14360_v49  ;;  %7827 = vmatpush1.bf16.msra.mxu1 %v7826_v12  ;;  %v9005_v12 = vpack.i.bf16 %v13957_v20, %v14016_v14 }
 0x73b   : > { %v5430_v9 = vrot.slane %v5413_v30, 7  ;;  %7828 = vmatprep.subr.bf16.mxu1 %v16154_v37 }
 0x73d   : > { %v14380_v11 = vsel %vm429_vm0, %v5478_v44, %v5430_v9  ;;  %v14383_v61 = vsel %vm429_vm0, %v5430_v9, %v5478_v44 }
 0x73e   : > { %v5638_v63 = vrot.slane %v14383_v61, 2  ;;  %v5639_v60 = vrot.slane %v14380_v11, 2  ;;  %v5574_v5 = vrot.slane %v14383_v61, 1  ;;  %v5575_v17 = vrot.slane %v14380_v11, 1  ;;  %7830 = vmatpush1.bf16.msra.mxu1 %v7829_v32 }
 0x73f   : > { %v9020_v32 = vpack.i.bf16 %v13975_v36, %v14042_v33 }
 0x740   : > { %v14391_v35 = vsel %vm591_vm2, %v5638_v63, %v5639_v60  ;;  %v14394_v2 = vsel %vm591_vm2, %v5639_v60, %v5638_v63  ;;  %v14397_v57 = vsel %vm526_vm1, %v5574_v5, %v5575_v17  ;;  %v14408_v18 = vsel %vm526_vm1, %v5575_v17, %v5574_v5 }
 0x741   : > { %16173 = vst [vmem:[#allocation61_spill] sm:$0xff] %v14394_v2  ;;  %16174 = vst [vmem:[#allocation9_spill] sm:$0xff] %v14397_v57  ;;  %v9010_v30 = vpack.i.bf16 %v14391_v35, %v13805_v22  ;;  %7657 = vmatprep.mubr.msk.f32.mxu0 %vm1655_vm11, %v14391_v35  ;;  %v9000_v37 = vpack.i.bf16 %v14397_v57, %v13878_v6  ;;  %v9015_v44 = vpack.i.bf16 %v14408_v18, %v13872_v40 }
 0x742   : > { %7658 = vmatmul.mubr.msk.f32.gmra.mrb[168].mxu0 %vm1655_vm11, %v14394_v2  ;;  %16175 = vst [vmem:[#allocation7_spill] sm:$0xff] %v14408_v18  ;;  %v9025_v63 = vpack.i.bf16 %v14394_v2, %v13802_v55  ;;  %v5606_v5 = vrot.slane %v14062_v21, 1 }
 0x743   : > { %7660 = vmatprep.mubr.msk.f32.mxu0 %vm1655_vm11, %v13878_v6  ;;  %9011 = vrot.lane.b32.xlu1 %v9010_v30, %s9348_s12 }
 0x744   : > { %9001 = vrot.lane.b32.xlu0 %v9000_v37, %s9346_s14 }
 0x745   : > { %v14414_v39 = vpop.permute.xlu0 %8851  ;;  %v14418_v9 = vpop.permute.xlu1 %8856 }
 0x746   : > { %16176 = vst [vmem:[#allocation34_spill] sm:$0xff] %v14418_v9  ;;  %7661 = vmatmul.mubr.msk.f32.gmra.mrb[170].mxu0 %vm1655_vm11, %v13872_v40  ;;  %v5607_v40 = vrot.slane %v14059_v43, 1 }
 0x747   : > { %9016 = vrot.lane.b32.xlu1 %v9015_v44, %s9346_s14  ;;  %v9035_v44 = vpack.i.bf16 %v13990_v53, %v14062_v21 }
 0x748   : > { %9006 = vrot.lane.b32.xlu0 %v9005_v12, %s9348_s12  ;;  %v9030_v12 = vpack.i.bf16 %v14068_v41, %v14032_v50  ;;  %v14444_v2 = vsel %vm526_vm1, %v5606_v5, %v5607_v40 }
 0x749   : > { %v14426_v6 = vpop.permute.xlu0 %8861  ;;  %v8867_v60 = vpop.permute.xlu1 %8866 }
 0x74a   : > { %16177 = vst [vmem:[#allocation53_spill] sm:$0xff] %v14426_v6  ;;  %v8869_v17 = vunpack.i.h.bf16 %v8867_v60  ;;  %v8868_v30 = vunpack.i.l.bf16 %v8867_v60  ;;  %v8864_v20 = vunpack.i.h.bf16 %v14426_v6 }
 0x74b   : > { %9021 = vrot.lane.b32.xlu1 %v9020_v32, %s9349_s13 }
 0x74c   : > { %9026 = vrot.lane.b32.xlu0 %v9025_v63, %s9348_s12  ;;  %v6409_v63 = vsel %vm1655_vm11, %v13825_v28, %v8868_v30  ;;  %v6313_v53 = vsel %vm1655_vm11, %v13792_v7, %v8869_v17  ;;  %v6312_v60 = vsel %vm1655_vm11, %v13795_v34, %v8864_v20  ;;  %v14465_v28 = vsel %vm526_vm1, %v5607_v40, %v5606_v5 }
 0x74d   : > { %v8877_v37 = vpop.permute.xlu0 %8876  ;;  %v14441_v36 = vpop.permute.xlu1 %8871  ;;  %v9040_v30 = vpack.i.bf16 %v14019_v25, %v14444_v2 }
 0x74e   : > { %16178 = vst [vmem:[#allocation80_spill] sm:$0xff] %v14441_v36  ;;  %v8879_v22 = vunpack.i.h.bf16 %v8877_v37  ;;  %v8878_v9 = vunpack.i.l.bf16 %v8877_v37  ;;  %v8874_v32 = vunpack.i.h.bf16 %v14441_v36  ;;  %v9045_v36 = vpack.i.bf16 %v14075_v46, %v14035_v54 }
 0x74f   : > { %9036 = vrot.lane.b32.xlu1 %v9035_v44, %s9348_s12 }
 0x750   : > { %9031 = vrot.lane.b32.xlu0 %v9030_v12, %s9346_s14  ;;  %v6441_v37 = vsel %vm2986_vm13, %v6409_v63, %v8878_v9  ;;  %v6345_v41 = vsel %vm2986_vm13, %v6313_v53, %v8879_v22  ;;  %v14462_v44 = vsel %vm2986_vm13, %v6312_v60, %v8874_v32  ;;  %v9055_v9 = vpack.i.bf16 %v14016_v14, %v14465_v28 }
 0x751   : > { %v14459_v6 = vpop.permute.xlu0 %8881  ;;  %v8887_v17 = vpop.permute.xlu1 %8886  ;;  %v9050_v63 = vpack.i.bf16 %v13993_v19, %v14059_v43  ;;  %v5611_v53 = vrot.slane %v14113_v51, 1 }
 0x752   : > { %v8889_v20 = vunpack.i.h.bf16 %v8887_v17  ;;  %v8888_v12 = vunpack.i.l.bf16 %v8887_v17  ;;  %v9060_v17 = vpack.i.bf16 %v14127_v13, %v14087_v29 }
 0x753   : > { %9046 = vrot.lane.b32.xlu1 %v9045_v36, %s9346_s14  ;;  %v5610_v36 = vrot.slane %v14116_v48, 1 }
 0x754   : > { %9041 = vrot.lane.b32.xlu0 %v9040_v30, %s9349_s13  ;;  %v14476_v32 = vsel %vm3019_vm14, %v6441_v37, %v8888_v12  ;;  %v14479_v5 = vsel %vm3019_vm14, %v6345_v41, %v8889_v20  ;;  %v9065_v41 = vpack.i.bf16 %v14032_v50, %v14116_v48  ;;  %v9075_v50 = vpack.i.bf16 %v14042_v33, %v14090_v52 }
 0x755   : > { %v14471_v22 = vpop.permute.xlu0 %8891  ;;  %v14481_v40 = vpop.permute.xlu1 %8896  ;;  %v14498_v30 = vsel %vm526_vm1, %v5610_v36, %v5611_v53 }
 0x756   : > { %v8899_v60 = vunpack.i.h.bf16 %v14481_v40 }
 0x757   : > { %9056 = vrot.lane.b32.xlu1 %v9055_v9, %s9349_s13  ;;  %v14510_v9 = vsel %vm526_vm1, %v5611_v53, %v5610_v36  ;;  %v9095_v36 = vpack.i.bf16 %v14087_v29, %v14169_v0  ;;  %v9090_v53 = vpack.i.bf16 %v14444_v2, %v14141_v3 }
 0x758   : > { %9051 = vrot.lane.b32.xlu0 %v9050_v63, %s9348_s12  ;;  %v6315_v20 = vsel %vm1655_vm11, %v13802_v55, %v8899_v60  ;;  %v9070_v63 = vpack.i.bf16 %v14062_v21, %v14498_v30  ;;  %v9085_v55 = vpack.i.bf16 %v14059_v43, %v14510_v9  ;;  %v9080_v60 = vpack.i.bf16 %v14035_v54, %v14113_v51 }
 0x759   : > { %v14490_v37 = vpop.permute.xlu0 %8906  ;;  %v9105_v54 = vpack.i.bf16 %v14465_v28, %v14144_v24 }
 0x75a   : > { %v8909_v19 = vunpack.i.h.bf16 %v14490_v37 }
 0x75b   : > { %9066 = vrot.lane.b32.xlu1 %v9065_v41, %s9348_s12  ;;  %v5614_v41 = vrot.slane %v14169_v0, 1 }
 0x75c   : > { %9061 = vrot.lane.b32.xlu0 %v9060_v17, %s9346_s14  ;;  %v14505_v12 = vsel %vm2986_vm13, %v6315_v20, %v8909_v19  ;;  %v5615_v17 = vrot.slane %v14166_v45, 1 }
 0x75e   : > { %v14529_v19 = vsel %vm526_vm1, %v5614_v41, %v5615_v17  ;;  %v14536_v20 = vsel %vm526_vm1, %v5615_v17, %v5614_v41  ;;  %v9125_v41 = vpack.i.bf16 %v14141_v3, %v14205_v47  ;;  %v9120_v17 = vpack.i.bf16 %v14498_v30, %v14183_v38 }
 0x75f   : > { %9076 = vrot.lane.b32.xlu1 %v9075_v50, %s9346_s14  ;;  %16179 = vst [vmem:[#allocation63_spill] sm:$0xff] %v14529_v19  ;;  %16180 = vst [vmem:[#allocation40_spill] sm:$0xff] %v14536_v20  ;;  %v9100_v50 = vpack.i.bf16 %v14116_v48, %v14529_v19  ;;  %v9115_v29 = vpack.i.bf16 %v14113_v51, %v14536_v20 }
 0x760   : > { %9071 = vrot.lane.b32.xlu0 %v9070_v63, %s9349_s13  ;;  %v9110_v63 = vpack.i.bf16 %v14090_v52, %v14166_v45  ;;  %v9135_v52 = vpack.i.bf16 %v14510_v9, %v14186_v15 }
 0x763   : > { %9086 = vrot.lane.b32.xlu1 %v9085_v55, %s9349_s13  ;;  %v5618_v55 = vrot.slane %v14205_v47, 1 }
 0x764   : > { %9081 = vrot.lane.b32.xlu0 %v9080_v60, %s9348_s12  ;;  %v5619_v60 = vrot.slane %v14202_v23, 1 }
 0x767   : > { %9096 = vrot.lane.b32.xlu1 %v9095_v36, %s9348_s12  ;;  %v14555_v36 = vsel %vm526_vm1, %v5618_v55, %v5619_v60 }
 0x768   : > { %9091 = vrot.lane.b32.xlu0 %v9090_v53, %s9346_s14  ;;  %16181 = vst [vmem:[#allocation62_spill] sm:$0xff] %v14555_v36  ;;  %v14562_v53 = vsel %vm526_vm1, %v5619_v60, %v5618_v55  ;;  %v9155_v55 = vpack.i.bf16 %v14183_v38, %v14241_v10  ;;  %v9150_v60 = vpack.i.bf16 %v14529_v19, %v14219_v59 }
 0x769   : > { %16182 = vst [vmem:[#allocation83_spill] sm:$0xff] %v14562_v53  ;;  %v9145_v3 = vpack.i.bf16 %v14166_v45, %v14562_v53 }
 0x76b   : > { %9106 = vrot.lane.b32.xlu1 %v9105_v54, %s9346_s14  ;;  %v9130_v54 = vpack.i.bf16 %v14169_v0, %v14555_v36 }
 0x76c   : > { %9101 = vrot.lane.b32.xlu0 %v9100_v50, %s9349_s13  ;;  %v9140_v50 = vpack.i.bf16 %v14144_v24, %v14202_v23  ;;  %v9165_v24 = vpack.i.bf16 %v14536_v20, %v14222_v16 }
 0x76f   : > { %9116 = vrot.lane.b32.xlu1 %v9115_v29, %s9349_s13  ;;  %v5622_v29 = vrot.slane %v14241_v10, 1 }
 0x770   : > { %9111 = vrot.lane.b32.xlu0 %v9110_v63, %s9348_s12  ;;  %v5623_v63 = vrot.slane %v14238_v31, 1 }
 0x773   : > { %9126 = vrot.lane.b32.xlu1 %v9125_v41, %s9348_s12  ;;  %v14574_v41 = vpop.permute.xlu1 %8901 }
 0x774   : > { %9121 = vrot.lane.b32.xlu0 %v9120_v17, %s9346_s14  ;;  %v14583_v17 = vsel %vm526_vm1, %v5622_v29, %v5623_v63 }
 0x775   : > { %16183 = vst [vmem:[#allocation64_spill] sm:$0xff] %v14583_v17  ;;  %v9160_v38 = vpack.i.bf16 %v14205_v47, %v14583_v17 }
 0x777   : > { %9136 = vrot.lane.b32.xlu1 %v9135_v52, %s9346_s14  ;;  %v14589_v52 = vpop.permute.xlu1 %8916 }
 0x778   : > { %9131 = vrot.lane.b32.xlu0 %v9130_v54, %s9349_s13  ;;  %v14592_v54 = vsel %vm526_vm1, %v5623_v63, %v5622_v29  ;;  %v5627_v29 = vrot.slane %v14274_v42, 1 }
 0x779   : > { %16184 = vst [vmem:[#allocation66_spill] sm:$0xff] %v14592_v54 }
 0x77b   : > { %9146 = vrot.lane.b32.xlu1 %v9145_v3, %s9349_s13  ;;  %v14594_v3 = vpop.permute.xlu0 %8911  ;;  %v14606_v63 = vpop.permute.xlu1 %8926 }
 0x77c   : > { %9141 = vrot.lane.b32.xlu0 %v9140_v50, %s9348_s12  ;;  %v9175_v50 = vpack.i.bf16 %v14202_v23, %v14592_v54 }
 0x77f   : > { %9156 = vrot.lane.b32.xlu1 %v9155_v55, %s9348_s12  ;;  %v9170_v55 = vpack.i.bf16 %v14186_v15, %v14238_v31  ;;  %v14609_v45 = vpop.permute.xlu0 %8921  ;;  %v14623_v23 = vpop.permute.xlu1 %8931 }
 0x780   : > { %9151 = vrot.lane.b32.xlu0 %v9150_v60, %s9346_s14  ;;  %v5626_v60 = vrot.slane %v14277_v56, 1 }
 0x782   : > { %v14617_v15 = vsel %vm526_vm1, %v5626_v60, %v5627_v29 }
 0x783   : > { %9166 = vrot.lane.b32.xlu1 %v9165_v24, %s9346_s14  ;;  %v9185_v24 = vpack.i.bf16 %v14219_v59, %v14277_v56  ;;  %16185 = vst [vmem:[#allocation41_spill] sm:$0xff] %v14617_v15  ;;  %v14628_v47 = vpop.permute.xlu0 %8936  ;;  %v9190_v59 = vpack.i.bf16 %v14241_v10, %v14617_v15  ;;  %v16189_v10 = vld [vmem:[#allocation32_spill] sm:$0xff] }
 0x784   : > { %9161 = vrot.lane.b32.xlu0 %v9160_v38, %s9349_s13  ;;  %v9180_v38 = vpack.i.bf16 %v14555_v36, %v14255_v58 }
 0x787   : > { %9176 = vrot.lane.b32.xlu1 %v9175_v50, %s9349_s13  ;;  %v9195_v50 = vpack.i.bf16 %v14562_v53, %v14258_v4  ;;  %v5630_v53 = vrot.slane %v14313_v8, 1  ;;  %v14643_v0 = vpop.permute.xlu0 %8941 }
 0x788   : > { %9171 = vrot.lane.b32.xlu0 %v9170_v55, %s9348_s12  ;;  %v14626_v55 = vsel %vm526_vm1, %v5627_v29, %v5626_v60  ;;  %v5631_v60 = vrot.slane %v14310_v1, 1  ;;  %v14640_v29 = vpop.permute.xlu1 %8946 }
 0x789   : > { %16186 = vst [vmem:[#allocation4_spill] sm:$0xff] %v14626_v55 }
 0x78b   : > { %9186 = vrot.lane.b32.xlu1 %v9185_v24, %s9348_s12  ;;  %v9205_v24 = vpack.i.bf16 %v14238_v31, %v14626_v55  ;;  %v14662_v51 = vpop.permute.xlu0 %8951 }
 0x78c   : > { %9181 = vrot.lane.b32.xlu0 %v9180_v38, %s9346_s14  ;;  %v9200_v38 = vpack.i.bf16 %v14222_v16, %v14274_v42  ;;  %v14651_v16 = vsel %vm526_vm1, %v5630_v53, %v5631_v60  ;;  %v14657_v36 = vpop.permute.xlu1 %8956 }
 0x78d   : > { %16188 = vst [vmem:[#allocation81_spill] sm:$0xff] %v14651_v16 }
 0x78f   : > { %9196 = vrot.lane.b32.xlu1 %v9195_v50, %s9346_s14  ;;  %v9215_v50 = vpack.i.bf16 %v14255_v58, %v14313_v8  ;;  %v9220_v58 = vpack.i.bf16 %v14277_v56, %v14651_v16  ;;  %v16193_v56 = vld [vmem:[#allocation37_spill] sm:$0xff] }
 0x790   : > { %9191 = vrot.lane.b32.xlu0 %v9190_v59, %s9349_s13  ;;  %v16187_v59 = vld [vmem:[#allocation36_spill] sm:$0xff] }
 0x791   : > { %v9210_v31 = vpack.i.bf16 %v14583_v17, %v16187_v59  ;;  %v14677_v17 = vpop.permute.xlu0 %8966 }
 0x793   : > { %9206 = vrot.lane.b32.xlu1 %v9205_v24, %s9349_s13  ;;  %v9225_v24 = vpack.i.bf16 %v14592_v54, %v16189_v10  ;;  %v5634_v54 = vrot.slane %v14349_v26, 1 }
 0x794   : > { %9201 = vrot.lane.b32.xlu0 %v9200_v38, %s9348_s12  ;;  %v14660_v38 = vsel %vm526_vm1, %v5631_v60, %v5630_v53  ;;  %v5635_v53 = vrot.slane %v14346_v27, 1  ;;  %v14674_v60 = vpop.permute.xlu1 %8961 }
 0x795   : > { %16190 = vst [vmem:[#allocation39_spill] sm:$0xff] %v14660_v38 }
 0x797   : > { %9216 = vrot.lane.b32.xlu1 %v9215_v50, %s9348_s12  ;;  %v9230_v50 = vpack.i.bf16 %v14258_v4, %v14310_v1  ;;  %v14685_v4 = vsel %vm526_vm1, %v5634_v54, %v5635_v53 }
 0x798   : > { %9211 = vrot.lane.b32.xlu0 %v9210_v31, %s9346_s14  ;;  %v9235_v31 = vpack.i.bf16 %v14274_v42, %v14660_v38  ;;  %16192 = vst [vmem:[#allocation5_spill] sm:$0xff] %v14685_v4  ;;  %v14691_v20 = vpop.permute.xlu1 %8976  ;;  %v9250_v19 = vpack.i.bf16 %v14313_v8, %v14685_v4 }
 0x79b   : > { %9226 = vrot.lane.b32.xlu1 %v9225_v24, %s9346_s14  ;;  %v9245_v24 = vpack.i.bf16 %v16187_v59, %v14349_v26  ;;  %v14698_v59 = vpop.permute.xlu0 %8971 }
 0x79c   : > { %9221 = vrot.lane.b32.xlu0 %v9220_v58, %s9349_s13  ;;  %v16191_v58 = vld [vmem:[#allocation51_spill] sm:$0xff] }
 0x79d   : > { %v9240_v42 = vpack.i.bf16 %v14617_v15, %v16191_v58 }
 0x79f   : > { %9236 = vrot.lane.b32.xlu1 %v9235_v31, %s9349_s13  ;;  %v9255_v31 = vpack.i.bf16 %v14626_v55, %v16193_v56 }
 0x7a0   : > { %9231 = vrot.lane.b32.xlu0 %v9230_v50, %s9348_s12  ;;  %v14696_v50 = vsel %vm526_vm1, %v5635_v53, %v5634_v54  ;;  %v14713_v54 = vpop.permute.xlu0 %8981 }
 0x7a1   : > { %16195 = vst [vmem:[#allocation38_spill] sm:$0xff] %v14696_v50 }
 0x7a3   : > { %9246 = vrot.lane.b32.xlu1 %v9245_v24, %s9348_s12  ;;  %v9260_v24 = vpack.i.bf16 %v16189_v10, %v14346_v27  ;;  %v9280_v10 = vpack.i.bf16 %v14660_v38, %v14360_v49 }
 0x7a4   : > { %9241 = vrot.lane.b32.xlu0 %v9240_v42, %s9346_s14  ;;  %v9265_v42 = vpack.i.bf16 %v14310_v1, %v14696_v50 }
 0x7a5   : > { %v14693_v48 = vpop.f32.mrb[140].mxu0 }
 0x7a6   : > { %16194 = vst [vmem:[#allocation54_spill] sm:$0xff] %v14693_v48  ;;  %v14700_v15 = vpop.f32.mrb[141].mxu0  ;;  %v14710_v48 = vpop.permute.xlu1 %8986 }
 0x7a7   : > { %16196 = vst [vmem:[#allocation82_spill] sm:$0xff] %v14700_v15  ;;  %9256 = vrot.lane.b32.xlu1 %v9255_v31, %s9346_s14  ;;  %v9275_v31 = vpack.i.bf16 %v16191_v58, %v14383_v61  ;;  %v9290_v58 = vpack.i.bf16 %v14357_v62, %v13795_v34  ;;  %v9300_v34 = vpack.i.bf16 %v14346_v27, %v14408_v18 }
 0x7a8   : > { %9251 = vrot.lane.b32.xlu0 %v9250_v19, %s9349_s13  ;;  %v9270_v19 = vpack.i.bf16 %v14651_v16, %v14357_v62  ;;  %v9295_v16 = vpack.i.bf16 %v14349_v26, %v14397_v57  ;;  %v8854_v62 = vunpack.i.h.bf16 %v14414_v39 }
 0x7ab   : > { %9266 = vrot.lane.b32.xlu1 %v9265_v42, %s9349_s13  ;;  %v14728_v42 = vpop.permute.xlu1 %8991 }
 0x7ac   : > { %9261 = vrot.lane.b32.xlu0 %v9260_v24, %s9348_s12  ;;  %v14730_v24 = vpop.permute.xlu0 %8996 }
 0x7ad   : > { %v14716_v53 = vpop.f32.mrb[142].mxu0 }
 0x7ae   : > { %16197 = vst [vmem:[#allocation42_spill] sm:$0xff] %v14716_v53  ;;  %v14722_v15 = vpop.f32.mrb[143].mxu0  ;;  %v9285_v53 = vpack.i.bf16 %v16193_v56, %v14380_v11 }
 0x7af   : > { %16198 = vst [vmem:[#allocation71_spill] sm:$0xff] %v14722_v15  ;;  %9276 = vrot.lane.b32.xlu1 %v9275_v31, %s9348_s12 }
 0x7b0   : > { %9271 = vrot.lane.b32.xlu0 %v9270_v19, %s9346_s14 }
 0x7b3   : > { %9281 = vrot.lane.b32.xlu1 %v9280_v10, %s9346_s14 }
 0x7b4   : > { %9286 = vrot.lane.b32.xlu0 %v9285_v53, %s9348_s12  ;;  %v8853_v53 = vunpack.i.l.bf16 %v14414_v39 }
 0x7b5   : > { %v14738_v31 = vpop.f32.mrb[144].mxu0  ;;  %v9012_v19 = vpop.permute.xlu1 %9011 }
 0x7b6   : > { %16199 = vst [vmem:[#allocation55_spill] sm:$0xff] %v14738_v31  ;;  %v9014_v15 = vunpack.i.h.bf16 %v9012_v19  ;;  %v9013_v1 = vunpack.i.l.bf16 %v9012_v19  ;;  %v9002_v8 = vpop.permute.xlu0 %9001  ;;  %v14740_v38 = vpop.f32.mrb[145].mxu0  ;;  %v16201_v31 = vld [vmem:[#allocation26_spill] sm:$0xff] }
 0x7b7   : > { %16200 = vst [vmem:[#allocation90_spill] sm:$0xff] %v14740_v38  ;;  %v9004_v55 = vunpack.i.h.bf16 %v9002_v8  ;;  %v9003_v56 = vunpack.i.l.bf16 %v9002_v8  ;;  %9291 = vrot.lane.b32.xlu1 %v9290_v58, %s9348_s12  ;;  %v9305_v8 = vpack.i.bf16 %v14685_v4, %v14391_v35  ;;  %v8884_v4 = vunpack.i.h.bf16 %v14459_v6 }
 0x7b8   : > { %9296 = vrot.lane.b32.xlu0 %v9295_v16, %s9349_s13 }
 0x7b9   : > { %v6310_v10 = vsel %vm1655_vm11, %v14383_v61, %v9004_v55  ;;  %v9017_v19 = vpop.permute.xlu1 %9016  ;;  %v6406_v38 = vsel %vm1655_vm11, %v16201_v31, %v9003_v56  ;;  %v16202_v56 = vld [vmem:[#allocation61_spill] sm:$0xff] }
 0x7ba   : > { %v14756_v58 = vpop.permute.xlu0 %9006  ;;  %v6438_v16 = vsel %vm2986_vm13, %v6406_v38, %v9013_v1  ;;  %v6342_v27 = vsel %vm2986_vm13, %v6310_v10, %v9014_v15  ;;  %v9019_v55 = vunpack.i.h.bf16 %v9017_v19  ;;  %v9018_v26 = vunpack.i.l.bf16 %v9017_v19  ;;  %v16204_v15 = vld [vmem:[#allocation53_spill] sm:$0xff]  ;;  %v16207_v19 = vld [vmem:[#allocation80_spill] sm:$0xff] }
 0x7bb   : > { %9301 = vrot.lane.b32.xlu1 %v9300_v34, %s9349_s13  ;;  %v6470_v39 = vsel %vm3019_vm14, %v6438_v16, %v8853_v53  ;;  %v6374_v18 = vsel %vm3019_vm14, %v6342_v27, %v8854_v62  ;;  %v9315_v35 = vpack.i.bf16 %v14696_v50, %v16202_v56  ;;  %v8863_v38 = vunpack.i.l.bf16 %v16204_v15  ;;  %v16206_v62 = vld [vmem:[#allocation34_spill] sm:$0xff]  ;;  %v16209_v50 = vld [vmem:[#allocation49_spill] sm:$0xff] }
 0x7bc   : > { %9306 = vrot.lane.b32.xlu0 %v9305_v8, %s9346_s14  ;;  %6673 = vmatprep.mubr.f32.mxu1 %v6470_v39  ;;  %v9310_v27 = vpack.i.bf16 %v14383_v61, %v16201_v31  ;;  %v8859_v53 = vunpack.i.h.bf16 %v16206_v62  ;;  %v8873_v8 = vunpack.i.l.bf16 %v16207_v19  ;;  %v8883_v56 = vunpack.i.l.bf16 %v14459_v6  ;;  %v16208_v15 = vld [vmem:[#allocation50_spill] sm:$0xff] }
 0x7bd   : > { %6674 = vmatmul.mubr.f32.vlgmr.msra.gmra.mrb[84].mxu1 %v6374_v18  ;;  %v14766_v57 = vpop.f32.mrb[146].mxu0  ;;  %v14768_v1 = vpop.permute.xlu1 %9021  ;;  %v8858_v18 = vunpack.i.l.bf16 %v16206_v62  ;;  %v6311_v61 = vsel %vm1655_vm11, %v14380_v11, %v9019_v55  ;;  %v9320_v62 = vpack.i.bf16 %v14360_v49, %v13792_v7  ;;  %v6408_v55 = vsel %vm1655_vm11, %v16209_v50, %v8863_v38 }
 0x7be   : > { %16203 = vst [vmem:[#allocation43_spill] sm:$0xff] %v14766_v57  ;;  %v9027_v34 = vpop.permute.xlu0 %9026  ;;  %v14771_v10 = vpop.f32.mrb[147].mxu0  ;;  %v6407_v57 = vsel %vm1655_vm11, %v16208_v15, %v9018_v26  ;;  %v8903_v38 = vunpack.i.l.bf16 %v14574_v41 }
 0x7bf   : > { %16205 = vst [vmem:[#allocation72_spill] sm:$0xff] %v14771_v10  ;;  %v9029_v16 = vunpack.i.h.bf16 %v9027_v34  ;;  %v9028_v39 = vunpack.i.l.bf16 %v9027_v34  ;;  %9316 = vrot.lane.b32.xlu1 %v9315_v35, %s9346_s14  ;;  %v9325_v34 = vpack.i.bf16 %v14380_v11, %v16208_v15  ;;  %v6440_v11 = vsel %vm2986_vm13, %v6408_v55, %v8873_v8 }
 0x7c0   : > { %9311 = vrot.lane.b32.xlu0 %v9310_v27, %s9349_s13  ;;  %v6472_v7 = vsel %vm3019_vm14, %v6440_v11, %v8883_v56  ;;  %v6376_v8 = vsel %vm3019_vm14, %v14462_v44, %v8884_v4  ;;  %v8898_v56 = vunpack.i.l.bf16 %v14481_v40  ;;  %v8904_v15 = vunpack.i.h.bf16 %v14574_v41  ;;  %v16212_v11 = vld [vmem:[#allocation12_spill] sm:$0xff] }
 0x7c1   : > { %v14785_v31 = vpop.permute.xlu1 %9036  ;;  %v6439_v19 = vsel %vm2986_vm13, %v6407_v57, %v9028_v39  ;;  %v6343_v35 = vsel %vm2986_vm13, %v6311_v61, %v9029_v16  ;;  %v8913_v16 = vunpack.i.l.bf16 %v14594_v3  ;;  %v8894_v39 = vunpack.i.h.bf16 %v14471_v22 }
 0x7c2   : > { %v14793_v10 = vpop.permute.xlu0 %9031  ;;  %v6471_v27 = vsel %vm3019_vm14, %v6439_v19, %v8858_v18  ;;  %v6375_v26 = vsel %vm3019_vm14, %v6343_v35, %v8859_v53  ;;  %v8893_v53 = vunpack.i.l.bf16 %v14471_v22  ;;  %v16210_v19 = vld [vmem:[#allocation15_spill] sm:$0xff]  ;;  %v8908_v44 = vunpack.i.l.bf16 %v14490_v37 }
 0x7c3   : > { %6678 = vmatprep.mubr.f32.mxu1 %v6471_v27  ;;  %9326 = vrot.lane.b32.xlu1 %v9325_v34, %s9349_s13  ;;  %v8914_v4 = vunpack.i.h.bf16 %v14594_v3  ;;  %v8918_v22 = vunpack.i.l.bf16 %v14589_v52  ;;  %v8923_v37 = vunpack.i.l.bf16 %v14609_v45 }
 0x7c4   : > { %9321 = vrot.lane.b32.xlu0 %v9320_v62, %s9348_s12  ;;  %6679 = vmatmul.mubr.f32.gmra.mrb[86].mxu1 %v6375_v26  ;;  %v6410_v34 = vsel %vm1655_vm11, %v16210_v19, %v8893_v53  ;;  %v16211_v62 = vld [vmem:[#allocation31_spill] sm:$0xff]  ;;  %v8933_v53 = vunpack.i.l.bf16 %v14623_v23  ;;  %v8924_v19 = vunpack.i.h.bf16 %v14609_v45 }
 0x7c5   : > { %6683 = vmatprep.mubr.f32.mxu1 %v6472_v7  ;;  %v14804_v49 = vpop.f32.mrb[148].mxu0  ;;  %v14806_v57 = vpop.permute.xlu1 %9046  ;;  %v6442_v35 = vsel %vm2986_vm13, %v6410_v34, %v8903_v38  ;;  %v6314_v27 = vsel %vm1655_vm11, %v16211_v62, %v8894_v39  ;;  %v8919_v7 = vunpack.i.h.bf16 %v14589_v52  ;;  %v8934_v52 = vunpack.i.h.bf16 %v14623_v23 }
 0x7c6   : > { %v14809_v50 = vpop.permute.xlu0 %9041  ;;  %v14811_v6 = vpop.f32.mrb[149].mxu0  ;;  %v6346_v55 = vsel %vm2986_vm13, %v6314_v27, %v8904_v15  ;;  %v8948_v62 = vunpack.i.l.bf16 %v14640_v29  ;;  %v8929_v23 = vunpack.i.h.bf16 %v14606_v63 }
 0x7c7   : > { %v6378_v38 = vsel %vm3019_vm14, %v6346_v55, %v8914_v4 }
 0x7c8   : > { %6684 = vmatmul.mubr.f32.gmra.mrb[88].mxu1 %v6376_v8 }
 0x7c9   : > { %6688 = vmatprep.mubr.f32.mxu1 %v14476_v32  ;;  %v14819_v18 = vpop.permute.xlu1 %9056  ;;  %v6474_v32 = vsel %vm3019_vm14, %v6442_v35, %v8913_v16  ;;  %v8943_v16 = vunpack.i.l.bf16 %v14643_v0  ;;  %v16213_v35 = vld [vmem:[#allocation11_spill] sm:$0xff] }
 0x7ca   : > { %v14823_v61 = vpop.permute.xlu0 %9051  ;;  %v6412_v4 = vsel %vm1655_vm11, %v16213_v35, %v8923_v37 }
 0x7cb   : > { %v6444_v45 = vsel %vm2986_vm13, %v6412_v4, %v8933_v53 }
 0x7cc   : > { %6689 = vmatmul.mubr.f32.gmra.mrb[90].mxu1 %v14479_v5  ;;  %v6411_v5 = vsel %vm1655_vm11, %v16212_v11, %v8898_v56  ;;  %v8928_v56 = vunpack.i.l.bf16 %v14606_v63  ;;  %v6476_v27 = vsel %vm3019_vm14, %v6444_v45, %v8943_v16  ;;  %v16214_v11 = vld [vmem:[#allocation14_spill] sm:$0xff]  ;;  %v8949_v16 = vunpack.i.h.bf16 %v14640_v29  ;;  %v16216_v45 = vld [vmem:[#allocation19_spill] sm:$0xff] }
 0x7cd   : > { %6693 = vmatprep.mubr.f32.mxu1 %v6474_v32  ;;  %v14833_v40 = vpop.f32.mrb[150].mxu0  ;;  %v14835_v41 = vpop.permute.xlu1 %9066  ;;  %v6443_v8 = vsel %vm2986_vm13, %v6411_v5, %v8908_v44  ;;  %v8938_v44 = vunpack.i.l.bf16 %v14628_v47  ;;  %v8944_v32 = vunpack.i.h.bf16 %v14643_v0  ;;  %v6316_v0 = vsel %vm1655_vm11, %v16214_v11, %v8924_v19  ;;  %v16217_v11 = vld [vmem:[#allocation25_spill] sm:$0xff] }
 0x7ce   : > { %v14840_v26 = vpop.permute.xlu0 %9061  ;;  %v14842_v3 = vpop.f32.mrb[151].mxu0  ;;  %v6475_v39 = vsel %vm3019_vm14, %v6443_v8, %v8918_v22  ;;  %v6379_v22 = vsel %vm3019_vm14, %v14505_v12, %v8919_v7  ;;  %v8939_v5 = vunpack.i.h.bf16 %v14628_v47  ;;  %v8953_v12 = vunpack.i.l.bf16 %v14662_v51  ;;  %v16215_v8 = vld [vmem:[#allocation10_spill] sm:$0xff] }
 0x7cf   : > { %v6413_v63 = vsel %vm1655_vm11, %v16215_v8, %v8928_v56  ;;  %v8973_v47 = vunpack.i.l.bf16 %v14698_v59  ;;  %v6317_v56 = vsel %vm1655_vm11, %v16216_v45, %v8929_v23  ;;  %v8958_v29 = vunpack.i.l.bf16 %v14657_v36 }
 0x7d0   : > { %6694 = vmatmul.mubr.f32.gmra.mrb[92].mxu1 %v6378_v38  ;;  %v6348_v38 = vsel %vm2986_vm13, %v6316_v0, %v8934_v52  ;;  %v6445_v19 = vsel %vm2986_vm13, %v6413_v63, %v8938_v44  ;;  %v6349_v44 = vsel %vm2986_vm13, %v6317_v56, %v8939_v5  ;;  %v6414_v0 = vsel %vm1655_vm11, %v16217_v11, %v8953_v12  ;;  %v16219_v56 = vld [vmem:[#allocation20_spill] sm:$0xff] }
 0x7d1   : > { %6698 = vmatprep.mubr.f32.mxu1 %v6475_v39  ;;  %v14854_v15 = vpop.permute.xlu1 %9076  ;;  %v8963_v39 = vunpack.i.l.bf16 %v14674_v60  ;;  %v6380_v35 = vsel %vm3019_vm14, %v6348_v38, %v8944_v32  ;;  %v6477_v4 = vsel %vm3019_vm14, %v6445_v19, %v8948_v62  ;;  %v8968_v62 = vunpack.i.l.bf16 %v14677_v17 }
 0x7d2   : > { %v14858_v34 = vpop.permute.xlu0 %9071  ;;  %v6381_v38 = vsel %vm3019_vm14, %v6349_v44, %v8949_v16  ;;  %v8978_v23 = vunpack.i.l.bf16 %v14691_v20  ;;  %v8983_v63 = vunpack.i.l.bf16 %v14713_v54  ;;  %v8959_v5 = vunpack.i.h.bf16 %v14657_v36 }
 0x7d3   : > { %v6446_v8 = vsel %vm2986_vm13, %v6414_v0, %v8963_v39  ;;  %v8969_v39 = vunpack.i.h.bf16 %v14677_v17  ;;  %v6415_v36 = vsel %vm1655_vm11, %v16219_v56, %v8958_v29  ;;  %v8979_v44 = vunpack.i.h.bf16 %v14691_v20  ;;  %v16221_v20 = vld [vmem:[#allocation2_spill] sm:$0xff]  ;;  %v16222_v56 = vld [vmem:[#allocation21_spill] sm:$0xff] }
 0x7d4   : > { %6699 = vmatmul.mubr.f32.gmra.mrb[94].mxu1 %v6379_v22  ;;  %v8954_v22 = vunpack.i.h.bf16 %v14662_v51  ;;  %v8974_v51 = vunpack.i.h.bf16 %v14698_v59  ;;  %v16218_v59 = vld [vmem:[#allocation13_spill] sm:$0xff]  ;;  %v8984_v11 = vunpack.i.h.bf16 %v14713_v54  ;;  %v8998_v17 = vunpack.i.l.bf16 %v14730_v24 }
 0x7d5   : > { %6703 = vmatprep.mubr.f32.mxu1 %v6476_v27  ;;  %v14870_v55 = vpop.f32.mrb[152].mxu0  ;;  %v14872_v37 = vpop.permute.xlu1 %9086  ;;  %v8964_v27 = vunpack.i.h.bf16 %v14674_v60  ;;  %v6478_v60 = vsel %vm3019_vm14, %v6446_v8, %v8973_v47  ;;  %v6319_v54 = vsel %vm1655_vm11, %v16221_v20, %v8959_v5  ;;  %v9023_v5 = vunpack.i.l.bf16 %v14768_v1 }
 0x7d6   : > { %v14878_v7 = vpop.permute.xlu0 %9081  ;;  %v14880_v53 = vpop.f32.mrb[153].mxu0  ;;  %v6318_v16 = vsel %vm1655_vm11, %v16218_v59, %v8954_v22  ;;  %v8994_v22 = vunpack.i.h.bf16 %v14728_v42 }
 0x7d7   : > { %v6350_v47 = vsel %vm2986_vm13, %v6318_v16, %v8964_v27  ;;  %v6351_v16 = vsel %vm2986_vm13, %v6319_v54, %v8969_v39  ;;  %v9009_v39 = vunpack.i.h.bf16 %v14756_v58 }
 0x7d8   : > { %6704 = vmatmul.mubr.f32.gmra.mrb[96].mxu1 %v6380_v35  ;;  %v8993_v35 = vunpack.i.l.bf16 %v14728_v42  ;;  %v6382_v0 = vsel %vm3019_vm14, %v6350_v47, %v8974_v51  ;;  %v8988_v42 = vunpack.i.l.bf16 %v14710_v48  ;;  %v6383_v47 = vsel %vm3019_vm14, %v6351_v16, %v8979_v44 }
 0x7d9   : > { %6708 = vmatprep.mubr.f32.mxu1 %v6477_v4  ;;  %v14892_v52 = vpop.permute.xlu1 %9096  ;;  %v9024_v44 = vunpack.i.h.bf16 %v14768_v1  ;;  %v9048_v1 = vunpack.i.l.bf16 %v14806_v57 }
 0x7da   : > { %v14898_v32 = vpop.permute.xlu0 %9091 }
 0x7dc   : > { %6709 = vmatmul.mubr.f32.gmra.mrb[98].mxu1 %v6381_v38  ;;  %v6447_v38 = vsel %vm2986_vm13, %v6415_v36, %v8968_v62  ;;  %v8989_v62 = vunpack.i.h.bf16 %v14710_v48  ;;  %v6320_v36 = vsel %vm1655_vm11, %v16222_v56, %v8984_v11 }
 0x7dd   : > { %6713 = vmatprep.mubr.f32.mxu1 %v6478_v60  ;;  %v14912_v12 = vpop.f32.mrb[154].mxu0  ;;  %v14914_v19 = vpop.permute.xlu1 %9106  ;;  %v6479_v8 = vsel %vm3019_vm14, %v6447_v38, %v8978_v23  ;;  %v16220_v60 = vld [vmem:[#allocation18_spill] sm:$0xff]  ;;  %v8999_v23 = vunpack.i.h.bf16 %v14730_v24 }
 0x7de   : > { %v14919_v4 = vpop.permute.xlu0 %9101  ;;  %v14921_v45 = vpop.f32.mrb[155].mxu0  ;;  %v6416_v27 = vsel %vm1655_vm11, %v16220_v60, %v8983_v63  ;;  %v9008_v63 = vunpack.i.l.bf16 %v14756_v58  ;;  %v6417_v60 = vsel %vm1655_vm11, %v14075_v46, %v8988_v42  ;;  %v9034_v58 = vunpack.i.h.bf16 %v14793_v10 }
 0x7df   : > { %v6448_v51 = vsel %vm2986_vm13, %v6416_v27, %v8993_v35  ;;  %v9033_v35 = vunpack.i.l.bf16 %v14793_v10  ;;  %v16223_v27 = vld [vmem:[#allocation24_spill] sm:$0xff] }
 0x7e0   : > { %6714 = vmatmul.mubr.f32.gmra.mrb[100].mxu1 %v6382_v0  ;;  %v6480_v48 = vsel %vm3019_vm14, %v6448_v51, %v8998_v17  ;;  %v6352_v0 = vsel %vm2986_vm13, %v6320_v36, %v8994_v22  ;;  %v6321_v17 = vsel %vm1655_vm11, %v16223_v27, %v8989_v62  ;;  %v9038_v22 = vunpack.i.l.bf16 %v14785_v31 }
 0x7e1   : > { %6718 = vmatprep.mubr.f32.mxu1 %v6479_v8  ;;  %v14935_v29 = vpop.permute.xlu1 %9116  ;;  %v6384_v20 = vsel %vm3019_vm14, %v6352_v0, %v8999_v23  ;;  %v6449_v54 = vsel %vm2986_vm13, %v6417_v60, %v9008_v63  ;;  %v9043_v51 = vunpack.i.l.bf16 %v14809_v50  ;;  %v6418_v46 = vsel %vm1655_vm11, %v14127_v13, %v9033_v35  ;;  %v16224_v35 = vld [vmem:[#allocation17_spill] sm:$0xff] }
 0x7e2   : > { %v14942_v59 = vpop.permute.xlu0 %9111  ;;  %v6481_v16 = vsel %vm3019_vm14, %v6449_v54, %v9023_v5  ;;  %v9053_v62 = vunpack.i.l.bf16 %v14823_v61  ;;  %v6353_v10 = vsel %vm2986_vm13, %v6321_v17, %v9009_v39  ;;  %v9039_v23 = vunpack.i.h.bf16 %v14785_v31 }
 0x7e3   : > { %v9049_v63 = vunpack.i.h.bf16 %v14806_v57  ;;  %v6385_v56 = vsel %vm3019_vm14, %v6353_v10, %v9024_v44  ;;  %v9044_v36 = vunpack.i.h.bf16 %v14809_v50  ;;  %v9054_v5 = vunpack.i.h.bf16 %v14823_v61 }
 0x7e4   : > { %6719 = vmatmul.mubr.f32.gmra.mrb[102].mxu1 %v6383_v47  ;;  %v6450_v13 = vsel %vm2986_vm13, %v6418_v46, %v9038_v22  ;;  %v9058_v0 = vunpack.i.l.bf16 %v14819_v18  ;;  %v9063_v39 = vunpack.i.l.bf16 %v14840_v26  ;;  %v6419_v57 = vsel %vm1655_vm11, %v14042_v33, %v9048_v1 }
 0x7e5   : > { %6723 = vmatprep.mubr.f32.mxu1 %v6480_v48  ;;  %v14955_v24 = vpop.f32.mrb[156].mxu0  ;;  %v14957_v38 = vpop.permute.xlu1 %9126  ;;  %v6322_v48 = vsel %vm1655_vm11, %v16224_v35, %v9034_v58  ;;  %v6482_v31 = vsel %vm3019_vm14, %v6450_v13, %v9043_v51  ;;  %v6451_v61 = vsel %vm2986_vm13, %v6419_v57, %v9053_v62  ;;  %v9059_v60 = vunpack.i.h.bf16 %v14819_v18  ;;  %v16225_v58 = vld [vmem:[#allocation16_spill] sm:$0xff] }
 0x7e6   : > { %v14960_v8 = vpop.permute.xlu0 %9121  ;;  %v14962_v11 = vpop.f32.mrb[157].mxu0  ;;  %v6354_v22 = vsel %vm2986_vm13, %v6322_v48, %v9039_v23  ;;  %v9068_v33 = vunpack.i.l.bf16 %v14835_v41  ;;  %v9064_v54 = vunpack.i.h.bf16 %v14840_v26  ;;  %v9073_v18 = vunpack.i.l.bf16 %v14858_v34 }
 0x7e7   : > { %v6386_v1 = vsel %vm3019_vm14, %v6354_v22, %v9044_v36  ;;  %v6483_v46 = vsel %vm3019_vm14, %v6451_v61, %v9058_v0  ;;  %v6420_v62 = vsel %vm1655_vm11, %v14444_v2, %v9063_v39  ;;  %v9083_v10 = vunpack.i.l.bf16 %v14878_v7 }
 0x7e8   : > { %6724 = vmatmul.mubr.f32.gmra.mrb[104].mxu1 %v6384_v20  ;;  %v6323_v20 = vsel %vm1655_vm11, %v16225_v58, %v9049_v63  ;;  %v9069_v26 = vunpack.i.h.bf16 %v14835_v41  ;;  %v9079_v63 = vunpack.i.h.bf16 %v14854_v15  ;;  %v9084_v13 = vunpack.i.h.bf16 %v14878_v7 }
 0x7e9   : > { %6728 = vmatprep.mubr.f32.mxu1 %v6481_v16  ;;  %v14978_v42 = vpop.permute.xlu1 %9136  ;;  %v6355_v51 = vsel %vm2986_vm13, %v6323_v20, %v9054_v5  ;;  %v9078_v16 = vunpack.i.l.bf16 %v14854_v15  ;;  %v9074_v5 = vunpack.i.h.bf16 %v14858_v34  ;;  %v6452_v35 = vsel %vm2986_vm13, %v6420_v62, %v9068_v33 }
 0x7ea   : > { %v14983_v47 = vpop.permute.xlu0 %9131  ;;  %v6387_v36 = vsel %vm3019_vm14, %v6355_v51, %v9059_v60  ;;  %v6324_v2 = vsel %vm1655_vm11, %v14019_v25, %v9064_v54  ;;  %v9088_v48 = vunpack.i.l.bf16 %v14872_v37  ;;  %v9093_v0 = vunpack.i.l.bf16 %v14898_v32 }
 0x7eb   : > { %v6484_v41 = vsel %vm3019_vm14, %v6452_v35, %v9073_v18  ;;  %v6421_v15 = vsel %vm1655_vm11, %v14465_v28, %v9078_v16  ;;  %v6356_v61 = vsel %vm2986_vm13, %v6324_v2, %v9069_v26  ;;  %v6325_v60 = vsel %vm1655_vm11, %v14016_v14, %v9079_v63 }
 0x7ec   : > { %6729 = vmatmul.mubr.f32.gmra.mrb[106].mxu1 %v6385_v56  ;;  %v6453_v7 = vsel %vm2986_vm13, %v6421_v15, %v9083_v10  ;;  %v9098_v28 = vunpack.i.l.bf16 %v14892_v52  ;;  %v9094_v22 = vunpack.i.h.bf16 %v14898_v32  ;;  %v6388_v58 = vsel %vm3019_vm14, %v6356_v61, %v9074_v5  ;;  %v16226_v61 = vld [vmem:[#allocation63_spill] sm:$0xff] }
 0x7ed   : > { %6733 = vmatprep.mubr.f32.mxu1 %v6482_v31  ;;  %v14996_v44 = vpop.f32.mrb[158].mxu0  ;;  %v14998_v50 = vpop.permute.xlu1 %9146  ;;  %v9089_v31 = vunpack.i.h.bf16 %v14872_v37  ;;  %v6357_v20 = vsel %vm2986_vm13, %v6325_v60, %v9084_v13  ;;  %v9108_v33 = vunpack.i.l.bf16 %v14914_v19  ;;  %v9103_v37 = vunpack.i.l.bf16 %v14919_v4 }
 0x7ee   : > { %v15002_v27 = vpop.permute.xlu0 %9141  ;;  %v15004_v17 = vpop.f32.mrb[159].mxu0  ;;  %v6485_v54 = vsel %vm3019_vm14, %v6453_v7, %v9088_v48  ;;  %v9113_v14 = vunpack.i.l.bf16 %v14942_v59  ;;  %v9099_v32 = vunpack.i.h.bf16 %v14892_v52  ;;  %v9109_v16 = vunpack.i.h.bf16 %v14914_v19 }
 0x7ef   : > { %v9104_v62 = vunpack.i.h.bf16 %v14919_v4  ;;  %v9114_v10 = vunpack.i.h.bf16 %v14942_v59  ;;  %v9118_v63 = vunpack.i.l.bf16 %v14935_v29  ;;  %v6423_v19 = vsel %vm1655_vm11, %v14510_v9, %v9108_v33 }
 0x7f0   : > { %6734 = vmatmul.mubr.f32.gmra.mrb[108].mxu1 %v6386_v1  ;;  %v6422_v1 = vsel %vm1655_vm11, %v14498_v30, %v9093_v0  ;;  %v6326_v30 = vsel %vm1655_vm11, %v14062_v21, %v9094_v22  ;;  %v6455_v59 = vsel %vm2986_vm13, %v6423_v19, %v9113_v14  ;;  %v9119_v13 = vunpack.i.h.bf16 %v14935_v29 }
 0x7f1   : > { %6738 = vmatprep.mubr.f32.mxu1 %v6483_v46  ;;  %v15019_v23 = vpop.permute.xlu1 %9156  ;;  %v6389_v46 = vsel %vm3019_vm14, %v6357_v20, %v9089_v31  ;;  %v6454_v26 = vsel %vm2986_vm13, %v6422_v1, %v9098_v28  ;;  %v6358_v2 = vsel %vm2986_vm13, %v6326_v30, %v9099_v32  ;;  %v6327_v48 = vsel %vm1655_vm11, %v14059_v43, %v9109_v16  ;;  %v16227_v1 = vld [vmem:[#allocation28_spill] sm:$0xff] }
 0x7f2   : > { %v15023_v56 = vpop.permute.xlu0 %9151  ;;  %v6486_v52 = vsel %vm3019_vm14, %v6454_v26, %v9103_v37  ;;  %v9128_v9 = vunpack.i.l.bf16 %v14957_v38  ;;  %v9124_v0 = vunpack.i.h.bf16 %v14960_v8  ;;  %v6359_v15 = vsel %vm2986_vm13, %v6327_v48, %v9114_v10 }
 0x7f3   : > { %v9138_v7 = vunpack.i.l.bf16 %v14978_v42  ;;  %v9133_v29 = vunpack.i.l.bf16 %v14983_v47  ;;  %v6487_v31 = vsel %vm3019_vm14, %v6455_v59, %v9118_v63  ;;  %v9143_v43 = vunpack.i.l.bf16 %v15002_v27 }
 0x7f4   : > { %6739 = vmatmul.mubr.f32.gmra.mrb[110].mxu1 %v6387_v36  ;;  %v9123_v36 = vunpack.i.l.bf16 %v14960_v8  ;;  %v9129_v8 = vunpack.i.h.bf16 %v14957_v38  ;;  %v9139_v22 = vunpack.i.h.bf16 %v14978_v42  ;;  %v6391_v20 = vsel %vm3019_vm14, %v6359_v15, %v9119_v13  ;;  %v16228_v42 = vld [vmem:[#allocation40_spill] sm:$0xff] }
 0x7f5   : > { %6743 = vmatprep.mubr.f32.mxu1 %v6484_v41  ;;  %v15036_v39 = vpop.f32.mrb[160].mxu0  ;;  %v15038_v34 = vpop.permute.xlu1 %9166  ;;  %v6390_v41 = vsel %vm3019_vm14, %v6358_v2, %v9104_v62  ;;  %v9134_v33 = vunpack.i.h.bf16 %v14983_v47  ;;  %v9144_v37 = vunpack.i.h.bf16 %v15002_v27  ;;  %v6328_v14 = vsel %vm1655_vm11, %v16227_v1, %v9124_v0  ;;  %v16230_v0 = vld [vmem:[#allocation62_spill] sm:$0xff] }
 0x7f6   : > { %v15042_v25 = vpop.permute.xlu0 %9161  ;;  %v15044_v57 = vpop.f32.mrb[161].mxu0  ;;  %v6424_v60 = vsel %vm1655_vm11, %v16226_v61, %v9123_v36  ;;  %v9148_v32 = vunpack.i.l.bf16 %v14998_v50  ;;  %v9153_v16 = vunpack.i.l.bf16 %v15023_v56  ;;  %v9149_v10 = vunpack.i.h.bf16 %v14998_v50  ;;  %v16229_v36 = vld [vmem:[#allocation23_spill] sm:$0xff] }
 0x7f7   : > { %v6360_v63 = vsel %vm2986_vm13, %v6328_v14, %v9129_v8  ;;  %v9158_v19 = vunpack.i.l.bf16 %v15019_v23  ;;  %v9154_v59 = vunpack.i.h.bf16 %v15023_v56  ;;  %v9168_v48 = vunpack.i.l.bf16 %v15038_v34 }
 0x7f8   : > { %6744 = vmatmul.mubr.f32.gmra.mrb[112].mxu1 %v6388_v58  ;;  %v6392_v13 = vsel %vm3019_vm14, %v6360_v63, %v9134_v33  ;;  %v9163_v50 = vunpack.i.l.bf16 %v15042_v25  ;;  %v9159_v56 = vunpack.i.h.bf16 %v15019_v23 }
 0x7f9   : > { %6748 = vmatprep.mubr.f32.mxu1 %v6485_v54  ;;  %v15059_v51 = vpop.permute.xlu1 %9176  ;;  %v6456_v54 = vsel %vm2986_vm13, %v6424_v60, %v9128_v9  ;;  %v9164_v60 = vunpack.i.h.bf16 %v15042_v25 }
 0x7fa   : > { %v15063_v18 = vpop.permute.xlu0 %9171  ;;  %v6488_v38 = vsel %vm3019_vm14, %v6456_v54, %v9133_v29  ;;  %v9169_v29 = vunpack.i.h.bf16 %v15038_v34  ;;  %v9178_v33 = vunpack.i.l.bf16 %v15059_v51  ;;  %v16232_v34 = vld [vmem:[#allocation83_spill] sm:$0xff]  ;;  %v9179_v14 = vunpack.i.h.bf16 %v15059_v51 }
 0x7fb   : > { %v9173_v15 = vunpack.i.l.bf16 %v15063_v18  ;;  %v6427_v54 = vsel %vm1655_vm11, %v16232_v34, %v9168_v48  ;;  %v16237_v34 = vld [vmem:[#allocation60_spill] sm:$0xff] }
 0x7fc   : > { %6749 = vmatmul.mubr.f32.gmra.mrb[114].mxu1 %v6389_v46  ;;  %v6425_v46 = vsel %vm1655_vm11, %v16228_v42, %v9138_v7  ;;  %v16233_v42 = vld [vmem:[#allocation30_spill] sm:$0xff] }
 0x7fd   : > { %6753 = vmatprep.mubr.f32.mxu1 %v6486_v52  ;;  %v15076_v5 = vpop.f32.mrb[162].mxu0  ;;  %v15078_v4 = vpop.permute.xlu1 %9186  ;;  %v6457_v27 = vsel %vm2986_vm13, %v6425_v46, %v9143_v43  ;;  %v6329_v52 = vsel %vm1655_vm11, %v16229_v36, %v9139_v22  ;;  %v9174_v43 = vunpack.i.h.bf16 %v15063_v18  ;;  %v16231_v22 = vld [vmem:[#allocation57_spill] sm:$0xff]  ;;  %v6459_v18 = vsel %vm2986_vm13, %v6427_v54, %v9173_v15 }
 0x7fe   : > { %v15082_v21 = vpop.permute.xlu0 %9181  ;;  %v15084_v35 = vpop.f32.mrb[163].mxu0  ;;  %v6361_v2 = vsel %vm2986_vm13, %v6329_v52, %v9144_v37  ;;  %v6489_v9 = vsel %vm3019_vm14, %v6457_v27, %v9148_v32  ;;  %v6331_v46 = vsel %vm1655_vm11, %v16233_v42, %v9169_v29  ;;  %v9188_v27 = vunpack.i.l.bf16 %v15078_v4  ;;  %v16235_v29 = vld [vmem:[#allocation33_spill] sm:$0xff] }
 0x7ff   : > { %v6393_v61 = vsel %vm3019_vm14, %v6361_v2, %v9149_v10  ;;  %v9183_v37 = vunpack.i.l.bf16 %v15082_v21  ;;  %v9184_v10 = vunpack.i.h.bf16 %v15082_v21  ;;  %v6363_v36 = vsel %vm2986_vm13, %v6331_v46, %v9174_v43 }
 0x800   : > { %6754 = vmatmul.mubr.f32.gmra.mrb[116].mxu1 %v6390_v41  ;;  %v6426_v41 = vsel %vm1655_vm11, %v16230_v0, %v9153_v16  ;;  %v9189_v21 = vunpack.i.h.bf16 %v15078_v4  ;;  %v6395_v0 = vsel %vm3019_vm14, %v6363_v36, %v9179_v14 }
 0x801   : > { %6758 = vmatprep.mubr.f32.mxu1 %v6487_v31  ;;  %v15099_v28 = vpop.permute.xlu1 %9196  ;;  %v6458_v8 = vsel %vm2986_vm13, %v6426_v41, %v9158_v19  ;;  %v6491_v19 = vsel %vm3019_vm14, %v6459_v18, %v9178_v33 }
 0x802   : > { %v15103_v58 = vpop.permute.xlu0 %9191  ;;  %v6490_v23 = vsel %vm3019_vm14, %v6458_v8, %v9163_v50  ;;  %v9198_v52 = vunpack.i.l.bf16 %v15099_v28  ;;  %v9199_v50 = vunpack.i.h.bf16 %v15099_v28  ;;  %v16236_v28 = vld [vmem:[#allocation66_spill] sm:$0xff] }
 0x803   : > { %v9193_v51 = vunpack.i.l.bf16 %v15103_v58  ;;  %v9194_v41 = vunpack.i.h.bf16 %v15103_v58 }
 0x804   : > { %6759 = vmatmul.mubr.f32.gmra.mrb[118].mxu1 %v6391_v20  ;;  %v6330_v20 = vsel %vm1655_vm11, %v16231_v22, %v9154_v59  ;;  %v16234_v59 = vld [vmem:[#allocation64_spill] sm:$0xff]  ;;  %v6429_v8 = vsel %vm1655_vm11, %v16236_v28, %v9198_v52  ;;  %v6333_v54 = vsel %vm1655_vm11, %v16237_v34, %v9199_v50  ;;  %v16241_v28 = vld [vmem:[#allocation27_spill] sm:$0xff] }
 0x805   : > { %6763 = vmatprep.mubr.f32.mxu1 %v6488_v38  ;;  %v15116_v62 = vpop.f32.mrb[164].mxu0  ;;  %v15118_v47 = vpop.permute.xlu1 %9206  ;;  %v6362_v38 = vsel %vm2986_vm13, %v6330_v20, %v9159_v56 }
 0x806   : > { %v15122_v26 = vpop.permute.xlu0 %9201  ;;  %v15124_v30 = vpop.f32.mrb[165].mxu0  ;;  %v6394_v63 = vsel %vm3019_vm14, %v6362_v38, %v9164_v60  ;;  %v9208_v60 = vunpack.i.l.bf16 %v15118_v47  ;;  %v9209_v20 = vunpack.i.h.bf16 %v15118_v47 }
 0x807   : > { %v9203_v2 = vunpack.i.l.bf16 %v15122_v26  ;;  %v9204_v15 = vunpack.i.h.bf16 %v15122_v26 }
 0x808   : > { %6764 = vmatmul.mubr.f32.gmra.mrb[120].mxu1 %v6392_v13  ;;  %v6428_v13 = vsel %vm1655_vm11, %v16234_v59, %v9183_v37 }
 0x809   : > { %6768 = vmatprep.mubr.f32.mxu1 %v6489_v9  ;;  %v15139_v7 = vpop.permute.xlu1 %9216  ;;  %v6460_v56 = vsel %vm2986_vm13, %v6428_v13, %v9188_v27  ;;  %v6461_v26 = vsel %vm2986_vm13, %v6429_v8, %v9203_v2  ;;  %v6365_v42 = vsel %vm2986_vm13, %v6333_v54, %v9204_v15 }
 0x80a   : > { %v15143_v31 = vpop.permute.xlu0 %9211  ;;  %v6492_v4 = vsel %vm3019_vm14, %v6460_v56, %v9193_v51  ;;  %v9218_v18 = vunpack.i.l.bf16 %v15139_v7  ;;  %v6493_v27 = vsel %vm3019_vm14, %v6461_v26, %v9208_v60  ;;  %v6397_v2 = vsel %vm3019_vm14, %v6365_v42, %v9209_v20 }
 0x80b   : > { %v9213_v43 = vunpack.i.l.bf16 %v15143_v31  ;;  %v9214_v14 = vunpack.i.h.bf16 %v15143_v31  ;;  %v9219_v31 = vunpack.i.h.bf16 %v15139_v7 }
 0x80c   : > { %6769 = vmatmul.mubr.f32.gmra.mrb[122].mxu1 %v6393_v61  ;;  %v6332_v61 = vsel %vm1655_vm11, %v16235_v29, %v9184_v10  ;;  %v16238_v10 = vld [vmem:[#allocation41_spill] sm:$0xff] }
 0x80d   : > { %6773 = vmatprep.mubr.f32.mxu1 %v6490_v23  ;;  %v15156_v1 = vpop.f32.mrb[166].mxu0  ;;  %v15158_v25 = vpop.permute.xlu1 %9226  ;;  %v6364_v23 = vsel %vm2986_vm13, %v6332_v61, %v9189_v21 }
 0x80e   : > { %v15162_v32 = vpop.permute.xlu0 %9221  ;;  %v15164_v16 = vpop.f32.mrb[167].mxu0  ;;  %v6396_v38 = vsel %vm3019_vm14, %v6364_v23, %v9194_v41  ;;  %v9228_v46 = vunpack.i.l.bf16 %v15158_v25  ;;  %v16239_v41 = vld [vmem:[#allocation48_spill] sm:$0xff] }
 0x80f   : > { %v9223_v47 = vunpack.i.l.bf16 %v15162_v32  ;;  %v9224_v21 = vunpack.i.h.bf16 %v15162_v32  ;;  %v6334_v15 = vsel %vm1655_vm11, %v16239_v41, %v9214_v14 }
 0x810   : > { %6774 = vmatmul.mubr.f32.gmra.mrb[124].mxu1 %v6394_v63  ;;  %v6430_v63 = vsel %vm1655_vm11, %v16238_v10, %v9213_v43 }
 0x811   : > { %6778 = vmatprep.mubr.f32.mxu1 %v6491_v19  ;;  %v15179_v48 = vpop.permute.xlu1 %9236  ;;  %v9229_v19 = vunpack.i.h.bf16 %v15158_v25  ;;  %v16240_v25 = vld [vmem:[#allocation4_spill] sm:$0xff] }
 0x812   : > { %v9232_v9 = vpop.permute.xlu0 %9231  ;;  %v9238_v56 = vunpack.i.l.bf16 %v15179_v48  ;;  %v6431_v61 = vsel %vm1655_vm11, %v16240_v25, %v9228_v46  ;;  %v9239_v32 = vunpack.i.h.bf16 %v15179_v48 }
 0x813   : > { %v9233_v36 = vunpack.i.l.bf16 %v9232_v9  ;;  %v9234_v50 = vunpack.i.h.bf16 %v9232_v9  ;;  %v6335_v8 = vsel %vm1655_vm11, %v16241_v28, %v9229_v19 }
 0x814   : > { %6779 = vmatmul.mubr.f32.gmra.mrb[126].mxu1 %v6395_v0  ;;  %v6462_v0 = vsel %vm2986_vm13, %v6430_v63, %v9218_v18 }
 0x815   : > { %6783 = vmatprep.mubr.f32.mxu1 %v6492_v4  ;;  %v15194_v22 = vpop.f32.mrb[168].mxu0  ;;  %v15196_v58 = vpop.permute.xlu1 %9246  ;;  %v6494_v7 = vsel %vm3019_vm14, %v6462_v0, %v9223_v47  ;;  %v6463_v43 = vsel %vm2986_vm13, %v6431_v61, %v9233_v36  ;;  %v6366_v4 = vsel %vm2986_vm13, %v6334_v15, %v9219_v31  ;;  %v6367_v34 = vsel %vm2986_vm13, %v6335_v8, %v9234_v50  ;;  %v16243_v31 = vld [vmem:[#allocation58_spill] sm:$0xff]  ;;  %v16244_v0 = vld [vmem:[#allocation39_spill] sm:$0xff] }
 0x816   : > { %v9242_v33 = vpop.permute.xlu0 %9241  ;;  %v15200_v37 = vpop.f32.mrb[169].mxu0  ;;  %v9248_v26 = vunpack.i.l.bf16 %v15196_v58  ;;  %v6398_v23 = vsel %vm3019_vm14, %v6366_v4, %v9224_v21  ;;  %v6495_v14 = vsel %vm3019_vm14, %v6463_v43, %v9238_v56  ;;  %v9249_v47 = vunpack.i.h.bf16 %v15196_v58  ;;  %v16245_v43 = vld [vmem:[#allocation59_spill] sm:$0xff] }
 0x817   : > { %v9243_v29 = vunpack.i.l.bf16 %v9242_v33  ;;  %v9244_v20 = vunpack.i.h.bf16 %v9242_v33  ;;  %v6399_v33 = vsel %vm3019_vm14, %v6367_v34, %v9239_v32 }
 0x818   : > { %6784 = vmatmul.mubr.f32.gmra.mrb[128].mxu1 %v6396_v38  ;;  %v16242_v38 = vld [vmem:[#allocation81_spill] sm:$0xff] }
 0x819   : > { %6788 = vmatprep.mubr.f32.mxu1 %v6493_v27  ;;  %v15214_v52 = vpop.f32.mrb[170].mxu0  ;;  %v9257_v51 = vpop.permute.xlu1 %9256  ;;  %v6432_v48 = vsel %vm1655_vm11, %v16242_v38, %v9243_v29  ;;  %v6336_v19 = vsel %vm1655_vm11, %v16243_v31, %v9244_v20  ;;  %v16246_v20 = vld [vmem:[#allocation5_spill] sm:$0xff] }
 0x81a   : > { %v9252_v59 = vpop.permute.xlu0 %9251  ;;  %v15218_v13 = vpop.f32.mrb[171].mxu0  ;;  %v9258_v54 = vunpack.i.l.bf16 %v9257_v51  ;;  %v9259_v10 = vunpack.i.h.bf16 %v9257_v51  ;;  %v6464_v36 = vsel %vm2986_vm13, %v6432_v48, %v9248_v26  ;;  %v6368_v29 = vsel %vm2986_vm13, %v6336_v19, %v9249_v47  ;;  %v16248_v47 = vld [vmem:[#allocation38_spill] sm:$0xff] }
 0x81b   : > { %v9253_v18 = vunpack.i.l.bf16 %v9252_v59  ;;  %v9254_v63 = vunpack.i.h.bf16 %v9252_v59 }
 0x81c   : > { %6789 = vmatmul.mubr.f32.gmra.mrb[130].mxu1 %v6397_v2  ;;  %v6433_v41 = vsel %vm1655_vm11, %v16244_v0, %v9258_v54  ;;  %v6337_v32 = vsel %vm1655_vm11, %v16245_v43, %v9259_v10 }
 0x81d   : > { %6793 = vmatprep.mubr.f32.mxu1 %v6494_v7  ;;  %v9267_v60 = vpop.permute.xlu1 %9266  ;;  %v6496_v50 = vsel %vm3019_vm14, %v6464_v36, %v9253_v18  ;;  %v6400_v61 = vsel %vm3019_vm14, %v6368_v29, %v9254_v63  ;;  %v16247_v18 = vld [vmem:[#allocation79_spill] sm:$0xff]  ;;  %v16250_v29 = vld [vmem:[#allocation9_spill] sm:$0xff] }
 0x81e   : > { %v9262_v9 = vpop.permute.xlu0 %9261  ;;  %v9268_v2 = vunpack.i.l.bf16 %v9267_v60  ;;  %v9269_v7 = vunpack.i.h.bf16 %v9267_v60 }
 0x81f   : > { %v9263_v42 = vunpack.i.l.bf16 %v9262_v9  ;;  %v9264_v21 = vunpack.i.h.bf16 %v9262_v9 }
 0x820   : > { %6794 = vmatmul.mubr.f32.gmra.mrb[132].mxu1 %v6398_v23 }
 0x821   : > { %6798 = vmatprep.mubr.f32.mxu1 %v6495_v14  ;;  %v9277_v46 = vpop.permute.xlu1 %9276  ;;  %v6465_v56 = vsel %vm2986_vm13, %v6433_v41, %v9263_v42  ;;  %v6369_v28 = vsel %vm2986_vm13, %v6337_v32, %v9264_v21  ;;  %v16249_v21 = vld [vmem:[#allocation8_spill] sm:$0xff] }
 0x822   : > { %v9272_v27 = vpop.permute.xlu0 %9271  ;;  %v9278_v9 = vunpack.i.l.bf16 %v9277_v46  ;;  %v6497_v4 = vsel %vm3019_vm14, %v6465_v56, %v9268_v2  ;;  %v9279_v8 = vunpack.i.h.bf16 %v9277_v46  ;;  %v6401_v42 = vsel %vm3019_vm14, %v6369_v28, %v9269_v7 }
 0x823   : > { %v9273_v15 = vunpack.i.l.bf16 %v9272_v27  ;;  %v9274_v51 = vunpack.i.h.bf16 %v9272_v27 }
 0x824   : > { %6799 = vmatmul.mubr.f32.gmra.mrb[134].mxu1 %v6399_v33 }
 0x825   : > { %6803 = vmatprep.mubr.f32.mxu1 %v6496_v50  ;;  %v9282_v58 = vpop.permute.xlu1 %9281  ;;  %v6434_v23 = vsel %vm1655_vm11, %v16246_v20, %v9273_v15  ;;  %v6338_v14 = vsel %vm1655_vm11, %v16247_v18, %v9274_v51 }
 0x826   : > { %v9287_v59 = vpop.permute.xlu0 %9286  ;;  %v9283_v25 = vunpack.i.l.bf16 %v9282_v58  ;;  %v9284_v34 = vunpack.i.h.bf16 %v9282_v58  ;;  %v6466_v46 = vsel %vm2986_vm13, %v6434_v23, %v9278_v9  ;;  %v6370_v63 = vsel %vm2986_vm13, %v6338_v14, %v9279_v8 }
 0x827   : > { %v9288_v60 = vunpack.i.l.bf16 %v9287_v59  ;;  %v9289_v36 = vunpack.i.h.bf16 %v9287_v59 }
 0x828   : > { %6804 = vmatmul.mubr.f32.gmra.mrb[136].mxu1 %v6400_v61  ;;  %v6435_v27 = vsel %vm1655_vm11, %v16248_v47, %v9283_v25  ;;  %v6339_v50 = vsel %vm1655_vm11, %v16249_v21, %v9284_v34 }
 0x829   : > { %6808 = vmatprep.mubr.f32.mxu1 %v6497_v4  ;;  %v9292_v26 = vpop.permute.xlu1 %9291  ;;  %v6467_v2 = vsel %vm2986_vm13, %v6435_v27, %v9288_v60  ;;  %v6371_v61 = vsel %vm2986_vm13, %v6339_v50, %v9289_v36  ;;  %v16251_v4 = vld [vmem:[#allocation52_spill] sm:$0xff] }
 0x82a   : > { %v9297_v54 = vpop.permute.xlu0 %9296  ;;  %v9293_v7 = vunpack.i.l.bf16 %v9292_v26  ;;  %v9294_v8 = vunpack.i.h.bf16 %v9292_v26  ;;  %v16252_v26 = vld [vmem:[#allocation7_spill] sm:$0xff] }
 0x82b   : > { %v9299_v38 = vunpack.i.h.bf16 %v9297_v54  ;;  %v9298_v48 = vunpack.i.l.bf16 %v9297_v54 }
 0x82c   : > { %6809 = vmatmul.mubr.f32.gmra.mrb[138].mxu1 %v6401_v42 }
 0x82d   : > { %v9302_v33 = vpop.permute.xlu1 %9301  ;;  %v6498_v10 = vsel %vm3019_vm14, %v6466_v46, %v9298_v48  ;;  %v6402_v58 = vsel %vm3019_vm14, %v6370_v63, %v9299_v38 }
 0x82e   : > { %v9303_v31 = vunpack.i.l.bf16 %v9302_v33  ;;  %v9307_v19 = vpop.permute.xlu0 %9306  ;;  %6813 = vmatprep.mubr.f32.mxu1 %v6498_v10  ;;  %v9304_v0 = vunpack.i.h.bf16 %v9302_v33  ;;  %v16253_v33 = vld [vmem:[#allocation35_spill] sm:$0xff] }
 0x82f   : > { %v9309_v41 = vunpack.i.h.bf16 %v9307_v19  ;;  %v9308_v15 = vunpack.i.l.bf16 %v9307_v19 }
 0x830   : > { %6814 = vmatmul.mubr.f32.gmra.mrb[140].mxu1 %v6402_v58  ;;  %v6499_v56 = vsel %vm3019_vm14, %v6467_v2, %v9303_v31  ;;  %v6403_v9 = vsel %vm3019_vm14, %v6371_v61, %v9304_v0  ;;  %v15291_v2 = vld [vmem:[%s15439_s8] ss:$0 sm:$0xff] }
 0x831   : > { %v9317_v51 = vpop.permute.xlu1 %9316  ;;  %6818 = vmatprep.mubr.f32.mxu1 %v6499_v56  ;;  %v6436_v59 = vsel %vm1655_vm11, %v16250_v29, %v9308_v15  ;;  %v6340_v28 = vsel %vm1655_vm11, %v16251_v4, %v9309_v41  ;;  %v16254_v41 = vld [vmem:[#allocation82_spill] sm:$0xff] }
 0x832   : > { %v9312_v25 = vpop.permute.xlu0 %9311  ;;  %v9319_v20 = vunpack.i.h.bf16 %v9317_v51  ;;  %v9318_v23 = vunpack.i.l.bf16 %v9317_v51  ;;  %v6468_v34 = vsel %vm2986_vm13, %v6436_v59, %v9293_v7  ;;  %v6372_v48 = vsel %vm2986_vm13, %v6340_v28, %v9294_v8  ;;  %v16255_v29 = vld [vmem:[#allocation54_spill] sm:$0xff] }
 0x833   : > { %v9314_v43 = vunpack.i.h.bf16 %v9312_v25  ;;  %v9313_v32 = vunpack.i.l.bf16 %v9312_v25  ;;  %v16257_v8 = vld [vmem:[#allocation42_spill] sm:$0xff] }
 0x834   : > { %6819 = vmatmul.mubr.f32.gmra.mrb[142].mxu1 %v6403_v9  ;;  %v6437_v46 = vsel %vm1655_vm11, %v16252_v26, %v9318_v23  ;;  %v6341_v10 = vsel %vm1655_vm11, %v16253_v33, %v9319_v20  ;;  %v16260_v33 = vld [vmem:[#allocation72_spill] sm:$0xff] }
 0x835   : > { %v9327_v60 = vpop.permute.xlu1 %9326  ;;  %v6500_v54 = vsel %vm3019_vm14, %v6468_v34, %v9313_v32  ;;  %v6404_v27 = vsel %vm3019_vm14, %v6372_v48, %v9314_v43  ;;  %v16256_v43 = vld [vmem:[#allocation71_spill] sm:$0xff] }
 0x836   : > { %v9329_v18 = vunpack.i.h.bf16 %v9327_v60  ;;  %v9328_v14 = vunpack.i.l.bf16 %v9327_v60  ;;  %v9322_v38 = vpop.permute.xlu0 %9321  ;;  %6823 = vmatprep.mubr.f32.mxu1 %v6500_v54  ;;  %v16258_v54 = vld [vmem:[#allocation90_spill] sm:$0xff] }
 0x837   : > { %v9324_v42 = vunpack.i.h.bf16 %v9322_v38  ;;  %v9323_v47 = vunpack.i.l.bf16 %v9322_v38 }
 0x838   : > { %6824 = vmatmul.mubr.f32.gmra.mrb[144].mxu1 %v6404_v27 }
 0x839   : > { %v6469_v63 = vsel %vm2986_vm13, %v6437_v46, %v9323_v47  ;;  %v6373_v36 = vsel %vm2986_vm13, %v6341_v10, %v9324_v42  ;;  %v16259_v42 = vld [vmem:[#allocation55_spill] sm:$0xff] }
 0x83a   : > { %v6501_v31 = vsel %vm3019_vm14, %v6469_v63, %v9328_v14  ;;  %v6405_v19 = vsel %vm3019_vm14, %v6373_v36, %v9329_v18 }
 0x83b   : > { %6828 = vmatprep.mubr.f32.mxu1 %v6501_v31 }
 0x83c   : > { %6829 = vmatmul.mubr.f32.gmra.mrb[146].mxu1 %v6405_v19  ;;  %v16261_v19 = vld [vmem:[#allocation43_spill] sm:$0xff] }
 0x890   : > { %v6675_v21 = vpop.f32.mrb[84].mxu1 }
 0x891   : > { %v6676_v50 = vadd.f32 %v15291_v2, %v6675_v21  ;;  %v6677_v0 = vpop.f32.mrb[85].mxu1 }
 0x893   : > { %v6901_v15 = vadd.f32 %v16254_v41, %v6676_v50 }
 0x895   : > { %7059 = vst.msk [vmem:[%s15299_s24] sm:$0xff] %vm1424_vm4, %v6901_v15 }
 0x897   : > { %v6680_v58 = vpop.f32.mrb[86].mxu1 }
 0x898   : > { %v6681_v56 = vadd.f32 %v15291_v2, %v6680_v58  ;;  %v6682_v51 = vpop.f32.mrb[87].mxu1 }
 0x89a   : > { %v6906_v59 = vadd.f32 %v16255_v29, %v6681_v56 }
 0x89b   : > { %v6685_v7 = vpop.f32.mrb[88].mxu1 }
 0x89c   : > { %7060 = vst.msk [vmem:[%s15299_s24 + $0x8] sm:$0xff] %vm1424_vm4, %v6906_v59  ;;  %v6686_v25 = vadd.f32 %v15291_v2, %v6685_v7  ;;  %v6687_v61 = vpop.f32.mrb[89].mxu1 }
 0x89e   : > { %v6911_v32 = vadd.f32 %v16256_v43, %v6686_v25 }
 0x89f   : > { %v6690_v9 = vpop.f32.mrb[90].mxu1 }
 0x8a0   : > { %7061 = vst.msk [vmem:[%s15299_s24 + $0x10] sm:$0xff] %vm1424_vm4, %v6911_v32  ;;  %v6691_v4 = vadd.f32 %v15291_v2, %v6690_v9  ;;  %v6692_v28 = vpop.f32.mrb[91].mxu1 }
 0x8a2   : > { %v6916_v20 = vadd.f32 %v16257_v8, %v6691_v4 }
 0x8a3   : > { %v6695_v23 = vpop.f32.mrb[92].mxu1 }
 0x8a4   : > { %7062 = vst.msk [vmem:[%s15299_s24 + $0x18] sm:$0xff] %vm1424_vm4, %v6916_v20  ;;  %v6696_v34 = vadd.f32 %v15291_v2, %v6695_v23  ;;  %v6697_v60 = vpop.f32.mrb[93].mxu1 }
 0x8a6   : > { %v6921_v18 = vadd.f32 %v16258_v54, %v6696_v34 }
 0x8a7   : > { %v6700_v14 = vpop.f32.mrb[94].mxu1 }
 0x8a8   : > { %7063 = vst.msk [vmem:[%s15299_s24 + $0x20] sm:$0xff] %vm1424_vm4, %v6921_v18  ;;  %v6701_v38 = vadd.f32 %v15291_v2, %v6700_v14  ;;  %v6702_v48 = vpop.f32.mrb[95].mxu1 }
 0x8aa   : > { %v6926_v47 = vadd.f32 %v16259_v42, %v6701_v38 }
 0x8ab   : > { %v6705_v27 = vpop.f32.mrb[96].mxu1 }
 0x8ac   : > { %7064 = vst.msk [vmem:[%s15299_s24 + $0x28] sm:$0xff] %vm1424_vm4, %v6926_v47  ;;  %v6706_v26 = vadd.f32 %v15291_v2, %v6705_v27  ;;  %v6707_v46 = vpop.f32.mrb[97].mxu1 }
 0x8ae   : > { %v6931_v10 = vadd.f32 %v16260_v33, %v6706_v26 }
 0x8af   : > { %v6710_v63 = vpop.f32.mrb[98].mxu1 }
 0x8b0   : > { %7065 = vst.msk [vmem:[%s15299_s24 + $0x30] sm:$0xff] %vm1424_vm4, %v6931_v10  ;;  %v6711_v36 = vadd.f32 %v15291_v2, %v6710_v63  ;;  %v6712_v31 = vpop.f32.mrb[99].mxu1 }
 0x8b2   : > { %v6936_v21 = vadd.f32 %v16261_v19, %v6711_v36 }
 0x8b3   : > { %v6715_v50 = vpop.f32.mrb[100].mxu1 }
 0x8b4   : > { %7066 = vst.msk [vmem:[%s15299_s24 + $0x38] sm:$0xff] %vm1424_vm4, %v6936_v21  ;;  %v6716_v0 = vadd.f32 %v15291_v2, %v6715_v50  ;;  %v6717_v41 = vpop.f32.mrb[101].mxu1 }
 0x8b6   : > { %v6941_v15 = vadd.f32 %v14811_v6, %v6716_v0 }
 0x8b7   : > { %v6720_v58 = vpop.f32.mrb[102].mxu1 }
 0x8b8   : > { %7067 = vst.msk [vmem:[%s15299_s24 + $0x40] sm:$0xff] %vm1424_vm4, %v6941_v15  ;;  %v6721_v56 = vadd.f32 %v15291_v2, %v6720_v58  ;;  %v6722_v51 = vpop.f32.mrb[103].mxu1 }
 0x8ba   : > { %v6946_v29 = vadd.f32 %v14804_v49, %v6721_v56 }
 0x8bb   : > { %v6725_v59 = vpop.f32.mrb[104].mxu1 }
 0x8bc   : > { %7068 = vst.msk [vmem:[%s15299_s24 + $0x48] sm:$0xff] %vm1424_vm4, %v6946_v29  ;;  %v6726_v7 = vadd.f32 %v15291_v2, %v6725_v59  ;;  %v6727_v25 = vpop.f32.mrb[105].mxu1 }
 0x8be   : > { %v6951_v61 = vadd.f32 %v14842_v3, %v6726_v7 }
 0x8bf   : > { %v6730_v43 = vpop.f32.mrb[106].mxu1 }
 0x8c0   : > { %7069 = vst.msk [vmem:[%s15299_s24 + $0x50] sm:$0xff] %vm1424_vm4, %v6951_v61  ;;  %v6731_v6 = vadd.f32 %v15291_v2, %v6730_v43  ;;  %v6732_v32 = vpop.f32.mrb[107].mxu1 }
 0x8c2   : > { %v6956_v9 = vadd.f32 %v14833_v40, %v6731_v6 }
 0x8c3   : > { %v6735_v4 = vpop.f32.mrb[108].mxu1 }
 0x8c4   : > { %7070 = vst.msk [vmem:[%s15299_s24 + $0x58] sm:$0xff] %vm1424_vm4, %v6956_v9  ;;  %v6736_v49 = vadd.f32 %v15291_v2, %v6735_v4  ;;  %v6737_v28 = vpop.f32.mrb[109].mxu1 }
 0x8c6   : > { %v6961_v8 = vadd.f32 %v14880_v53, %v6736_v49 }
 0x8c7   : > { %v6740_v20 = vpop.f32.mrb[110].mxu1 }
 0x8c8   : > { %7071 = vst.msk [vmem:[%s15299_s24 + $0x60] sm:$0xff] %vm1424_vm4, %v6961_v8  ;;  %v6741_v3 = vadd.f32 %v15291_v2, %v6740_v20  ;;  %v6742_v23 = vpop.f32.mrb[111].mxu1 }
 0x8ca   : > { %v6966_v34 = vadd.f32 %v14870_v55, %v6741_v3 }
 0x8cb   : > { %v6745_v60 = vpop.f32.mrb[112].mxu1 }
 0x8cc   : > { %7072 = vst.msk [vmem:[%s15299_s24 + $0x68] sm:$0xff] %vm1424_vm4, %v6966_v34  ;;  %v6746_v40 = vadd.f32 %v15291_v2, %v6745_v60  ;;  %v6747_v54 = vpop.f32.mrb[113].mxu1 }
 0x8ce   : > { %v6971_v18 = vadd.f32 %v14921_v45, %v6746_v40 }
 0x8cf   : > { %v6750_v14 = vpop.f32.mrb[114].mxu1 }
 0x8d0   : > { %7073 = vst.msk [vmem:[%s15299_s24 + $0x70] sm:$0xff] %vm1424_vm4, %v6971_v18  ;;  %v6751_v53 = vadd.f32 %v15291_v2, %v6750_v14  ;;  %v6752_v38 = vpop.f32.mrb[115].mxu1 }
 0x8d2   : > { %v6976_v48 = vadd.f32 %v14912_v12, %v6751_v53 }
 0x8d3   : > { %v6755_v42 = vpop.f32.mrb[116].mxu1 }
 0x8d4   : > { %7074 = vst.msk [vmem:[%s15299_s24 + $0x78] sm:$0xff] %vm1424_vm4, %v6976_v48  ;;  %v6756_v55 = vadd.f32 %v15291_v2, %v6755_v42  ;;  %v6757_v47 = vpop.f32.mrb[117].mxu1 }
 0x8d6   : > { %v6981_v27 = vadd.f32 %v14962_v11, %v6756_v55 }
 0x8d7   : > { %v6760_v26 = vpop.f32.mrb[118].mxu1 }
 0x8d8   : > { %7075 = vst.msk [vmem:[%s15299_s24 + $0x80] sm:$0xff] %vm1424_vm4, %v6981_v27  ;;  %v6761_v45 = vadd.f32 %v15291_v2, %v6760_v26  ;;  %v6762_v46 = vpop.f32.mrb[119].mxu1 }
 0x8da   : > { %v6986_v33 = vadd.f32 %v14955_v24, %v6761_v45 }
 0x8db   : > { %v6765_v10 = vpop.f32.mrb[120].mxu1 }
 0x8dc   : > { %7076 = vst.msk [vmem:[%s15299_s24 + $0x88] sm:$0xff] %vm1424_vm4, %v6986_v33  ;;  %v6766_v12 = vadd.f32 %v15291_v2, %v6765_v10  ;;  %v6767_v63 = vpop.f32.mrb[121].mxu1 }
 0x8de   : > { %v6991_v36 = vadd.f32 %v15004_v17, %v6766_v12 }
 0x8df   : > { %v6770_v31 = vpop.f32.mrb[122].mxu1 }
 0x8e0   : > { %7077 = vst.msk [vmem:[%s15299_s24 + $0x90] sm:$0xff] %vm1424_vm4, %v6991_v36  ;;  %v6771_v11 = vadd.f32 %v15291_v2, %v6770_v31  ;;  %v6772_v19 = vpop.f32.mrb[123].mxu1 }
 0x8e2   : > { %v6996_v21 = vadd.f32 %v14996_v44, %v6771_v11 }
 0x8e3   : > { %v6775_v50 = vpop.f32.mrb[124].mxu1 }
 0x8e4   : > { %7078 = vst.msk [vmem:[%s15299_s24 + $0x98] sm:$0xff] %vm1424_vm4, %v6996_v21  ;;  %v6776_v24 = vadd.f32 %v15291_v2, %v6775_v50  ;;  %v6777_v0 = vpop.f32.mrb[125].mxu1 }
 0x8e6   : > { %v7001_v41 = vadd.f32 %v15044_v57, %v6776_v24 }
 0x8e7   : > { %v6780_v15 = vpop.f32.mrb[126].mxu1 }
 0x8e8   : > { %7079 = vst.msk [vmem:[%s15299_s24 + $0xa0] sm:$0xff] %vm1424_vm4, %v7001_v41  ;;  %v6781_v17 = vadd.f32 %v15291_v2, %v6780_v15  ;;  %v6782_v58 = vpop.f32.mrb[127].mxu1 }
 0x8ea   : > { %v7006_v56 = vadd.f32 %v15036_v39, %v6781_v17 }
 0x8eb   : > { %v6785_v51 = vpop.f32.mrb[128].mxu1 }
 0x8ec   : > { %7080 = vst.msk [vmem:[%s15299_s24 + $0xa8] sm:$0xff] %vm1424_vm4, %v7006_v56  ;;  %v6786_v44 = vadd.f32 %v15291_v2, %v6785_v51  ;;  %v6787_v29 = vpop.f32.mrb[129].mxu1 }
 0x8ee   : > { %v7011_v59 = vadd.f32 %v15084_v35, %v6786_v44 }
 0x8ef   : > { %v6790_v7 = vpop.f32.mrb[130].mxu1 }
 0x8f0   : > { %7081 = vst.msk [vmem:[%s15299_s24 + $0xb0] sm:$0xff] %vm1424_vm4, %v7011_v59  ;;  %v6791_v57 = vadd.f32 %v15291_v2, %v6790_v7  ;;  %v6792_v25 = vpop.f32.mrb[131].mxu1 }
 0x8f2   : > { %v7016_v61 = vadd.f32 %v15076_v5, %v6791_v57 }
 0x8f3   : > { %v6795_v43 = vpop.f32.mrb[132].mxu1 }
 0x8f4   : > { %7082 = vst.msk [vmem:[%s15299_s24 + $0xb8] sm:$0xff] %vm1424_vm4, %v7016_v61  ;;  %v6796_v39 = vadd.f32 %v15291_v2, %v6795_v43  ;;  %v6797_v6 = vpop.f32.mrb[133].mxu1 }
 0x8f6   : > { %v7021_v32 = vadd.f32 %v15124_v30, %v6796_v39 }
 0x8f7   : > { %v6800_v9 = vpop.f32.mrb[134].mxu1 }
 0x8f8   : > { %7083 = vst.msk [vmem:[%s15299_s24 + $0xc0] sm:$0xff] %vm1424_vm4, %v7021_v32  ;;  %v6801_v35 = vadd.f32 %v15291_v2, %v6800_v9  ;;  %v6802_v4 = vpop.f32.mrb[135].mxu1 }
 0x8fa   : > { %v7026_v49 = vadd.f32 %v15116_v62, %v6801_v35 }
 0x8fb   : > { %v6805_v28 = vpop.f32.mrb[136].mxu1 }
 0x8fc   : > { %7084 = vst.msk [vmem:[%s15299_s24 + $0xc8] sm:$0xff] %vm1424_vm4, %v7026_v49  ;;  %v6806_v5 = vadd.f32 %v15291_v2, %v6805_v28  ;;  %v6807_v8 = vpop.f32.mrb[137].mxu1 }
 0x8fe   : > { %v7031_v20 = vadd.f32 %v15164_v16, %v6806_v5 }
 0x8ff   : > { %v6810_v3 = vpop.f32.mrb[138].mxu1 }
 0x900   : > { %7085 = vst.msk [vmem:[%s15299_s24 + $0xd0] sm:$0xff] %vm1424_vm4, %v7031_v20  ;;  %v6811_v30 = vadd.f32 %v15291_v2, %v6810_v3  ;;  %v6812_v23 = vpop.f32.mrb[139].mxu1 }
 0x902   : > { %v7036_v34 = vadd.f32 %v15156_v1, %v6811_v30 }
 0x903   : > { %v6815_v60 = vpop.f32.mrb[140].mxu1 }
 0x904   : > { %7086 = vst.msk [vmem:[%s15299_s24 + $0xd8] sm:$0xff] %vm1424_vm4, %v7036_v34  ;;  %v6816_v62 = vadd.f32 %v15291_v2, %v6815_v60  ;;  %v6817_v40 = vpop.f32.mrb[141].mxu1 }
 0x906   : > { %v7041_v54 = vadd.f32 %v15200_v37, %v6816_v62 }
 0x907   : > { %v6820_v16 = vpop.f32.mrb[142].mxu1 }
 0x908   : > { %7087 = vst.msk [vmem:[%s15299_s24 + $0xe0] sm:$0xff] %vm1424_vm4, %v7041_v54  ;;  %v6821_v18 = vadd.f32 %v15291_v2, %v6820_v16  ;;  %v6822_v14 = vpop.f32.mrb[143].mxu1 }
 0x90a   : > { %v7046_v53 = vadd.f32 %v15194_v22, %v6821_v18 }
 0x90b   : > { %v6825_v38 = vpop.f32.mrb[144].mxu1 }
 0x90c   : > { %7088 = vst.msk [vmem:[%s15299_s24 + $0xe8] sm:$0xff] %vm1424_vm4, %v7046_v53  ;;  %v6826_v1 = vadd.f32 %v15291_v2, %v6825_v38  ;;  %v6827_v48 = vpop.f32.mrb[145].mxu1 }
 0x90e   : > { %v7051_v42 = vadd.f32 %v15218_v13, %v6826_v1 }
 0x90f   : > { %v6830_v55 = vpop.f32.mrb[146].mxu1 }
 0x910   : > { %7089 = vst.msk [vmem:[%s15299_s24 + $0xf0] sm:$0xff] %vm1424_vm4, %v7051_v42  ;;  %v6831_v37 = vadd.f32 %v15291_v2, %v6830_v55  ;;  %v6832_v47 = vpop.f32.mrb[147].mxu1 }
 0x912   : > { %v7056_v27 = vadd.f32 %v15214_v52, %v6831_v37 }
 0x914   : > { %7090 = vst.msk [vmem:[%s15299_s24 + $0xf8] sm:$0xff] %vm1424_vm4, %v7056_v27 }
 0x915 PF: > { %s19_s30 = sadd.s32 1, %s9337_s30  }
 0x916   : > { %p16_p4 = scmp.ge.s32.totalorder %s19_s30, 4  }
 0x918   :  { %18 = sbr.rel (!%p16_p4) target bundleno = 1 (0x1), region = 86 }

</bundles_post_ra>
